<compile_context>
chip_gen: v5e
topology: v5e:2x2
jax: 0.10.0
libtpu: 0.0.40
codegen_flags: <defaults>
</compile_context>

<pallas_src>
import functools
import math

import jax
import jax.numpy as jnp
from jax.experimental import pallas as pl
from jax.experimental.pallas import tpu as pltpu  # noqa: F401  (TPU backend)


# --------------------------------------------------------------------------
# Fully fused forward kernel
# --------------------------------------------------------------------------

def _fused_forward_kernel(
    # --- TGNN inputs ---
    taps_ref,      # [T, N, K*Cn]  f32   causal-conv im2col taps
    A_ref,         # [T, N, N]     f32   row-normalised mean-agg adjacency
    convw_ref,     # [K*Cn, Cn]    f32
    convb_ref,     # [1, Cn]       f32
    sage1w_ref,    # [2, Cn, Hn]   f32   (0: lin_l on agg, 1: lin_r on root)
    sage1b_ref,    # [1, Hn]       f32
    sage2w_ref,    # [2, Hn, Hn]   f32
    sage2b_ref,    # [1, Hn]       f32
    wih_ref,       # [4, Hn, Hn]   f32   per-gate (i,f,g,o) input->hidden
    whh_ref,       # [4, Hn, Hn]   f32   per-gate hidden->hidden
    lstmb_ref,     # [4, 1, Hn]    f32   per-gate bias (b_ih + b_hh)
    # --- Transformer inputs ---
    xe_ref,        # [B*S, d]      f32   batch-major flattened edge features
    mask_ref,      # [B*S, B*S]    f32   block-diagonal additive mask
    wqkv_ref,      # [L*3*nh, d, dh] f32 per-(layer, q/k/v, head) projection
    bqkv_ref,      # [L*3*nh, 1, dh] f32
    outw_ref,      # [L*nh, dh, d] f32   per-head out-proj row blocks
    outb_ref,      # [L, 1, d]     f32
    ff1w_ref,      # [L, d, dff]   bf16
    ff1b_ref,      # [L, 1, dff]   f32
    ff2w_ref,      # [L, dff, d]   bf16
    ff2b_ref,      # [L, 1, d]     f32
    lngb_ref,      # [L*4, 1, d]   f32   (ln1_g, ln1_b, ln2_g, ln2_b) per layer
    # --- outputs ---
    h_out_ref,     # [N, Hn]
    a_out_ref,     # [B, d]
):
    f32 = jnp.float32

    # ---------------- TGNN branch ----------------
    T = taps_ref.shape[0]
    N, Hn = h_out_ref.shape

    convw = convw_ref[...]
    convb = convb_ref[...]
    s1_l, s1_r = sage1w_ref[0], sage1w_ref[1]
    s2_l, s2_r = sage2w_ref[0], sage2w_ref[1]
    s1b = sage1b_ref[...]
    s2b = sage2b_ref[...]

    h = jnp.zeros((N, Hn), f32)
    c = jnp.zeros((N, Hn), f32)
    for t in range(T):  # static unroll; LSTM carry stays in registers
        # CausalConv1d at timestep t == im2col taps @ flattened kernel
        x = jnp.dot(taps_ref[t], convw, preferred_element_type=f32) + convb
        A = A_ref[t]
        # SAGEConv1 (+relu): lin_l(mean_agg(x)) + lin_r(x)
        agg = jnp.dot(A, x, preferred_element_type=f32)
        h1 = (jnp.dot(agg, s1_l, preferred_element_type=f32)
              + jnp.dot(x, s1_r, preferred_element_type=f32) + s1b)
        h1 = jnp.maximum(h1, 0.0)
        # SAGEConv2
        agg2 = jnp.dot(A, h1, preferred_element_type=f32)
        h2 = (jnp.dot(agg2, s2_l, preferred_element_type=f32)
              + jnp.dot(h1, s2_r, preferred_element_type=f32) + s2b)
        # LSTM cell (gate order i,f,g,o); per-gate weights avoid lane-offset
        # slicing of a [*, 4H] gate matrix.
        gates = []
        for k in range(4):
            gates.append(jnp.dot(h2, wih_ref[k], preferred_element_type=f32)
                         + jnp.dot(h, whh_ref[k], preferred_element_type=f32)
                         + lstmb_ref[k])
        i_g = jax.nn.sigmoid(gates[0])
        f_g = jax.nn.sigmoid(gates[1])
        g_g = jnp.tanh(gates[2])
        o_g = jax.nn.sigmoid(gates[3])
        c = f_g * c + i_g * g_g
        h = o_g * jnp.tanh(c)
    h_out_ref[...] = h

    # ---------------- TransformerEncoder branch ----------------
    BS, d = xe_ref.shape
    B = a_out_ref.shape[0]
    S = BS // B
    L = outb_ref.shape[0]
    nh = outw_ref.shape[0] // L
    dh = outw_ref.shape[1]
    scale = 1.0 / math.sqrt(dh)

    mask = mask_ref[...]
    x = xe_ref[...]

    def layer_norm(y, g, b):
        mu = jnp.mean(y, axis=-1, keepdims=True)
        var = jnp.mean(jnp.square(y - mu), axis=-1, keepdims=True)
        return (y - mu) * jax.lax.rsqrt(var + 1e-5) * g + b

    for l in range(L):  # static unroll over encoder layers (post-norm, eval)
        attn = jnp.zeros((BS, d), f32) + outb_ref[l]          # out-proj bias
        for hh in range(nh):  # static unroll over heads
            iq = (l * 3 + 0) * nh + hh
            ik = (l * 3 + 1) * nh + hh
            iv = (l * 3 + 2) * nh + hh
            q = jnp.dot(x, wqkv_ref[iq], preferred_element_type=f32) + bqkv_ref[iq]
            k = jnp.dot(x, wqkv_ref[ik], preferred_element_type=f32) + bqkv_ref[ik]
            v = jnp.dot(x, wqkv_ref[iv], preferred_element_type=f32) + bqkv_ref[iv]
            # Block-diagonal mask keeps attention within each batch element.
            s = jnp.dot(q * scale, k.T, preferred_element_type=f32) + mask
            s = s - jnp.max(s, axis=-1, keepdims=True)
            p = jnp.exp(s)
            p = p * pl.reciprocal(jnp.sum(p, axis=-1, keepdims=True), approx=True)
            oh = jnp.dot(p, v, preferred_element_type=f32)             # [BS, dh]
            # Per-head slice of the output projection == concat(heads) @ W_out
            attn = attn + jnp.dot(oh, outw_ref[l * nh + hh],
                                  preferred_element_type=f32)
        h1e = layer_norm(x + attn, lngb_ref[l * 4 + 0], lngb_ref[l * 4 + 1])
        # FFN on the batch-flattened activation; bf16 weights, f32 accumulate.
        ff = jnp.dot(h1e.astype(ff1w_ref.dtype), ff1w_ref[l],
                     preferred_element_type=f32) + ff1b_ref[l]
        ff = jnp.maximum(ff, 0.0)
        ff = jnp.dot(ff.astype(ff2w_ref.dtype), ff2w_ref[l],
                     preferred_element_type=f32) + ff2b_ref[l]
        x = layer_norm(h1e + ff, lngb_ref[l * 4 + 2], lngb_ref[l * 4 + 3])

    # a = encoder output at the last sequence position of every batch element
    a_out_ref[...] = jnp.concatenate(
        [x[bi * S + S - 1: bi * S + S, :] for bi in range(B)], axis=0)


# --------------------------------------------------------------------------
# Host-side preparation + wrapper
# --------------------------------------------------------------------------

def mean_agg_matrices(edge_index_arr, num_nodes):
    # PyG SAGEConv mean aggregation, stacked over time:
    #   A[t, i, j] = 1 / deg_in_t(i)  for each edge j -> i at timestep t
    T = edge_index_arr.shape[0]
    src = edge_index_arr[:, 0, :]                                    # [T, E]
    dst = edge_index_arr[:, 1, :]                                    # [T, E]
    t_idx = jnp.broadcast_to(jnp.arange(T)[:, None], src.shape)
    A = jnp.zeros((T, num_nodes, num_nodes),
                  jnp.float32).at[t_idx, dst, src].add(1.0)
    deg = jnp.maximum(jnp.sum(A, axis=2, keepdims=True), 1.0)
    return A / deg


@functools.partial(jax.jit, static_argnames=("num_heads",))
def model_forward(params, xs, edge_indexs, edge_features, num_heads=4):
    # xs: [T, N, Cn] channel-last stack of data.x[t]
    # edge_indexs: list of T arrays [2, E];  edge_features: [S, B, Ce] seq-first
    edge_index_arr = jnp.stack(list(edge_indexs), axis=0)            # [T, 2, E]
    T, N, Cn = xs.shape
    K = params["conv_w"].shape[2]
    Hn = params["lstm_whh"].shape[0]
    S, B, Ce = edge_features.shape
    dh = Ce // num_heads

    # --- TGNN operands ---------------------------------------------------
    # im2col for the causal conv: taps[t, n, k*Cn + ci] = x[t - K + 1 + k, n, ci]
    x_pad = jnp.pad(xs, ((K - 1, 0), (0, 0), (0, 0)))
    taps = jnp.concatenate([x_pad[k:k + T] for k in range(K)], axis=-1)      # [T,N,K*Cn]
    convw = jnp.transpose(params["conv_w"], (2, 1, 0)).reshape(K * Cn, Cn)   # [K*Cn,Cn]
    A = mean_agg_matrices(edge_index_arr, N)                                 # [T,N,N]
    sage1w = jnp.stack([params["sage1_wl"], params["sage1_wr"]])             # [2,Cn,Hn]
    sage2w = jnp.stack([params["sage2_wl"], params["sage2_wr"]])             # [2,Hn,Hn]
    wih = jnp.stack(jnp.split(params["lstm_wih"], 4, axis=1))                # [4,Hn,Hn]
    whh = jnp.stack(jnp.split(params["lstm_whh"], 4, axis=1))                # [4,Hn,Hn]
    lstmb = jnp.stack(jnp.split(params["lstm_b"], 4, axis=1))                # [4,1,Hn]

    # --- Transformer operands (pre-split per layer / q,k,v / head) --------
    xe = jnp.transpose(edge_features, (1, 0, 2)).reshape(B * S, Ce)   # batch-major flat
    blk = jnp.arange(B * S) // S
    mask = jnp.where(blk[:, None] == blk[None, :], 0.0, -1e30).astype(jnp.float32)

    wqkv, bqkv, outw, outb = [], [], [], []
    ff1w, ff1b, ff2w, ff2b, lngb = [], [], [], [], []
    for lp in params["layers"]:
        for j in range(3):                    # q, k, v column blocks of in_proj
            for hh in range(num_heads):
                c0 = j * Ce + hh * dh
                wqkv.append(lp["in_w"][:, c0:c0 + dh])
                bqkv.append(lp["in_b"][:, c0:c0 + dh])
        outw.append(lp["out_w"].reshape(num_heads, dh, Ce))
        outb.append(lp["out_b"])
        ff1w.append(lp["ff1_w"])
        ff1b.append(lp["ff1_b"])
        ff2w.append(lp["ff2_w"])
        ff2b.append(lp["ff2_b"])
        lngb.extend([lp["ln1_g"], lp["ln1_b"], lp["ln2_g"], lp["ln2_b"]])
    wqkv = jnp.stack(wqkv)                                   # [L*3*nh, Ce, dh]
    bqkv = jnp.stack(bqkv)                                   # [L*3*nh, 1, dh]
    outw = jnp.concatenate(outw, axis=0)                     # [L*nh, dh, Ce]
    outb = jnp.stack(outb)                                   # [L, 1, Ce]
    ff1w = jnp.stack(ff1w).astype(jnp.bfloat16)              # [L, Ce, dff]
    ff1b = jnp.stack(ff1b)                                   # [L, 1, dff]
    ff2w = jnp.stack(ff2w).astype(jnp.bfloat16)              # [L, dff, Ce]
    ff2b = jnp.stack(ff2b)                                   # [L, 1, Ce]
    lngb = jnp.stack(lngb)                                   # [L*4, 1, Ce]

    # Single fused pallas_call: no grid, every operand fully VMEM-resident,
    # default whole-array BlockSpecs.
    h, a = pl.pallas_call(
        _fused_forward_kernel,
        out_shape=(jax.ShapeDtypeStruct((N, Hn), jnp.float32),
                   jax.ShapeDtypeStruct((B, Ce), jnp.float32)),
    )(taps, A, convw, params["conv_b"],
      sage1w, params["sage1_bl"], sage2w, params["sage2_bl"],
      wih, whh, lstmb,
      xe, mask, wqkv, bqkv, outw, outb, ff1w, ff1b, ff2w, ff2b, lngb)
    return h, a


# --------------------------------------------------------------------------
# Deterministic parameter init (PyTorch layouts transposed to [in, out])
# --------------------------------------------------------------------------

def init_params(key, Cn, Hn, Ce, K, num_layers, dff):
    ks = iter(jax.random.split(key, 64))

    def nrm(shape, scale=0.1):
        return (scale * jax.random.normal(next(ks), shape)).astype(jnp.float32)

    p = {}
    # CausalConv1d(Cn, Cn, K)
    p["conv_w"] = nrm((Cn, Cn, K))          # [Co, Ci, K] (PyTorch layout)
    p["conv_b"] = nrm((1, Cn))
    # SAGEConv(Cn, Hn): lin_l (bias) on aggregated, lin_r (no bias) on root
    p["sage1_wl"] = nrm((Cn, Hn)); p["sage1_bl"] = nrm((1, Hn)); p["sage1_wr"] = nrm((Cn, Hn))
    # SAGEConv(Hn, Hn)
    p["sage2_wl"] = nrm((Hn, Hn)); p["sage2_bl"] = nrm((1, Hn)); p["sage2_wr"] = nrm((Hn, Hn))
    # LSTM(Hn, Hn), gate order i,f,g,o; bias = b_ih + b_hh combined
    p["lstm_wih"] = nrm((Hn, 4 * Hn))
    p["lstm_whh"] = nrm((Hn, 4 * Hn))
    p["lstm_b"] = nrm((1, 4 * Hn))
    # TransformerEncoder layers (weights stored as [in, out] == PyTorch weight.T)
    p["layers"] = []
    for _ in range(num_layers):
        lp = {
            "in_w": nrm((Ce, 3 * Ce)), "in_b": nrm((1, 3 * Ce)),
            "out_w": nrm((Ce, Ce)),    "out_b": nrm((1, Ce)),
            "ff1_w": nrm((Ce, dff)),   "ff1_b": nrm((1, dff)),
            "ff2_w": nrm((dff, Ce)),   "ff2_b": nrm((1, Ce)),
            "ln1_g": jnp.ones((1, Ce), jnp.float32),
            "ln1_b": jnp.zeros((1, Ce), jnp.float32),
            "ln2_g": jnp.ones((1, Ce), jnp.float32),
            "ln2_b": jnp.zeros((1, Ce), jnp.float32),
        }
        p["layers"].append(lp)
    return p


# --------------------------------------------------------------------------
# Demo
# --------------------------------------------------------------------------

if __name__ == "__main__":
    # Module hyper-params
    N, Cn, Hn, T, K = 12, 8, 16, 4, 3      # nodes, in_channels_n, hidden_channels_n, temporal_steps, kernel_size
    Ce, num_heads, dff = 8, 4, 2048        # in_channels_e, TransformerEncoderLayer defaults (dim_feedforward=2048)
    S, B, E = 6, 5, 24                     # edge-feature seq len, batch, graph edges per timestep

    key = jax.random.PRNGKey(0)
    kp, kx, ke, kf = jax.random.split(key, 4)
    params = init_params(kp, Cn, Hn, Ce, K, num_layers=2, dff=dff)

    xs = jax.random.normal(kx, (T, N, Cn), jnp.float32)                  # data.x[t] for t in range(T)
    edge_keys = jax.random.split(ke, T)
    edge_indexs = [jax.random.randint(edge_keys[t], (2, E), 0, N) for t in range(T)]
    edge_features = jax.random.normal(kf, (S, B, Ce), jnp.float32)       # seq-first [S, B, d_model]

    h, a = model_forward(params, xs, edge_indexs, edge_features, num_heads=num_heads)
    h, a = jax.block_until_ready((h, a))

    assert h.shape == (N, Hn), h.shape
    assert a.shape == (B, Ce), a.shape
    assert bool(jnp.all(jnp.isfinite(h))) and bool(jnp.all(jnp.isfinite(a)))
    print("KERNEL_OK")
</pallas_src>

<mosaic_0001>
module attributes {stable_mosaic.version = 11 : i64} {
  func.func @_fused_forward_kernel(%arg0: memref<4x12x24xf32, #tpu.memory_space<vmem>>, %arg1: memref<4x12x12xf32, #tpu.memory_space<vmem>>, %arg2: memref<24x8xf32, #tpu.memory_space<vmem>>, %arg3: memref<1x8xf32, #tpu.memory_space<vmem>>, %arg4: memref<2x8x16xf32, #tpu.memory_space<vmem>>, %arg5: memref<1x16xf32, #tpu.memory_space<vmem>>, %arg6: memref<2x16x16xf32, #tpu.memory_space<vmem>>, %arg7: memref<1x16xf32, #tpu.memory_space<vmem>>, %arg8: memref<4x16x16xf32, #tpu.memory_space<vmem>>, %arg9: memref<4x16x16xf32, #tpu.memory_space<vmem>>, %arg10: memref<4x1x16xf32, #tpu.memory_space<vmem>>, %arg11: memref<30x8xf32, #tpu.memory_space<vmem>>, %arg12: memref<30x30xf32, #tpu.memory_space<vmem>>, %arg13: memref<24x8x2xf32, #tpu.memory_space<vmem>>, %arg14: memref<24x1x2xf32, #tpu.memory_space<vmem>>, %arg15: memref<8x2x8xf32, #tpu.memory_space<vmem>>, %arg16: memref<2x1x8xf32, #tpu.memory_space<vmem>>, %arg17: memref<2x8x2048xbf16, #tpu.memory_space<vmem>>, %arg18: memref<2x1x2048xf32, #tpu.memory_space<vmem>>, %arg19: memref<2x2048x8xbf16, #tpu.memory_space<vmem>>, %arg20: memref<2x1x8xf32, #tpu.memory_space<vmem>>, %arg21: memref<8x1x8xf32, #tpu.memory_space<vmem>>, %arg22: memref<12x16xf32, #tpu.memory_space<vmem>>, %arg23: memref<5x8xf32, #tpu.memory_space<vmem>>) attributes {dimension_semantics = [], scalar_prefetch = 0 : i64, scratch_operands = 0 : i64, tpu.core_type = #tpu.core_type<tc>} {
    %c0 = arith.constant 0 : index
    %c0_0 = arith.constant 0 : index
    %0 = vector.load %arg2[%c0, %c0_0] : memref<24x8xf32, #tpu.memory_space<vmem>>, vector<24x8xf32>
    %c0_1 = arith.constant 0 : index
    %c0_2 = arith.constant 0 : index
    %1 = vector.load %arg3[%c0_1, %c0_2] : memref<1x8xf32, #tpu.memory_space<vmem>>, vector<1x8xf32>
    %c0_3 = arith.constant 0 : index
    %c0_4 = arith.constant 0 : index
    %c0_5 = arith.constant 0 : index
    %2 = vector.load %arg4[%c0_3, %c0_4, %c0_5] : memref<2x8x16xf32, #tpu.memory_space<vmem>>, vector<1x8x16xf32>
    %3 = vector.shape_cast %2 : vector<1x8x16xf32> to vector<8x16xf32>
    %c1 = arith.constant 1 : index
    %c0_6 = arith.constant 0 : index
    %c0_7 = arith.constant 0 : index
    %4 = vector.load %arg4[%c1, %c0_6, %c0_7] : memref<2x8x16xf32, #tpu.memory_space<vmem>>, vector<1x8x16xf32>
    %5 = vector.shape_cast %4 : vector<1x8x16xf32> to vector<8x16xf32>
    %c0_8 = arith.constant 0 : index
    %c0_9 = arith.constant 0 : index
    %c0_10 = arith.constant 0 : index
    %6 = vector.load %arg6[%c0_8, %c0_9, %c0_10] : memref<2x16x16xf32, #tpu.memory_space<vmem>>, vector<1x16x16xf32>
    %7 = vector.shape_cast %6 : vector<1x16x16xf32> to vector<16x16xf32>
    %c1_11 = arith.constant 1 : index
    %c0_12 = arith.constant 0 : index
    %c0_13 = arith.constant 0 : index
    %8 = vector.load %arg6[%c1_11, %c0_12, %c0_13] : memref<2x16x16xf32, #tpu.memory_space<vmem>>, vector<1x16x16xf32>
    %9 = vector.shape_cast %8 : vector<1x16x16xf32> to vector<16x16xf32>
    %c0_14 = arith.constant 0 : index
    %c0_15 = arith.constant 0 : index
    %10 = vector.load %arg5[%c0_14, %c0_15] : memref<1x16xf32, #tpu.memory_space<vmem>>, vector<1x16xf32>
    %c0_16 = arith.constant 0 : index
    %c0_17 = arith.constant 0 : index
    %11 = vector.load %arg7[%c0_16, %c0_17] : memref<1x16xf32, #tpu.memory_space<vmem>>, vector<1x16xf32>
    %cst = arith.constant 0.000000e+00 : f32
    %12 = vector.broadcast %cst : f32 to vector<12x16xf32>
    %cst_18 = arith.constant 0.000000e+00 : f32
    %13 = vector.broadcast %cst_18 : f32 to vector<12x16xf32>
    %c0_19 = arith.constant 0 : index
    %c0_20 = arith.constant 0 : index
    %c0_21 = arith.constant 0 : index
    %14 = vector.load %arg0[%c0_19, %c0_20, %c0_21] : memref<4x12x24xf32, #tpu.memory_space<vmem>>, vector<1x12x24xf32>
    %15 = vector.shape_cast %14 : vector<1x12x24xf32> to vector<12x24xf32>
    %cst_22 = arith.constant dense<0.000000e+00> : vector<12x8xf32>
    %16 = tpu.matmul %15, %0, %cst_22 {dimension_numbers = #tpu.dot_dimension_numbers<[1], [0], [0], [1], [0, 0, 1, 1], [], []>} : vector<12x24xf32>, vector<24x8xf32>, vector<12x8xf32> -> vector<12x8xf32>
    %17 = vector.broadcast %1 : vector<1x8xf32> to vector<12x8xf32>
    %18 = arith.addf %16, %17 : vector<12x8xf32>
    %c0_23 = arith.constant 0 : index
    %c0_24 = arith.constant 0 : index
    %c0_25 = arith.constant 0 : index
    %19 = vector.load %arg1[%c0_23, %c0_24, %c0_25] : memref<4x12x12xf32, #tpu.memory_space<vmem>>, vector<1x12x12xf32>
    %20 = vector.shape_cast %19 : vector<1x12x12xf32> to vector<12x12xf32>
    %cst_26 = arith.constant dense<0.000000e+00> : vector<12x8xf32>
    %21 = tpu.matmul %20, %18, %cst_26 {dimension_numbers = #tpu.dot_dimension_numbers<[1], [0], [0], [1], [0, 0, 1, 1], [], []>} : vector<12x12xf32>, vector<12x8xf32>, vector<12x8xf32> -> vector<12x8xf32>
    %cst_27 = arith.constant dense<0.000000e+00> : vector<12x16xf32>
    %22 = tpu.matmul %21, %3, %cst_27 {dimension_numbers = #tpu.dot_dimension_numbers<[1], [0], [0], [1], [0, 0, 1, 1], [], []>} : vector<12x8xf32>, vector<8x16xf32>, vector<12x16xf32> -> vector<12x16xf32>
    %cst_28 = arith.constant dense<0.000000e+00> : vector<12x16xf32>
    %23 = tpu.matmul %18, %5, %cst_28 {dimension_numbers = #tpu.dot_dimension_numbers<[1], [0], [0], [1], [0, 0, 1, 1], [], []>} : vector<12x8xf32>, vector<8x16xf32>, vector<12x16xf32> -> vector<12x16xf32>
    %24 = arith.addf %22, %23 : vector<12x16xf32>
    %25 = vector.broadcast %10 : vector<1x16xf32> to vector<12x16xf32>
    %26 = arith.addf %24, %25 : vector<12x16xf32>
    %cst_29 = arith.constant 0.000000e+00 : f32
    %27 = vector.broadcast %cst_29 : f32 to vector<12x16xf32>
    %28 = arith.maximumf %26, %27 : vector<12x16xf32>
    %cst_30 = arith.constant dense<0.000000e+00> : vector<12x16xf32>
    %29 = tpu.matmul %20, %28, %cst_30 {dimension_numbers = #tpu.dot_dimension_numbers<[1], [0], [0], [1], [0, 0, 1, 1], [], []>} : vector<12x12xf32>, vector<12x16xf32>, vector<12x16xf32> -> vector<12x16xf32>
    %cst_31 = arith.constant dense<0.000000e+00> : vector<12x16xf32>
    %30 = tpu.matmul %29, %7, %cst_31 {dimension_numbers = #tpu.dot_dimension_numbers<[1], [0], [0], [1], [0, 0, 1, 1], [], []>} : vector<12x16xf32>, vector<16x16xf32>, vector<12x16xf32> -> vector<12x16xf32>
    %cst_32 = arith.constant dense<0.000000e+00> : vector<12x16xf32>
    %31 = tpu.matmul %28, %9, %cst_32 {dimension_numbers = #tpu.dot_dimension_numbers<[1], [0], [0], [1], [0, 0, 1, 1], [], []>} : vector<12x16xf32>, vector<16x16xf32>, vector<12x16xf32> -> vector<12x16xf32>
    %32 = arith.addf %30, %31 : vector<12x16xf32>
    %33 = vector.broadcast %11 : vector<1x16xf32> to vector<12x16xf32>
    %34 = arith.addf %32, %33 : vector<12x16xf32>
    %c0_33 = arith.constant 0 : index
    %c0_34 = arith.constant 0 : index
    %c0_35 = arith.constant 0 : index
    %35 = vector.load %arg8[%c0_33, %c0_34, %c0_35] : memref<4x16x16xf32, #tpu.memory_space<vmem>>, vector<1x16x16xf32>
    %36 = vector.shape_cast %35 : vector<1x16x16xf32> to vector<16x16xf32>
    %cst_36 = arith.constant dense<0.000000e+00> : vector<12x16xf32>
    %37 = tpu.matmul %34, %36, %cst_36 {dimension_numbers = #tpu.dot_dimension_numbers<[1], [0], [0], [1], [0, 0, 1, 1], [], []>} : vector<12x16xf32>, vector<16x16xf32>, vector<12x16xf32> -> vector<12x16xf32>
    %c0_37 = arith.constant 0 : index
    %c0_38 = arith.constant 0 : index
    %c0_39 = arith.constant 0 : index
    %38 = vector.load %arg9[%c0_37, %c0_38, %c0_39] : memref<4x16x16xf32, #tpu.memory_space<vmem>>, vector<1x16x16xf32>
    %39 = vector.shape_cast %38 : vector<1x16x16xf32> to vector<16x16xf32>
    %cst_40 = arith.constant dense<0.000000e+00> : vector<12x16xf32>
    %40 = tpu.matmul %12, %39, %cst_40 {dimension_numbers = #tpu.dot_dimension_numbers<[1], [0], [0], [1], [0, 0, 1, 1], [], []>} : vector<12x16xf32>, vector<16x16xf32>, vector<12x16xf32> -> vector<12x16xf32>
    %41 = arith.addf %37, %40 : vector<12x16xf32>
    %c0_41 = arith.constant 0 : index
    %c0_42 = arith.constant 0 : index
    %c0_43 = arith.constant 0 : index
    %42 = vector.load %arg10[%c0_41, %c0_42, %c0_43] : memref<4x1x16xf32, #tpu.memory_space<vmem>>, vector<1x1x16xf32>
    %43 = vector.shape_cast %42 : vector<1x1x16xf32> to vector<1x16xf32>
    %44 = vector.broadcast %43 : vector<1x16xf32> to vector<12x16xf32>
    %45 = arith.addf %41, %44 : vector<12x16xf32>
    %c1_44 = arith.constant 1 : index
    %c0_45 = arith.constant 0 : index
    %c0_46 = arith.constant 0 : index
    %46 = vector.load %arg8[%c1_44, %c0_45, %c0_46] : memref<4x16x16xf32, #tpu.memory_space<vmem>>, vector<1x16x16xf32>
    %47 = vector.shape_cast %46 : vector<1x16x16xf32> to vector<16x16xf32>
    %cst_47 = arith.constant dense<0.000000e+00> : vector<12x16xf32>
    %48 = tpu.matmul %34, %47, %cst_47 {dimension_numbers = #tpu.dot_dimension_numbers<[1], [0], [0], [1], [0, 0, 1, 1], [], []>} : vector<12x16xf32>, vector<16x16xf32>, vector<12x16xf32> -> vector<12x16xf32>
    %c1_48 = arith.constant 1 : index
    %c0_49 = arith.constant 0 : index
    %c0_50 = arith.constant 0 : index
    %49 = vector.load %arg9[%c1_48, %c0_49, %c0_50] : memref<4x16x16xf32, #tpu.memory_space<vmem>>, vector<1x16x16xf32>
    %50 = vector.shape_cast %49 : vector<1x16x16xf32> to vector<16x16xf32>
    %cst_51 = arith.constant dense<0.000000e+00> : vector<12x16xf32>
    %51 = tpu.matmul %12, %50, %cst_51 {dimension_numbers = #tpu.dot_dimension_numbers<[1], [0], [0], [1], [0, 0, 1, 1], [], []>} : vector<12x16xf32>, vector<16x16xf32>, vector<12x16xf32> -> vector<12x16xf32>
    %52 = arith.addf %48, %51 : vector<12x16xf32>
    %c1_52 = arith.constant 1 : index
    %c0_53 = arith.constant 0 : index
    %c0_54 = arith.constant 0 : index
    %53 = vector.load %arg10[%c1_52, %c0_53, %c0_54] : memref<4x1x16xf32, #tpu.memory_space<vmem>>, vector<1x1x16xf32>
    %54 = vector.shape_cast %53 : vector<1x1x16xf32> to vector<1x16xf32>
    %55 = vector.broadcast %54 : vector<1x16xf32> to vector<12x16xf32>
    %56 = arith.addf %52, %55 : vector<12x16xf32>
    %c2 = arith.constant 2 : index
    %c0_55 = arith.constant 0 : index
    %c0_56 = arith.constant 0 : index
    %57 = vector.load %arg8[%c2, %c0_55, %c0_56] : memref<4x16x16xf32, #tpu.memory_space<vmem>>, vector<1x16x16xf32>
    %58 = vector.shape_cast %57 : vector<1x16x16xf32> to vector<16x16xf32>
    %cst_57 = arith.constant dense<0.000000e+00> : vector<12x16xf32>
    %59 = tpu.matmul %34, %58, %cst_57 {dimension_numbers = #tpu.dot_dimension_numbers<[1], [0], [0], [1], [0, 0, 1, 1], [], []>} : vector<12x16xf32>, vector<16x16xf32>, vector<12x16xf32> -> vector<12x16xf32>
    %c2_58 = arith.constant 2 : index
    %c0_59 = arith.constant 0 : index
    %c0_60 = arith.constant 0 : index
    %60 = vector.load %arg9[%c2_58, %c0_59, %c0_60] : memref<4x16x16xf32, #tpu.memory_space<vmem>>, vector<1x16x16xf32>
    %61 = vector.shape_cast %60 : vector<1x16x16xf32> to vector<16x16xf32>
    %cst_61 = arith.constant dense<0.000000e+00> : vector<12x16xf32>
    %62 = tpu.matmul %12, %61, %cst_61 {dimension_numbers = #tpu.dot_dimension_numbers<[1], [0], [0], [1], [0, 0, 1, 1], [], []>} : vector<12x16xf32>, vector<16x16xf32>, vector<12x16xf32> -> vector<12x16xf32>
    %63 = arith.addf %59, %62 : vector<12x16xf32>
    %c2_62 = arith.constant 2 : index
    %c0_63 = arith.constant 0 : index
    %c0_64 = arith.constant 0 : index
    %64 = vector.load %arg10[%c2_62, %c0_63, %c0_64] : memref<4x1x16xf32, #tpu.memory_space<vmem>>, vector<1x1x16xf32>
    %65 = vector.shape_cast %64 : vector<1x1x16xf32> to vector<1x16xf32>
    %66 = vector.broadcast %65 : vector<1x16xf32> to vector<12x16xf32>
    %67 = arith.addf %63, %66 : vector<12x16xf32>
    %c3 = arith.constant 3 : index
    %c0_65 = arith.constant 0 : index
    %c0_66 = arith.constant 0 : index
    %68 = vector.load %arg8[%c3, %c0_65, %c0_66] : memref<4x16x16xf32, #tpu.memory_space<vmem>>, vector<1x16x16xf32>
    %69 = vector.shape_cast %68 : vector<1x16x16xf32> to vector<16x16xf32>
    %cst_67 = arith.constant dense<0.000000e+00> : vector<12x16xf32>
    %70 = tpu.matmul %34, %69, %cst_67 {dimension_numbers = #tpu.dot_dimension_numbers<[1], [0], [0], [1], [0, 0, 1, 1], [], []>} : vector<12x16xf32>, vector<16x16xf32>, vector<12x16xf32> -> vector<12x16xf32>
    %c3_68 = arith.constant 3 : index
    %c0_69 = arith.constant 0 : index
    %c0_70 = arith.constant 0 : index
    %71 = vector.load %arg9[%c3_68, %c0_69, %c0_70] : memref<4x16x16xf32, #tpu.memory_space<vmem>>, vector<1x16x16xf32>
    %72 = vector.shape_cast %71 : vector<1x16x16xf32> to vector<16x16xf32>
    %cst_71 = arith.constant dense<0.000000e+00> : vector<12x16xf32>
    %73 = tpu.matmul %12, %72, %cst_71 {dimension_numbers = #tpu.dot_dimension_numbers<[1], [0], [0], [1], [0, 0, 1, 1], [], []>} : vector<12x16xf32>, vector<16x16xf32>, vector<12x16xf32> -> vector<12x16xf32>
    %74 = arith.addf %70, %73 : vector<12x16xf32>
    %c3_72 = arith.constant 3 : index
    %c0_73 = arith.constant 0 : index
    %c0_74 = arith.constant 0 : index
    %75 = vector.load %arg10[%c3_72, %c0_73, %c0_74] : memref<4x1x16xf32, #tpu.memory_space<vmem>>, vector<1x1x16xf32>
    %76 = vector.shape_cast %75 : vector<1x1x16xf32> to vector<1x16xf32>
    %77 = vector.broadcast %76 : vector<1x16xf32> to vector<12x16xf32>
    %78 = arith.addf %74, %77 : vector<12x16xf32>
    %79 = arith.negf %45 : vector<12x16xf32>
    %80 = math.exp %79 : vector<12x16xf32>
    %cst_75 = arith.constant 1.000000e+00 : f32
    %81 = vector.broadcast %cst_75 : f32 to vector<12x16xf32>
    %82 = arith.addf %81, %80 : vector<12x16xf32>
    %83 = arith.divf %81, %82 : vector<12x16xf32>
    %84 = arith.negf %56 : vector<12x16xf32>
    %85 = math.exp %84 : vector<12x16xf32>
    %cst_76 = arith.constant 1.000000e+00 : f32
    %86 = vector.broadcast %cst_76 : f32 to vector<12x16xf32>
    %87 = arith.addf %86, %85 : vector<12x16xf32>
    %88 = arith.divf %86, %87 : vector<12x16xf32>
    %89 = math.tanh %67 : vector<12x16xf32>
    %90 = arith.negf %78 : vector<12x16xf32>
    %91 = math.exp %90 : vector<12x16xf32>
    %cst_77 = arith.constant 1.000000e+00 : f32
    %92 = vector.broadcast %cst_77 : f32 to vector<12x16xf32>
    %93 = arith.addf %92, %91 : vector<12x16xf32>
    %94 = arith.divf %92, %93 : vector<12x16xf32>
    %95 = arith.mulf %88, %13 : vector<12x16xf32>
    %96 = arith.mulf %83, %89 : vector<12x16xf32>
    %97 = arith.addf %95, %96 : vector<12x16xf32>
    %98 = math.tanh %97 : vector<12x16xf32>
    %99 = arith.mulf %94, %98 : vector<12x16xf32>
    %c1_78 = arith.constant 1 : index
    %c0_79 = arith.constant 0 : index
    %c0_80 = arith.constant 0 : index
    %100 = vector.load %arg0[%c1_78, %c0_79, %c0_80] : memref<4x12x24xf32, #tpu.memory_space<vmem>>, vector<1x12x24xf32>
    %101 = vector.shape_cast %100 : vector<1x12x24xf32> to vector<12x24xf32>
    %cst_81 = arith.constant dense<0.000000e+00> : vector<12x8xf32>
    %102 = tpu.matmul %101, %0, %cst_81 {dimension_numbers = #tpu.dot_dimension_numbers<[1], [0], [0], [1], [0, 0, 1, 1], [], []>} : vector<12x24xf32>, vector<24x8xf32>, vector<12x8xf32> -> vector<12x8xf32>
    %103 = vector.broadcast %1 : vector<1x8xf32> to vector<12x8xf32>
    %104 = arith.addf %102, %103 : vector<12x8xf32>
    %c1_82 = arith.constant 1 : index
    %c0_83 = arith.constant 0 : index
    %c0_84 = arith.constant 0 : index
    %105 = vector.load %arg1[%c1_82, %c0_83, %c0_84] : memref<4x12x12xf32, #tpu.memory_space<vmem>>, vector<1x12x12xf32>
    %106 = vector.shape_cast %105 : vector<1x12x12xf32> to vector<12x12xf32>
    %cst_85 = arith.constant dense<0.000000e+00> : vector<12x8xf32>
    %107 = tpu.matmul %106, %104, %cst_85 {dimension_numbers = #tpu.dot_dimension_numbers<[1], [0], [0], [1], [0, 0, 1, 1], [], []>} : vector<12x12xf32>, vector<12x8xf32>, vector<12x8xf32> -> vector<12x8xf32>
    %cst_86 = arith.constant dense<0.000000e+00> : vector<12x16xf32>
    %108 = tpu.matmul %107, %3, %cst_86 {dimension_numbers = #tpu.dot_dimension_numbers<[1], [0], [0], [1], [0, 0, 1, 1], [], []>} : vector<12x8xf32>, vector<8x16xf32>, vector<12x16xf32> -> vector<12x16xf32>
    %cst_87 = arith.constant dense<0.000000e+00> : vector<12x16xf32>
    %109 = tpu.matmul %104, %5, %cst_87 {dimension_numbers = #tpu.dot_dimension_numbers<[1], [0], [0], [1], [0, 0, 1, 1], [], []>} : vector<12x8xf32>, vector<8x16xf32>, vector<12x16xf32> -> vector<12x16xf32>
    %110 = arith.addf %108, %109 : vector<12x16xf32>
    %111 = vector.broadcast %10 : vector<1x16xf32> to vector<12x16xf32>
    %112 = arith.addf %110, %111 : vector<12x16xf32>
    %cst_88 = arith.constant 0.000000e+00 : f32
    %113 = vector.broadcast %cst_88 : f32 to vector<12x16xf32>
    %114 = arith.maximumf %112, %113 : vector<12x16xf32>
    %cst_89 = arith.constant dense<0.000000e+00> : vector<12x16xf32>
    %115 = tpu.matmul %106, %114, %cst_89 {dimension_numbers = #tpu.dot_dimension_numbers<[1], [0], [0], [1], [0, 0, 1, 1], [], []>} : vector<12x12xf32>, vector<12x16xf32>, vector<12x16xf32> -> vector<12x16xf32>
    %cst_90 = arith.constant dense<0.000000e+00> : vector<12x16xf32>
    %116 = tpu.matmul %115, %7, %cst_90 {dimension_numbers = #tpu.dot_dimension_numbers<[1], [0], [0], [1], [0, 0, 1, 1], [], []>} : vector<12x16xf32>, vector<16x16xf32>, vector<12x16xf32> -> vector<12x16xf32>
    %cst_91 = arith.constant dense<0.000000e+00> : vector<12x16xf32>
    %117 = tpu.matmul %114, %9, %cst_91 {dimension_numbers = #tpu.dot_dimension_numbers<[1], [0], [0], [1], [0, 0, 1, 1], [], []>} : vector<12x16xf32>, vector<16x16xf32>, vector<12x16xf32> -> vector<12x16xf32>
    %118 = arith.addf %116, %117 : vector<12x16xf32>
    %119 = vector.broadcast %11 : vector<1x16xf32> to vector<12x16xf32>
    %120 = arith.addf %118, %119 : vector<12x16xf32>
    %c0_92 = arith.constant 0 : index
    %c0_93 = arith.constant 0 : index
    %c0_94 = arith.constant 0 : index
    %121 = vector.load %arg8[%c0_92, %c0_93, %c0_94] : memref<4x16x16xf32, #tpu.memory_space<vmem>>, vector<1x16x16xf32>
    %122 = vector.shape_cast %121 : vector<1x16x16xf32> to vector<16x16xf32>
    %cst_95 = arith.constant dense<0.000000e+00> : vector<12x16xf32>
    %123 = tpu.matmul %120, %122, %cst_95 {dimension_numbers = #tpu.dot_dimension_numbers<[1], [0], [0], [1], [0, 0, 1, 1], [], []>} : vector<12x16xf32>, vector<16x16xf32>, vector<12x16xf32> -> vector<12x16xf32>
    %c0_96 = arith.constant 0 : index
    %c0_97 = arith.constant 0 : index
    %c0_98 = arith.constant 0 : index
    %124 = vector.load %arg9[%c0_96, %c0_97, %c0_98] : memref<4x16x16xf32, #tpu.memory_space<vmem>>, vector<1x16x16xf32>
    %125 = vector.shape_cast %124 : vector<1x16x16xf32> to vector<16x16xf32>
    %cst_99 = arith.constant dense<0.000000e+00> : vector<12x16xf32>
    %126 = tpu.matmul %99, %125, %cst_99 {dimension_numbers = #tpu.dot_dimension_numbers<[1], [0], [0], [1], [0, 0, 1, 1], [], []>} : vector<12x16xf32>, vector<16x16xf32>, vector<12x16xf32> -> vector<12x16xf32>
    %127 = arith.addf %123, %126 : vector<12x16xf32>
    %c0_100 = arith.constant 0 : index
    %c0_101 = arith.constant 0 : index
    %c0_102 = arith.constant 0 : index
    %128 = vector.load %arg10[%c0_100, %c0_101, %c0_102] : memref<4x1x16xf32, #tpu.memory_space<vmem>>, vector<1x1x16xf32>
    %129 = vector.shape_cast %128 : vector<1x1x16xf32> to vector<1x16xf32>
    %130 = vector.broadcast %129 : vector<1x16xf32> to vector<12x16xf32>
    %131 = arith.addf %127, %130 : vector<12x16xf32>
    %c1_103 = arith.constant 1 : index
    %c0_104 = arith.constant 0 : index
    %c0_105 = arith.constant 0 : index
    %132 = vector.load %arg8[%c1_103, %c0_104, %c0_105] : memref<4x16x16xf32, #tpu.memory_space<vmem>>, vector<1x16x16xf32>
    %133 = vector.shape_cast %132 : vector<1x16x16xf32> to vector<16x16xf32>
    %cst_106 = arith.constant dense<0.000000e+00> : vector<12x16xf32>
    %134 = tpu.matmul %120, %133, %cst_106 {dimension_numbers = #tpu.dot_dimension_numbers<[1], [0], [0], [1], [0, 0, 1, 1], [], []>} : vector<12x16xf32>, vector<16x16xf32>, vector<12x16xf32> -> vector<12x16xf32>
    %c1_107 = arith.constant 1 : index
    %c0_108 = arith.constant 0 : index
    %c0_109 = arith.constant 0 : index
    %135 = vector.load %arg9[%c1_107, %c0_108, %c0_109] : memref<4x16x16xf32, #tpu.memory_space<vmem>>, vector<1x16x16xf32>
    %136 = vector.shape_cast %135 : vector<1x16x16xf32> to vector<16x16xf32>
    %cst_110 = arith.constant dense<0.000000e+00> : vector<12x16xf32>
    %137 = tpu.matmul %99, %136, %cst_110 {dimension_numbers = #tpu.dot_dimension_numbers<[1], [0], [0], [1], [0, 0, 1, 1], [], []>} : vector<12x16xf32>, vector<16x16xf32>, vector<12x16xf32> -> vector<12x16xf32>
    %138 = arith.addf %134, %137 : vector<12x16xf32>
    %c1_111 = arith.constant 1 : index
    %c0_112 = arith.constant 0 : index
    %c0_113 = arith.constant 0 : index
    %139 = vector.load %arg10[%c1_111, %c0_112, %c0_113] : memref<4x1x16xf32, #tpu.memory_space<vmem>>, vector<1x1x16xf32>
    %140 = vector.shape_cast %139 : vector<1x1x16xf32> to vector<1x16xf32>
    %141 = vector.broadcast %140 : vector<1x16xf32> to vector<12x16xf32>
    %142 = arith.addf %138, %141 : vector<12x16xf32>
    %c2_114 = arith.constant 2 : index
    %c0_115 = arith.constant 0 : index
    %c0_116 = arith.constant 0 : index
    %143 = vector.load %arg8[%c2_114, %c0_115, %c0_116] : memref<4x16x16xf32, #tpu.memory_space<vmem>>, vector<1x16x16xf32>
    %144 = vector.shape_cast %143 : vector<1x16x16xf32> to vector<16x16xf32>
    %cst_117 = arith.constant dense<0.000000e+00> : vector<12x16xf32>
    %145 = tpu.matmul %120, %144, %cst_117 {dimension_numbers = #tpu.dot_dimension_numbers<[1], [0], [0], [1], [0, 0, 1, 1], [], []>} : vector<12x16xf32>, vector<16x16xf32>, vector<12x16xf32> -> vector<12x16xf32>
    %c2_118 = arith.constant 2 : index
    %c0_119 = arith.constant 0 : index
    %c0_120 = arith.constant 0 : index
    %146 = vector.load %arg9[%c2_118, %c0_119, %c0_120] : memref<4x16x16xf32, #tpu.memory_space<vmem>>, vector<1x16x16xf32>
    %147 = vector.shape_cast %146 : vector<1x16x16xf32> to vector<16x16xf32>
    %cst_121 = arith.constant dense<0.000000e+00> : vector<12x16xf32>
    %148 = tpu.matmul %99, %147, %cst_121 {dimension_numbers = #tpu.dot_dimension_numbers<[1], [0], [0], [1], [0, 0, 1, 1], [], []>} : vector<12x16xf32>, vector<16x16xf32>, vector<12x16xf32> -> vector<12x16xf32>
    %149 = arith.addf %145, %148 : vector<12x16xf32>
    %c2_122 = arith.constant 2 : index
    %c0_123 = arith.constant 0 : index
    %c0_124 = arith.constant 0 : index
    %150 = vector.load %arg10[%c2_122, %c0_123, %c0_124] : memref<4x1x16xf32, #tpu.memory_space<vmem>>, vector<1x1x16xf32>
    %151 = vector.shape_cast %150 : vector<1x1x16xf32> to vector<1x16xf32>
    %152 = vector.broadcast %151 : vector<1x16xf32> to vector<12x16xf32>
    %153 = arith.addf %149, %152 : vector<12x16xf32>
    %c3_125 = arith.constant 3 : index
    %c0_126 = arith.constant 0 : index
    %c0_127 = arith.constant 0 : index
    %154 = vector.load %arg8[%c3_125, %c0_126, %c0_127] : memref<4x16x16xf32, #tpu.memory_space<vmem>>, vector<1x16x16xf32>
    %155 = vector.shape_cast %154 : vector<1x16x16xf32> to vector<16x16xf32>
    %cst_128 = arith.constant dense<0.000000e+00> : vector<12x16xf32>
    %156 = tpu.matmul %120, %155, %cst_128 {dimension_numbers = #tpu.dot_dimension_numbers<[1], [0], [0], [1], [0, 0, 1, 1], [], []>} : vector<12x16xf32>, vector<16x16xf32>, vector<12x16xf32> -> vector<12x16xf32>
    %c3_129 = arith.constant 3 : index
    %c0_130 = arith.constant 0 : index
    %c0_131 = arith.constant 0 : index
    %157 = vector.load %arg9[%c3_129, %c0_130, %c0_131] : memref<4x16x16xf32, #tpu.memory_space<vmem>>, vector<1x16x16xf32>
    %158 = vector.shape_cast %157 : vector<1x16x16xf32> to vector<16x16xf32>
    %cst_132 = arith.constant dense<0.000000e+00> : vector<12x16xf32>
    %159 = tpu.matmul %99, %158, %cst_132 {dimension_numbers = #tpu.dot_dimension_numbers<[1], [0], [0], [1], [0, 0, 1, 1], [], []>} : vector<12x16xf32>, vector<16x16xf32>, vector<12x16xf32> -> vector<12x16xf32>
    %160 = arith.addf %156, %159 : vector<12x16xf32>
    %c3_133 = arith.constant 3 : index
    %c0_134 = arith.constant 0 : index
    %c0_135 = arith.constant 0 : index
    %161 = vector.load %arg10[%c3_133, %c0_134, %c0_135] : memref<4x1x16xf32, #tpu.memory_space<vmem>>, vector<1x1x16xf32>
    %162 = vector.shape_cast %161 : vector<1x1x16xf32> to vector<1x16xf32>
    %163 = vector.broadcast %162 : vector<1x16xf32> to vector<12x16xf32>
    %164 = arith.addf %160, %163 : vector<12x16xf32>
    %165 = arith.negf %131 : vector<12x16xf32>
    %166 = math.exp %165 : vector<12x16xf32>
    %cst_136 = arith.constant 1.000000e+00 : f32
    %167 = vector.broadcast %cst_136 : f32 to vector<12x16xf32>
    %168 = arith.addf %167, %166 : vector<12x16xf32>
    %169 = arith.divf %167, %168 : vector<12x16xf32>
    %170 = arith.negf %142 : vector<12x16xf32>
    %171 = math.exp %170 : vector<12x16xf32>
    %cst_137 = arith.constant 1.000000e+00 : f32
    %172 = vector.broadcast %cst_137 : f32 to vector<12x16xf32>
    %173 = arith.addf %172, %171 : vector<12x16xf32>
    %174 = arith.divf %172, %173 : vector<12x16xf32>
    %175 = math.tanh %153 : vector<12x16xf32>
    %176 = arith.negf %164 : vector<12x16xf32>
    %177 = math.exp %176 : vector<12x16xf32>
    %cst_138 = arith.constant 1.000000e+00 : f32
    %178 = vector.broadcast %cst_138 : f32 to vector<12x16xf32>
    %179 = arith.addf %178, %177 : vector<12x16xf32>
    %180 = arith.divf %178, %179 : vector<12x16xf32>
    %181 = arith.mulf %174, %97 : vector<12x16xf32>
    %182 = arith.mulf %169, %175 : vector<12x16xf32>
    %183 = arith.addf %181, %182 : vector<12x16xf32>
    %184 = math.tanh %183 : vector<12x16xf32>
    %185 = arith.mulf %180, %184 : vector<12x16xf32>
    %c2_139 = arith.constant 2 : index
    %c0_140 = arith.constant 0 : index
    %c0_141 = arith.constant 0 : index
    %186 = vector.load %arg0[%c2_139, %c0_140, %c0_141] : memref<4x12x24xf32, #tpu.memory_space<vmem>>, vector<1x12x24xf32>
    %187 = vector.shape_cast %186 : vector<1x12x24xf32> to vector<12x24xf32>
    %cst_142 = arith.constant dense<0.000000e+00> : vector<12x8xf32>
    %188 = tpu.matmul %187, %0, %cst_142 {dimension_numbers = #tpu.dot_dimension_numbers<[1], [0], [0], [1], [0, 0, 1, 1], [], []>} : vector<12x24xf32>, vector<24x8xf32>, vector<12x8xf32> -> vector<12x8xf32>
    %189 = vector.broadcast %1 : vector<1x8xf32> to vector<12x8xf32>
    %190 = arith.addf %188, %189 : vector<12x8xf32>
    %c2_143 = arith.constant 2 : index
    %c0_144 = arith.constant 0 : index
    %c0_145 = arith.constant 0 : index
    %191 = vector.load %arg1[%c2_143, %c0_144, %c0_145] : memref<4x12x12xf32, #tpu.memory_space<vmem>>, vector<1x12x12xf32>
    %192 = vector.shape_cast %191 : vector<1x12x12xf32> to vector<12x12xf32>
    %cst_146 = arith.constant dense<0.000000e+00> : vector<12x8xf32>
    %193 = tpu.matmul %192, %190, %cst_146 {dimension_numbers = #tpu.dot_dimension_numbers<[1], [0], [0], [1], [0, 0, 1, 1], [], []>} : vector<12x12xf32>, vector<12x8xf32>, vector<12x8xf32> -> vector<12x8xf32>
    %cst_147 = arith.constant dense<0.000000e+00> : vector<12x16xf32>
    %194 = tpu.matmul %193, %3, %cst_147 {dimension_numbers = #tpu.dot_dimension_numbers<[1], [0], [0], [1], [0, 0, 1, 1], [], []>} : vector<12x8xf32>, vector<8x16xf32>, vector<12x16xf32> -> vector<12x16xf32>
    %cst_148 = arith.constant dense<0.000000e+00> : vector<12x16xf32>
    %195 = tpu.matmul %190, %5, %cst_148 {dimension_numbers = #tpu.dot_dimension_numbers<[1], [0], [0], [1], [0, 0, 1, 1], [], []>} : vector<12x8xf32>, vector<8x16xf32>, vector<12x16xf32> -> vector<12x16xf32>
    %196 = arith.addf %194, %195 : vector<12x16xf32>
    %197 = vector.broadcast %10 : vector<1x16xf32> to vector<12x16xf32>
    %198 = arith.addf %196, %197 : vector<12x16xf32>
    %cst_149 = arith.constant 0.000000e+00 : f32
    %199 = vector.broadcast %cst_149 : f32 to vector<12x16xf32>
    %200 = arith.maximumf %198, %199 : vector<12x16xf32>
    %cst_150 = arith.constant dense<0.000000e+00> : vector<12x16xf32>
    %201 = tpu.matmul %192, %200, %cst_150 {dimension_numbers = #tpu.dot_dimension_numbers<[1], [0], [0], [1], [0, 0, 1, 1], [], []>} : vector<12x12xf32>, vector<12x16xf32>, vector<12x16xf32> -> vector<12x16xf32>
    %cst_151 = arith.constant dense<0.000000e+00> : vector<12x16xf32>
    %202 = tpu.matmul %201, %7, %cst_151 {dimension_numbers = #tpu.dot_dimension_numbers<[1], [0], [0], [1], [0, 0, 1, 1], [], []>} : vector<12x16xf32>, vector<16x16xf32>, vector<12x16xf32> -> vector<12x16xf32>
    %cst_152 = arith.constant dense<0.000000e+00> : vector<12x16xf32>
    %203 = tpu.matmul %200, %9, %cst_152 {dimension_numbers = #tpu.dot_dimension_numbers<[1], [0], [0], [1], [0, 0, 1, 1], [], []>} : vector<12x16xf32>, vector<16x16xf32>, vector<12x16xf32> -> vector<12x16xf32>
    %204 = arith.addf %202, %203 : vector<12x16xf32>
    %205 = vector.broadcast %11 : vector<1x16xf32> to vector<12x16xf32>
    %206 = arith.addf %204, %205 : vector<12x16xf32>
    %c0_153 = arith.constant 0 : index
    %c0_154 = arith.constant 0 : index
    %c0_155 = arith.constant 0 : index
    %207 = vector.load %arg8[%c0_153, %c0_154, %c0_155] : memref<4x16x16xf32, #tpu.memory_space<vmem>>, vector<1x16x16xf32>
    %208 = vector.shape_cast %207 : vector<1x16x16xf32> to vector<16x16xf32>
    %cst_156 = arith.constant dense<0.000000e+00> : vector<12x16xf32>
    %209 = tpu.matmul %206, %208, %cst_156 {dimension_numbers = #tpu.dot_dimension_numbers<[1], [0], [0], [1], [0, 0, 1, 1], [], []>} : vector<12x16xf32>, vector<16x16xf32>, vector<12x16xf32> -> vector<12x16xf32>
    %c0_157 = arith.constant 0 : index
    %c0_158 = arith.constant 0 : index
    %c0_159 = arith.constant 0 : index
    %210 = vector.load %arg9[%c0_157, %c0_158, %c0_159] : memref<4x16x16xf32, #tpu.memory_space<vmem>>, vector<1x16x16xf32>
    %211 = vector.shape_cast %210 : vector<1x16x16xf32> to vector<16x16xf32>
    %cst_160 = arith.constant dense<0.000000e+00> : vector<12x16xf32>
    %212 = tpu.matmul %185, %211, %cst_160 {dimension_numbers = #tpu.dot_dimension_numbers<[1], [0], [0], [1], [0, 0, 1, 1], [], []>} : vector<12x16xf32>, vector<16x16xf32>, vector<12x16xf32> -> vector<12x16xf32>
    %213 = arith.addf %209, %212 : vector<12x16xf32>
    %c0_161 = arith.constant 0 : index
    %c0_162 = arith.constant 0 : index
    %c0_163 = arith.constant 0 : index
    %214 = vector.load %arg10[%c0_161, %c0_162, %c0_163] : memref<4x1x16xf32, #tpu.memory_space<vmem>>, vector<1x1x16xf32>
    %215 = vector.shape_cast %214 : vector<1x1x16xf32> to vector<1x16xf32>
    %216 = vector.broadcast %215 : vector<1x16xf32> to vector<12x16xf32>
    %217 = arith.addf %213, %216 : vector<12x16xf32>
    %c1_164 = arith.constant 1 : index
    %c0_165 = arith.constant 0 : index
    %c0_166 = arith.constant 0 : index
    %218 = vector.load %arg8[%c1_164, %c0_165, %c0_166] : memref<4x16x16xf32, #tpu.memory_space<vmem>>, vector<1x16x16xf32>
    %219 = vector.shape_cast %218 : vector<1x16x16xf32> to vector<16x16xf32>
    %cst_167 = arith.constant dense<0.000000e+00> : vector<12x16xf32>
    %220 = tpu.matmul %206, %219, %cst_167 {dimension_numbers = #tpu.dot_dimension_numbers<[1], [0], [0], [1], [0, 0, 1, 1], [], []>} : vector<12x16xf32>, vector<16x16xf32>, vector<12x16xf32> -> vector<12x16xf32>
    %c1_168 = arith.constant 1 : index
    %c0_169 = arith.constant 0 : index
    %c0_170 = arith.constant 0 : index
    %221 = vector.load %arg9[%c1_168, %c0_169, %c0_170] : memref<4x16x16xf32, #tpu.memory_space<vmem>>, vector<1x16x16xf32>
    %222 = vector.shape_cast %221 : vector<1x16x16xf32> to vector<16x16xf32>
    %cst_171 = arith.constant dense<0.000000e+00> : vector<12x16xf32>
    %223 = tpu.matmul %185, %222, %cst_171 {dimension_numbers = #tpu.dot_dimension_numbers<[1], [0], [0], [1], [0, 0, 1, 1], [], []>} : vector<12x16xf32>, vector<16x16xf32>, vector<12x16xf32> -> vector<12x16xf32>
    %224 = arith.addf %220, %223 : vector<12x16xf32>
    %c1_172 = arith.constant 1 : index
    %c0_173 = arith.constant 0 : index
    %c0_174 = arith.constant 0 : index
    %225 = vector.load %arg10[%c1_172, %c0_173, %c0_174] : memref<4x1x16xf32, #tpu.memory_space<vmem>>, vector<1x1x16xf32>
    %226 = vector.shape_cast %225 : vector<1x1x16xf32> to vector<1x16xf32>
    %227 = vector.broadcast %226 : vector<1x16xf32> to vector<12x16xf32>
    %228 = arith.addf %224, %227 : vector<12x16xf32>
    %c2_175 = arith.constant 2 : index
    %c0_176 = arith.constant 0 : index
    %c0_177 = arith.constant 0 : index
    %229 = vector.load %arg8[%c2_175, %c0_176, %c0_177] : memref<4x16x16xf32, #tpu.memory_space<vmem>>, vector<1x16x16xf32>
    %230 = vector.shape_cast %229 : vector<1x16x16xf32> to vector<16x16xf32>
    %cst_178 = arith.constant dense<0.000000e+00> : vector<12x16xf32>
    %231 = tpu.matmul %206, %230, %cst_178 {dimension_numbers = #tpu.dot_dimension_numbers<[1], [0], [0], [1], [0, 0, 1, 1], [], []>} : vector<12x16xf32>, vector<16x16xf32>, vector<12x16xf32> -> vector<12x16xf32>
    %c2_179 = arith.constant 2 : index
    %c0_180 = arith.constant 0 : index
    %c0_181 = arith.constant 0 : index
    %232 = vector.load %arg9[%c2_179, %c0_180, %c0_181] : memref<4x16x16xf32, #tpu.memory_space<vmem>>, vector<1x16x16xf32>
    %233 = vector.shape_cast %232 : vector<1x16x16xf32> to vector<16x16xf32>
    %cst_182 = arith.constant dense<0.000000e+00> : vector<12x16xf32>
    %234 = tpu.matmul %185, %233, %cst_182 {dimension_numbers = #tpu.dot_dimension_numbers<[1], [0], [0], [1], [0, 0, 1, 1], [], []>} : vector<12x16xf32>, vector<16x16xf32>, vector<12x16xf32> -> vector<12x16xf32>
    %235 = arith.addf %231, %234 : vector<12x16xf32>
    %c2_183 = arith.constant 2 : index
    %c0_184 = arith.constant 0 : index
    %c0_185 = arith.constant 0 : index
    %236 = vector.load %arg10[%c2_183, %c0_184, %c0_185] : memref<4x1x16xf32, #tpu.memory_space<vmem>>, vector<1x1x16xf32>
    %237 = vector.shape_cast %236 : vector<1x1x16xf32> to vector<1x16xf32>
    %238 = vector.broadcast %237 : vector<1x16xf32> to vector<12x16xf32>
    %239 = arith.addf %235, %238 : vector<12x16xf32>
    %c3_186 = arith.constant 3 : index
    %c0_187 = arith.constant 0 : index
    %c0_188 = arith.constant 0 : index
    %240 = vector.load %arg8[%c3_186, %c0_187, %c0_188] : memref<4x16x16xf32, #tpu.memory_space<vmem>>, vector<1x16x16xf32>
    %241 = vector.shape_cast %240 : vector<1x16x16xf32> to vector<16x16xf32>
    %cst_189 = arith.constant dense<0.000000e+00> : vector<12x16xf32>
    %242 = tpu.matmul %206, %241, %cst_189 {dimension_numbers = #tpu.dot_dimension_numbers<[1], [0], [0], [1], [0, 0, 1, 1], [], []>} : vector<12x16xf32>, vector<16x16xf32>, vector<12x16xf32> -> vector<12x16xf32>
    %c3_190 = arith.constant 3 : index
    %c0_191 = arith.constant 0 : index
    %c0_192 = arith.constant 0 : index
    %243 = vector.load %arg9[%c3_190, %c0_191, %c0_192] : memref<4x16x16xf32, #tpu.memory_space<vmem>>, vector<1x16x16xf32>
    %244 = vector.shape_cast %243 : vector<1x16x16xf32> to vector<16x16xf32>
    %cst_193 = arith.constant dense<0.000000e+00> : vector<12x16xf32>
    %245 = tpu.matmul %185, %244, %cst_193 {dimension_numbers = #tpu.dot_dimension_numbers<[1], [0], [0], [1], [0, 0, 1, 1], [], []>} : vector<12x16xf32>, vector<16x16xf32>, vector<12x16xf32> -> vector<12x16xf32>
    %246 = arith.addf %242, %245 : vector<12x16xf32>
    %c3_194 = arith.constant 3 : index
    %c0_195 = arith.constant 0 : index
    %c0_196 = arith.constant 0 : index
    %247 = vector.load %arg10[%c3_194, %c0_195, %c0_196] : memref<4x1x16xf32, #tpu.memory_space<vmem>>, vector<1x1x16xf32>
    %248 = vector.shape_cast %247 : vector<1x1x16xf32> to vector<1x16xf32>
    %249 = vector.broadcast %248 : vector<1x16xf32> to vector<12x16xf32>
    %250 = arith.addf %246, %249 : vector<12x16xf32>
    %251 = arith.negf %217 : vector<12x16xf32>
    %252 = math.exp %251 : vector<12x16xf32>
    %cst_197 = arith.constant 1.000000e+00 : f32
    %253 = vector.broadcast %cst_197 : f32 to vector<12x16xf32>
    %254 = arith.addf %253, %252 : vector<12x16xf32>
    %255 = arith.divf %253, %254 : vector<12x16xf32>
    %256 = arith.negf %228 : vector<12x16xf32>
    %257 = math.exp %256 : vector<12x16xf32>
    %cst_198 = arith.constant 1.000000e+00 : f32
    %258 = vector.broadcast %cst_198 : f32 to vector<12x16xf32>
    %259 = arith.addf %258, %257 : vector<12x16xf32>
    %260 = arith.divf %258, %259 : vector<12x16xf32>
    %261 = math.tanh %239 : vector<12x16xf32>
    %262 = arith.negf %250 : vector<12x16xf32>
    %263 = math.exp %262 : vector<12x16xf32>
    %cst_199 = arith.constant 1.000000e+00 : f32
    %264 = vector.broadcast %cst_199 : f32 to vector<12x16xf32>
    %265 = arith.addf %264, %263 : vector<12x16xf32>
    %266 = arith.divf %264, %265 : vector<12x16xf32>
    %267 = arith.mulf %260, %183 : vector<12x16xf32>
    %268 = arith.mulf %255, %261 : vector<12x16xf32>
    %269 = arith.addf %267, %268 : vector<12x16xf32>
    %270 = math.tanh %269 : vector<12x16xf32>
    %271 = arith.mulf %266, %270 : vector<12x16xf32>
    %c3_200 = arith.constant 3 : index
    %c0_201 = arith.constant 0 : index
    %c0_202 = arith.constant 0 : index
    %272 = vector.load %arg0[%c3_200, %c0_201, %c0_202] : memref<4x12x24xf32, #tpu.memory_space<vmem>>, vector<1x12x24xf32>
    %273 = vector.shape_cast %272 : vector<1x12x24xf32> to vector<12x24xf32>
    %cst_203 = arith.constant dense<0.000000e+00> : vector<12x8xf32>
    %274 = tpu.matmul %273, %0, %cst_203 {dimension_numbers = #tpu.dot_dimension_numbers<[1], [0], [0], [1], [0, 0, 1, 1], [], []>} : vector<12x24xf32>, vector<24x8xf32>, vector<12x8xf32> -> vector<12x8xf32>
    %275 = vector.broadcast %1 : vector<1x8xf32> to vector<12x8xf32>
    %276 = arith.addf %274, %275 : vector<12x8xf32>
    %c3_204 = arith.constant 3 : index
    %c0_205 = arith.constant 0 : index
    %c0_206 = arith.constant 0 : index
    %277 = vector.load %arg1[%c3_204, %c0_205, %c0_206] : memref<4x12x12xf32, #tpu.memory_space<vmem>>, vector<1x12x12xf32>
    %278 = vector.shape_cast %277 : vector<1x12x12xf32> to vector<12x12xf32>
    %cst_207 = arith.constant dense<0.000000e+00> : vector<12x8xf32>
    %279 = tpu.matmul %278, %276, %cst_207 {dimension_numbers = #tpu.dot_dimension_numbers<[1], [0], [0], [1], [0, 0, 1, 1], [], []>} : vector<12x12xf32>, vector<12x8xf32>, vector<12x8xf32> -> vector<12x8xf32>
    %cst_208 = arith.constant dense<0.000000e+00> : vector<12x16xf32>
    %280 = tpu.matmul %279, %3, %cst_208 {dimension_numbers = #tpu.dot_dimension_numbers<[1], [0], [0], [1], [0, 0, 1, 1], [], []>} : vector<12x8xf32>, vector<8x16xf32>, vector<12x16xf32> -> vector<12x16xf32>
    %cst_209 = arith.constant dense<0.000000e+00> : vector<12x16xf32>
    %281 = tpu.matmul %276, %5, %cst_209 {dimension_numbers = #tpu.dot_dimension_numbers<[1], [0], [0], [1], [0, 0, 1, 1], [], []>} : vector<12x8xf32>, vector<8x16xf32>, vector<12x16xf32> -> vector<12x16xf32>
    %282 = arith.addf %280, %281 : vector<12x16xf32>
    %283 = vector.broadcast %10 : vector<1x16xf32> to vector<12x16xf32>
    %284 = arith.addf %282, %283 : vector<12x16xf32>
    %cst_210 = arith.constant 0.000000e+00 : f32
    %285 = vector.broadcast %cst_210 : f32 to vector<12x16xf32>
    %286 = arith.maximumf %284, %285 : vector<12x16xf32>
    %cst_211 = arith.constant dense<0.000000e+00> : vector<12x16xf32>
    %287 = tpu.matmul %278, %286, %cst_211 {dimension_numbers = #tpu.dot_dimension_numbers<[1], [0], [0], [1], [0, 0, 1, 1], [], []>} : vector<12x12xf32>, vector<12x16xf32>, vector<12x16xf32> -> vector<12x16xf32>
    %cst_212 = arith.constant dense<0.000000e+00> : vector<12x16xf32>
    %288 = tpu.matmul %287, %7, %cst_212 {dimension_numbers = #tpu.dot_dimension_numbers<[1], [0], [0], [1], [0, 0, 1, 1], [], []>} : vector<12x16xf32>, vector<16x16xf32>, vector<12x16xf32> -> vector<12x16xf32>
    %cst_213 = arith.constant dense<0.000000e+00> : vector<12x16xf32>
    %289 = tpu.matmul %286, %9, %cst_213 {dimension_numbers = #tpu.dot_dimension_numbers<[1], [0], [0], [1], [0, 0, 1, 1], [], []>} : vector<12x16xf32>, vector<16x16xf32>, vector<12x16xf32> -> vector<12x16xf32>
    %290 = arith.addf %288, %289 : vector<12x16xf32>
    %291 = vector.broadcast %11 : vector<1x16xf32> to vector<12x16xf32>
    %292 = arith.addf %290, %291 : vector<12x16xf32>
    %c0_214 = arith.constant 0 : index
    %c0_215 = arith.constant 0 : index
    %c0_216 = arith.constant 0 : index
    %293 = vector.load %arg8[%c0_214, %c0_215, %c0_216] : memref<4x16x16xf32, #tpu.memory_space<vmem>>, vector<1x16x16xf32>
    %294 = vector.shape_cast %293 : vector<1x16x16xf32> to vector<16x16xf32>
    %cst_217 = arith.constant dense<0.000000e+00> : vector<12x16xf32>
    %295 = tpu.matmul %292, %294, %cst_217 {dimension_numbers = #tpu.dot_dimension_numbers<[1], [0], [0], [1], [0, 0, 1, 1], [], []>} : vector<12x16xf32>, vector<16x16xf32>, vector<12x16xf32> -> vector<12x16xf32>
    %c0_218 = arith.constant 0 : index
    %c0_219 = arith.constant 0 : index
    %c0_220 = arith.constant 0 : index
    %296 = vector.load %arg9[%c0_218, %c0_219, %c0_220] : memref<4x16x16xf32, #tpu.memory_space<vmem>>, vector<1x16x16xf32>
    %297 = vector.shape_cast %296 : vector<1x16x16xf32> to vector<16x16xf32>
    %cst_221 = arith.constant dense<0.000000e+00> : vector<12x16xf32>
    %298 = tpu.matmul %271, %297, %cst_221 {dimension_numbers = #tpu.dot_dimension_numbers<[1], [0], [0], [1], [0, 0, 1, 1], [], []>} : vector<12x16xf32>, vector<16x16xf32>, vector<12x16xf32> -> vector<12x16xf32>
    %299 = arith.addf %295, %298 : vector<12x16xf32>
    %c0_222 = arith.constant 0 : index
    %c0_223 = arith.constant 0 : index
    %c0_224 = arith.constant 0 : index
    %300 = vector.load %arg10[%c0_222, %c0_223, %c0_224] : memref<4x1x16xf32, #tpu.memory_space<vmem>>, vector<1x1x16xf32>
    %301 = vector.shape_cast %300 : vector<1x1x16xf32> to vector<1x16xf32>
    %302 = vector.broadcast %301 : vector<1x16xf32> to vector<12x16xf32>
    %303 = arith.addf %299, %302 : vector<12x16xf32>
    %c1_225 = arith.constant 1 : index
    %c0_226 = arith.constant 0 : index
    %c0_227 = arith.constant 0 : index
    %304 = vector.load %arg8[%c1_225, %c0_226, %c0_227] : memref<4x16x16xf32, #tpu.memory_space<vmem>>, vector<1x16x16xf32>
    %305 = vector.shape_cast %304 : vector<1x16x16xf32> to vector<16x16xf32>
    %cst_228 = arith.constant dense<0.000000e+00> : vector<12x16xf32>
    %306 = tpu.matmul %292, %305, %cst_228 {dimension_numbers = #tpu.dot_dimension_numbers<[1], [0], [0], [1], [0, 0, 1, 1], [], []>} : vector<12x16xf32>, vector<16x16xf32>, vector<12x16xf32> -> vector<12x16xf32>
    %c1_229 = arith.constant 1 : index
    %c0_230 = arith.constant 0 : index
    %c0_231 = arith.constant 0 : index
    %307 = vector.load %arg9[%c1_229, %c0_230, %c0_231] : memref<4x16x16xf32, #tpu.memory_space<vmem>>, vector<1x16x16xf32>
    %308 = vector.shape_cast %307 : vector<1x16x16xf32> to vector<16x16xf32>
    %cst_232 = arith.constant dense<0.000000e+00> : vector<12x16xf32>
    %309 = tpu.matmul %271, %308, %cst_232 {dimension_numbers = #tpu.dot_dimension_numbers<[1], [0], [0], [1], [0, 0, 1, 1], [], []>} : vector<12x16xf32>, vector<16x16xf32>, vector<12x16xf32> -> vector<12x16xf32>
    %310 = arith.addf %306, %309 : vector<12x16xf32>
    %c1_233 = arith.constant 1 : index
    %c0_234 = arith.constant 0 : index
    %c0_235 = arith.constant 0 : index
    %311 = vector.load %arg10[%c1_233, %c0_234, %c0_235] : memref<4x1x16xf32, #tpu.memory_space<vmem>>, vector<1x1x16xf32>
    %312 = vector.shape_cast %311 : vector<1x1x16xf32> to vector<1x16xf32>
    %313 = vector.broadcast %312 : vector<1x16xf32> to vector<12x16xf32>
    %314 = arith.addf %310, %313 : vector<12x16xf32>
    %c2_236 = arith.constant 2 : index
    %c0_237 = arith.constant 0 : index
    %c0_238 = arith.constant 0 : index
    %315 = vector.load %arg8[%c2_236, %c0_237, %c0_238] : memref<4x16x16xf32, #tpu.memory_space<vmem>>, vector<1x16x16xf32>
    %316 = vector.shape_cast %315 : vector<1x16x16xf32> to vector<16x16xf32>
    %cst_239 = arith.constant dense<0.000000e+00> : vector<12x16xf32>
    %317 = tpu.matmul %292, %316, %cst_239 {dimension_numbers = #tpu.dot_dimension_numbers<[1], [0], [0], [1], [0, 0, 1, 1], [], []>} : vector<12x16xf32>, vector<16x16xf32>, vector<12x16xf32> -> vector<12x16xf32>
    %c2_240 = arith.constant 2 : index
    %c0_241 = arith.constant 0 : index
    %c0_242 = arith.constant 0 : index
    %318 = vector.load %arg9[%c2_240, %c0_241, %c0_242] : memref<4x16x16xf32, #tpu.memory_space<vmem>>, vector<1x16x16xf32>
    %319 = vector.shape_cast %318 : vector<1x16x16xf32> to vector<16x16xf32>
    %cst_243 = arith.constant dense<0.000000e+00> : vector<12x16xf32>
    %320 = tpu.matmul %271, %319, %cst_243 {dimension_numbers = #tpu.dot_dimension_numbers<[1], [0], [0], [1], [0, 0, 1, 1], [], []>} : vector<12x16xf32>, vector<16x16xf32>, vector<12x16xf32> -> vector<12x16xf32>
    %321 = arith.addf %317, %320 : vector<12x16xf32>
    %c2_244 = arith.constant 2 : index
    %c0_245 = arith.constant 0 : index
    %c0_246 = arith.constant 0 : index
    %322 = vector.load %arg10[%c2_244, %c0_245, %c0_246] : memref<4x1x16xf32, #tpu.memory_space<vmem>>, vector<1x1x16xf32>
    %323 = vector.shape_cast %322 : vector<1x1x16xf32> to vector<1x16xf32>
    %324 = vector.broadcast %323 : vector<1x16xf32> to vector<12x16xf32>
    %325 = arith.addf %321, %324 : vector<12x16xf32>
    %c3_247 = arith.constant 3 : index
    %c0_248 = arith.constant 0 : index
    %c0_249 = arith.constant 0 : index
    %326 = vector.load %arg8[%c3_247, %c0_248, %c0_249] : memref<4x16x16xf32, #tpu.memory_space<vmem>>, vector<1x16x16xf32>
    %327 = vector.shape_cast %326 : vector<1x16x16xf32> to vector<16x16xf32>
    %cst_250 = arith.constant dense<0.000000e+00> : vector<12x16xf32>
    %328 = tpu.matmul %292, %327, %cst_250 {dimension_numbers = #tpu.dot_dimension_numbers<[1], [0], [0], [1], [0, 0, 1, 1], [], []>} : vector<12x16xf32>, vector<16x16xf32>, vector<12x16xf32> -> vector<12x16xf32>
    %c3_251 = arith.constant 3 : index
    %c0_252 = arith.constant 0 : index
    %c0_253 = arith.constant 0 : index
    %329 = vector.load %arg9[%c3_251, %c0_252, %c0_253] : memref<4x16x16xf32, #tpu.memory_space<vmem>>, vector<1x16x16xf32>
    %330 = vector.shape_cast %329 : vector<1x16x16xf32> to vector<16x16xf32>
    %cst_254 = arith.constant dense<0.000000e+00> : vector<12x16xf32>
    %331 = tpu.matmul %271, %330, %cst_254 {dimension_numbers = #tpu.dot_dimension_numbers<[1], [0], [0], [1], [0, 0, 1, 1], [], []>} : vector<12x16xf32>, vector<16x16xf32>, vector<12x16xf32> -> vector<12x16xf32>
    %332 = arith.addf %328, %331 : vector<12x16xf32>
    %c3_255 = arith.constant 3 : index
    %c0_256 = arith.constant 0 : index
    %c0_257 = arith.constant 0 : index
    %333 = vector.load %arg10[%c3_255, %c0_256, %c0_257] : memref<4x1x16xf32, #tpu.memory_space<vmem>>, vector<1x1x16xf32>
    %334 = vector.shape_cast %333 : vector<1x1x16xf32> to vector<1x16xf32>
    %335 = vector.broadcast %334 : vector<1x16xf32> to vector<12x16xf32>
    %336 = arith.addf %332, %335 : vector<12x16xf32>
    %337 = arith.negf %303 : vector<12x16xf32>
    %338 = math.exp %337 : vector<12x16xf32>
    %cst_258 = arith.constant 1.000000e+00 : f32
    %339 = vector.broadcast %cst_258 : f32 to vector<12x16xf32>
    %340 = arith.addf %339, %338 : vector<12x16xf32>
    %341 = arith.divf %339, %340 : vector<12x16xf32>
    %342 = arith.negf %314 : vector<12x16xf32>
    %343 = math.exp %342 : vector<12x16xf32>
    %cst_259 = arith.constant 1.000000e+00 : f32
    %344 = vector.broadcast %cst_259 : f32 to vector<12x16xf32>
    %345 = arith.addf %344, %343 : vector<12x16xf32>
    %346 = arith.divf %344, %345 : vector<12x16xf32>
    %347 = math.tanh %325 : vector<12x16xf32>
    %348 = arith.negf %336 : vector<12x16xf32>
    %349 = math.exp %348 : vector<12x16xf32>
    %cst_260 = arith.constant 1.000000e+00 : f32
    %350 = vector.broadcast %cst_260 : f32 to vector<12x16xf32>
    %351 = arith.addf %350, %349 : vector<12x16xf32>
    %352 = arith.divf %350, %351 : vector<12x16xf32>
    %353 = arith.mulf %346, %269 : vector<12x16xf32>
    %354 = arith.mulf %341, %347 : vector<12x16xf32>
    %355 = arith.addf %353, %354 : vector<12x16xf32>
    %356 = math.tanh %355 : vector<12x16xf32>
    %357 = arith.mulf %352, %356 : vector<12x16xf32>
    %c0_261 = arith.constant 0 : index
    %c0_262 = arith.constant 0 : index
    %358 = vector.load %arg22[%c0_261, %c0_262] : memref<12x16xf32, #tpu.memory_space<vmem>>, vector<12x16xf32>
    tpu.vector_store %arg22[%c0_261, %c0_262], %357 {strides = array<i32>} : memref<12x16xf32, #tpu.memory_space<vmem>>, vector<12x16xf32>,
    %c0_263 = arith.constant 0 : index
    %c0_264 = arith.constant 0 : index
    %359 = vector.load %arg12[%c0_263, %c0_264] : memref<30x30xf32, #tpu.memory_space<vmem>>, vector<30x30xf32>
    %c0_265 = arith.constant 0 : index
    %c0_266 = arith.constant 0 : index
    %360 = vector.load %arg11[%c0_265, %c0_266] : memref<30x8xf32, #tpu.memory_space<vmem>>, vector<30x8xf32>
    %cst_267 = arith.constant 0.000000e+00 : f32
    %361 = vector.broadcast %cst_267 : f32 to vector<30x8xf32>
    %c0_268 = arith.constant 0 : index
    %c0_269 = arith.constant 0 : index
    %c0_270 = arith.constant 0 : index
    %362 = vector.load %arg16[%c0_268, %c0_269, %c0_270] : memref<2x1x8xf32, #tpu.memory_space<vmem>>, vector<1x1x8xf32>
    %363 = vector.shape_cast %362 : vector<1x1x8xf32> to vector<1x8xf32>
    %364 = vector.broadcast %363 : vector<1x8xf32> to vector<30x8xf32>
    %365 = arith.addf %361, %364 : vector<30x8xf32>
    %c0_271 = arith.constant 0 : index
    %c0_272 = arith.constant 0 : index
    %c0_273 = arith.constant 0 : index
    %366 = vector.load %arg13[%c0_271, %c0_272, %c0_273] : memref<24x8x2xf32, #tpu.memory_space<vmem>>, vector<1x8x2xf32>
    %367 = vector.shape_cast %366 : vector<1x8x2xf32> to vector<8x2xf32>
    %cst_274 = arith.constant dense<0.000000e+00> : vector<30x2xf32>
    %368 = tpu.matmul %360, %367, %cst_274 {dimension_numbers = #tpu.dot_dimension_numbers<[1], [0], [0], [1], [0, 0, 1, 1], [], []>} : vector<30x8xf32>, vector<8x2xf32>, vector<30x2xf32> -> vector<30x2xf32>
    %c0_275 = arith.constant 0 : index
    %c0_276 = arith.constant 0 : index
    %c0_277 = arith.constant 0 : index
    %369 = vector.load %arg14[%c0_275, %c0_276, %c0_277] : memref<24x1x2xf32, #tpu.memory_space<vmem>>, vector<1x1x2xf32>
    %370 = vector.shape_cast %369 : vector<1x1x2xf32> to vector<1x2xf32>
    %371 = vector.broadcast %370 : vector<1x2xf32> to vector<30x2xf32>
    %372 = arith.addf %368, %371 : vector<30x2xf32>
    %c4 = arith.constant 4 : index
    %c0_278 = arith.constant 0 : index
    %c0_279 = arith.constant 0 : index
    %373 = vector.load %arg13[%c4, %c0_278, %c0_279] : memref<24x8x2xf32, #tpu.memory_space<vmem>>, vector<1x8x2xf32>
    %374 = vector.shape_cast %373 : vector<1x8x2xf32> to vector<8x2xf32>
    %cst_280 = arith.constant dense<0.000000e+00> : vector<30x2xf32>
    %375 = tpu.matmul %360, %374, %cst_280 {dimension_numbers = #tpu.dot_dimension_numbers<[1], [0], [0], [1], [0, 0, 1, 1], [], []>} : vector<30x8xf32>, vector<8x2xf32>, vector<30x2xf32> -> vector<30x2xf32>
    %c4_281 = arith.constant 4 : index
    %c0_282 = arith.constant 0 : index
    %c0_283 = arith.constant 0 : index
    %376 = vector.load %arg14[%c4_281, %c0_282, %c0_283] : memref<24x1x2xf32, #tpu.memory_space<vmem>>, vector<1x1x2xf32>
    %377 = vector.shape_cast %376 : vector<1x1x2xf32> to vector<1x2xf32>
    %378 = vector.broadcast %377 : vector<1x2xf32> to vector<30x2xf32>
    %379 = arith.addf %375, %378 : vector<30x2xf32>
    %c8 = arith.constant 8 : index
    %c0_284 = arith.constant 0 : index
    %c0_285 = arith.constant 0 : index
    %380 = vector.load %arg13[%c8, %c0_284, %c0_285] : memref<24x8x2xf32, #tpu.memory_space<vmem>>, vector<1x8x2xf32>
    %381 = vector.shape_cast %380 : vector<1x8x2xf32> to vector<8x2xf32>
    %cst_286 = arith.constant dense<0.000000e+00> : vector<30x2xf32>
    %382 = tpu.matmul %360, %381, %cst_286 {dimension_numbers = #tpu.dot_dimension_numbers<[1], [0], [0], [1], [0, 0, 1, 1], [], []>} : vector<30x8xf32>, vector<8x2xf32>, vector<30x2xf32> -> vector<30x2xf32>
    %c8_287 = arith.constant 8 : index
    %c0_288 = arith.constant 0 : index
    %c0_289 = arith.constant 0 : index
    %383 = vector.load %arg14[%c8_287, %c0_288, %c0_289] : memref<24x1x2xf32, #tpu.memory_space<vmem>>, vector<1x1x2xf32>
    %384 = vector.shape_cast %383 : vector<1x1x2xf32> to vector<1x2xf32>
    %385 = vector.broadcast %384 : vector<1x2xf32> to vector<30x2xf32>
    %386 = arith.addf %382, %385 : vector<30x2xf32>
    %cst_290 = arith.constant 0.707106769 : f32
    %387 = vector.broadcast %cst_290 : f32 to vector<30x2xf32>
    %388 = arith.mulf %372, %387 : vector<30x2xf32>
    %389 = tpu.transpose %379, [1, 0] : vector<30x2xf32> -> vector<2x30xf32>
    %cst_291 = arith.constant dense<0.000000e+00> : vector<30x30xf32>
    %390 = tpu.matmul %388, %389, %cst_291 {dimension_numbers = #tpu.dot_dimension_numbers<[1], [0], [0], [1], [0, 0, 1, 1], [], []>} : vector<30x2xf32>, vector<2x30xf32>, vector<30x30xf32> -> vector<30x30xf32>
    %391 = arith.addf %390, %359 : vector<30x30xf32>
    %cst_292 = arith.constant dense<0xFF800000> : vector<30xf32>
    %392 = vector.multi_reduction <maximumf>, %391, %cst_292 [1] : vector<30x30xf32> to vector<30xf32>
    %393 = vector.shape_cast %392 : vector<30xf32> to vector<30x1xf32>
    %394 = vector.broadcast %393 : vector<30x1xf32> to vector<30x30xf32>
    %395 = arith.subf %391, %394 : vector<30x30xf32>
    %396 = math.exp %395 : vector<30x30xf32>
    %cst_293 = arith.constant dense<0.000000e+00> : vector<30xf32>
    %397 = vector.multi_reduction <add>, %396, %cst_293 [1] : vector<30x30xf32> to vector<30xf32>
    %398 = vector.shape_cast %397 : vector<30xf32> to vector<30x1xf32>
    %399 = tpu.reciprocal %398 {approx = true} : vector<30x1xf32> -> vector<30x1xf32>
    %400 = vector.broadcast %399 : vector<30x1xf32> to vector<30x30xf32>
    %401 = arith.mulf %396, %400 : vector<30x30xf32>
    %cst_294 = arith.constant dense<0.000000e+00> : vector<30x2xf32>
    %402 = tpu.matmul %401, %386, %cst_294 {dimension_numbers = #tpu.dot_dimension_numbers<[1], [0], [0], [1], [0, 0, 1, 1], [], []>} : vector<30x30xf32>, vector<30x2xf32>, vector<30x2xf32> -> vector<30x2xf32>
    %c0_295 = arith.constant 0 : index
    %c0_296 = arith.constant 0 : index
    %c0_297 = arith.constant 0 : index
    %403 = vector.load %arg15[%c0_295, %c0_296, %c0_297] : memref<8x2x8xf32, #tpu.memory_space<vmem>>, vector<1x2x8xf32>
    %404 = vector.shape_cast %403 : vector<1x2x8xf32> to vector<2x8xf32>
    %cst_298 = arith.constant dense<0.000000e+00> : vector<30x8xf32>
    %405 = tpu.matmul %402, %404, %cst_298 {dimension_numbers = #tpu.dot_dimension_numbers<[1], [0], [0], [1], [0, 0, 1, 1], [], []>} : vector<30x2xf32>, vector<2x8xf32>, vector<30x8xf32> -> vector<30x8xf32>
    %406 = arith.addf %365, %405 : vector<30x8xf32>
    %c1_299 = arith.constant 1 : index
    %c0_300 = arith.constant 0 : index
    %c0_301 = arith.constant 0 : index
    %407 = vector.load %arg13[%c1_299, %c0_300, %c0_301] : memref<24x8x2xf32, #tpu.memory_space<vmem>>, vector<1x8x2xf32>
    %408 = vector.shape_cast %407 : vector<1x8x2xf32> to vector<8x2xf32>
    %cst_302 = arith.constant dense<0.000000e+00> : vector<30x2xf32>
    %409 = tpu.matmul %360, %408, %cst_302 {dimension_numbers = #tpu.dot_dimension_numbers<[1], [0], [0], [1], [0, 0, 1, 1], [], []>} : vector<30x8xf32>, vector<8x2xf32>, vector<30x2xf32> -> vector<30x2xf32>
    %c1_303 = arith.constant 1 : index
    %c0_304 = arith.constant 0 : index
    %c0_305 = arith.constant 0 : index
    %410 = vector.load %arg14[%c1_303, %c0_304, %c0_305] : memref<24x1x2xf32, #tpu.memory_space<vmem>>, vector<1x1x2xf32>
    %411 = vector.shape_cast %410 : vector<1x1x2xf32> to vector<1x2xf32>
    %412 = vector.broadcast %411 : vector<1x2xf32> to vector<30x2xf32>
    %413 = arith.addf %409, %412 : vector<30x2xf32>
    %c5 = arith.constant 5 : index
    %c0_306 = arith.constant 0 : index
    %c0_307 = arith.constant 0 : index
    %414 = vector.load %arg13[%c5, %c0_306, %c0_307] : memref<24x8x2xf32, #tpu.memory_space<vmem>>, vector<1x8x2xf32>
    %415 = vector.shape_cast %414 : vector<1x8x2xf32> to vector<8x2xf32>
    %cst_308 = arith.constant dense<0.000000e+00> : vector<30x2xf32>
    %416 = tpu.matmul %360, %415, %cst_308 {dimension_numbers = #tpu.dot_dimension_numbers<[1], [0], [0], [1], [0, 0, 1, 1], [], []>} : vector<30x8xf32>, vector<8x2xf32>, vector<30x2xf32> -> vector<30x2xf32>
    %c5_309 = arith.constant 5 : index
    %c0_310 = arith.constant 0 : index
    %c0_311 = arith.constant 0 : index
    %417 = vector.load %arg14[%c5_309, %c0_310, %c0_311] : memref<24x1x2xf32, #tpu.memory_space<vmem>>, vector<1x1x2xf32>
    %418 = vector.shape_cast %417 : vector<1x1x2xf32> to vector<1x2xf32>
    %419 = vector.broadcast %418 : vector<1x2xf32> to vector<30x2xf32>
    %420 = arith.addf %416, %419 : vector<30x2xf32>
    %c9 = arith.constant 9 : index
    %c0_312 = arith.constant 0 : index
    %c0_313 = arith.constant 0 : index
    %421 = vector.load %arg13[%c9, %c0_312, %c0_313] : memref<24x8x2xf32, #tpu.memory_space<vmem>>, vector<1x8x2xf32>
    %422 = vector.shape_cast %421 : vector<1x8x2xf32> to vector<8x2xf32>
    %cst_314 = arith.constant dense<0.000000e+00> : vector<30x2xf32>
    %423 = tpu.matmul %360, %422, %cst_314 {dimension_numbers = #tpu.dot_dimension_numbers<[1], [0], [0], [1], [0, 0, 1, 1], [], []>} : vector<30x8xf32>, vector<8x2xf32>, vector<30x2xf32> -> vector<30x2xf32>
    %c9_315 = arith.constant 9 : index
    %c0_316 = arith.constant 0 : index
    %c0_317 = arith.constant 0 : index
    %424 = vector.load %arg14[%c9_315, %c0_316, %c0_317] : memref<24x1x2xf32, #tpu.memory_space<vmem>>, vector<1x1x2xf32>
    %425 = vector.shape_cast %424 : vector<1x1x2xf32> to vector<1x2xf32>
    %426 = vector.broadcast %425 : vector<1x2xf32> to vector<30x2xf32>
    %427 = arith.addf %423, %426 : vector<30x2xf32>
    %cst_318 = arith.constant 0.707106769 : f32
    %428 = vector.broadcast %cst_318 : f32 to vector<30x2xf32>
    %429 = arith.mulf %413, %428 : vector<30x2xf32>
    %430 = tpu.transpose %420, [1, 0] : vector<30x2xf32> -> vector<2x30xf32>
    %cst_319 = arith.constant dense<0.000000e+00> : vector<30x30xf32>
    %431 = tpu.matmul %429, %430, %cst_319 {dimension_numbers = #tpu.dot_dimension_numbers<[1], [0], [0], [1], [0, 0, 1, 1], [], []>} : vector<30x2xf32>, vector<2x30xf32>, vector<30x30xf32> -> vector<30x30xf32>
    %432 = arith.addf %431, %359 : vector<30x30xf32>
    %cst_320 = arith.constant dense<0xFF800000> : vector<30xf32>
    %433 = vector.multi_reduction <maximumf>, %432, %cst_320 [1] : vector<30x30xf32> to vector<30xf32>
    %434 = vector.shape_cast %433 : vector<30xf32> to vector<30x1xf32>
    %435 = vector.broadcast %434 : vector<30x1xf32> to vector<30x30xf32>
    %436 = arith.subf %432, %435 : vector<30x30xf32>
    %437 = math.exp %436 : vector<30x30xf32>
    %cst_321 = arith.constant dense<0.000000e+00> : vector<30xf32>
    %438 = vector.multi_reduction <add>, %437, %cst_321 [1] : vector<30x30xf32> to vector<30xf32>
    %439 = vector.shape_cast %438 : vector<30xf32> to vector<30x1xf32>
    %440 = tpu.reciprocal %439 {approx = true} : vector<30x1xf32> -> vector<30x1xf32>
    %441 = vector.broadcast %440 : vector<30x1xf32> to vector<30x30xf32>
    %442 = arith.mulf %437, %441 : vector<30x30xf32>
    %cst_322 = arith.constant dense<0.000000e+00> : vector<30x2xf32>
    %443 = tpu.matmul %442, %427, %cst_322 {dimension_numbers = #tpu.dot_dimension_numbers<[1], [0], [0], [1], [0, 0, 1, 1], [], []>} : vector<30x30xf32>, vector<30x2xf32>, vector<30x2xf32> -> vector<30x2xf32>
    %c1_323 = arith.constant 1 : index
    %c0_324 = arith.constant 0 : index
    %c0_325 = arith.constant 0 : index
    %444 = vector.load %arg15[%c1_323, %c0_324, %c0_325] : memref<8x2x8xf32, #tpu.memory_space<vmem>>, vector<1x2x8xf32>
    %445 = vector.shape_cast %444 : vector<1x2x8xf32> to vector<2x8xf32>
    %cst_326 = arith.constant dense<0.000000e+00> : vector<30x8xf32>
    %446 = tpu.matmul %443, %445, %cst_326 {dimension_numbers = #tpu.dot_dimension_numbers<[1], [0], [0], [1], [0, 0, 1, 1], [], []>} : vector<30x2xf32>, vector<2x8xf32>, vector<30x8xf32> -> vector<30x8xf32>
    %447 = arith.addf %406, %446 : vector<30x8xf32>
    %c2_327 = arith.constant 2 : index
    %c0_328 = arith.constant 0 : index
    %c0_329 = arith.constant 0 : index
    %448 = vector.load %arg13[%c2_327, %c0_328, %c0_329] : memref<24x8x2xf32, #tpu.memory_space<vmem>>, vector<1x8x2xf32>
    %449 = vector.shape_cast %448 : vector<1x8x2xf32> to vector<8x2xf32>
    %cst_330 = arith.constant dense<0.000000e+00> : vector<30x2xf32>
    %450 = tpu.matmul %360, %449, %cst_330 {dimension_numbers = #tpu.dot_dimension_numbers<[1], [0], [0], [1], [0, 0, 1, 1], [], []>} : vector<30x8xf32>, vector<8x2xf32>, vector<30x2xf32> -> vector<30x2xf32>
    %c2_331 = arith.constant 2 : index
    %c0_332 = arith.constant 0 : index
    %c0_333 = arith.constant 0 : index
    %451 = vector.load %arg14[%c2_331, %c0_332, %c0_333] : memref<24x1x2xf32, #tpu.memory_space<vmem>>, vector<1x1x2xf32>
    %452 = vector.shape_cast %451 : vector<1x1x2xf32> to vector<1x2xf32>
    %453 = vector.broadcast %452 : vector<1x2xf32> to vector<30x2xf32>
    %454 = arith.addf %450, %453 : vector<30x2xf32>
    %c6 = arith.constant 6 : index
    %c0_334 = arith.constant 0 : index
    %c0_335 = arith.constant 0 : index
    %455 = vector.load %arg13[%c6, %c0_334, %c0_335] : memref<24x8x2xf32, #tpu.memory_space<vmem>>, vector<1x8x2xf32>
    %456 = vector.shape_cast %455 : vector<1x8x2xf32> to vector<8x2xf32>
    %cst_336 = arith.constant dense<0.000000e+00> : vector<30x2xf32>
    %457 = tpu.matmul %360, %456, %cst_336 {dimension_numbers = #tpu.dot_dimension_numbers<[1], [0], [0], [1], [0, 0, 1, 1], [], []>} : vector<30x8xf32>, vector<8x2xf32>, vector<30x2xf32> -> vector<30x2xf32>
    %c6_337 = arith.constant 6 : index
    %c0_338 = arith.constant 0 : index
    %c0_339 = arith.constant 0 : index
    %458 = vector.load %arg14[%c6_337, %c0_338, %c0_339] : memref<24x1x2xf32, #tpu.memory_space<vmem>>, vector<1x1x2xf32>
    %459 = vector.shape_cast %458 : vector<1x1x2xf32> to vector<1x2xf32>
    %460 = vector.broadcast %459 : vector<1x2xf32> to vector<30x2xf32>
    %461 = arith.addf %457, %460 : vector<30x2xf32>
    %c10 = arith.constant 10 : index
    %c0_340 = arith.constant 0 : index
    %c0_341 = arith.constant 0 : index
    %462 = vector.load %arg13[%c10, %c0_340, %c0_341] : memref<24x8x2xf32, #tpu.memory_space<vmem>>, vector<1x8x2xf32>
    %463 = vector.shape_cast %462 : vector<1x8x2xf32> to vector<8x2xf32>
    %cst_342 = arith.constant dense<0.000000e+00> : vector<30x2xf32>
    %464 = tpu.matmul %360, %463, %cst_342 {dimension_numbers = #tpu.dot_dimension_numbers<[1], [0], [0], [1], [0, 0, 1, 1], [], []>} : vector<30x8xf32>, vector<8x2xf32>, vector<30x2xf32> -> vector<30x2xf32>
    %c10_343 = arith.constant 10 : index
    %c0_344 = arith.constant 0 : index
    %c0_345 = arith.constant 0 : index
    %465 = vector.load %arg14[%c10_343, %c0_344, %c0_345] : memref<24x1x2xf32, #tpu.memory_space<vmem>>, vector<1x1x2xf32>
    %466 = vector.shape_cast %465 : vector<1x1x2xf32> to vector<1x2xf32>
    %467 = vector.broadcast %466 : vector<1x2xf32> to vector<30x2xf32>
    %468 = arith.addf %464, %467 : vector<30x2xf32>
    %cst_346 = arith.constant 0.707106769 : f32
    %469 = vector.broadcast %cst_346 : f32 to vector<30x2xf32>
    %470 = arith.mulf %454, %469 : vector<30x2xf32>
    %471 = tpu.transpose %461, [1, 0] : vector<30x2xf32> -> vector<2x30xf32>
    %cst_347 = arith.constant dense<0.000000e+00> : vector<30x30xf32>
    %472 = tpu.matmul %470, %471, %cst_347 {dimension_numbers = #tpu.dot_dimension_numbers<[1], [0], [0], [1], [0, 0, 1, 1], [], []>} : vector<30x2xf32>, vector<2x30xf32>, vector<30x30xf32> -> vector<30x30xf32>
    %473 = arith.addf %472, %359 : vector<30x30xf32>
    %cst_348 = arith.constant dense<0xFF800000> : vector<30xf32>
    %474 = vector.multi_reduction <maximumf>, %473, %cst_348 [1] : vector<30x30xf32> to vector<30xf32>
    %475 = vector.shape_cast %474 : vector<30xf32> to vector<30x1xf32>
    %476 = vector.broadcast %475 : vector<30x1xf32> to vector<30x30xf32>
    %477 = arith.subf %473, %476 : vector<30x30xf32>
    %478 = math.exp %477 : vector<30x30xf32>
    %cst_349 = arith.constant dense<0.000000e+00> : vector<30xf32>
    %479 = vector.multi_reduction <add>, %478, %cst_349 [1] : vector<30x30xf32> to vector<30xf32>
    %480 = vector.shape_cast %479 : vector<30xf32> to vector<30x1xf32>
    %481 = tpu.reciprocal %480 {approx = true} : vector<30x1xf32> -> vector<30x1xf32>
    %482 = vector.broadcast %481 : vector<30x1xf32> to vector<30x30xf32>
    %483 = arith.mulf %478, %482 : vector<30x30xf32>
    %cst_350 = arith.constant dense<0.000000e+00> : vector<30x2xf32>
    %484 = tpu.matmul %483, %468, %cst_350 {dimension_numbers = #tpu.dot_dimension_numbers<[1], [0], [0], [1], [0, 0, 1, 1], [], []>} : vector<30x30xf32>, vector<30x2xf32>, vector<30x2xf32> -> vector<30x2xf32>
    %c2_351 = arith.constant 2 : index
    %c0_352 = arith.constant 0 : index
    %c0_353 = arith.constant 0 : index
    %485 = vector.load %arg15[%c2_351, %c0_352, %c0_353] : memref<8x2x8xf32, #tpu.memory_space<vmem>>, vector<1x2x8xf32>
    %486 = vector.shape_cast %485 : vector<1x2x8xf32> to vector<2x8xf32>
    %cst_354 = arith.constant dense<0.000000e+00> : vector<30x8xf32>
    %487 = tpu.matmul %484, %486, %cst_354 {dimension_numbers = #tpu.dot_dimension_numbers<[1], [0], [0], [1], [0, 0, 1, 1], [], []>} : vector<30x2xf32>, vector<2x8xf32>, vector<30x8xf32> -> vector<30x8xf32>
    %488 = arith.addf %447, %487 : vector<30x8xf32>
    %c3_355 = arith.constant 3 : index
    %c0_356 = arith.constant 0 : index
    %c0_357 = arith.constant 0 : index
    %489 = vector.load %arg13[%c3_355, %c0_356, %c0_357] : memref<24x8x2xf32, #tpu.memory_space<vmem>>, vector<1x8x2xf32>
    %490 = vector.shape_cast %489 : vector<1x8x2xf32> to vector<8x2xf32>
    %cst_358 = arith.constant dense<0.000000e+00> : vector<30x2xf32>
    %491 = tpu.matmul %360, %490, %cst_358 {dimension_numbers = #tpu.dot_dimension_numbers<[1], [0], [0], [1], [0, 0, 1, 1], [], []>} : vector<30x8xf32>, vector<8x2xf32>, vector<30x2xf32> -> vector<30x2xf32>
    %c3_359 = arith.constant 3 : index
    %c0_360 = arith.constant 0 : index
    %c0_361 = arith.constant 0 : index
    %492 = vector.load %arg14[%c3_359, %c0_360, %c0_361] : memref<24x1x2xf32, #tpu.memory_space<vmem>>, vector<1x1x2xf32>
    %493 = vector.shape_cast %492 : vector<1x1x2xf32> to vector<1x2xf32>
    %494 = vector.broadcast %493 : vector<1x2xf32> to vector<30x2xf32>
    %495 = arith.addf %491, %494 : vector<30x2xf32>
    %c7 = arith.constant 7 : index
    %c0_362 = arith.constant 0 : index
    %c0_363 = arith.constant 0 : index
    %496 = vector.load %arg13[%c7, %c0_362, %c0_363] : memref<24x8x2xf32, #tpu.memory_space<vmem>>, vector<1x8x2xf32>
    %497 = vector.shape_cast %496 : vector<1x8x2xf32> to vector<8x2xf32>
    %cst_364 = arith.constant dense<0.000000e+00> : vector<30x2xf32>
    %498 = tpu.matmul %360, %497, %cst_364 {dimension_numbers = #tpu.dot_dimension_numbers<[1], [0], [0], [1], [0, 0, 1, 1], [], []>} : vector<30x8xf32>, vector<8x2xf32>, vector<30x2xf32> -> vector<30x2xf32>
    %c7_365 = arith.constant 7 : index
    %c0_366 = arith.constant 0 : index
    %c0_367 = arith.constant 0 : index
    %499 = vector.load %arg14[%c7_365, %c0_366, %c0_367] : memref<24x1x2xf32, #tpu.memory_space<vmem>>, vector<1x1x2xf32>
    %500 = vector.shape_cast %499 : vector<1x1x2xf32> to vector<1x2xf32>
    %501 = vector.broadcast %500 : vector<1x2xf32> to vector<30x2xf32>
    %502 = arith.addf %498, %501 : vector<30x2xf32>
    %c11 = arith.constant 11 : index
    %c0_368 = arith.constant 0 : index
    %c0_369 = arith.constant 0 : index
    %503 = vector.load %arg13[%c11, %c0_368, %c0_369] : memref<24x8x2xf32, #tpu.memory_space<vmem>>, vector<1x8x2xf32>
    %504 = vector.shape_cast %503 : vector<1x8x2xf32> to vector<8x2xf32>
    %cst_370 = arith.constant dense<0.000000e+00> : vector<30x2xf32>
    %505 = tpu.matmul %360, %504, %cst_370 {dimension_numbers = #tpu.dot_dimension_numbers<[1], [0], [0], [1], [0, 0, 1, 1], [], []>} : vector<30x8xf32>, vector<8x2xf32>, vector<30x2xf32> -> vector<30x2xf32>
    %c11_371 = arith.constant 11 : index
    %c0_372 = arith.constant 0 : index
    %c0_373 = arith.constant 0 : index
    %506 = vector.load %arg14[%c11_371, %c0_372, %c0_373] : memref<24x1x2xf32, #tpu.memory_space<vmem>>, vector<1x1x2xf32>
    %507 = vector.shape_cast %506 : vector<1x1x2xf32> to vector<1x2xf32>
    %508 = vector.broadcast %507 : vector<1x2xf32> to vector<30x2xf32>
    %509 = arith.addf %505, %508 : vector<30x2xf32>
    %cst_374 = arith.constant 0.707106769 : f32
    %510 = vector.broadcast %cst_374 : f32 to vector<30x2xf32>
    %511 = arith.mulf %495, %510 : vector<30x2xf32>
    %512 = tpu.transpose %502, [1, 0] : vector<30x2xf32> -> vector<2x30xf32>
    %cst_375 = arith.constant dense<0.000000e+00> : vector<30x30xf32>
    %513 = tpu.matmul %511, %512, %cst_375 {dimension_numbers = #tpu.dot_dimension_numbers<[1], [0], [0], [1], [0, 0, 1, 1], [], []>} : vector<30x2xf32>, vector<2x30xf32>, vector<30x30xf32> -> vector<30x30xf32>
    %514 = arith.addf %513, %359 : vector<30x30xf32>
    %cst_376 = arith.constant dense<0xFF800000> : vector<30xf32>
    %515 = vector.multi_reduction <maximumf>, %514, %cst_376 [1] : vector<30x30xf32> to vector<30xf32>
    %516 = vector.shape_cast %515 : vector<30xf32> to vector<30x1xf32>
    %517 = vector.broadcast %516 : vector<30x1xf32> to vector<30x30xf32>
    %518 = arith.subf %514, %517 : vector<30x30xf32>
    %519 = math.exp %518 : vector<30x30xf32>
    %cst_377 = arith.constant dense<0.000000e+00> : vector<30xf32>
    %520 = vector.multi_reduction <add>, %519, %cst_377 [1] : vector<30x30xf32> to vector<30xf32>
    %521 = vector.shape_cast %520 : vector<30xf32> to vector<30x1xf32>
    %522 = tpu.reciprocal %521 {approx = true} : vector<30x1xf32> -> vector<30x1xf32>
    %523 = vector.broadcast %522 : vector<30x1xf32> to vector<30x30xf32>
    %524 = arith.mulf %519, %523 : vector<30x30xf32>
    %cst_378 = arith.constant dense<0.000000e+00> : vector<30x2xf32>
    %525 = tpu.matmul %524, %509, %cst_378 {dimension_numbers = #tpu.dot_dimension_numbers<[1], [0], [0], [1], [0, 0, 1, 1], [], []>} : vector<30x30xf32>, vector<30x2xf32>, vector<30x2xf32> -> vector<30x2xf32>
    %c3_379 = arith.constant 3 : index
    %c0_380 = arith.constant 0 : index
    %c0_381 = arith.constant 0 : index
    %526 = vector.load %arg15[%c3_379, %c0_380, %c0_381] : memref<8x2x8xf32, #tpu.memory_space<vmem>>, vector<1x2x8xf32>
    %527 = vector.shape_cast %526 : vector<1x2x8xf32> to vector<2x8xf32>
    %cst_382 = arith.constant dense<0.000000e+00> : vector<30x8xf32>
    %528 = tpu.matmul %525, %527, %cst_382 {dimension_numbers = #tpu.dot_dimension_numbers<[1], [0], [0], [1], [0, 0, 1, 1], [], []>} : vector<30x2xf32>, vector<2x8xf32>, vector<30x8xf32> -> vector<30x8xf32>
    %529 = arith.addf %488, %528 : vector<30x8xf32>
    %530 = arith.addf %360, %529 : vector<30x8xf32>
    %c0_383 = arith.constant 0 : index
    %c0_384 = arith.constant 0 : index
    %c0_385 = arith.constant 0 : index
    %531 = vector.load %arg21[%c0_383, %c0_384, %c0_385] : memref<8x1x8xf32, #tpu.memory_space<vmem>>, vector<1x1x8xf32>
    %532 = vector.shape_cast %531 : vector<1x1x8xf32> to vector<1x8xf32>
    %c1_386 = arith.constant 1 : index
    %c0_387 = arith.constant 0 : index
    %c0_388 = arith.constant 0 : index
    %533 = vector.load %arg21[%c1_386, %c0_387, %c0_388] : memref<8x1x8xf32, #tpu.memory_space<vmem>>, vector<1x1x8xf32>
    %534 = vector.shape_cast %533 : vector<1x1x8xf32> to vector<1x8xf32>
    %cst_389 = arith.constant dense<0.000000e+00> : vector<30xf32>
    %535 = vector.multi_reduction <add>, %530, %cst_389 [1] : vector<30x8xf32> to vector<30xf32>
    %536 = vector.shape_cast %535 : vector<30xf32> to vector<30x1xf32>
    %cst_390 = arith.constant 8.000000e+00 : f32
    %537 = vector.broadcast %cst_390 : f32 to vector<30x1xf32>
    %538 = arith.divf %536, %537 : vector<30x1xf32>
    %539 = vector.broadcast %538 : vector<30x1xf32> to vector<30x8xf32>
    %540 = arith.subf %530, %539 : vector<30x8xf32>
    %541 = arith.mulf %540, %540 : vector<30x8xf32>
    %cst_391 = arith.constant dense<0.000000e+00> : vector<30xf32>
    %542 = vector.multi_reduction <add>, %541, %cst_391 [1] : vector<30x8xf32> to vector<30xf32>
    %543 = vector.shape_cast %542 : vector<30xf32> to vector<30x1xf32>
    %cst_392 = arith.constant 8.000000e+00 : f32
    %544 = vector.broadcast %cst_392 : f32 to vector<30x1xf32>
    %545 = arith.divf %543, %544 : vector<30x1xf32>
    %546 = vector.broadcast %538 : vector<30x1xf32> to vector<30x8xf32>
    %547 = arith.subf %530, %546 : vector<30x8xf32>
    %cst_393 = arith.constant 9.99999974E-6 : f32
    %548 = vector.broadcast %cst_393 : f32 to vector<30x1xf32>
    %549 = arith.addf %545, %548 : vector<30x1xf32>
    %550 = math.rsqrt %549 : vector<30x1xf32>
    %551 = vector.broadcast %550 : vector<30x1xf32> to vector<30x8xf32>
    %552 = arith.mulf %547, %551 : vector<30x8xf32>
    %553 = vector.broadcast %532 : vector<1x8xf32> to vector<30x8xf32>
    %554 = arith.mulf %552, %553 : vector<30x8xf32>
    %555 = vector.broadcast %534 : vector<1x8xf32> to vector<30x8xf32>
    %556 = arith.addf %554, %555 : vector<30x8xf32>
    %557 = arith.truncf %556 : vector<30x8xf32> to vector<30x8xbf16>
    %c0_394 = arith.constant 0 : index
    %c0_395 = arith.constant 0 : index
    %c0_396 = arith.constant 0 : index
    %558 = vector.load %arg17[%c0_394, %c0_395, %c0_396] : memref<2x8x2048xbf16, #tpu.memory_space<vmem>>, vector<1x8x2048xbf16>
    %559 = vector.shape_cast %558 : vector<1x8x2048xbf16> to vector<8x2048xbf16>
    %cst_397 = arith.constant dense<0.000000e+00> : vector<30x2048xf32>
    %560 = tpu.matmul %557, %559, %cst_397 {dimension_numbers = #tpu.dot_dimension_numbers<[1], [0], [0], [1], [0, 0, 1, 1], [], []>} : vector<30x8xbf16>, vector<8x2048xbf16>, vector<30x2048xf32> -> vector<30x2048xf32>
    %c0_398 = arith.constant 0 : index
    %c0_399 = arith.constant 0 : index
    %c0_400 = arith.constant 0 : index
    %561 = vector.load %arg18[%c0_398, %c0_399, %c0_400] : memref<2x1x2048xf32, #tpu.memory_space<vmem>>, vector<1x1x2048xf32>
    %562 = vector.shape_cast %561 : vector<1x1x2048xf32> to vector<1x2048xf32>
    %563 = vector.broadcast %562 : vector<1x2048xf32> to vector<30x2048xf32>
    %564 = arith.addf %560, %563 : vector<30x2048xf32>
    %cst_401 = arith.constant 0.000000e+00 : f32
    %565 = vector.broadcast %cst_401 : f32 to vector<30x2048xf32>
    %566 = arith.maximumf %564, %565 : vector<30x2048xf32>
    %567 = arith.truncf %566 : vector<30x2048xf32> to vector<30x2048xbf16>
    %c0_402 = arith.constant 0 : index
    %c0_403 = arith.constant 0 : index
    %c0_404 = arith.constant 0 : index
    %568 = vector.load %arg19[%c0_402, %c0_403, %c0_404] : memref<2x2048x8xbf16, #tpu.memory_space<vmem>>, vector<1x2048x8xbf16>
    %569 = vector.shape_cast %568 : vector<1x2048x8xbf16> to vector<2048x8xbf16>
    %cst_405 = arith.constant dense<0.000000e+00> : vector<30x8xf32>
    %570 = tpu.matmul %567, %569, %cst_405 {dimension_numbers = #tpu.dot_dimension_numbers<[1], [0], [0], [1], [0, 0, 1, 1], [], []>} : vector<30x2048xbf16>, vector<2048x8xbf16>, vector<30x8xf32> -> vector<30x8xf32>
    %c0_406 = arith.constant 0 : index
    %c0_407 = arith.constant 0 : index
    %c0_408 = arith.constant 0 : index
    %571 = vector.load %arg20[%c0_406, %c0_407, %c0_408] : memref<2x1x8xf32, #tpu.memory_space<vmem>>, vector<1x1x8xf32>
    %572 = vector.shape_cast %571 : vector<1x1x8xf32> to vector<1x8xf32>
    %573 = vector.broadcast %572 : vector<1x8xf32> to vector<30x8xf32>
    %574 = arith.addf %570, %573 : vector<30x8xf32>
    %575 = arith.addf %556, %574 : vector<30x8xf32>
    %c2_409 = arith.constant 2 : index
    %c0_410 = arith.constant 0 : index
    %c0_411 = arith.constant 0 : index
    %576 = vector.load %arg21[%c2_409, %c0_410, %c0_411] : memref<8x1x8xf32, #tpu.memory_space<vmem>>, vector<1x1x8xf32>
    %577 = vector.shape_cast %576 : vector<1x1x8xf32> to vector<1x8xf32>
    %c3_412 = arith.constant 3 : index
    %c0_413 = arith.constant 0 : index
    %c0_414 = arith.constant 0 : index
    %578 = vector.load %arg21[%c3_412, %c0_413, %c0_414] : memref<8x1x8xf32, #tpu.memory_space<vmem>>, vector<1x1x8xf32>
    %579 = vector.shape_cast %578 : vector<1x1x8xf32> to vector<1x8xf32>
    %cst_415 = arith.constant dense<0.000000e+00> : vector<30xf32>
    %580 = vector.multi_reduction <add>, %575, %cst_415 [1] : vector<30x8xf32> to vector<30xf32>
    %581 = vector.shape_cast %580 : vector<30xf32> to vector<30x1xf32>
    %cst_416 = arith.constant 8.000000e+00 : f32
    %582 = vector.broadcast %cst_416 : f32 to vector<30x1xf32>
    %583 = arith.divf %581, %582 : vector<30x1xf32>
    %584 = vector.broadcast %583 : vector<30x1xf32> to vector<30x8xf32>
    %585 = arith.subf %575, %584 : vector<30x8xf32>
    %586 = arith.mulf %585, %585 : vector<30x8xf32>
    %cst_417 = arith.constant dense<0.000000e+00> : vector<30xf32>
    %587 = vector.multi_reduction <add>, %586, %cst_417 [1] : vector<30x8xf32> to vector<30xf32>
    %588 = vector.shape_cast %587 : vector<30xf32> to vector<30x1xf32>
    %cst_418 = arith.constant 8.000000e+00 : f32
    %589 = vector.broadcast %cst_418 : f32 to vector<30x1xf32>
    %590 = arith.divf %588, %589 : vector<30x1xf32>
    %591 = vector.broadcast %583 : vector<30x1xf32> to vector<30x8xf32>
    %592 = arith.subf %575, %591 : vector<30x8xf32>
    %cst_419 = arith.constant 9.99999974E-6 : f32
    %593 = vector.broadcast %cst_419 : f32 to vector<30x1xf32>
    %594 = arith.addf %590, %593 : vector<30x1xf32>
    %595 = math.rsqrt %594 : vector<30x1xf32>
    %596 = vector.broadcast %595 : vector<30x1xf32> to vector<30x8xf32>
    %597 = arith.mulf %592, %596 : vector<30x8xf32>
    %598 = vector.broadcast %577 : vector<1x8xf32> to vector<30x8xf32>
    %599 = arith.mulf %597, %598 : vector<30x8xf32>
    %600 = vector.broadcast %579 : vector<1x8xf32> to vector<30x8xf32>
    %601 = arith.addf %599, %600 : vector<30x8xf32>
    %cst_420 = arith.constant 0.000000e+00 : f32
    %602 = vector.broadcast %cst_420 : f32 to vector<30x8xf32>
    %c1_421 = arith.constant 1 : index
    %c0_422 = arith.constant 0 : index
    %c0_423 = arith.constant 0 : index
    %603 = vector.load %arg16[%c1_421, %c0_422, %c0_423] : memref<2x1x8xf32, #tpu.memory_space<vmem>>, vector<1x1x8xf32>
    %604 = vector.shape_cast %603 : vector<1x1x8xf32> to vector<1x8xf32>
    %605 = vector.broadcast %604 : vector<1x8xf32> to vector<30x8xf32>
    %606 = arith.addf %602, %605 : vector<30x8xf32>
    %c12 = arith.constant 12 : index
    %c0_424 = arith.constant 0 : index
    %c0_425 = arith.constant 0 : index
    %607 = vector.load %arg13[%c12, %c0_424, %c0_425] : memref<24x8x2xf32, #tpu.memory_space<vmem>>, vector<1x8x2xf32>
    %608 = vector.shape_cast %607 : vector<1x8x2xf32> to vector<8x2xf32>
    %cst_426 = arith.constant dense<0.000000e+00> : vector<30x2xf32>
    %609 = tpu.matmul %601, %608, %cst_426 {dimension_numbers = #tpu.dot_dimension_numbers<[1], [0], [0], [1], [0, 0, 1, 1], [], []>} : vector<30x8xf32>, vector<8x2xf32>, vector<30x2xf32> -> vector<30x2xf32>
    %c12_427 = arith.constant 12 : index
    %c0_428 = arith.constant 0 : index
    %c0_429 = arith.constant 0 : index
    %610 = vector.load %arg14[%c12_427, %c0_428, %c0_429] : memref<24x1x2xf32, #tpu.memory_space<vmem>>, vector<1x1x2xf32>
    %611 = vector.shape_cast %610 : vector<1x1x2xf32> to vector<1x2xf32>
    %612 = vector.broadcast %611 : vector<1x2xf32> to vector<30x2xf32>
    %613 = arith.addf %609, %612 : vector<30x2xf32>
    %c16 = arith.constant 16 : index
    %c0_430 = arith.constant 0 : index
    %c0_431 = arith.constant 0 : index
    %614 = vector.load %arg13[%c16, %c0_430, %c0_431] : memref<24x8x2xf32, #tpu.memory_space<vmem>>, vector<1x8x2xf32>
    %615 = vector.shape_cast %614 : vector<1x8x2xf32> to vector<8x2xf32>
    %cst_432 = arith.constant dense<0.000000e+00> : vector<30x2xf32>
    %616 = tpu.matmul %601, %615, %cst_432 {dimension_numbers = #tpu.dot_dimension_numbers<[1], [0], [0], [1], [0, 0, 1, 1], [], []>} : vector<30x8xf32>, vector<8x2xf32>, vector<30x2xf32> -> vector<30x2xf32>
    %c16_433 = arith.constant 16 : index
    %c0_434 = arith.constant 0 : index
    %c0_435 = arith.constant 0 : index
    %617 = vector.load %arg14[%c16_433, %c0_434, %c0_435] : memref<24x1x2xf32, #tpu.memory_space<vmem>>, vector<1x1x2xf32>
    %618 = vector.shape_cast %617 : vector<1x1x2xf32> to vector<1x2xf32>
    %619 = vector.broadcast %618 : vector<1x2xf32> to vector<30x2xf32>
    %620 = arith.addf %616, %619 : vector<30x2xf32>
    %c20 = arith.constant 20 : index
    %c0_436 = arith.constant 0 : index
    %c0_437 = arith.constant 0 : index
    %621 = vector.load %arg13[%c20, %c0_436, %c0_437] : memref<24x8x2xf32, #tpu.memory_space<vmem>>, vector<1x8x2xf32>
    %622 = vector.shape_cast %621 : vector<1x8x2xf32> to vector<8x2xf32>
    %cst_438 = arith.constant dense<0.000000e+00> : vector<30x2xf32>
    %623 = tpu.matmul %601, %622, %cst_438 {dimension_numbers = #tpu.dot_dimension_numbers<[1], [0], [0], [1], [0, 0, 1, 1], [], []>} : vector<30x8xf32>, vector<8x2xf32>, vector<30x2xf32> -> vector<30x2xf32>
    %c20_439 = arith.constant 20 : index
    %c0_440 = arith.constant 0 : index
    %c0_441 = arith.constant 0 : index
    %624 = vector.load %arg14[%c20_439, %c0_440, %c0_441] : memref<24x1x2xf32, #tpu.memory_space<vmem>>, vector<1x1x2xf32>
    %625 = vector.shape_cast %624 : vector<1x1x2xf32> to vector<1x2xf32>
    %626 = vector.broadcast %625 : vector<1x2xf32> to vector<30x2xf32>
    %627 = arith.addf %623, %626 : vector<30x2xf32>
    %cst_442 = arith.constant 0.707106769 : f32
    %628 = vector.broadcast %cst_442 : f32 to vector<30x2xf32>
    %629 = arith.mulf %613, %628 : vector<30x2xf32>
    %630 = tpu.transpose %620, [1, 0] : vector<30x2xf32> -> vector<2x30xf32>
    %cst_443 = arith.constant dense<0.000000e+00> : vector<30x30xf32>
    %631 = tpu.matmul %629, %630, %cst_443 {dimension_numbers = #tpu.dot_dimension_numbers<[1], [0], [0], [1], [0, 0, 1, 1], [], []>} : vector<30x2xf32>, vector<2x30xf32>, vector<30x30xf32> -> vector<30x30xf32>
    %632 = arith.addf %631, %359 : vector<30x30xf32>
    %cst_444 = arith.constant dense<0xFF800000> : vector<30xf32>
    %633 = vector.multi_reduction <maximumf>, %632, %cst_444 [1] : vector<30x30xf32> to vector<30xf32>
    %634 = vector.shape_cast %633 : vector<30xf32> to vector<30x1xf32>
    %635 = vector.broadcast %634 : vector<30x1xf32> to vector<30x30xf32>
    %636 = arith.subf %632, %635 : vector<30x30xf32>
    %637 = math.exp %636 : vector<30x30xf32>
    %cst_445 = arith.constant dense<0.000000e+00> : vector<30xf32>
    %638 = vector.multi_reduction <add>, %637, %cst_445 [1] : vector<30x30xf32> to vector<30xf32>
    %639 = vector.shape_cast %638 : vector<30xf32> to vector<30x1xf32>
    %640 = tpu.reciprocal %639 {approx = true} : vector<30x1xf32> -> vector<30x1xf32>
    %641 = vector.broadcast %640 : vector<30x1xf32> to vector<30x30xf32>
    %642 = arith.mulf %637, %641 : vector<30x30xf32>
    %cst_446 = arith.constant dense<0.000000e+00> : vector<30x2xf32>
    %643 = tpu.matmul %642, %627, %cst_446 {dimension_numbers = #tpu.dot_dimension_numbers<[1], [0], [0], [1], [0, 0, 1, 1], [], []>} : vector<30x30xf32>, vector<30x2xf32>, vector<30x2xf32> -> vector<30x2xf32>
    %c4_447 = arith.constant 4 : index
    %c0_448 = arith.constant 0 : index
    %c0_449 = arith.constant 0 : index
    %644 = vector.load %arg15[%c4_447, %c0_448, %c0_449] : memref<8x2x8xf32, #tpu.memory_space<vmem>>, vector<1x2x8xf32>
    %645 = vector.shape_cast %644 : vector<1x2x8xf32> to vector<2x8xf32>
    %cst_450 = arith.constant dense<0.000000e+00> : vector<30x8xf32>
    %646 = tpu.matmul %643, %645, %cst_450 {dimension_numbers = #tpu.dot_dimension_numbers<[1], [0], [0], [1], [0, 0, 1, 1], [], []>} : vector<30x2xf32>, vector<2x8xf32>, vector<30x8xf32> -> vector<30x8xf32>
    %647 = arith.addf %606, %646 : vector<30x8xf32>
    %c13 = arith.constant 13 : index
    %c0_451 = arith.constant 0 : index
    %c0_452 = arith.constant 0 : index
    %648 = vector.load %arg13[%c13, %c0_451, %c0_452] : memref<24x8x2xf32, #tpu.memory_space<vmem>>, vector<1x8x2xf32>
    %649 = vector.shape_cast %648 : vector<1x8x2xf32> to vector<8x2xf32>
    %cst_453 = arith.constant dense<0.000000e+00> : vector<30x2xf32>
    %650 = tpu.matmul %601, %649, %cst_453 {dimension_numbers = #tpu.dot_dimension_numbers<[1], [0], [0], [1], [0, 0, 1, 1], [], []>} : vector<30x8xf32>, vector<8x2xf32>, vector<30x2xf32> -> vector<30x2xf32>
    %c13_454 = arith.constant 13 : index
    %c0_455 = arith.constant 0 : index
    %c0_456 = arith.constant 0 : index
    %651 = vector.load %arg14[%c13_454, %c0_455, %c0_456] : memref<24x1x2xf32, #tpu.memory_space<vmem>>, vector<1x1x2xf32>
    %652 = vector.shape_cast %651 : vector<1x1x2xf32> to vector<1x2xf32>
    %653 = vector.broadcast %652 : vector<1x2xf32> to vector<30x2xf32>
    %654 = arith.addf %650, %653 : vector<30x2xf32>
    %c17 = arith.constant 17 : index
    %c0_457 = arith.constant 0 : index
    %c0_458 = arith.constant 0 : index
    %655 = vector.load %arg13[%c17, %c0_457, %c0_458] : memref<24x8x2xf32, #tpu.memory_space<vmem>>, vector<1x8x2xf32>
    %656 = vector.shape_cast %655 : vector<1x8x2xf32> to vector<8x2xf32>
    %cst_459 = arith.constant dense<0.000000e+00> : vector<30x2xf32>
    %657 = tpu.matmul %601, %656, %cst_459 {dimension_numbers = #tpu.dot_dimension_numbers<[1], [0], [0], [1], [0, 0, 1, 1], [], []>} : vector<30x8xf32>, vector<8x2xf32>, vector<30x2xf32> -> vector<30x2xf32>
    %c17_460 = arith.constant 17 : index
    %c0_461 = arith.constant 0 : index
    %c0_462 = arith.constant 0 : index
    %658 = vector.load %arg14[%c17_460, %c0_461, %c0_462] : memref<24x1x2xf32, #tpu.memory_space<vmem>>, vector<1x1x2xf32>
    %659 = vector.shape_cast %658 : vector<1x1x2xf32> to vector<1x2xf32>
    %660 = vector.broadcast %659 : vector<1x2xf32> to vector<30x2xf32>
    %661 = arith.addf %657, %660 : vector<30x2xf32>
    %c21 = arith.constant 21 : index
    %c0_463 = arith.constant 0 : index
    %c0_464 = arith.constant 0 : index
    %662 = vector.load %arg13[%c21, %c0_463, %c0_464] : memref<24x8x2xf32, #tpu.memory_space<vmem>>, vector<1x8x2xf32>
    %663 = vector.shape_cast %662 : vector<1x8x2xf32> to vector<8x2xf32>
    %cst_465 = arith.constant dense<0.000000e+00> : vector<30x2xf32>
    %664 = tpu.matmul %601, %663, %cst_465 {dimension_numbers = #tpu.dot_dimension_numbers<[1], [0], [0], [1], [0, 0, 1, 1], [], []>} : vector<30x8xf32>, vector<8x2xf32>, vector<30x2xf32> -> vector<30x2xf32>
    %c21_466 = arith.constant 21 : index
    %c0_467 = arith.constant 0 : index
    %c0_468 = arith.constant 0 : index
    %665 = vector.load %arg14[%c21_466, %c0_467, %c0_468] : memref<24x1x2xf32, #tpu.memory_space<vmem>>, vector<1x1x2xf32>
    %666 = vector.shape_cast %665 : vector<1x1x2xf32> to vector<1x2xf32>
    %667 = vector.broadcast %666 : vector<1x2xf32> to vector<30x2xf32>
    %668 = arith.addf %664, %667 : vector<30x2xf32>
    %cst_469 = arith.constant 0.707106769 : f32
    %669 = vector.broadcast %cst_469 : f32 to vector<30x2xf32>
    %670 = arith.mulf %654, %669 : vector<30x2xf32>
    %671 = tpu.transpose %661, [1, 0] : vector<30x2xf32> -> vector<2x30xf32>
    %cst_470 = arith.constant dense<0.000000e+00> : vector<30x30xf32>
    %672 = tpu.matmul %670, %671, %cst_470 {dimension_numbers = #tpu.dot_dimension_numbers<[1], [0], [0], [1], [0, 0, 1, 1], [], []>} : vector<30x2xf32>, vector<2x30xf32>, vector<30x30xf32> -> vector<30x30xf32>
    %673 = arith.addf %672, %359 : vector<30x30xf32>
    %cst_471 = arith.constant dense<0xFF800000> : vector<30xf32>
    %674 = vector.multi_reduction <maximumf>, %673, %cst_471 [1] : vector<30x30xf32> to vector<30xf32>
    %675 = vector.shape_cast %674 : vector<30xf32> to vector<30x1xf32>
    %676 = vector.broadcast %675 : vector<30x1xf32> to vector<30x30xf32>
    %677 = arith.subf %673, %676 : vector<30x30xf32>
    %678 = math.exp %677 : vector<30x30xf32>
    %cst_472 = arith.constant dense<0.000000e+00> : vector<30xf32>
    %679 = vector.multi_reduction <add>, %678, %cst_472 [1] : vector<30x30xf32> to vector<30xf32>
    %680 = vector.shape_cast %679 : vector<30xf32> to vector<30x1xf32>
    %681 = tpu.reciprocal %680 {approx = true} : vector<30x1xf32> -> vector<30x1xf32>
    %682 = vector.broadcast %681 : vector<30x1xf32> to vector<30x30xf32>
    %683 = arith.mulf %678, %682 : vector<30x30xf32>
    %cst_473 = arith.constant dense<0.000000e+00> : vector<30x2xf32>
    %684 = tpu.matmul %683, %668, %cst_473 {dimension_numbers = #tpu.dot_dimension_numbers<[1], [0], [0], [1], [0, 0, 1, 1], [], []>} : vector<30x30xf32>, vector<30x2xf32>, vector<30x2xf32> -> vector<30x2xf32>
    %c5_474 = arith.constant 5 : index
    %c0_475 = arith.constant 0 : index
    %c0_476 = arith.constant 0 : index
    %685 = vector.load %arg15[%c5_474, %c0_475, %c0_476] : memref<8x2x8xf32, #tpu.memory_space<vmem>>, vector<1x2x8xf32>
    %686 = vector.shape_cast %685 : vector<1x2x8xf32> to vector<2x8xf32>
    %cst_477 = arith.constant dense<0.000000e+00> : vector<30x8xf32>
    %687 = tpu.matmul %684, %686, %cst_477 {dimension_numbers = #tpu.dot_dimension_numbers<[1], [0], [0], [1], [0, 0, 1, 1], [], []>} : vector<30x2xf32>, vector<2x8xf32>, vector<30x8xf32> -> vector<30x8xf32>
    %688 = arith.addf %647, %687 : vector<30x8xf32>
    %c14 = arith.constant 14 : index
    %c0_478 = arith.constant 0 : index
    %c0_479 = arith.constant 0 : index
    %689 = vector.load %arg13[%c14, %c0_478, %c0_479] : memref<24x8x2xf32, #tpu.memory_space<vmem>>, vector<1x8x2xf32>
    %690 = vector.shape_cast %689 : vector<1x8x2xf32> to vector<8x2xf32>
    %cst_480 = arith.constant dense<0.000000e+00> : vector<30x2xf32>
    %691 = tpu.matmul %601, %690, %cst_480 {dimension_numbers = #tpu.dot_dimension_numbers<[1], [0], [0], [1], [0, 0, 1, 1], [], []>} : vector<30x8xf32>, vector<8x2xf32>, vector<30x2xf32> -> vector<30x2xf32>
    %c14_481 = arith.constant 14 : index
    %c0_482 = arith.constant 0 : index
    %c0_483 = arith.constant 0 : index
    %692 = vector.load %arg14[%c14_481, %c0_482, %c0_483] : memref<24x1x2xf32, #tpu.memory_space<vmem>>, vector<1x1x2xf32>
    %693 = vector.shape_cast %692 : vector<1x1x2xf32> to vector<1x2xf32>
    %694 = vector.broadcast %693 : vector<1x2xf32> to vector<30x2xf32>
    %695 = arith.addf %691, %694 : vector<30x2xf32>
    %c18 = arith.constant 18 : index
    %c0_484 = arith.constant 0 : index
    %c0_485 = arith.constant 0 : index
    %696 = vector.load %arg13[%c18, %c0_484, %c0_485] : memref<24x8x2xf32, #tpu.memory_space<vmem>>, vector<1x8x2xf32>
    %697 = vector.shape_cast %696 : vector<1x8x2xf32> to vector<8x2xf32>
    %cst_486 = arith.constant dense<0.000000e+00> : vector<30x2xf32>
    %698 = tpu.matmul %601, %697, %cst_486 {dimension_numbers = #tpu.dot_dimension_numbers<[1], [0], [0], [1], [0, 0, 1, 1], [], []>} : vector<30x8xf32>, vector<8x2xf32>, vector<30x2xf32> -> vector<30x2xf32>
    %c18_487 = arith.constant 18 : index
    %c0_488 = arith.constant 0 : index
    %c0_489 = arith.constant 0 : index
    %699 = vector.load %arg14[%c18_487, %c0_488, %c0_489] : memref<24x1x2xf32, #tpu.memory_space<vmem>>, vector<1x1x2xf32>
    %700 = vector.shape_cast %699 : vector<1x1x2xf32> to vector<1x2xf32>
    %701 = vector.broadcast %700 : vector<1x2xf32> to vector<30x2xf32>
    %702 = arith.addf %698, %701 : vector<30x2xf32>
    %c22 = arith.constant 22 : index
    %c0_490 = arith.constant 0 : index
    %c0_491 = arith.constant 0 : index
    %703 = vector.load %arg13[%c22, %c0_490, %c0_491] : memref<24x8x2xf32, #tpu.memory_space<vmem>>, vector<1x8x2xf32>
    %704 = vector.shape_cast %703 : vector<1x8x2xf32> to vector<8x2xf32>
    %cst_492 = arith.constant dense<0.000000e+00> : vector<30x2xf32>
    %705 = tpu.matmul %601, %704, %cst_492 {dimension_numbers = #tpu.dot_dimension_numbers<[1], [0], [0], [1], [0, 0, 1, 1], [], []>} : vector<30x8xf32>, vector<8x2xf32>, vector<30x2xf32> -> vector<30x2xf32>
    %c22_493 = arith.constant 22 : index
    %c0_494 = arith.constant 0 : index
    %c0_495 = arith.constant 0 : index
    %706 = vector.load %arg14[%c22_493, %c0_494, %c0_495] : memref<24x1x2xf32, #tpu.memory_space<vmem>>, vector<1x1x2xf32>
    %707 = vector.shape_cast %706 : vector<1x1x2xf32> to vector<1x2xf32>
    %708 = vector.broadcast %707 : vector<1x2xf32> to vector<30x2xf32>
    %709 = arith.addf %705, %708 : vector<30x2xf32>
    %cst_496 = arith.constant 0.707106769 : f32
    %710 = vector.broadcast %cst_496 : f32 to vector<30x2xf32>
    %711 = arith.mulf %695, %710 : vector<30x2xf32>
    %712 = tpu.transpose %702, [1, 0] : vector<30x2xf32> -> vector<2x30xf32>
    %cst_497 = arith.constant dense<0.000000e+00> : vector<30x30xf32>
    %713 = tpu.matmul %711, %712, %cst_497 {dimension_numbers = #tpu.dot_dimension_numbers<[1], [0], [0], [1], [0, 0, 1, 1], [], []>} : vector<30x2xf32>, vector<2x30xf32>, vector<30x30xf32> -> vector<30x30xf32>
    %714 = arith.addf %713, %359 : vector<30x30xf32>
    %cst_498 = arith.constant dense<0xFF800000> : vector<30xf32>
    %715 = vector.multi_reduction <maximumf>, %714, %cst_498 [1] : vector<30x30xf32> to vector<30xf32>
    %716 = vector.shape_cast %715 : vector<30xf32> to vector<30x1xf32>
    %717 = vector.broadcast %716 : vector<30x1xf32> to vector<30x30xf32>
    %718 = arith.subf %714, %717 : vector<30x30xf32>
    %719 = math.exp %718 : vector<30x30xf32>
    %cst_499 = arith.constant dense<0.000000e+00> : vector<30xf32>
    %720 = vector.multi_reduction <add>, %719, %cst_499 [1] : vector<30x30xf32> to vector<30xf32>
    %721 = vector.shape_cast %720 : vector<30xf32> to vector<30x1xf32>
    %722 = tpu.reciprocal %721 {approx = true} : vector<30x1xf32> -> vector<30x1xf32>
    %723 = vector.broadcast %722 : vector<30x1xf32> to vector<30x30xf32>
    %724 = arith.mulf %719, %723 : vector<30x30xf32>
    %cst_500 = arith.constant dense<0.000000e+00> : vector<30x2xf32>
    %725 = tpu.matmul %724, %709, %cst_500 {dimension_numbers = #tpu.dot_dimension_numbers<[1], [0], [0], [1], [0, 0, 1, 1], [], []>} : vector<30x30xf32>, vector<30x2xf32>, vector<30x2xf32> -> vector<30x2xf32>
    %c6_501 = arith.constant 6 : index
    %c0_502 = arith.constant 0 : index
    %c0_503 = arith.constant 0 : index
    %726 = vector.load %arg15[%c6_501, %c0_502, %c0_503] : memref<8x2x8xf32, #tpu.memory_space<vmem>>, vector<1x2x8xf32>
    %727 = vector.shape_cast %726 : vector<1x2x8xf32> to vector<2x8xf32>
    %cst_504 = arith.constant dense<0.000000e+00> : vector<30x8xf32>
    %728 = tpu.matmul %725, %727, %cst_504 {dimension_numbers = #tpu.dot_dimension_numbers<[1], [0], [0], [1], [0, 0, 1, 1], [], []>} : vector<30x2xf32>, vector<2x8xf32>, vector<30x8xf32> -> vector<30x8xf32>
    %729 = arith.addf %688, %728 : vector<30x8xf32>
    %c15 = arith.constant 15 : index
    %c0_505 = arith.constant 0 : index
    %c0_506 = arith.constant 0 : index
    %730 = vector.load %arg13[%c15, %c0_505, %c0_506] : memref<24x8x2xf32, #tpu.memory_space<vmem>>, vector<1x8x2xf32>
    %731 = vector.shape_cast %730 : vector<1x8x2xf32> to vector<8x2xf32>
    %cst_507 = arith.constant dense<0.000000e+00> : vector<30x2xf32>
    %732 = tpu.matmul %601, %731, %cst_507 {dimension_numbers = #tpu.dot_dimension_numbers<[1], [0], [0], [1], [0, 0, 1, 1], [], []>} : vector<30x8xf32>, vector<8x2xf32>, vector<30x2xf32> -> vector<30x2xf32>
    %c15_508 = arith.constant 15 : index
    %c0_509 = arith.constant 0 : index
    %c0_510 = arith.constant 0 : index
    %733 = vector.load %arg14[%c15_508, %c0_509, %c0_510] : memref<24x1x2xf32, #tpu.memory_space<vmem>>, vector<1x1x2xf32>
    %734 = vector.shape_cast %733 : vector<1x1x2xf32> to vector<1x2xf32>
    %735 = vector.broadcast %734 : vector<1x2xf32> to vector<30x2xf32>
    %736 = arith.addf %732, %735 : vector<30x2xf32>
    %c19 = arith.constant 19 : index
    %c0_511 = arith.constant 0 : index
    %c0_512 = arith.constant 0 : index
    %737 = vector.load %arg13[%c19, %c0_511, %c0_512] : memref<24x8x2xf32, #tpu.memory_space<vmem>>, vector<1x8x2xf32>
    %738 = vector.shape_cast %737 : vector<1x8x2xf32> to vector<8x2xf32>
    %cst_513 = arith.constant dense<0.000000e+00> : vector<30x2xf32>
    %739 = tpu.matmul %601, %738, %cst_513 {dimension_numbers = #tpu.dot_dimension_numbers<[1], [0], [0], [1], [0, 0, 1, 1], [], []>} : vector<30x8xf32>, vector<8x2xf32>, vector<30x2xf32> -> vector<30x2xf32>
    %c19_514 = arith.constant 19 : index
    %c0_515 = arith.constant 0 : index
    %c0_516 = arith.constant 0 : index
    %740 = vector.load %arg14[%c19_514, %c0_515, %c0_516] : memref<24x1x2xf32, #tpu.memory_space<vmem>>, vector<1x1x2xf32>
    %741 = vector.shape_cast %740 : vector<1x1x2xf32> to vector<1x2xf32>
    %742 = vector.broadcast %741 : vector<1x2xf32> to vector<30x2xf32>
    %743 = arith.addf %739, %742 : vector<30x2xf32>
    %c23 = arith.constant 23 : index
    %c0_517 = arith.constant 0 : index
    %c0_518 = arith.constant 0 : index
    %744 = vector.load %arg13[%c23, %c0_517, %c0_518] : memref<24x8x2xf32, #tpu.memory_space<vmem>>, vector<1x8x2xf32>
    %745 = vector.shape_cast %744 : vector<1x8x2xf32> to vector<8x2xf32>
    %cst_519 = arith.constant dense<0.000000e+00> : vector<30x2xf32>
    %746 = tpu.matmul %601, %745, %cst_519 {dimension_numbers = #tpu.dot_dimension_numbers<[1], [0], [0], [1], [0, 0, 1, 1], [], []>} : vector<30x8xf32>, vector<8x2xf32>, vector<30x2xf32> -> vector<30x2xf32>
    %c23_520 = arith.constant 23 : index
    %c0_521 = arith.constant 0 : index
    %c0_522 = arith.constant 0 : index
    %747 = vector.load %arg14[%c23_520, %c0_521, %c0_522] : memref<24x1x2xf32, #tpu.memory_space<vmem>>, vector<1x1x2xf32>
    %748 = vector.shape_cast %747 : vector<1x1x2xf32> to vector<1x2xf32>
    %749 = vector.broadcast %748 : vector<1x2xf32> to vector<30x2xf32>
    %750 = arith.addf %746, %749 : vector<30x2xf32>
    %cst_523 = arith.constant 0.707106769 : f32
    %751 = vector.broadcast %cst_523 : f32 to vector<30x2xf32>
    %752 = arith.mulf %736, %751 : vector<30x2xf32>
    %753 = tpu.transpose %743, [1, 0] : vector<30x2xf32> -> vector<2x30xf32>
    %cst_524 = arith.constant dense<0.000000e+00> : vector<30x30xf32>
    %754 = tpu.matmul %752, %753, %cst_524 {dimension_numbers = #tpu.dot_dimension_numbers<[1], [0], [0], [1], [0, 0, 1, 1], [], []>} : vector<30x2xf32>, vector<2x30xf32>, vector<30x30xf32> -> vector<30x30xf32>
    %755 = arith.addf %754, %359 : vector<30x30xf32>
    %cst_525 = arith.constant dense<0xFF800000> : vector<30xf32>
    %756 = vector.multi_reduction <maximumf>, %755, %cst_525 [1] : vector<30x30xf32> to vector<30xf32>
    %757 = vector.shape_cast %756 : vector<30xf32> to vector<30x1xf32>
    %758 = vector.broadcast %757 : vector<30x1xf32> to vector<30x30xf32>
    %759 = arith.subf %755, %758 : vector<30x30xf32>
    %760 = math.exp %759 : vector<30x30xf32>
    %cst_526 = arith.constant dense<0.000000e+00> : vector<30xf32>
    %761 = vector.multi_reduction <add>, %760, %cst_526 [1] : vector<30x30xf32> to vector<30xf32>
    %762 = vector.shape_cast %761 : vector<30xf32> to vector<30x1xf32>
    %763 = tpu.reciprocal %762 {approx = true} : vector<30x1xf32> -> vector<30x1xf32>
    %764 = vector.broadcast %763 : vector<30x1xf32> to vector<30x30xf32>
    %765 = arith.mulf %760, %764 : vector<30x30xf32>
    %cst_527 = arith.constant dense<0.000000e+00> : vector<30x2xf32>
    %766 = tpu.matmul %765, %750, %cst_527 {dimension_numbers = #tpu.dot_dimension_numbers<[1], [0], [0], [1], [0, 0, 1, 1], [], []>} : vector<30x30xf32>, vector<30x2xf32>, vector<30x2xf32> -> vector<30x2xf32>
    %c7_528 = arith.constant 7 : index
    %c0_529 = arith.constant 0 : index
    %c0_530 = arith.constant 0 : index
    %767 = vector.load %arg15[%c7_528, %c0_529, %c0_530] : memref<8x2x8xf32, #tpu.memory_space<vmem>>, vector<1x2x8xf32>
    %768 = vector.shape_cast %767 : vector<1x2x8xf32> to vector<2x8xf32>
    %cst_531 = arith.constant dense<0.000000e+00> : vector<30x8xf32>
    %769 = tpu.matmul %766, %768, %cst_531 {dimension_numbers = #tpu.dot_dimension_numbers<[1], [0], [0], [1], [0, 0, 1, 1], [], []>} : vector<30x2xf32>, vector<2x8xf32>, vector<30x8xf32> -> vector<30x8xf32>
    %770 = arith.addf %729, %769 : vector<30x8xf32>
    %771 = arith.addf %601, %770 : vector<30x8xf32>
    %c4_532 = arith.constant 4 : index
    %c0_533 = arith.constant 0 : index
    %c0_534 = arith.constant 0 : index
    %772 = vector.load %arg21[%c4_532, %c0_533, %c0_534] : memref<8x1x8xf32, #tpu.memory_space<vmem>>, vector<1x1x8xf32>
    %773 = vector.shape_cast %772 : vector<1x1x8xf32> to vector<1x8xf32>
    %c5_535 = arith.constant 5 : index
    %c0_536 = arith.constant 0 : index
    %c0_537 = arith.constant 0 : index
    %774 = vector.load %arg21[%c5_535, %c0_536, %c0_537] : memref<8x1x8xf32, #tpu.memory_space<vmem>>, vector<1x1x8xf32>
    %775 = vector.shape_cast %774 : vector<1x1x8xf32> to vector<1x8xf32>
    %cst_538 = arith.constant dense<0.000000e+00> : vector<30xf32>
    %776 = vector.multi_reduction <add>, %771, %cst_538 [1] : vector<30x8xf32> to vector<30xf32>
    %777 = vector.shape_cast %776 : vector<30xf32> to vector<30x1xf32>
    %cst_539 = arith.constant 8.000000e+00 : f32
    %778 = vector.broadcast %cst_539 : f32 to vector<30x1xf32>
    %779 = arith.divf %777, %778 : vector<30x1xf32>
    %780 = vector.broadcast %779 : vector<30x1xf32> to vector<30x8xf32>
    %781 = arith.subf %771, %780 : vector<30x8xf32>
    %782 = arith.mulf %781, %781 : vector<30x8xf32>
    %cst_540 = arith.constant dense<0.000000e+00> : vector<30xf32>
    %783 = vector.multi_reduction <add>, %782, %cst_540 [1] : vector<30x8xf32> to vector<30xf32>
    %784 = vector.shape_cast %783 : vector<30xf32> to vector<30x1xf32>
    %cst_541 = arith.constant 8.000000e+00 : f32
    %785 = vector.broadcast %cst_541 : f32 to vector<30x1xf32>
    %786 = arith.divf %784, %785 : vector<30x1xf32>
    %787 = vector.broadcast %779 : vector<30x1xf32> to vector<30x8xf32>
    %788 = arith.subf %771, %787 : vector<30x8xf32>
    %cst_542 = arith.constant 9.99999974E-6 : f32
    %789 = vector.broadcast %cst_542 : f32 to vector<30x1xf32>
    %790 = arith.addf %786, %789 : vector<30x1xf32>
    %791 = math.rsqrt %790 : vector<30x1xf32>
    %792 = vector.broadcast %791 : vector<30x1xf32> to vector<30x8xf32>
    %793 = arith.mulf %788, %792 : vector<30x8xf32>
    %794 = vector.broadcast %773 : vector<1x8xf32> to vector<30x8xf32>
    %795 = arith.mulf %793, %794 : vector<30x8xf32>
    %796 = vector.broadcast %775 : vector<1x8xf32> to vector<30x8xf32>
    %797 = arith.addf %795, %796 : vector<30x8xf32>
    %798 = arith.truncf %797 : vector<30x8xf32> to vector<30x8xbf16>
    %c1_543 = arith.constant 1 : index
    %c0_544 = arith.constant 0 : index
    %c0_545 = arith.constant 0 : index
    %799 = vector.load %arg17[%c1_543, %c0_544, %c0_545] : memref<2x8x2048xbf16, #tpu.memory_space<vmem>>, vector<1x8x2048xbf16>
    %800 = vector.shape_cast %799 : vector<1x8x2048xbf16> to vector<8x2048xbf16>
    %cst_546 = arith.constant dense<0.000000e+00> : vector<30x2048xf32>
    %801 = tpu.matmul %798, %800, %cst_546 {dimension_numbers = #tpu.dot_dimension_numbers<[1], [0], [0], [1], [0, 0, 1, 1], [], []>} : vector<30x8xbf16>, vector<8x2048xbf16>, vector<30x2048xf32> -> vector<30x2048xf32>
    %c1_547 = arith.constant 1 : index
    %c0_548 = arith.constant 0 : index
    %c0_549 = arith.constant 0 : index
    %802 = vector.load %arg18[%c1_547, %c0_548, %c0_549] : memref<2x1x2048xf32, #tpu.memory_space<vmem>>, vector<1x1x2048xf32>
    %803 = vector.shape_cast %802 : vector<1x1x2048xf32> to vector<1x2048xf32>
    %804 = vector.broadcast %803 : vector<1x2048xf32> to vector<30x2048xf32>
    %805 = arith.addf %801, %804 : vector<30x2048xf32>
    %cst_550 = arith.constant 0.000000e+00 : f32
    %806 = vector.broadcast %cst_550 : f32 to vector<30x2048xf32>
    %807 = arith.maximumf %805, %806 : vector<30x2048xf32>
    %808 = arith.truncf %807 : vector<30x2048xf32> to vector<30x2048xbf16>
    %c1_551 = arith.constant 1 : index
    %c0_552 = arith.constant 0 : index
    %c0_553 = arith.constant 0 : index
    %809 = vector.load %arg19[%c1_551, %c0_552, %c0_553] : memref<2x2048x8xbf16, #tpu.memory_space<vmem>>, vector<1x2048x8xbf16>
    %810 = vector.shape_cast %809 : vector<1x2048x8xbf16> to vector<2048x8xbf16>
    %cst_554 = arith.constant dense<0.000000e+00> : vector<30x8xf32>
    %811 = tpu.matmul %808, %810, %cst_554 {dimension_numbers = #tpu.dot_dimension_numbers<[1], [0], [0], [1], [0, 0, 1, 1], [], []>} : vector<30x2048xbf16>, vector<2048x8xbf16>, vector<30x8xf32> -> vector<30x8xf32>
    %c1_555 = arith.constant 1 : index
    %c0_556 = arith.constant 0 : index
    %c0_557 = arith.constant 0 : index
    %812 = vector.load %arg20[%c1_555, %c0_556, %c0_557] : memref<2x1x8xf32, #tpu.memory_space<vmem>>, vector<1x1x8xf32>
    %813 = vector.shape_cast %812 : vector<1x1x8xf32> to vector<1x8xf32>
    %814 = vector.broadcast %813 : vector<1x8xf32> to vector<30x8xf32>
    %815 = arith.addf %811, %814 : vector<30x8xf32>
    %816 = arith.addf %797, %815 : vector<30x8xf32>
    %c6_558 = arith.constant 6 : index
    %c0_559 = arith.constant 0 : index
    %c0_560 = arith.constant 0 : index
    %817 = vector.load %arg21[%c6_558, %c0_559, %c0_560] : memref<8x1x8xf32, #tpu.memory_space<vmem>>, vector<1x1x8xf32>
    %818 = vector.shape_cast %817 : vector<1x1x8xf32> to vector<1x8xf32>
    %c7_561 = arith.constant 7 : index
    %c0_562 = arith.constant 0 : index
    %c0_563 = arith.constant 0 : index
    %819 = vector.load %arg21[%c7_561, %c0_562, %c0_563] : memref<8x1x8xf32, #tpu.memory_space<vmem>>, vector<1x1x8xf32>
    %820 = vector.shape_cast %819 : vector<1x1x8xf32> to vector<1x8xf32>
    %cst_564 = arith.constant dense<0.000000e+00> : vector<30xf32>
    %821 = vector.multi_reduction <add>, %816, %cst_564 [1] : vector<30x8xf32> to vector<30xf32>
    %822 = vector.shape_cast %821 : vector<30xf32> to vector<30x1xf32>
    %cst_565 = arith.constant 8.000000e+00 : f32
    %823 = vector.broadcast %cst_565 : f32 to vector<30x1xf32>
    %824 = arith.divf %822, %823 : vector<30x1xf32>
    %825 = vector.broadcast %824 : vector<30x1xf32> to vector<30x8xf32>
    %826 = arith.subf %816, %825 : vector<30x8xf32>
    %827 = arith.mulf %826, %826 : vector<30x8xf32>
    %cst_566 = arith.constant dense<0.000000e+00> : vector<30xf32>
    %828 = vector.multi_reduction <add>, %827, %cst_566 [1] : vector<30x8xf32> to vector<30xf32>
    %829 = vector.shape_cast %828 : vector<30xf32> to vector<30x1xf32>
    %cst_567 = arith.constant 8.000000e+00 : f32
    %830 = vector.broadcast %cst_567 : f32 to vector<30x1xf32>
    %831 = arith.divf %829, %830 : vector<30x1xf32>
    %832 = vector.broadcast %824 : vector<30x1xf32> to vector<30x8xf32>
    %833 = arith.subf %816, %832 : vector<30x8xf32>
    %cst_568 = arith.constant 9.99999974E-6 : f32
    %834 = vector.broadcast %cst_568 : f32 to vector<30x1xf32>
    %835 = arith.addf %831, %834 : vector<30x1xf32>
    %836 = math.rsqrt %835 : vector<30x1xf32>
    %837 = vector.broadcast %836 : vector<30x1xf32> to vector<30x8xf32>
    %838 = arith.mulf %833, %837 : vector<30x8xf32>
    %839 = vector.broadcast %818 : vector<1x8xf32> to vector<30x8xf32>
    %840 = arith.mulf %838, %839 : vector<30x8xf32>
    %841 = vector.broadcast %820 : vector<1x8xf32> to vector<30x8xf32>
    %842 = arith.addf %840, %841 : vector<30x8xf32>
    %843 = vector.extract_strided_slice %842 {offsets = [5, 0], sizes = [1, 8], strides = [1, 1]} : vector<30x8xf32> to vector<1x8xf32>
    %844 = vector.extract_strided_slice %842 {offsets = [11, 0], sizes = [1, 8], strides = [1, 1]} : vector<30x8xf32> to vector<1x8xf32>
    %845 = vector.extract_strided_slice %842 {offsets = [17, 0], sizes = [1, 8], strides = [1, 1]} : vector<30x8xf32> to vector<1x8xf32>
    %846 = vector.extract_strided_slice %842 {offsets = [23, 0], sizes = [1, 8], strides = [1, 1]} : vector<30x8xf32> to vector<1x8xf32>
    %847 = vector.extract_strided_slice %842 {offsets = [29, 0], sizes = [1, 8], strides = [1, 1]} : vector<30x8xf32> to vector<1x8xf32>
    %848 = tpu.concatenate %843, %844, %845, %846, %847 in 0 : vector<1x8xf32>, vector<1x8xf32>, vector<1x8xf32>, vector<1x8xf32>, vector<1x8xf32> -> vector<5x8xf32>
    %c0_569 = arith.constant 0 : index
    %c0_570 = arith.constant 0 : index
    %849 = vector.load %arg23[%c0_569, %c0_570] : memref<5x8xf32, #tpu.memory_space<vmem>>, vector<5x8xf32>
    tpu.vector_store %arg23[%c0_569, %c0_570], %848 {strides = array<i32>} : memref<5x8xf32, #tpu.memory_space<vmem>>, vector<5x8xf32>,
    return
  }
}

</mosaic_0001>

<bundles_post_ra>
// kernel: model_forward.1
= control target key start
LH: loop header
LB: loop body
LE: loop exit
PB: predicated region body
PF: predicated region fallthrough
CT: control target
= control target key end

     0   :  { %s14713_s0 = inlined_call_operand.vmem [shape: f32[4,12,24], index: 0, kind: input, shape index: {}]   ;;  %s14714_s1 = inlined_call_operand.vmem [shape: f32[4,12,12], index: 1, kind: input, shape index: {}]   ;;  %s14715_s2 = inlined_call_operand.vmem [shape: f32[24,8], index: 2, kind: input, shape index: {}]   ;;  %s14716_s3 = inlined_call_operand.vmem [shape: f32[1,8], index: 3, kind: input, shape index: {}]   ;;  %s14717_s4 = inlined_call_operand.vmem [shape: f32[2,8,16], index: 4, kind: input, shape index: {}]   ;;  %s14718_s5 = inlined_call_operand.vmem [shape: f32[1,16], index: 5, kind: input, shape index: {}]   ;;  %s14719_s6 = inlined_call_operand.vmem [shape: f32[2,16,16], index: 6, kind: input, shape index: {}]   ;;  %s14720_s7 = inlined_call_operand.vmem [shape: f32[1,16], index: 7, kind: input, shape index: {}]   ;;  %s14721_s8 = inlined_call_operand.vmem [shape: f32[4,16,16], index: 8, kind: input, shape index: {}]   ;;  %s14722_s9 = inlined_call_operand.vmem [shape: f32[4,16,16], index: 9, kind: input, shape index: {}]   ;;  %s14723_s10 = inlined_call_operand.vmem [shape: f32[4,1,16], index: 10, kind: input, shape index: {}]   ;;  %s14724_s11 = inlined_call_operand.vmem [shape: f32[30,8], index: 11, kind: input, shape index: {}]   ;;  %s14725_s12 = inlined_call_operand.vmem [shape: f32[30,30], index: 12, kind: input, shape index: {}]   ;;  %s14726_s13 = inlined_call_operand.vmem [shape: f32[24,8,2], index: 13, kind: input, shape index: {}]   ;;  %s14727_s14 = inlined_call_operand.vmem [shape: f32[24,1,2], index: 14, kind: input, shape index: {}]   ;;  %s14728_s15 = inlined_call_operand.vmem [shape: f32[8,2,8], index: 15, kind: input, shape index: {}]   ;;  %s14729_s16 = inlined_call_operand.vmem [shape: f32[2,1,8], index: 16, kind: input, shape index: {}]   ;;  %s14730_s17 = inlined_call_operand.vmem [shape: bf16[2,8,2048], index: 17, kind: input, shape index: {}]   ;;  %s14731_s18 = inlined_call_operand.vmem [shape: f32[2,1,2048], index: 18, kind: input, shape index: {}]   ;;  %s14732_s19 = inlined_call_operand.vmem [shape: bf16[2,2048,8], index: 19, kind: input, shape index: {}]   ;;  %s14733_s20 = inlined_call_operand.vmem [shape: f32[2,1,8], index: 20, kind: input, shape index: {}]   ;;  %s14734_s21 = inlined_call_operand.vmem [shape: f32[8,1,8], index: 21, kind: input, shape index: {}]   ;;  %s14735_s22 = inlined_call_operand.hbm [shape: f32[12,16], index: 22, kind: output, shape index: {0}]   ;;  %s14736_s23 = inlined_call_operand.hbm [shape: f32[5,8], index: 23, kind: output, shape index: {1}]  }
   0x1   :  { %14745 = sst [smem:[#allocation8_spill]] %s14713_s0 }
   0x2   :  { %14746 = sst [smem:[#allocation9_spill]] %s14714_s1 }
   0x3   :  { %14747 = sst [smem:[#allocation10_spill]] %s14715_s2 }
   0x4   :  { %14748 = sst [smem:[#allocation11_spill]] %s14716_s3 }
   0x5   :  { %14749 = sst [smem:[#allocation12_spill]] %s14717_s4 }
   0x6   :  { %14750 = sst [smem:[#allocation13_spill]] %s14718_s5 }
   0x7   :  { %14751 = sst [smem:[#allocation14_spill]] %s14719_s6 }
   0x8   :  { %14752 = sst [smem:[#allocation15_spill]] %s14720_s7 }
   0x9   :  { %29 = vsyncpa [#allocation3], 0  ;;  %s14753_s24 = sld [smem:[#allocation10_spill]]  ;;  %vm95_vm0 = vcmask 195584  }
   0xa   :  { %s14754_s27 = sld [smem:[#allocation8_spill]] }
   0xf   :  { %v11681_v0 = vld [vmem:[%s14753_s24 + $0x10] sm:$0xff]  ;;  %v11686_v1 = vld [vmem:[%s14753_s24 + $0x8] sm:$0xff]  ;;  %v11692_v2 = vld [vmem:[%s14753_s24] sm:$0xff] }
  0x10   :  { %115 = vmatpush.msra.mxu0 %v11681_v0  ;;  %v90_v3 = vld [vmem:[%s14754_s27] sm:$0xff]  ;;  %v91_v4 = vld [vmem:[%s14754_s27 + $0x8] sm:$0xf] }
  0x12   :  { %116 = vmatpush.msra.mxu0 %v11686_v1 }
  0x14   :  { %117 = vmatpush.msra.mxu0 %v11692_v2 }
  0x15   :  { %9038 = vmatmul.msk.f32.vlgmr.msra.gmra.mxu0 %vm95_vm0, %v90_v3 }
  0x1d   :  { %9039 = vmatmul.msk.f32.gmra.mxu0 %vm95_vm0, %v91_v4 }
  0x1e   :  { %30 = vsyncpa [#allocation5], 0  ;;  %s14755_s0 = sld [smem:[#allocation12_spill]]  ;;  %vm161_vm1 = vcmask 64512   ;;  %vm134_vm2 = vcmask 1043456   ;;  %vm127_vm3 = vcmask 97280  }
  0x1f   :  { %s14756_s25 = sld [smem:[#allocation11_spill]]  ;;  %v11751_v18 = vld [vmem:[%s14722_s9 + $0x8] sm:$0xff]  ;;  %v11756_v19 = vld [vmem:[%s14722_s9] sm:$0xff]  ;;  %v11552_v21 = vmov 0.0   ;;  %vm252_vm4 = vcmask 130048   ;;  %v11806_v36 = vld [vmem:[%s14722_s9 + $0x18] sm:$0xff] }
  0x20   :  { %s14757_s26 = sld [smem:[#allocation9_spill]]  ;;  %336 = vmatpush.msrb.mxu0 %v11751_v18  ;;  %v11777_v32 = vld [vmem:[%s14722_s9 + $0x28] sm:$0xff]  ;;  %v11783_v33 = vld [vmem:[%s14722_s9 + $0x20] sm:$0xff]  ;;  %v11812_v37 = vld [vmem:[%s14722_s9 + $0x10] sm:$0xff]  ;;  %s9007_s7 = sshll.u32 %s14735_s22, 4  ;;  %s9008_s7 = int_to_ptr.hbm [resolvable:$true] %s9007_s7 }
  0x21   :  { %s14758_s4 = sld [smem:[#allocation14_spill]]  ;;  %v9083_v38 = vld [vmem:[%s14754_s27 + $0x10] sm:$0xff]  ;;  %v9084_v39 = vld [vmem:[%s14754_s27 + $0x18] sm:$0xf]  ;;  %v11836_v45 = vld [vmem:[%s14721_s8 + $0x8] sm:$0xff] }
  0x22   :  { %337 = vmatpush.msrb.mxu0 %v11756_v19  ;;  %s14759_s3 = sld [smem:[#allocation13_spill]]  ;;  %v11841_v46 = vld [vmem:[%s14721_s8 + $0x18] sm:$0xff]  ;;  %v11848_v47 = vld [vmem:[%s14721_s8] sm:$0xff]  ;;  %v11853_v48 = vld [vmem:[%s14721_s8 + $0x10] sm:$0xff] }
  0x23   :  { %v11860_v49 = vld [vmem:[%s14722_s9 + $0x38] sm:$0xff]  ;;  %v11866_v50 = vld [vmem:[%s14722_s9 + $0x30] sm:$0xff]  ;;  %v11877_v52 = vld [vmem:[%s14721_s8 + $0x28] sm:$0xff]  ;;  %s14760_s28 = sld [smem:[#allocation15_spill]] }
  0x24   :  { %v11707_v5 = vld [vmem:[%s14755_s0 + $0x8] sm:$0xff]  ;;  %v11731_v13 = vld [vmem:[%s14755_s0] sm:$0xff]  ;;  %459 = vmatpush.msra.mxu0 %v11777_v32  ;;  %v11882_v53 = vld [vmem:[%s14721_s8 + $0x38] sm:$0xff] }
  0x25   :  { %182 = vmatpush.msra.mxu2 %v11707_v5  ;;  %v11713_v6 = vld [vmem:[%s14756_s25] ss:$0 sm:$0xff]  ;;  %211 = vmatpush.msra.mxu3 %v11731_v13  ;;  %v11894_v55 = vld [vmem:[%s14721_s8 + $0x30] sm:$0xff] }
  0x26   :  { %v125_v11 = vld [vmem:[%s14757_s26] sm:$0xff]  ;;  %v126_v12 = vld [vmem:[%s14757_s26 + $0x8] sm:$0xf]  ;;  %338 = vmatmul.f32.vlgmr.msrb.gmra.mxu0 %v11552_v21 }
  0x27   :  { %v11739_v16 = vld [vmem:[%s14758_s4 + $0x18] sm:$0xff]  ;;  %v11745_v17 = vld [vmem:[%s14758_s4 + $0x10] sm:$0xff]  ;;  %460 = vmatpush.msra.mxu0 %v11783_v33  ;;  %v11789_v34 = vld [vmem:[%s14758_s4 + $0x8] sm:$0xff] }
  0x28   :  { %272 = vmatpush.msrb.mxu3 %v11739_v16  ;;  %v11764_v22 = vld [vmem:[%s14759_s3] ss:$0 sm:$0xff] }
  0x29   :  { %v11796_v35 = vld [vmem:[%s14758_s4] sm:$0xff]  ;;  %705 = vmatpush.msrb.mxu0 %v11681_v0 }
  0x2a   :  { %273 = vmatpush.msrb.mxu3 %v11745_v17  ;;  %v11887_v54 = vld [vmem:[%s14721_s8 + $0x20] sm:$0xff] }
  0x2b   :  { %706 = vmatpush.msrb.mxu0 %v11686_v1  ;;  %v11907_v60 = vld [vmem:[%s14760_s28] ss:$0 sm:$0xff] }
  0x2d   :  { %707 = vmatpush.msrb.mxu0 %v11692_v2 }
  0x2e   :  { %341 = vmatmul.f32.gmra.mxu0 %v11552_v21 }
  0x36   :  { %461 = vmatmul.f32.vlgmr.msra.gmra.mxu0 %v11552_v21 }
  0x3e   :  { %464 = vmatmul.f32.gmra.mxu0 %v11552_v21 }
  0x46   :  { %9085 = vmatmul.msk.f32.vlgmr.msrb.gmra.mxu0 %vm95_vm0, %v9083_v38 }
  0x4e   :  { %9086 = vmatmul.msk.f32.gmra.mxu0 %vm95_vm0, %v9084_v39 }
  0x92   :  { %v119_v7 = vpop.f32.mrf.mxu0 }
  0x93   :  { %v120_v8 = vadd.f32 %v11713_v6, %v119_v7 }
  0x95   :  { %9043 = vmatmul.msk.f32.vlgmr.msra.gmra.mxu2 %vm161_vm1, %v120_v8 }
  0x9a   :  { %v122_v9 = vpop.f32.mrf.mxu0 }
  0x9b   :  { %v123_v10 = vadd.f32 %v11713_v6, %v122_v9 }
  0x9d   :  { %9040 = vmatpush.msk.msra.mxu1 %vm134_vm2, %v123_v10  ;;  %9044 = vmatmul.msk.f32.gmra.mxu2 %vm161_vm1, %v123_v10  ;;  %v11930_v10 = vld [vmem:[%s14757_s26 + $0x10] sm:$0xff] }
  0x9f   :  { %153 = vmatpush.msra.mxu1 %v120_v8 }
  0xa0   :  { %9041 = vmatmul.msk.f32.vlgmr.msra.gmra.mxu1 %vm127_vm3, %v125_v11 }
  0xa1   :  { %301 = vmatpush.msrb.mxu1 %v11789_v34 }
  0xa3   :  { %302 = vmatpush.msrb.mxu1 %v11796_v35  ;;  %v11827_v42 = vpop.f32.mrf.mxu0 }
  0xa5   :  { %423 = vmatpush.msra.mxu1 %v11841_v46 }
  0xa7   :  { %424 = vmatpush.msra.mxu1 %v11853_v48 }
  0xa8   :  { %9042 = vmatmul.msk.f32.gmra.mxu1 %vm127_vm3, %v126_v12 }
  0xab   :  { %v11829_v43 = vpop.f32.mrf.mxu0 }
  0xb3   :  { %v11831_v44 = vpop.f32.mrf.mxu0 }
  0xbb   :  { %v11868_v51 = vpop.f32.mrf.mxu0 }
  0xc3   :  { %v709_v56 = vpop.f32.mrf.mxu0 }
  0xc4   :  { %v710_v57 = vadd.f32 %v11713_v6, %v709_v56 }
  0xcb   :  { %v712_v58 = vpop.f32.mrf.mxu0 }
  0xcc   :  { %v713_v62 = vadd.f32 %v11713_v6, %v712_v58 }
 0x118   :  { %v184_v20 = vpop.f32.mrf.mxu2 }
 0x11d   :  { %v155_v14 = vpop.f32.mrf.mxu1 }
 0x11e   :  { %9045 = vmatmul.msk.f32.vlgmr.msra.gmra.mxu3 %vm161_vm1, %v155_v14  ;;  %v11946_v14 = vld [vmem:[%s14723_s10 + $0x1] ss:$0 sm:$0xff] }
 0x11f   :  { %400 = vmatpush.msra.mxu3 %v11806_v36 }
 0x120   :  { %v187_v27 = vpop.f32.mrf.mxu2 }
 0x121   :  { %401 = vmatpush.msra.mxu3 %v11812_v37 }
 0x125   :  { %v158_v15 = vpop.f32.mrf.mxu1 }
 0x126   :  { %9046 = vmatmul.msk.f32.gmra.mxu3 %vm161_vm1, %v158_v15 }
 0x1a1   :  { %v213_v23 = vpop.f32.mrf.mxu3 }
 0x1a2   :  { %v214_v24 = vadd.f32 %v213_v23, %v184_v20 }
 0x1a4   :  { %v222_v25 = vadd.f32 %v11764_v22, %v214_v24 }
 0x1a6   :  { %v224_v26 = vmax.f32 %v222_v25, 0.0  ;;  %v11952_v25 = vld [vmem:[%s14723_s10] ss:$0 sm:$0xff] }
 0x1a8   :  { %9050 = vmatmul.msk.f32.vlgmr.msrb.gmra.mxu3 %vm252_vm4, %v224_v26 }
 0x1a9   :  { %v216_v28 = vpop.f32.mrf.mxu3  ;;  %518 = vmatpush.msrb.mxu3 %v11860_v49 }
 0x1aa   :  { %v217_v29 = vadd.f32 %v216_v28, %v187_v27 }
 0x1ab   :  { %519 = vmatpush.msrb.mxu3 %v11866_v50 }
 0x1ac   :  { %v223_v30 = vadd.f32 %v11764_v22, %v217_v29 }
 0x1ae   :  { %v225_v31 = vmax.f32 %v223_v30, 0.0 }
 0x1b0   :  { %9047 = vmatpush.msk.msrb.mxu2 %vm134_vm2, %v225_v31  ;;  %9051 = vmatmul.msk.f32.gmra.mxu3 %vm252_vm4, %v225_v31 }
 0x1b2   :  { %244 = vmatpush.msrb.mxu2 %v224_v26 }
 0x1b3   :  { %9048 = vmatmul.msk.f32.vlgmr.msrb.gmra.mxu2 %vm127_vm3, %v125_v11  ;;  %v11939_v11 = vld [vmem:[%s14757_s26 + $0x18] sm:$0xf] }
 0x1b4   :  { %365 = vmatpush.msra.mxu2 %v11836_v45 }
 0x1b6   :  { %366 = vmatpush.msra.mxu2 %v11848_v47 }
 0x1b8   :  { %402 = vmatmul.f32.vlgmr.msra.gmra.mxu3 %v11552_v21  ;;  %482 = vmatpush.msrb.mxu2 %v11877_v52 }
 0x1b9   :  { %770 = vmatpush.msra.mxu3 %v11707_v5 }
 0x1ba   :  { %483 = vmatpush.msrb.mxu2 %v11887_v54 }
 0x1bb   :  { %9049 = vmatmul.msk.f32.gmra.mxu2 %vm127_vm3, %v126_v12 }
 0x1c0   :  { %405 = vmatmul.f32.gmra.mxu3 %v11552_v21 }
 0x1c8   :  { %520 = vmatmul.f32.vlgmr.msrb.gmra.mxu3 %v11552_v21 }
 0x1c9   :  { %885 = vmatpush.msrb.mxu3 %v11789_v34 }
 0x1cb   :  { %886 = vmatpush.msrb.mxu3 %v11796_v35 }
 0x1d0   :  { %523 = vmatmul.f32.gmra.mxu3 %v11552_v21 }
 0x1d8   :  { %9092 = vmatmul.msk.f32.vlgmr.msra.gmra.mxu3 %vm161_vm1, %v710_v57 }
 0x1d9   :  { %993 = vmatpush.msra.mxu3 %v11841_v46 }
 0x1db   :  { %994 = vmatpush.msra.mxu3 %v11853_v48 }
 0x1e0   :  { %9093 = vmatmul.msk.f32.gmra.mxu3 %vm161_vm1, %v713_v62 }
 0x22b   :  { %v275_v59 = vpop.f32.mrf.mxu3 }
 0x233   :  { %v278_v4 = vpop.f32.mrf.mxu3 }
 0x236   :  { %v246_v40 = vpop.f32.mrf.mxu2 }
 0x237   :  { %9052 = vmatmul.msk.f32.vlgmr.msrb.gmra.mxu1 %vm252_vm4, %v246_v40 }
 0x238   :  { %541 = vmatpush.msrb.mxu1 %v11882_v53 }
 0x23a   :  { %542 = vmatpush.msrb.mxu1 %v11894_v55 }
 0x23b   :  { %v403_v12 = vpop.f32.mrf.mxu3 }
 0x23e   :  { %v249_v41 = vpop.f32.mrf.mxu2 }
 0x23f   :  { %9053 = vmatmul.msk.f32.gmra.mxu1 %vm252_vm4, %v249_v41 }
 0x243   :  { %v406_v24 = vpop.f32.mrf.mxu3 }
 0x2b4   :  { %v304_v61 = vpop.f32.mrf.mxu1 }
 0x2b5   :  { %v305_v63 = vadd.f32 %v304_v61, %v275_v59 }
 0x2b7   :  { %v313_v3 = vadd.f32 %v11907_v60, %v305_v63 }
 0x2b9   :  { %9054 = vmatmul.msk.f32.vlgmr.msra.gmra.mxu2 %vm252_vm4, %v313_v3  ;;  %9060 = vmatmul.msk.f32.vlgmr.msra.gmra.mxu1 %vm252_vm4, %v313_v3 }
 0x2ba   :  { %9089 = vmatpush.msk.msra.mxu2 %vm134_vm2, %v713_v62  ;;  %799 = vmatpush.msra.mxu1 %v11731_v13 }
 0x2bc   :  { %v307_v7 = vpop.f32.mrf.mxu1  ;;  %742 = vmatpush.msra.mxu2 %v710_v57  ;;  %v521_v57 = vpop.f32.mrf.mxu3 }
 0x2bd   :  { %v308_v8 = vadd.f32 %v307_v7, %v278_v4 }
 0x2bf   :  { %v314_v9 = vadd.f32 %v11907_v60, %v308_v8 }
 0x2c1   :  { %9055 = vmatmul.msk.f32.gmra.mxu2 %vm252_vm4, %v314_v9  ;;  %9061 = vmatmul.msk.f32.gmra.mxu1 %vm252_vm4, %v314_v9 }
 0x2c9   :  { %9067 = vmatmul.msk.f32.vlgmr.msrb.gmra.mxu2 %vm252_vm4, %v313_v3  ;;  %9074 = vmatmul.msk.f32.vlgmr.msrb.gmra.mxu1 %vm252_vm4, %v313_v3 }
 0x2ca   :  { %916 = vmatpush.msrb.mxu1 %v11751_v18  ;;  %856 = vmatpush.msrb.mxu2 %v11739_v16 }
 0x2cc   :  { %917 = vmatpush.msrb.mxu1 %v11756_v19  ;;  %857 = vmatpush.msrb.mxu2 %v11745_v17 }
 0x2d1   :  { %9068 = vmatmul.msk.f32.gmra.mxu2 %vm252_vm4, %v314_v9  ;;  %9075 = vmatmul.msk.f32.gmra.mxu1 %vm252_vm4, %v314_v9 }
 0x2d9   :  { %9090 = vmatmul.msk.f32.vlgmr.msra.gmra.mxu2 %vm127_vm3, %v11930_v10 }
 0x2da   :  { %970 = vmatpush.msra.mxu2 %v11806_v36 }
 0x2dc   :  { %971 = vmatpush.msra.mxu2 %v11812_v37 }
 0x2e1   :  { %9091 = vmatmul.msk.f32.gmra.mxu2 %vm127_vm3, %v11939_v11 }
 0x336   :  { %v426_v15 = vpop.f32.mrf.mxu1 }
 0x337   :  { %v427_v20 = vadd.f32 %v426_v15, %v403_v12 }
 0x339   :  { %v437_v21 = vadd.f32 %v11946_v14, %v427_v20 }
 0x33b   :  { %v9079_v23 = vmul.f32 -1.442695, %v437_v21 }
 0x33c   :  { %v368_v26 = vpop.f32.mrf.mxu2 }
 0x33d   :  { %11170 = vpow2.f32 %v9079_v23  ;;  %v369_v27 = vadd.f32 %v368_v26, %v11827_v42  ;;  %v11961_v42 = vld [vmem:[%s14723_s10 + $0x3] ss:$0 sm:$0xff]  ;;  %v11971_v23 = vld [vmem:[%s14723_s10 + $0x2] ss:$0 sm:$0xff] }
 0x33e   :  { %v429_v28 = vpop.f32.mrf.mxu1 }
 0x33f   :  { %v378_v29 = vadd.f32 %v11952_v25, %v369_v27  ;;  %v430_v30 = vadd.f32 %v429_v28, %v406_v24  ;;  %v524_v27 = vpop.f32.mrf.mxu3 }
 0x341   :  { %v9077_v31 = vmul.f32 -1.442695, %v378_v29  ;;  %v438_v38 = vadd.f32 %v11946_v14, %v430_v30 }
 0x343   :  { %v11171_v39 = vpop.eup %11170  ;;  %11172 = vpow2.f32 %v9077_v31  ;;  %v9080_v40 = vmul.f32 -1.442695, %v438_v38 }
 0x344   :  { %v601_v41 = vadd.f32 1.0, %v11171_v39  ;;  %v371_v56 = vpop.f32.mrf.mxu2 }
 0x345   :  { %11174 = vpow2.f32 %v9080_v40  ;;  %v372_v58 = vadd.f32 %v371_v56, %v11829_v43 }
 0x346   :  { %11176 = vrcp.f32 %v601_v41  ;;  %v544_v59 = vpop.f32.mrf.mxu1  ;;  %vm608_vm5 = vweird.f32 %v601_v41  ;;  %v614_v56 = vand.u32 2147483648, %v601_v41 }
 0x347   :  { %v379_v61 = vadd.f32 %v11952_v25, %v372_v58  ;;  %v545_v62 = vadd.f32 %v544_v59, %v521_v57 }
 0x349   :  { %v11173_v63 = vpop.eup %11172  ;;  %v9078_v3 = vmul.f32 -1.442695, %v379_v61  ;;  %v555_v4 = vadd.f32 %v11961_v42, %v545_v62  ;;  %v612_v62 = vand.u32 2147483647, %v601_v41 }
 0x34a   :  { %v563_v7 = vadd.f32 1.0, %v11173_v63 }
 0x34b   :  { %v11175_v8 = vpop.eup %11174  ;;  %11178 = vpow2.f32 %v9078_v3  ;;  %v9081_v9 = vmul.f32 -1.442695, %v555_v4  ;;  %vm613_vm9 = vcmp.eq.f32.partialorder %v612_v62, 8.507059e+37 }
 0x34c   :  { %v11177_v12 = vpop.eup %11176  ;;  %11180 = vrcp.f32 %v563_v7  ;;  %v11965_v43 = vadd.f32 1.0, %v11175_v8  ;;  %v485_v15 = vpop.f32.mrf.mxu2  ;;  %vm570_vm11 = vweird.f32 %v563_v7 }
 0x34d   :  { %v604_v20 = vmul.f32 %v11177_v12, %v601_v41  ;;  %11182 = vpow2.f32 %v9081_v9  ;;  %v486_v21 = vadd.f32 %v485_v15, %v11831_v44  ;;  %vm609_vm6 = vweird.f32 %v11177_v12 }
 0x34e   :  { %11184 = vrcp.f32 %v11965_v43  ;;  %v547_v24 = vpop.f32.mrf.mxu1  ;;  %v574_v9 = vand.u32 2147483647, %v563_v7  ;;  %v576_v15 = vand.u32 2147483648, %v563_v7  ;;  %vm11987_vm8 = vmor %vm608_vm5, %vm609_vm6  ;;  %vm623_vm10 = vweird.f32 %v11965_v43 }
 0x34f   :  { %v605_v26 = vsub.f32 1.0, %v604_v20  ;;  %v548_v28 = vadd.f32 %v547_v24, %v524_v27  ;;  %v496_v31 = vadd.f32 %v11971_v23, %v486_v21  ;;  %v629_v62 = vand.u32 2147483648, %v11965_v43 }
 0x350   :  { %vm575_vm13 = vcmp.eq.f32.partialorder %v574_v9, 8.507059e+37 }
 0x351   :  { %v11179_v29 = vpop.eup %11178  ;;  %v606_v30 = vmul.f32 %v11177_v12, %v605_v26  ;;  %v556_v44 = vadd.f32 %v11961_v42, %v548_v28  ;;  %v615_v28 = vor.u32 1.1754944e-38, %v614_v56 }
 0x352   :  { %v11181_v38 = vpop.eup %11180  ;;  %v11975_v39 = vadd.f32 1.0, %v11179_v29 }
 0x353   :  { %v11183_v40 = vpop.eup %11182  ;;  %v566_v57 = vmul.f32 %v11181_v38, %v563_v7  ;;  %v607_v58 = vadd.f32 %v11177_v12, %v606_v30  ;;  %v9082_v63 = vmul.f32 -1.442695, %v556_v44  ;;  %vm571_vm7 = vweird.f32 %v11181_v38 }
 0x354   :  { %v11978_v59 = vpop.eup %11184  ;;  %11186 = vrcp.f32 %v11975_v39  ;;  %v11981_v61 = vadd.f32 1.0, %v11183_v40  ;;  %v488_v3 = vpop.f32.mrf.mxu2  ;;  %vm572_vm12 = vmor %vm570_vm11, %vm571_vm7  ;;  %vm585_vm6 = vweird.f32 %v11975_v39 }
 0x355   :  { %v567_v4 = vsub.f32 1.0, %v566_v57  ;;  %v619_v8 = vmul.f32 %v11978_v59, %v11965_v43  ;;  %11188 = vtanh.f32 %v496_v31  ;;  %v489_v21 = vadd.f32 %v488_v3, %v11868_v51 }
 0x356   :  { %11190 = vrcp.f32 %v11981_v61  ;;  %v611_v27 = vsel %vm11987_vm8, %v11177_v12, %v607_v58  ;;  %v577_v31 = vor.u32 1.1754944e-38, %v576_v15  ;;  %vm624_vm14 = vweird.f32 %v11978_v59 }
 0x357   :  { %v620_v24 = vsub.f32 1.0, %v619_v8  ;;  %v568_v26 = vmul.f32 %v11181_v38, %v567_v4  ;;  %11192 = vpow2.f32 %v9082_v63  ;;  %v616_v51 = vsel %vm613_vm9, %v615_v28, %v611_v27  ;;  %vm12011_vm5 = vmor %vm623_vm10, %vm624_vm14 }
 0x358   :  { %v497_v44 = vadd.f32 %v11971_v23, %v489_v21  ;;  %v589_v63 = vand.u32 2147483647, %v11975_v39  ;;  %v627_v3 = vand.u32 2147483647, %v11965_v43  ;;  %v673_v20 = vmul.f32 0.0, %v616_v51 }
 0x359   :  { %v621_v29 = vmul.f32 %v11978_v59, %v620_v24  ;;  %v569_v30 = vadd.f32 %v11181_v38, %v568_v26  ;;  %v591_v24 = vand.u32 2147483648, %v11975_v39  ;;  %vm648_vm11 = vweird.f32 %v11981_v61 }
 0x35a   :  { %v11187_v41 = vpop.eup %11186  ;;  %11194 = vtanh.f32 %v497_v44  ;;  %vm628_vm7 = vcmp.eq.f32.partialorder %v627_v3, 8.507059e+37  ;;  %vm590_vm8 = vcmp.eq.f32.partialorder %v589_v63, 8.507059e+37 }
 0x35b   :  { %v11189_v40 = vpop.eup %11188  ;;  %v581_v12 = vmul.f32 %v11187_v41, %v11975_v39  ;;  %v573_v57 = vsel %vm572_vm12, %v11181_v38, %v569_v30  ;;  %v622_v56 = vadd.f32 %v11978_v59, %v621_v29  ;;  %vm586_vm15 = vweird.f32 %v11187_v41 }
 0x35c   :  { %v11191_v58 = vpop.eup %11190  ;;  %v578_v7 = vsel %vm575_vm13, %v577_v31, %v573_v57  ;;  %v744_v4 = vpop.f32.mrf.mxu2  ;;  %v630_v31 = vor.u32 1.1754944e-38, %v629_v62  ;;  %vm587_vm10 = vmor %vm585_vm6, %vm586_vm15  ;;  %v592_v44 = vor.u32 1.1754944e-38, %v591_v24  ;;  %v652_v39 = vand.u32 2147483647, %v11981_v61 }
 0x35d   :  { %v11193_v8 = vpop.eup %11192  ;;  %v582_v9 = vsub.f32 1.0, %v581_v12  ;;  %v644_v15 = vmul.f32 %v11191_v58, %v11981_v61  ;;  %v675_v21 = vmul.f32 %v11189_v40, %v578_v7  ;;  %9094 = vmatmul.msk.f32.vlgmr.msra.gmra.mxu1 %vm161_vm1, %v744_v4  ;;  %v626_v30 = vsel %vm12011_vm5, %v11978_v59, %v622_v56 }
 0x35e   :  { %v642_v38 = vadd.f32 1.0, %v11193_v8  ;;  %1018 = vmatpush.msra.mxu1 %v11777_v32  ;;  %vm649_vm9 = vweird.f32 %v11191_v58  ;;  %v631_v40 = vsel %vm628_vm7, %v630_v31, %v626_v30  ;;  %v654_v12 = vand.u32 2147483648, %v11981_v61 }
 0x35f   :  { %v645_v27 = vsub.f32 1.0, %v644_v15  ;;  %v12016_v28 = vadd.f32 %v675_v21, %v673_v20  ;;  %v583_v29 = vmul.f32 %v11187_v41, %v582_v9  ;;  %vm650_vm12 = vmor %vm648_vm11, %vm649_vm9  ;;  %v674_v63 = vmul.f32 0.0, %v631_v40 }
 0x360   :  { %11196 = vrcp.f32 %v642_v38  ;;  %1019 = vmatpush.msra.mxu1 %v11783_v33  ;;  %v11195_v56 = vpop.eup %11194  ;;  %v655_v9 = vor.u32 1.1754944e-38, %v654_v12  ;;  %vm653_vm13 = vcmp.eq.f32.partialorder %v652_v39, 8.507059e+37  ;;  %v669_v26 = vand.u32 2147483648, %v642_v38 }
 0x361   :  { %v646_v43 = vmul.f32 %v11191_v58, %v645_v27  ;;  %v584_v51 = vadd.f32 %v11187_v41, %v583_v29  ;;  %11198 = vtanh.f32 %v12016_v28  ;;  %v667_v29 = vand.u32 2147483647, %v642_v38 }
 0x362   :  { %vm663_vm15 = vweird.f32 %v642_v38 }
 0x363   :  { %v588_v59 = vsel %vm587_vm10, %v11187_v41, %v584_v51  ;;  %v647_v57 = vadd.f32 %v11191_v58, %v646_v43  ;;  %vm668_vm6 = vcmp.eq.f32.partialorder %v667_v29, 8.507059e+37 }
 0x364   :  { %v593_v62 = vsel %vm590_vm8, %v592_v44, %v588_v59  ;;  %v747_v7 = vpop.f32.mrf.mxu2 }
 0x365   :  { %v676_v3 = vmul.f32 %v11195_v56, %v593_v62  ;;  %9095 = vmatmul.msk.f32.gmra.mxu1 %vm161_vm1, %v747_v7  ;;  %v651_v4 = vsel %vm650_vm12, %v11191_v58, %v647_v57  ;;  %v670_v58 = vor.u32 1.1754944e-38, %v669_v26 }
 0x366   :  { %v11197_v8 = vpop.eup %11196  ;;  %v656_v21 = vsel %vm653_vm13, %v655_v9, %v651_v4 }
 0x367   :  { %v659_v15 = vmul.f32 %v11197_v8, %v642_v38  ;;  %v12029_v20 = vadd.f32 %v676_v3, %v674_v63  ;;  %v11199_v41 = vpop.eup %11198  ;;  %vm664_vm14 = vweird.f32 %v11197_v8  ;;  %v772_v38 = vpop.f32.mrf.mxu3 }
 0x368   :  { %v681_v61 = vmul.f32 %v11199_v41, %v656_v21  ;;  %vm665_vm5 = vmor %vm663_vm15, %vm664_vm14 }
 0x369   :  { %v660_v24 = vsub.f32 1.0, %v659_v15  ;;  %11200 = vtanh.f32 %v12029_v20 }
 0x36b   :  { %v661_v27 = vmul.f32 %v11197_v8, %v660_v24 }
 0x36d   :  { %9103 = vmatmul.msk.f32.vlgmr.msrb.gmra.mxu1 %vm252_vm4, %v681_v61  ;;  %v662_v30 = vadd.f32 %v11197_v8, %v661_v27 }
 0x36e   :  { %1248 = vmatpush.msrb.mxu1 %v11681_v0 }
 0x36f   :  { %v666_v31 = vsel %vm665_vm5, %v11197_v8, %v662_v30  ;;  %v11201_v43 = vpop.eup %11200  ;;  %v775_v57 = vpop.f32.mrf.mxu3 }
 0x370   :  { %v671_v51 = vsel %vm668_vm6, %v670_v58, %v666_v31  ;;  %1249 = vmatpush.msrb.mxu1 %v11686_v1 }
 0x371   :  { %v682_v44 = vmul.f32 %v11201_v43, %v671_v51 }
 0x372   :  { %1250 = vmatpush.msrb.mxu1 %v11692_v2 }
 0x375   :  { %9104 = vmatmul.msk.f32.gmra.mxu1 %vm252_vm4, %v682_v44 }
 0x37d   :  { %9111 = vmatmul.msk.f32.vlgmr.msra.gmra.mxu1 %vm252_vm4, %v681_v61 }
 0x385   :  { %9112 = vmatmul.msk.f32.gmra.mxu1 %vm252_vm4, %v682_v44 }
 0x3da   :  { %v801_v40 = vpop.f32.mrf.mxu1 }
 0x3db   :  { %v802_v12 = vadd.f32 %v801_v40, %v772_v38 }
 0x3dd   :  { %v807_v0 = vadd.f32 %v11764_v22, %v802_v12 }
 0x3df   :  { %v809_v59 = vmax.f32 %v807_v0, 0.0 }
 0x3e1   :  { %9099 = vmatmul.msk.f32.vlgmr.msrb.gmra.mxu2 %vm252_vm4, %v809_v59 }
 0x3e2   :  { %v804_v39 = vpop.f32.mrf.mxu1  ;;  %1066 = vmatpush.msrb.mxu2 %v11860_v49 }
 0x3e3   :  { %v805_v1 = vadd.f32 %v804_v39, %v775_v57 }
 0x3e4   :  { %1067 = vmatpush.msrb.mxu2 %v11866_v50 }
 0x3e5   :  { %v808_v2 = vadd.f32 %v11764_v22, %v805_v1  ;;  %v9125_v22 = vld [vmem:[%s14754_s27 + $0x20] sm:$0xff] }
 0x3e6   :  { %9127 = vmatmul.msk.f32.vlgmr.msrb.gmra.mxu1 %vm95_vm0, %v9125_v22 }
 0x3e7   :  { %v810_v56 = vmax.f32 %v808_v2, 0.0 }
 0x3e9   :  { %9096 = vmatpush.msk.msra.mxu0 %vm134_vm2, %v810_v56  ;;  %9100 = vmatmul.msk.f32.gmra.mxu2 %vm252_vm4, %v810_v56 }
 0x3eb   :  { %829 = vmatpush.msra.mxu0 %v809_v59 }
 0x3ec   :  { %9097 = vmatmul.msk.f32.vlgmr.msra.gmra.mxu0 %vm127_vm3, %v11930_v10 }
 0x3ed   :  { %945 = vmatpush.msrb.mxu0 %v11836_v45 }
 0x3ef   :  { %946 = vmatpush.msrb.mxu0 %v11848_v47 }
 0x3f1   :  { %1041 = vmatpush.msra.mxu0 %v11877_v52  ;;  %9107 = vmatmul.msk.f32.vlgmr.msra.gmra.mxu2 %vm252_vm4, %v681_v61 }
 0x3f2   :  { %1313 = vmatpush.msra.mxu2 %v11707_v5  ;;  %v9126_v5 = vld [vmem:[%s14754_s27 + $0x28] sm:$0xf] }
 0x3f3   :  { %1042 = vmatpush.msra.mxu0 %v11887_v54  ;;  %9128 = vmatmul.msk.f32.gmra.mxu1 %vm95_vm0, %v9126_v5 }
 0x3f4   :  { %9098 = vmatmul.msk.f32.gmra.mxu0 %vm127_vm3, %v11939_v11 }
 0x3f9   :  { %9108 = vmatmul.msk.f32.gmra.mxu2 %vm252_vm4, %v682_v44 }
 0x401   :  { %9115 = vmatmul.msk.f32.vlgmr.msrb.gmra.mxu2 %vm252_vm4, %v681_v61 }
 0x402   :  { %1428 = vmatpush.msrb.mxu2 %v11789_v34 }
 0x404   :  { %1429 = vmatpush.msrb.mxu2 %v11796_v35  ;;  %v919_v35 = vpop.f32.mrf.mxu1 }
 0x409   :  { %9116 = vmatmul.msk.f32.gmra.mxu2 %vm252_vm4, %v682_v44 }
 0x40c   :  { %v922_v11 = vpop.f32.mrf.mxu1 }
 0x414   :  { %v12073_v62 = vpop.f32.mrf.mxu1 }
 0x41c   :  { %v12075_v7 = vpop.f32.mrf.mxu1 }
 0x463   :  { %v1252_v63 = vpop.f32.mrf.mxu1 }
 0x464   :  { %v1253_v3 = vadd.f32 %v11713_v6, %v1252_v63  ;;  %v859_v9 = vpop.f32.mrf.mxu2 }
 0x466   :  { %9134 = vmatmul.msk.f32.vlgmr.msra.gmra.mxu2 %vm161_vm1, %v1253_v3 }
 0x467   :  { %1536 = vmatpush.msra.mxu2 %v11841_v46 }
 0x469   :  { %v831_v10 = vpop.f32.mrf.mxu0  ;;  %1537 = vmatpush.msra.mxu2 %v11853_v48 }
 0x46a   :  { %9101 = vmatmul.msk.f32.vlgmr.msrb.gmra.mxu3 %vm252_vm4, %v831_v10 }
 0x46b   :  { %1089 = vmatpush.msrb.mxu3 %v11882_v53 }
 0x46c   :  { %v862_v46 = vpop.f32.mrf.mxu2 }
 0x46d   :  { %1090 = vmatpush.msrb.mxu3 %v11894_v55 }
 0x470   :  { %v1255_v4 = vpop.f32.mrf.mxu1 }
 0x471   :  { %v834_v34 = vpop.f32.mrf.mxu0  ;;  %v1256_v8 = vadd.f32 %v11713_v6, %v1255_v4 }
 0x472   :  { %9102 = vmatmul.msk.f32.gmra.mxu3 %vm252_vm4, %v834_v34 }
 0x473   :  { %9135 = vmatmul.msk.f32.gmra.mxu2 %vm161_vm1, %v1256_v8 }
 0x4ed   :  { %v888_v15 = vpop.f32.mrf.mxu3 }
 0x4ee   :  { %v889_v41 = vadd.f32 %v888_v15, %v859_v9 }
 0x4f0   :  { %v894_v21 = vadd.f32 %v11907_v60, %v889_v41 }
 0x4f2   :  { %9105 = vmatmul.msk.f32.vlgmr.msrb.gmra.mxu0 %vm252_vm4, %v894_v21  ;;  %9109 = vmatmul.msk.f32.vlgmr.msra.gmra.mxu3 %vm252_vm4, %v894_v21 }
 0x4f3   :  { %9131 = vmatpush.msk.msrb.mxu0 %vm134_vm2, %v1256_v8  ;;  %1342 = vmatpush.msra.mxu3 %v11731_v13  ;;  %v12102_v13 = vld [vmem:[%s14757_s26 + $0x20] sm:$0xff] }
 0x4f5   :  { %v891_v48 = vpop.f32.mrf.mxu3  ;;  %1285 = vmatpush.msrb.mxu0 %v1253_v3 }
 0x4f6   :  { %v892_v24 = vadd.f32 %v891_v48, %v862_v46 }
 0x4f8   :  { %v895_v6 = vadd.f32 %v11907_v60, %v892_v24 }
 0x4fa   :  { %9106 = vmatmul.msk.f32.gmra.mxu0 %vm252_vm4, %v895_v6  ;;  %9110 = vmatmul.msk.f32.gmra.mxu3 %vm252_vm4, %v895_v6 }
 0x502   :  { %9113 = vmatmul.msk.f32.vlgmr.msra.gmra.mxu0 %vm252_vm4, %v894_v21  ;;  %9117 = vmatmul.msk.f32.vlgmr.msrb.gmra.mxu3 %vm252_vm4, %v894_v21 }
 0x503   :  { %1459 = vmatpush.msrb.mxu3 %v11751_v18  ;;  %1399 = vmatpush.msra.mxu0 %v11739_v16  ;;  %v12111_v16 = vld [vmem:[%s14757_s26 + $0x28] sm:$0xf] }
 0x505   :  { %1460 = vmatpush.msrb.mxu3 %v11756_v19  ;;  %1400 = vmatpush.msra.mxu0 %v11745_v17  ;;  %v973_v19 = vpop.f32.mrf.mxu2 }
 0x50a   :  { %9114 = vmatmul.msk.f32.gmra.mxu0 %vm252_vm4, %v895_v6  ;;  %9118 = vmatmul.msk.f32.gmra.mxu3 %vm252_vm4, %v895_v6 }
 0x50d   :  { %v976_v43 = vpop.f32.mrf.mxu2 }
 0x512   :  { %9132 = vmatmul.msk.f32.vlgmr.msrb.gmra.mxu0 %vm127_vm3, %v12102_v13 }
 0x513   :  { %1513 = vmatpush.msrb.mxu0 %v11806_v36 }
 0x515   :  { %1514 = vmatpush.msrb.mxu0 %v11812_v37  ;;  %v1069_v22 = vpop.f32.mrf.mxu2 }
 0x51a   :  { %9133 = vmatmul.msk.f32.gmra.mxu0 %vm127_vm3, %v12111_v16 }
 0x56f   :  { %v948_v17 = vpop.f32.mrf.mxu0 }
 0x570   :  { %v949_v18 = vadd.f32 %v948_v17, %v919_v35  ;;  %v1072_v17 = vpop.f32.mrf.mxu2 }
 0x572   :  { %v954_v26 = vadd.f32 %v11952_v25, %v949_v18 }
 0x574   :  { %v9119_v61 = vmul.f32 -1.442695, %v954_v26 }
 0x575   :  { %v996_v27 = vpop.f32.mrf.mxu3 }
 0x576   :  { %11202 = vpow2.f32 %v9119_v61  ;;  %v997_v29 = vadd.f32 %v996_v27, %v973_v19 }
 0x577   :  { %v951_v36 = vpop.f32.mrf.mxu0 }
 0x578   :  { %v1002_v37 = vadd.f32 %v11946_v14, %v997_v29  ;;  %v952_v30 = vadd.f32 %v951_v36, %v922_v11 }
 0x57a   :  { %v9121_v58 = vmul.f32 -1.442695, %v1002_v37  ;;  %v955_v31 = vadd.f32 %v11952_v25, %v952_v30 }
 0x57c   :  { %v11203_v51 = vpop.eup %11202  ;;  %11204 = vpow2.f32 %v9121_v58  ;;  %v9120_v44 = vmul.f32 -1.442695, %v955_v31 }
 0x57d   :  { %v12118_v38 = vadd.f32 1.0, %v11203_v51  ;;  %v999_v40 = vpop.f32.mrf.mxu3 }
 0x57e   :  { %11206 = vpow2.f32 %v9120_v44  ;;  %v1000_v12 = vadd.f32 %v999_v40, %v976_v43 }
 0x57f   :  { %11208 = vrcp.f32 %v12118_v38  ;;  %v1044_v0 = vpop.f32.mrf.mxu0  ;;  %vm1113_vm9 = vweird.f32 %v12118_v38  ;;  %v1119_v36 = vand.u32 2147483648, %v12118_v38  ;;  %v1117_v30 = vand.u32 2147483647, %v12118_v38 }
 0x580   :  { %v1003_v59 = vadd.f32 %v11946_v14, %v1000_v12  ;;  %v1045_v4 = vadd.f32 %v1044_v0, %v12073_v62 }
 0x581   :  { %vm1118_vm14 = vcmp.eq.f32.partialorder %v1117_v30, 8.507059e+37 }
 0x582   :  { %v11205_v57 = vpop.eup %11204  ;;  %v9122_v39 = vmul.f32 -1.442695, %v1003_v59  ;;  %v1050_v6 = vadd.f32 %v11971_v23, %v1045_v4 }
 0x583   :  { %v1144_v1 = vadd.f32 1.0, %v11205_v57 }
 0x584   :  { %v11207_v2 = vpop.eup %11206  ;;  %11210 = vpow2.f32 %v9122_v39 }
 0x585   :  { %v12122_v56 = vpop.eup %11208  ;;  %11212 = vrcp.f32 %v1144_v1  ;;  %v12124_v5 = vadd.f32 1.0, %v11207_v2  ;;  %v1092_v10 = vpop.f32.mrf.mxu3  ;;  %v1157_v18 = vand.u32 2147483648, %v1144_v1  ;;  %v1155_v19 = vand.u32 2147483647, %v1144_v1 }
 0x586   :  { %v1109_v34 = vmul.f32 %v12122_v56, %v12118_v38  ;;  %v1093_v35 = vadd.f32 %v1092_v10, %v1069_v22  ;;  %vm1114_vm7 = vweird.f32 %v12122_v56  ;;  %vm1151_vm10 = vweird.f32 %v1144_v1 }
 0x587   :  { %11214 = vrcp.f32 %v12124_v5  ;;  %v1047_v11 = vpop.f32.mrf.mxu0  ;;  %vm12146_vm11 = vmor %vm1113_vm9, %vm1114_vm7  ;;  %v1158_v51 = vor.u32 1.1754944e-38, %v1157_v18  ;;  %vm1156_vm13 = vcmp.eq.f32.partialorder %v1155_v19, 8.507059e+37  ;;  %v1120_v38 = vor.u32 1.1754944e-38, %v1119_v36 }
 0x588   :  { %v1110_v14 = vsub.f32 1.0, %v1109_v34  ;;  %v1098_v63 = vadd.f32 %v11961_v42, %v1093_v35 }
 0x58a   :  { %v11211_v3 = vpop.eup %11210  ;;  %v9123_v15 = vmul.f32 -1.442695, %v1098_v63  ;;  %v1111_v21 = vmul.f32 %v12122_v56, %v1110_v14 }
 0x58b   :  { %v11213_v8 = vpop.eup %11212  ;;  %v12131_v9 = vadd.f32 1.0, %v11211_v3 }
 0x58c   :  { %v1147_v41 = vmul.f32 %v11213_v8, %v1144_v1  ;;  %vm1152_vm8 = vweird.f32 %v11213_v8  ;;  %v1112_v27 = vadd.f32 %v12122_v56, %v1111_v21  ;;  %v1048_v1 = vadd.f32 %v1047_v11, %v12075_v7 }
 0x58d   :  { %v12134_v46 = vpop.eup %11214  ;;  %11216 = vrcp.f32 %v12131_v9  ;;  %v1095_v48 = vpop.f32.mrf.mxu3  ;;  %vm1153_vm12 = vmor %vm1151_vm10, %vm1152_vm8  ;;  %v1172_v35 = vand.u32 2147483648, %v12131_v9  ;;  %vm1166_vm5 = vweird.f32 %v12131_v9  ;;  %v1170_v11 = vand.u32 2147483647, %v12131_v9 }
 0x58e   :  { %v1148_v24 = vsub.f32 1.0, %v1147_v41  ;;  %11218 = vpow2.f32 %v9123_v15  ;;  %v1124_v62 = vmul.f32 %v12134_v46, %v12124_v5  ;;  %v1096_v29 = vadd.f32 %v1095_v48, %v1072_v17 }
 0x58f   :  { %v1287_v26 = vpop.f32.mrf.mxu0  ;;  %11220 = vtanh.f32 %v1050_v6  ;;  %v1116_v12 = vsel %vm12146_vm11, %v12122_v56, %v1112_v27  ;;  %v1051_v63 = vadd.f32 %v11971_v23, %v1048_v1  ;;  %vm1129_vm6 = vweird.f32 %v12134_v46 }
 0x590   :  { %v1149_v61 = vmul.f32 %v11213_v8, %v1148_v24  ;;  %9136 = vmatmul.msk.f32.vlgmr.msra.gmra.mxu3 %vm161_vm1, %v1287_v26  ;;  %v1099_v31 = vadd.f32 %v11961_v42, %v1096_v29  ;;  %v1125_v44 = vsub.f32 1.0, %v1124_v62  ;;  %v1121_v2 = vsel %vm1118_vm14, %v1120_v38, %v1116_v12 }
 0x591   :  { %1561 = vmatpush.msra.mxu3 %v11777_v32  ;;  %vm1128_vm8 = vweird.f32 %v12124_v5  ;;  %v1132_v23 = vand.u32 2147483647, %v12124_v5  ;;  %v1173_v48 = vor.u32 1.1754944e-38, %v1172_v35  ;;  %vm1171_vm10 = vcmp.eq.f32.partialorder %v1170_v11, 8.507059e+37  ;;  %v12200_v35 = vld [vmem:[%s14759_s3] ss:$0 sm:$0xff] }
 0x592   :  { %v1150_v58 = vadd.f32 %v11213_v8, %v1149_v61  ;;  %v9124_v42 = vmul.f32 -1.442695, %v1099_v31  ;;  %vm1130_vm9 = vmor %vm1128_vm8, %vm1129_vm6 }
 0x593   :  { %v11217_v43 = vpop.eup %11216  ;;  %1562 = vmatpush.msra.mxu3 %v11783_v33  ;;  %v1126_v33 = vmul.f32 %v12134_v46, %v1125_v44  ;;  %vm1133_vm11 = vcmp.eq.f32.partialorder %v1132_v23, 8.507059e+37 }
 0x594   :  { %v11219_v40 = vpop.eup %11218  ;;  %v1162_v32 = vmul.f32 %v11217_v43, %v12131_v9  ;;  %v1154_v0 = vsel %vm1153_vm12, %v11213_v8, %v1150_v58  ;;  %vm1167_vm15 = vweird.f32 %v11217_v43  ;;  %v1134_v8 = vand.u32 2147483648, %v12124_v5 }
 0x595   :  { %v1159_v59 = vsel %vm1156_vm13, %v1158_v51, %v1154_v0  ;;  %v1184_v57 = vadd.f32 1.0, %v11219_v40  ;;  %v11221_v56 = vpop.eup %11220  ;;  %v1127_v7 = vadd.f32 %v12134_v46, %v1126_v33  ;;  %vm12167_vm7 = vmor %vm1166_vm5, %vm1167_vm15 }
 0x596   :  { %v1163_v39 = vsub.f32 1.0, %v1162_v32  ;;  %v1216_v34 = vmul.f32 %v1159_v59, %v12016_v28  ;;  %v1218_v14 = vmul.f32 %v11221_v56, %v1121_v2  ;;  %v1135_v18 = vor.u32 1.1754944e-38, %v1134_v8  ;;  %v11461_v59 = vld [vmem:[%s14753_s24 + $0x8] sm:$0xff] }
 0x597   :  { %11222 = vrcp.f32 %v1184_v57  ;;  %v1290_v22 = vpop.f32.mrf.mxu0  ;;  %v1131_v9 = vsel %vm1130_vm9, %v12134_v46, %v1127_v7  ;;  %v1197_v5 = vand.u32 2147483648, %v1184_v57  ;;  %v1195_v61 = vand.u32 2147483647, %v1184_v57 }
 0x598   :  { %v1164_v10 = vmul.f32 %v11217_v43, %v1163_v39  ;;  %11224 = vpow2.f32 %v9124_v42  ;;  %9137 = vmatmul.msk.f32.gmra.mxu3 %vm161_vm1, %v1290_v22  ;;  %v12171_v4 = vadd.f32 %v1218_v14, %v1216_v34  ;;  %v1136_v26 = vsel %vm1133_vm11, %v1135_v18, %v1131_v9  ;;  %v11462_v39 = vld [vmem:[%s14753_s24] sm:$0xff] }
 0x599   :  { %11226 = vtanh.f32 %v1051_v63  ;;  %vm1191_vm13 = vweird.f32 %v1184_v57  ;;  %v1198_v37 = vor.u32 1.1754944e-38, %v1197_v5  ;;  %vm1196_vm15 = vcmp.eq.f32.partialorder %v1195_v61, 8.507059e+37 }
 0x59a   :  { %v1165_v3 = vadd.f32 %v11217_v43, %v1164_v10  ;;  %11228 = vtanh.f32 %v12171_v4  ;;  %v1315_v10 = vpop.f32.mrf.mxu2 }
 0x59c   :  { %v1169_v41 = vsel %vm12167_vm7, %v11217_v43, %v1165_v3 }
 0x59d   :  { %v11223_v15 = vpop.eup %11222  ;;  %v1174_v62 = vsel %vm1171_vm10, %v1173_v48, %v1169_v41  ;;  %v11467_v48 = vld [vmem:[%s14756_s25] ss:$0 sm:$0xff] }
 0x59e   :  { %v11225_v21 = vpop.eup %11224  ;;  %v1187_v24 = vmul.f32 %v11223_v15, %v1184_v57  ;;  %vm1192_vm12 = vweird.f32 %v11223_v15  ;;  %v1217_v27 = vmul.f32 %v1174_v62, %v12029_v20  ;;  %v11460_v20 = vld [vmem:[%s14753_s24 + $0x10] sm:$0xff] }
 0x59f   :  { %v1185_v6 = vadd.f32 1.0, %v11225_v21  ;;  %v11227_v29 = vpop.eup %11226  ;;  %vm1193_vm14 = vmor %vm1191_vm13, %vm1192_vm12 }
 0x5a0   :  { %v1188_v17 = vsub.f32 1.0, %v1187_v24  ;;  %v1219_v46 = vmul.f32 %v11227_v29, %v1136_v26  ;;  %v11229_v30 = vpop.eup %11228  ;;  %v12267_v29 = vld [vmem:[%s14760_s28] ss:$0 sm:$0xff]  ;;  %s9021_s28 = sshll.u32 %s14736_s23, 4  ;;  %s9022_s28 = int_to_ptr.hbm [resolvable:$true] %s9021_s28 }
 0x5a1   :  { %11230 = vrcp.f32 %v1185_v6  ;;  %v1212_v12 = vand.u32 2147483648, %v1185_v6  ;;  %v1210_v38 = vand.u32 2147483647, %v1185_v6  ;;  %vm1206_vm6 = vweird.f32 %v1185_v6 }
 0x5a2   :  { %v1189_v19 = vmul.f32 %v11223_v15, %v1188_v17  ;;  %v12181_v43 = vadd.f32 %v1219_v46, %v1217_v27  ;;  %v1318_v3 = vpop.f32.mrf.mxu2  ;;  %v11473_v46 = vld [vmem:[%s14758_s4 + $0x18] sm:$0xff] }
 0x5a3   :  { %v1213_v42 = vor.u32 1.1754944e-38, %v1212_v12  ;;  %vm1211_vm8 = vcmp.eq.f32.partialorder %v1210_v38, 8.507059e+37 }
 0x5a4   :  { %v1190_v36 = vadd.f32 %v11223_v15, %v1189_v19  ;;  %11232 = vtanh.f32 %v12181_v43  ;;  %v11470_v19 = vld [vmem:[%s14755_s0] sm:$0xff] }
 0x5a6   :  { %v1194_v58 = vsel %vm1193_vm14, %v11223_v15, %v1190_v36  ;;  %v11472_v36 = vld [vmem:[%s14722_s9 + $0x8] sm:$0xff] }
 0x5a7   :  { %v11231_v31 = vpop.eup %11230  ;;  %v1199_v51 = vsel %vm1196_vm15, %v1198_v37, %v1194_v58  ;;  %v11474_v37 = vld [vmem:[%s14722_s9] sm:$0xff]  ;;  %v12291_v58 = vld [vmem:[%s14757_s26 + $0x30] sm:$0xff] }
 0x5a8   :  { %v1202_v44 = vmul.f32 %v11231_v31, %v1185_v6  ;;  %v1224_v40 = vmul.f32 %v11229_v30, %v1199_v51  ;;  %vm1207_vm5 = vweird.f32 %v11231_v31  ;;  %v11475_v30 = vld [vmem:[%s14758_s4 + $0x10] sm:$0xff] }
 0x5a9   :  { %vm1208_vm7 = vmor %vm1206_vm6, %vm1207_vm5  ;;  %v11477_v51 = vld [vmem:[%s14722_s9 + $0x10] sm:$0xff] }
 0x5aa   :  { %9145 = vmatmul.msk.f32.vlgmr.msrb.gmra.mxu3 %vm252_vm4, %v1224_v40  ;;  %v1203_v32 = vsub.f32 1.0, %v1202_v44  ;;  %v11233_v2 = vpop.eup %11232  ;;  %v12304_v44 = vld [vmem:[%s14757_s26 + $0x38] sm:$0xf] }
 0x5ab   :  { %1791 = vmatpush.msrb.mxu3 %v11460_v20 }
 0x5ac   :  { %v1204_v0 = vmul.f32 %v11231_v31, %v1203_v32 }
 0x5ad   :  { %1792 = vmatpush.msrb.mxu3 %v11461_v59 }
 0x5ae   :  { %v1205_v57 = vadd.f32 %v11231_v31, %v1204_v0 }
 0x5af   :  { %1793 = vmatpush.msrb.mxu3 %v11462_v39 }
 0x5b0   :  { %v1209_v1 = vsel %vm1208_vm7, %v11231_v31, %v1205_v57  ;;  %v11476_v31 = vld [vmem:[%s14722_s9 + $0x18] sm:$0xff] }
 0x5b1   :  { %v1214_v33 = vsel %vm1211_vm8, %v1213_v42, %v1209_v1  ;;  %v12312_v42 = vld [vmem:[%s14723_s10 + $0x1] ss:$0 sm:$0xff] }
 0x5b2   :  { %v1225_v22 = vmul.f32 %v11233_v2, %v1214_v33 }
 0x5b4   :  { %9146 = vmatmul.msk.f32.gmra.mxu3 %vm252_vm4, %v1225_v22 }
 0x5bc   :  { %9153 = vmatmul.msk.f32.vlgmr.msra.gmra.mxu3 %vm252_vm4, %v1224_v40 }
 0x5c4   :  { %9154 = vmatmul.msk.f32.gmra.mxu3 %vm252_vm4, %v1225_v22 }
 0x613   :  { %v1344_v34 = vpop.f32.mrf.mxu3 }
 0x614   :  { %v1345_v56 = vadd.f32 %v1344_v34, %v1315_v10 }
 0x616   :  { %v1350_v14 = vadd.f32 %v12200_v35, %v1345_v56 }
 0x618   :  { %v1352_v63 = vmax.f32 %v1350_v14, 0.0 }
 0x61a   :  { %9141 = vmatmul.msk.f32.vlgmr.msra.gmra.mxu0 %vm252_vm4, %v1352_v63 }
 0x61b   :  { %v1347_v7 = vpop.f32.mrf.mxu3  ;;  %1609 = vmatpush.msra.mxu0 %v11860_v49  ;;  %v11464_v49 = vld [vmem:[%s14755_s0 + $0x8] sm:$0xff]  ;;  %s11556_s0 = smov 8  }
 0x61c   :  { %v1348_v11 = vadd.f32 %v1347_v7, %v1318_v3 }
 0x61d   :  { %1610 = vmatpush.msra.mxu0 %v11866_v50  ;;  %v9167_v50 = vld [vmem:[%s14754_s27 + $0x30] sm:$0xff] }
 0x61e   :  { %v1351_v28 = vadd.f32 %v12200_v35, %v1348_v11  ;;  %9169 = vmatmul.msk.f32.vlgmr.msrb.gmra.mxu3 %vm95_vm0, %v9167_v50 }
 0x620   :  { %v1353_v8 = vmax.f32 %v1351_v28, 0.0 }
 0x622   :  { %9138 = vmatpush.msk.msra.mxu1 %vm134_vm2, %v1353_v8  ;;  %9142 = vmatmul.msk.f32.gmra.mxu0 %vm252_vm4, %v1353_v8 }
 0x624   :  { %1372 = vmatpush.msra.mxu1 %v1352_v63 }
 0x625   :  { %9139 = vmatmul.msk.f32.vlgmr.msra.gmra.mxu1 %vm127_vm3, %v12102_v13 }
 0x626   :  { %1488 = vmatpush.msrb.mxu1 %v11836_v45  ;;  %v11465_v45 = vld [vmem:[%s14758_s4 + $0x8] sm:$0xff] }
 0x628   :  { %1489 = vmatpush.msrb.mxu1 %v11848_v47  ;;  %v11466_v47 = vld [vmem:[%s14758_s4] sm:$0xff]  ;;  %s11555_s4 = smov 128  }
 0x62a   :  { %1584 = vmatpush.msra.mxu1 %v11877_v52  ;;  %9149 = vmatmul.msk.f32.vlgmr.msrb.gmra.mxu0 %vm252_vm4, %v1224_v40  ;;  %v9168_v52 = vld [vmem:[%s14754_s27 + $0x38] sm:$0xf] }
 0x62b   :  { %1856 = vmatpush.msrb.mxu0 %v11464_v49  ;;  %9170 = vmatmul.msk.f32.gmra.mxu3 %vm95_vm0, %v9168_v52 }
 0x62c   :  { %1585 = vmatpush.msra.mxu1 %v11887_v54 }
 0x62d   :  { %9140 = vmatmul.msk.f32.gmra.mxu1 %vm127_vm3, %v12111_v16  ;;  %v1462_v16 = vpop.f32.mrf.mxu3 }
 0x632   :  { %9150 = vmatmul.msk.f32.gmra.mxu0 %vm252_vm4, %v1225_v22 }
 0x637   :  { %v1465_v15 = vpop.f32.mrf.mxu3 }
 0x63a   :  { %9157 = vmatmul.msk.f32.vlgmr.msra.gmra.mxu0 %vm252_vm4, %v1224_v40 }
 0x63b   :  { %1971 = vmatpush.msra.mxu0 %v11465_v45 }
 0x63d   :  { %1972 = vmatpush.msra.mxu0 %v11466_v47 }
 0x63f   :  { %v12242_v23 = vpop.f32.mrf.mxu3 }
 0x642   :  { %9158 = vmatmul.msk.f32.gmra.mxu0 %vm252_vm4, %v1225_v22 }
 0x647   :  { %v12244_v41 = vpop.f32.mrf.mxu3 }
 0x697   :  { %v1402_v17 = vpop.f32.mrf.mxu0 }
 0x69f   :  { %v1405_v26 = vpop.f32.mrf.mxu0 }
 0x6a1   :  { %v1795_v21 = vpop.f32.mrf.mxu3 }
 0x6a2   :  { %v1374_v54 = vpop.f32.mrf.mxu1  ;;  %v1796_v24 = vadd.f32 %v11467_v48, %v1795_v21 }
 0x6a3   :  { %9143 = vmatmul.msk.f32.vlgmr.msrb.gmra.mxu2 %vm252_vm4, %v1374_v54 }
 0x6a4   :  { %1632 = vmatpush.msrb.mxu2 %v11882_v53  ;;  %9176 = vmatmul.msk.f32.vlgmr.msrb.gmra.mxu0 %vm161_vm1, %v1796_v24  ;;  %v11468_v53 = vld [vmem:[%s14721_s8 + $0x18] sm:$0xff] }
 0x6a5   :  { %2079 = vmatpush.msrb.mxu0 %v11468_v53 }
 0x6a6   :  { %1633 = vmatpush.msrb.mxu2 %v11894_v55  ;;  %v11469_v55 = vld [vmem:[%s14721_s8 + $0x10] sm:$0xff] }
 0x6a7   :  { %2080 = vmatpush.msrb.mxu0 %v11469_v55  ;;  %v1516_v12 = vpop.f32.mrf.mxu0 }
 0x6aa   :  { %v1377_v13 = vpop.f32.mrf.mxu1 }
 0x6ab   :  { %9144 = vmatmul.msk.f32.gmra.mxu2 %vm252_vm4, %v1377_v13 }
 0x6ae   :  { %v1798_v9 = vpop.f32.mrf.mxu3 }
 0x6af   :  { %v1799_v6 = vadd.f32 %v11467_v48, %v1798_v9  ;;  %v1519_v22 = vpop.f32.mrf.mxu0 }
 0x6b1   :  { %9177 = vmatmul.msk.f32.gmra.mxu0 %vm161_vm1, %v1799_v6 }
 0x6b7   :  { %v1612_v45 = vpop.f32.mrf.mxu0 }
 0x726   :  { %v1431_v18 = vpop.f32.mrf.mxu2 }
 0x727   :  { %v1432_v62 = vadd.f32 %v1431_v18, %v1402_v17 }
 0x729   :  { %v1437_v5 = vadd.f32 %v11907_v60, %v1432_v62 }
 0x72b   :  { %9147 = vmatmul.msk.f32.vlgmr.msrb.gmra.mxu1 %vm252_vm4, %v1437_v5  ;;  %9151 = vmatmul.msk.f32.vlgmr.msra.gmra.mxu2 %vm252_vm4, %v1437_v5 }
 0x72c   :  { %9173 = vmatpush.msk.msrb.mxu1 %vm134_vm2, %v1799_v6  ;;  %1885 = vmatpush.msra.mxu2 %v11470_v19  ;;  %v12343_v19 = vld [vmem:[%s14723_s10 + $0x2] ss:$0 sm:$0xff] }
 0x72e   :  { %v1434_v61 = vpop.f32.mrf.mxu2  ;;  %1828 = vmatpush.msrb.mxu1 %v1796_v24 }
 0x72f   :  { %v1435_v27 = vadd.f32 %v1434_v61, %v1405_v26  ;;  %v1615_v26 = vpop.f32.mrf.mxu0 }
 0x731   :  { %v1438_v60 = vadd.f32 %v12267_v29, %v1435_v27 }
 0x733   :  { %9148 = vmatmul.msk.f32.gmra.mxu1 %vm252_vm4, %v1438_v60  ;;  %9152 = vmatmul.msk.f32.gmra.mxu2 %vm252_vm4, %v1438_v60 }
 0x73b   :  { %9155 = vmatmul.msk.f32.vlgmr.msra.gmra.mxu1 %vm252_vm4, %v1437_v5  ;;  %9159 = vmatmul.msk.f32.vlgmr.msrb.gmra.mxu2 %vm252_vm4, %v1437_v5 }
 0x73c   :  { %2002 = vmatpush.msrb.mxu2 %v11472_v36  ;;  %1942 = vmatpush.msra.mxu1 %v11473_v46 }
 0x73e   :  { %2003 = vmatpush.msrb.mxu2 %v11474_v37  ;;  %1943 = vmatpush.msra.mxu1 %v11475_v30 }
 0x743   :  { %9156 = vmatmul.msk.f32.gmra.mxu1 %vm252_vm4, %v1438_v60  ;;  %9160 = vmatmul.msk.f32.gmra.mxu2 %vm252_vm4, %v1438_v60 }
 0x74b   :  { %9174 = vmatmul.msk.f32.vlgmr.msrb.gmra.mxu1 %vm127_vm3, %v12291_v58 }
 0x74c   :  { %2056 = vmatpush.msrb.mxu1 %v11476_v31 }
 0x74e   :  { %2057 = vmatpush.msrb.mxu1 %v11477_v51  ;;  %v11481_v51 = vld [vmem:[%s14722_s9 + $0x28] sm:$0xff] }
 0x753   :  { %9175 = vmatmul.msk.f32.gmra.mxu1 %vm127_vm3, %v12304_v44 }
 0x7a8   :  { %v1491_v40 = vpop.f32.mrf.mxu1 }
 0x7a9   :  { %v1492_v32 = vadd.f32 %v1491_v40, %v1462_v16 }
 0x7ab   :  { %v1497_v20 = vadd.f32 %v11952_v25, %v1492_v32 }
 0x7ad   :  { %v9161_v0 = vmul.f32 -1.442695, %v1497_v20 }
 0x7ae   :  { %v1539_v38 = vpop.f32.mrf.mxu2 }
 0x7af   :  { %11234 = vpow2.f32 %v9161_v0  ;;  %v1540_v59 = vadd.f32 %v1539_v38, %v1516_v12 }
 0x7b0   :  { %v1494_v57 = vpop.f32.mrf.mxu1 }
 0x7b1   :  { %v1545_v39 = vadd.f32 %v12312_v42, %v1540_v59  ;;  %v1495_v1 = vadd.f32 %v1494_v57, %v1465_v15  ;;  %v12330_v15 = vld [vmem:[%s14723_s10 + $0x3] ss:$0 sm:$0xff] }
 0x7b2   :  { %v11482_v57 = vld [vmem:[%s14722_s9 + $0x20] sm:$0xff] }
 0x7b3   :  { %v9163_v2 = vmul.f32 -1.442695, %v1545_v39  ;;  %v1498_v33 = vadd.f32 %v11952_v25, %v1495_v1 }
 0x7b5   :  { %v11235_v10 = vpop.eup %11234  ;;  %11236 = vpow2.f32 %v9163_v2  ;;  %v9162_v34 = vmul.f32 -1.442695, %v1498_v33 }
 0x7b6   :  { %v12316_v56 = vadd.f32 1.0, %v11235_v10  ;;  %v1542_v14 = vpop.f32.mrf.mxu2 }
 0x7b7   :  { %11238 = vpow2.f32 %v9162_v34  ;;  %v1543_v63 = vadd.f32 %v1542_v14, %v1519_v22 }
 0x7b8   :  { %11240 = vrcp.f32 %v12316_v56  ;;  %v1587_v3 = vpop.f32.mrf.mxu1  ;;  %vm1656_vm10 = vweird.f32 %v12316_v56  ;;  %v1662_v31 = vand.u32 2147483648, %v12316_v56  ;;  %v1660_v32 = vand.u32 2147483647, %v12316_v56 }
 0x7b9   :  { %v1546_v7 = vadd.f32 %v12312_v42, %v1543_v63  ;;  %v1588_v24 = vadd.f32 %v1587_v3, %v12242_v23 }
 0x7ba   :  { %v1663_v22 = vor.u32 1.1754944e-38, %v1662_v31  ;;  %vm1661_vm15 = vcmp.eq.f32.partialorder %v1660_v32, 8.507059e+37 }
 0x7bb   :  { %v11237_v11 = vpop.eup %11236  ;;  %v9164_v28 = vmul.f32 -1.442695, %v1546_v7  ;;  %v1593_v23 = vadd.f32 %v12343_v19, %v1588_v24 }
 0x7bc   :  { %v1687_v8 = vadd.f32 1.0, %v11237_v11 }
 0x7bd   :  { %v11239_v49 = vpop.eup %11238  ;;  %11242 = vpow2.f32 %v9164_v28 }
 0x7be   :  { %v12320_v25 = vpop.eup %11240  ;;  %11244 = vrcp.f32 %v1687_v8  ;;  %v12322_v47 = vadd.f32 1.0, %v11239_v49  ;;  %v1635_v50 = vpop.f32.mrf.mxu2  ;;  %v1700_v61 = vand.u32 2147483648, %v1687_v8  ;;  %v1698_v60 = vand.u32 2147483647, %v1687_v8 }
 0x7bf   :  { %v1652_v52 = vmul.f32 %v12320_v25, %v12316_v56  ;;  %v1636_v54 = vadd.f32 %v1635_v50, %v1612_v45  ;;  %vm1657_vm0 = vweird.f32 %v12320_v25  ;;  %vm1694_vm11 = vweird.f32 %v1687_v8 }
 0x7c0   :  { %11246 = vrcp.f32 %v12322_v47  ;;  %v1590_v13 = vpop.f32.mrf.mxu1  ;;  %vm12356_vm12 = vmor %vm1656_vm10, %vm1657_vm0  ;;  %v1701_v38 = vor.u32 1.1754944e-38, %v1700_v61  ;;  %vm1699_vm14 = vcmp.eq.f32.partialorder %v1698_v60, 8.507059e+37  ;;  %vm1671_vm0 = vweird.f32 %v12322_v47 }
 0x7c1   :  { %v1653_v16 = vsub.f32 1.0, %v1652_v52  ;;  %v1641_v21 = vadd.f32 %v12330_v15, %v1636_v54  ;;  %v1591_v63 = vadd.f32 %v1590_v13, %v12244_v41 }
 0x7c3   :  { %v11243_v48 = vpop.eup %11242  ;;  %v9165_v9 = vmul.f32 -1.442695, %v1641_v21  ;;  %v1654_v17 = vmul.f32 %v12320_v25, %v1653_v16  ;;  %v1594_v50 = vadd.f32 %v12343_v19, %v1591_v63  ;;  %v1677_v16 = vand.u32 2147483648, %v12322_v47 }
 0x7c4   :  { %v11245_v53 = vpop.eup %11244  ;;  %v12334_v55 = vadd.f32 1.0, %v11243_v48  ;;  %v1675_v48 = vand.u32 2147483647, %v12322_v47 }
 0x7c5   :  { %v1690_v6 = vmul.f32 %v11245_v53, %v1687_v8  ;;  %vm1695_vm9 = vweird.f32 %v11245_v53  ;;  %v1655_v37 = vadd.f32 %v12320_v25, %v1654_v17 }
 0x7c6   :  { %v12337_v18 = vpop.eup %11246  ;;  %11248 = vrcp.f32 %v12334_v55  ;;  %v1638_v62 = vpop.f32.mrf.mxu2  ;;  %vm1696_vm13 = vmor %vm1694_vm11, %vm1695_vm9  ;;  %vm1709_vm6 = vweird.f32 %v12334_v55  ;;  %v1713_v54 = vand.u32 2147483647, %v12334_v55  ;;  %vm1676_vm11 = vcmp.eq.f32.partialorder %v1675_v48, 8.507059e+37 }
 0x7c7   :  { %v1691_v5 = vsub.f32 1.0, %v1690_v6  ;;  %11250 = vpow2.f32 %v9165_v9  ;;  %v1667_v27 = vmul.f32 %v12337_v18, %v12322_v47  ;;  %v1639_v30 = vadd.f32 %v1638_v62, %v1615_v26 }
 0x7c8   :  { %v1830_v36 = vpop.f32.mrf.mxu1  ;;  %11252 = vtanh.f32 %v1593_v23  ;;  %v1659_v2 = vsel %vm12356_vm12, %v12320_v25, %v1655_v37  ;;  %v1715_v25 = vand.u32 2147483648, %v12334_v55  ;;  %vm1672_vm7 = vweird.f32 %v12337_v18 }
 0x7c9   :  { %v1692_v46 = vmul.f32 %v11245_v53, %v1691_v5  ;;  %9178 = vmatmul.msk.f32.vlgmr.msra.gmra.mxu2 %vm161_vm1, %v1830_v36  ;;  %v1642_v20 = vadd.f32 %v12330_v15, %v1639_v30  ;;  %v1668_v59 = vsub.f32 1.0, %v1667_v27  ;;  %v1664_v3 = vsel %vm1661_vm15, %v1663_v22, %v1659_v2  ;;  %vm12390_vm9 = vmor %vm1671_vm0, %vm1672_vm7 }
 0x7ca   :  { %2104 = vmatpush.msra.mxu2 %v11481_v51  ;;  %v1716_v9 = vor.u32 1.1754944e-38, %v1715_v25  ;;  %vm1714_vm10 = vcmp.eq.f32.partialorder %v1713_v54, 8.507059e+37  ;;  %v1678_v5 = vor.u32 1.1754944e-38, %v1677_v16  ;;  %v11489_v54 = vld [vmem:[%s14721_s8 + $0x38] sm:$0xff] }
 0x7cb   :  { %v1693_v12 = vadd.f32 %v11245_v53, %v1692_v46  ;;  %v9166_v56 = vmul.f32 -1.442695, %v1642_v20  ;;  %v1669_v7 = vmul.f32 %v12337_v18, %v1668_v59 }
 0x7cc   :  { %v11249_v0 = vpop.eup %11248  ;;  %2105 = vmatpush.msra.mxu2 %v11482_v57 }
 0x7cd   :  { %v11251_v39 = vpop.eup %11250  ;;  %v1705_v1 = vmul.f32 %v11249_v0, %v12334_v55  ;;  %v1697_v33 = vsel %vm1696_vm13, %v11245_v53, %v1693_v12  ;;  %vm1710_vm5 = vweird.f32 %v11249_v0  ;;  %v1670_v41 = vadd.f32 %v12337_v18, %v1669_v7 }
 0x7ce   :  { %v1702_v10 = vsel %vm1699_vm14, %v1701_v38, %v1697_v33  ;;  %v1727_v34 = vadd.f32 1.0, %v11251_v39  ;;  %v11253_v49 = vpop.eup %11252  ;;  %vm12379_vm8 = vmor %vm1709_vm6, %vm1710_vm5 }
 0x7cf   :  { %v1706_v14 = vsub.f32 1.0, %v1705_v1  ;;  %v1759_v8 = vmul.f32 %v1702_v10, %v12171_v4  ;;  %v1761_v45 = vmul.f32 %v11253_v49, %v1664_v3  ;;  %v1674_v17 = vsel %vm12390_vm9, %v12337_v18, %v1670_v41  ;;  %v11484_v49 = vld [vmem:[%s14722_s9 + $0x30] sm:$0xff] }
 0x7d0   :  { %11254 = vrcp.f32 %v1727_v34  ;;  %v1833_v11 = vpop.f32.mrf.mxu1  ;;  %v1740_v26 = vand.u32 2147483648, %v1727_v34  ;;  %v1738_v27 = vand.u32 2147483647, %v1727_v34  ;;  %v1679_v60 = vsel %vm1676_vm11, %v1678_v5, %v1674_v17  ;;  %v11490_v4 = vld [vmem:[%s14721_s8 + $0x30] sm:$0xff] }
 0x7d1   :  { %v1707_v28 = vmul.f32 %v11249_v0, %v1706_v14  ;;  %11256 = vpow2.f32 %v9166_v56  ;;  %9179 = vmatmul.msk.f32.gmra.mxu2 %vm161_vm1, %v1833_v11  ;;  %v12383_v13 = vadd.f32 %v1761_v45, %v1759_v8  ;;  %vm1734_vm13 = vweird.f32 %v1727_v34  ;;  %v12482_v5 = vld [vmem:[%s14724_s11 + $0x10] sm:$0xff] }
 0x7d2   :  { %11258 = vtanh.f32 %v1594_v50  ;;  %v1741_v18 = vor.u32 1.1754944e-38, %v1740_v26  ;;  %vm1739_vm15 = vcmp.eq.f32.partialorder %v1738_v27, 8.507059e+37  ;;  %v11485_v50 = vld [vmem:[%s14721_s8 + $0x8] sm:$0xff] }
 0x7d3   :  { %v1708_v52 = vadd.f32 %v11249_v0, %v1707_v28  ;;  %11260 = vtanh.f32 %v12383_v13  ;;  %v11483_v28 = vld [vmem:[%s14722_s9 + $0x38] sm:$0xff] }
 0x7d5   :  { %v1712_v24 = vsel %vm12379_vm8, %v11249_v0, %v1708_v52  ;;  %v11486_v52 = vld [vmem:[%s14721_s8] sm:$0xff] }
 0x7d6   :  { %v11255_v21 = vpop.eup %11254  ;;  %v1717_v23 = vsel %vm1714_vm10, %v1716_v9, %v1712_v24 }
 0x7d7   :  { %v11257_v53 = vpop.eup %11256  ;;  %v1730_v6 = vmul.f32 %v11255_v21, %v1727_v34  ;;  %vm1735_vm12 = vweird.f32 %v11255_v21  ;;  %v1760_v36 = vmul.f32 %v1717_v23, %v12181_v43  ;;  %v1858_v34 = vpop.f32.mrf.mxu0  ;;  %v12491_v23 = vld [vmem:[%s14724_s11 + $0x18] sm:$0x3f] }
 0x7d8   :  { %v1728_v62 = vadd.f32 1.0, %v11257_v53  ;;  %v11259_v46 = vpop.eup %11258  ;;  %vm1736_vm14 = vmor %vm1734_vm13, %vm1735_vm12  ;;  %v9213_v53 = vld [vmem:[%s14726_s13 + $0x20] sm:$0xff] }
 0x7d9   :  { %v1731_v47 = vsub.f32 1.0, %v1730_v6  ;;  %v1762_v30 = vmul.f32 %v11259_v46, %v1679_v60  ;;  %v11261_v31 = vpop.eup %11260 }
 0x7da   :  { %11262 = vrcp.f32 %v1728_v62  ;;  %v1755_v59 = vand.u32 2147483648, %v1728_v62  ;;  %v1753_v57 = vand.u32 2147483647, %v1728_v62  ;;  %vm1749_vm6 = vweird.f32 %v1728_v62 }
 0x7db   :  { %v1732_v61 = vmul.f32 %v11255_v21, %v1731_v47  ;;  %v12399_v32 = vadd.f32 %v1762_v30, %v1760_v36  ;;  %v12473_v47 = vld [vmem:[%s14724_s11 + $0x8] sm:$0xff] }
 0x7dc   :  { %v1756_v1 = vor.u32 1.1754944e-38, %v1755_v59  ;;  %vm1754_vm8 = vcmp.eq.f32.partialorder %v1753_v57, 8.507059e+37 }
 0x7dd   :  { %v1733_v37 = vadd.f32 %v11255_v21, %v1732_v61  ;;  %11264 = vtanh.f32 %v12399_v32 }
 0x7df   :  { %v1737_v51 = vsel %vm1736_vm14, %v11255_v21, %v1733_v37  ;;  %v1861_v7 = vpop.f32.mrf.mxu0 }
 0x7e0   :  { %v11263_v40 = vpop.eup %11262  ;;  %v1742_v12 = vsel %vm1739_vm15, %v1741_v18, %v1737_v51  ;;  %v11491_v51 = vld [vmem:[%s14723_s10] ss:$0 sm:$0xff] }
 0x7e1   :  { %v1745_v20 = vmul.f32 %v11263_v40, %v1728_v62  ;;  %v1767_v0 = vmul.f32 %v11261_v31, %v1742_v12  ;;  %vm1750_vm5 = vweird.f32 %v11263_v40  ;;  %v2328_v62 = vld [vmem:[%s14726_s13] sm:$0xff] }
 0x7e2   :  { %vm1751_vm7 = vmor %vm1749_vm6, %vm1750_vm5 }
 0x7e3   :  { %9187 = vmatmul.msk.f32.vlgmr.msrb.gmra.mxu2 %vm252_vm4, %v1767_v0  ;;  %v1746_v38 = vsub.f32 1.0, %v1745_v20  ;;  %v11265_v33 = vpop.eup %11264 }
 0x7e4   :  { %2360 = vmatpush.msrb.mxu2 %v2328_v62 }
 0x7e5   :  { %v1747_v43 = vmul.f32 %v11263_v40, %v1746_v38 }
 0x7e7   :  { %v1748_v39 = vadd.f32 %v11263_v40, %v1747_v43 }
 0x7e9   :  { %v1752_v2 = vsel %vm1751_vm7, %v11263_v40, %v1748_v39 }
 0x7ea   :  { %v1757_v22 = vsel %vm1754_vm8, %v1756_v1, %v1752_v2 }
 0x7eb   :  { %v1768_v10 = vmul.f32 %v11265_v33, %v1757_v22 }
 0x7ed   :  { %9188 = vmatmul.msk.f32.gmra.mxu2 %vm252_vm4, %v1768_v10 }
 0x7f5   :  { %9195 = vmatmul.msk.f32.vlgmr.msra.gmra.mxu2 %vm252_vm4, %v1767_v0 }
 0x7fd   :  { %9196 = vmatmul.msk.f32.gmra.mxu2 %vm252_vm4, %v1768_v10 }
 0x84c   :  { %v1887_v56 = vpop.f32.mrf.mxu2 }
 0x84d   :  { %v1888_v14 = vadd.f32 %v1887_v56, %v1858_v34 }
 0x84f   :  { %v1893_v63 = vadd.f32 %v12200_v35, %v1888_v14 }
 0x851   :  { %v1895_v3 = vmax.f32 %v1893_v63, 0.0 }
 0x853   :  { %9183 = vmatmul.msk.f32.vlgmr.msra.gmra.mxu1 %vm252_vm4, %v1895_v3 }
 0x854   :  { %v1890_v11 = vpop.f32.mrf.mxu2  ;;  %2152 = vmatpush.msra.mxu1 %v11483_v28 }
 0x855   :  { %v1891_v8 = vadd.f32 %v1890_v11, %v1861_v7 }
 0x856   :  { %2153 = vmatpush.msra.mxu1 %v11484_v49 }
 0x857   :  { %v1894_v25 = vadd.f32 %v12200_v35, %v1891_v8  ;;  %v11487_v35 = vld [vmem:[%s14721_s8 + $0x28] sm:$0xff] }
 0x859   :  { %v1896_v45 = vmax.f32 %v1894_v25, 0.0 }
 0x85b   :  { %9180 = vmatpush.msk.msra.mxu3 %vm134_vm2, %v1896_v45  ;;  %9184 = vmatmul.msk.f32.gmra.mxu1 %vm252_vm4, %v1896_v45 }
 0x85d   :  { %1915 = vmatpush.msra.mxu3 %v1895_v3 }
 0x85e   :  { %9181 = vmatmul.msk.f32.vlgmr.msra.gmra.mxu3 %vm127_vm3, %v12291_v58  ;;  %v11488_v58 = vld [vmem:[%s14721_s8 + $0x20] sm:$0xff] }
 0x85f   :  { %2031 = vmatpush.msrb.mxu3 %v11485_v50 }
 0x861   :  { %2032 = vmatpush.msrb.mxu3 %v11486_v52 }
 0x863   :  { %2127 = vmatpush.msra.mxu3 %v11487_v35  ;;  %9191 = vmatmul.msk.f32.vlgmr.msrb.gmra.mxu1 %vm252_vm4, %v1767_v0 }
 0x865   :  { %2128 = vmatpush.msra.mxu3 %v11488_v58 }
 0x866   :  { %9182 = vmatmul.msk.f32.gmra.mxu3 %vm127_vm3, %v12304_v44  ;;  %v2005_v27 = vpop.f32.mrf.mxu2 }
 0x86b   :  { %9192 = vmatmul.msk.f32.gmra.mxu1 %vm252_vm4, %v1768_v10 }
 0x870   :  { %v2008_v20 = vpop.f32.mrf.mxu2 }
 0x873   :  { %9199 = vmatmul.msk.f32.vlgmr.msra.gmra.mxu1 %vm252_vm4, %v1767_v0 }
 0x878   :  { %v2107_v7 = vpop.f32.mrf.mxu2 }
 0x87b   :  { %9200 = vmatmul.msk.f32.gmra.mxu1 %vm252_vm4, %v1768_v10 }
 0x8d0   :  { %v1945_v16 = vpop.f32.mrf.mxu1 }
 0x8d8   :  { %v1948_v9 = vpop.f32.mrf.mxu1 }
 0x8e0   :  { %v2059_v26 = vpop.f32.mrf.mxu1 }
 0x8e1   :  { %v1917_v41 = vpop.f32.mrf.mxu3 }
 0x8e2   :  { %9185 = vmatmul.msk.f32.vlgmr.msra.gmra.mxu0 %vm252_vm4, %v1917_v41 }
 0x8e3   :  { %2175 = vmatpush.msra.mxu0 %v11489_v54 }
 0x8e5   :  { %2176 = vmatpush.msra.mxu0 %v11490_v4 }
 0x8e8   :  { %v2062_v46 = vpop.f32.mrf.mxu1 }
 0x8e9   :  { %v1920_v44 = vpop.f32.mrf.mxu3 }
 0x8ea   :  { %9186 = vmatmul.msk.f32.gmra.mxu0 %vm252_vm4, %v1920_v44 }
 0x8f0   :  { %v2155_v57 = vpop.f32.mrf.mxu1 }
 0x8f8   :  { %v2158_v45 = vpop.f32.mrf.mxu1 }
 0x95f   :  { %v1974_v21 = vpop.f32.mrf.mxu0 }
 0x960   :  { %v1975_v48 = vadd.f32 %v1974_v21, %v1945_v16 }
 0x962   :  { %v1980_v24 = vadd.f32 %v12267_v29, %v1975_v48 }
 0x964   :  { %9189 = vmatmul.msk.f32.vlgmr.msrb.gmra.mxu3 %vm252_vm4, %v1980_v24  ;;  %9193 = vmatmul.msk.f32.vlgmr.msrb.gmra.mxu0 %vm252_vm4, %v1980_v24 }
 0x965   :  { %2396 = vmatpush.msrb.mxu3 %v9213_v53 }
 0x967   :  { %v1977_v6 = vpop.f32.mrf.mxu0 }
 0x968   :  { %v1978_v55 = vadd.f32 %v1977_v6, %v1948_v9 }
 0x96a   :  { %v1981_v17 = vadd.f32 %v12267_v29, %v1978_v55  ;;  %v12464_v29 = vld [vmem:[%s14724_s11] sm:$0xff] }
 0x96b   :  { %9209 = vmatmul.msk.f32.vlgmr.msrb.gmra.mxu2 %vm161_vm1, %v12464_v29 }
 0x96c   :  { %9190 = vmatmul.msk.f32.gmra.mxu3 %vm252_vm4, %v1981_v17  ;;  %9194 = vmatmul.msk.f32.gmra.mxu0 %vm252_vm4, %v1981_v17 }
 0x973   :  { %9210 = vmatmul.msk.f32.gmra.mxu2 %vm161_vm1, %v12473_v47 }
 0x974   :  { %9197 = vmatmul.msk.f32.vlgmr.msra.gmra.mxu3 %vm252_vm4, %v1980_v24  ;;  %9201 = vmatmul.msk.f32.vlgmr.msra.gmra.mxu0 %vm252_vm4, %v1980_v24 }
 0x97b   :  { %9211 = vmatmul.msk.f32.gmra.mxu2 %vm161_vm1, %v12482_v5 }
 0x97c   :  { %9198 = vmatmul.msk.f32.gmra.mxu3 %vm252_vm4, %v1981_v17  ;;  %9202 = vmatmul.msk.f32.gmra.mxu0 %vm252_vm4, %v1981_v17 }
 0x983   :  { %9212 = vmatmul.msk.f32.gmra.mxu2 %vm161_vm1, %v12491_v23 }
 0x984   :  { %9215 = vmatmul.msk.f32.vlgmr.msrb.gmra.mxu3 %vm161_vm1, %v12464_v29 }
 0x98c   :  { %9216 = vmatmul.msk.f32.gmra.mxu3 %vm161_vm1, %v12473_v47 }
 0x994   :  { %9217 = vmatmul.msk.f32.gmra.mxu3 %vm161_vm1, %v12482_v5 }
 0x99c   :  { %9218 = vmatmul.msk.f32.gmra.mxu3 %vm161_vm1, %v12491_v23 }
 0x9e1   :  { %v2082_v61 = vpop.f32.mrf.mxu0 }
 0x9e2   :  { %v2083_v60 = vadd.f32 %v2082_v61, %v2059_v26  ;;  %v2110_v26 = vpop.f32.mrf.mxu2 }
 0x9e4   :  { %v2088_v36 = vadd.f32 %v12312_v42, %v2083_v60 }
 0x9e6   :  { %v9205_v37 = vmul.f32 -1.442695, %v2088_v36 }
 0x9e7   :  { %v2034_v18 = vpop.f32.mrf.mxu3 }
 0x9e8   :  { %11266 = vpow2.f32 %v9205_v37  ;;  %v2035_v30 = vadd.f32 %v2034_v18, %v2005_v27 }
 0x9e9   :  { %v2085_v31 = vpop.f32.mrf.mxu0 }
 0x9ea   :  { %v2040_v40 = vadd.f32 %v11491_v51, %v2035_v30  ;;  %v2086_v12 = vadd.f32 %v2085_v31, %v2062_v46 }
 0x9ec   :  { %v9203_v0 = vmul.f32 -1.442695, %v2040_v40  ;;  %v2089_v38 = vadd.f32 %v12312_v42, %v2086_v12 }
 0x9ee   :  { %v11267_v59 = vpop.eup %11266  ;;  %11268 = vpow2.f32 %v9203_v0  ;;  %v9206_v43 = vmul.f32 -1.442695, %v2089_v38 }
 0x9ef   :  { %v2230_v39 = vadd.f32 1.0, %v11267_v59  ;;  %v2037_v1 = vpop.f32.mrf.mxu3 }
 0x9f0   :  { %11270 = vpow2.f32 %v9206_v43  ;;  %v2038_v2 = vadd.f32 %v2037_v1, %v2008_v20 }
 0x9f1   :  { %11272 = vrcp.f32 %v2230_v39  ;;  %v2178_v33 = vpop.f32.mrf.mxu0  ;;  %vm2237_vm3 = vweird.f32 %v2230_v39  ;;  %v2243_v6 = vand.u32 2147483648, %v2230_v39  ;;  %v2241_v17 = vand.u32 2147483647, %v2230_v39 }
 0x9f2   :  { %v2041_v22 = vadd.f32 %v11491_v51, %v2038_v2  ;;  %v2179_v10 = vadd.f32 %v2178_v33, %v2155_v57 }
 0x9f3   :  { %v2244_v31 = vor.u32 1.1754944e-38, %v2243_v6  ;;  %vm2242_vm11 = vcmp.eq.f32.partialorder %v2241_v17, 8.507059e+37 }
 0x9f4   :  { %v11269_v34 = vpop.eup %11268  ;;  %v9204_v56 = vmul.f32 -1.442695, %v2041_v22  ;;  %v2184_v14 = vadd.f32 %v12330_v15, %v2179_v10 }
 0x9f5   :  { %v2192_v63 = vadd.f32 1.0, %v11269_v34 }
 0x9f6   :  { %v11271_v3 = vpop.eup %11270  ;;  %11274 = vpow2.f32 %v9204_v56  ;;  %v9207_v42 = vmul.f32 -1.442695, %v2184_v14 }
 0x9f7   :  { %v11273_v11 = vpop.eup %11272  ;;  %11276 = vrcp.f32 %v2192_v63  ;;  %v12503_v28 = vadd.f32 1.0, %v11271_v3  ;;  %v2130_v8 = vpop.f32.mrf.mxu3  ;;  %v2203_v27 = vand.u32 2147483647, %v2192_v63  ;;  %v2205_v36 = vand.u32 2147483648, %v2192_v63 }
 0x9f8   :  { %v2233_v49 = vmul.f32 %v11273_v11, %v2230_v39  ;;  %11278 = vpow2.f32 %v9207_v42  ;;  %v2131_v25 = vadd.f32 %v2130_v8, %v2107_v7  ;;  %vm2238_vm0 = vweird.f32 %v11273_v11 }
 0x9f9   :  { %11280 = vrcp.f32 %v12503_v28  ;;  %v2181_v50 = vpop.f32.mrf.mxu0  ;;  %vm12519_vm9 = vmor %vm2237_vm3, %vm2238_vm0  ;;  %v2258_v51 = vand.u32 2147483648, %v12503_v28  ;;  %v2256_v40 = vand.u32 2147483647, %v12503_v28  ;;  %vm2252_vm12 = vweird.f32 %v12503_v28 }
 0x9fa   :  { %v2234_v52 = vsub.f32 1.0, %v2233_v49  ;;  %v2182_v35 = vadd.f32 %v2181_v50, %v2158_v45  ;;  %v2136_v54 = vadd.f32 %v12343_v19, %v2131_v25  ;;  %vm2199_vm13 = vweird.f32 %v2192_v63 }
 0x9fb   :  { %vm2204_vm15 = vcmp.eq.f32.partialorder %v2203_v27, 8.507059e+37  ;;  %v2206_v38 = vor.u32 1.1754944e-38, %v2205_v36  ;;  %v2259_v22 = vor.u32 1.1754944e-38, %v2258_v51  ;;  %vm12536_vm6 = vcmp.eq.f32.partialorder %v2256_v40, 8.507059e+37 }
 0x9fc   :  { %v11275_v58 = vpop.eup %11274  ;;  %v2235_v41 = vmul.f32 %v11273_v11, %v2234_v52  ;;  %v2185_v4 = vadd.f32 %v12330_v15, %v2182_v35 }
 0x9fd   :  { %v11277_v44 = vpop.eup %11276  ;;  %v12508_v16 = vadd.f32 1.0, %v11275_v58 }
 0x9fe   :  { %v11279_v21 = vpop.eup %11278  ;;  %v2195_v48 = vmul.f32 %v11277_v44, %v2192_v63  ;;  %v2236_v24 = vadd.f32 %v11273_v11, %v2235_v41  ;;  %v9208_v53 = vmul.f32 -1.442695, %v2185_v4  ;;  %vm2200_vm10 = vweird.f32 %v11277_v44 }
 0x9ff   :  { %v12510_v9 = vpop.eup %11280  ;;  %11282 = vrcp.f32 %v12508_v16  ;;  %v12513_v55 = vadd.f32 1.0, %v11279_v21  ;;  %v2133_v62 = vpop.f32.mrf.mxu3  ;;  %vm2201_vm14 = vmor %vm2199_vm13, %vm2200_vm10  ;;  %v2218_v34 = vand.u32 2147483647, %v12508_v16  ;;  %v2220_v49 = vand.u32 2147483648, %v12508_v16 }
 0xa00   :  { %v2196_v15 = vsub.f32 1.0, %v2195_v48  ;;  %v2248_v61 = vmul.f32 %v12510_v9, %v12503_v28  ;;  %11284 = vtanh.f32 %v2136_v54  ;;  %v2134_v46 = vadd.f32 %v2133_v62, %v2110_v26 }
 0xa01   :  { %11286 = vrcp.f32 %v12513_v55  ;;  %v2240_v30 = vsel %vm12519_vm9, %v11273_v11, %v2236_v24  ;;  %vm2253_vm5 = vweird.f32 %v12510_v9  ;;  %vm2214_vm3 = vweird.f32 %v12508_v16 }
 0xa02   :  { %v2249_v37 = vsub.f32 1.0, %v2248_v61  ;;  %v2197_v18 = vmul.f32 %v11277_v44, %v2196_v15  ;;  %11288 = vpow2.f32 %v9208_v53  ;;  %v2245_v59 = vsel %vm2242_vm11, %v2244_v31, %v2240_v30  ;;  %vm12548_vm7 = vmor %vm2252_vm12, %vm2253_vm5 }
 0xa03   :  { %v2137_v43 = vadd.f32 %v12343_v19, %v2134_v46  ;;  %v2302_v7 = vmul.f32 %v2245_v59, %v12383_v13  ;;  %v2281_v28 = vand.u32 2147483647, %v12513_v55  ;;  %v2283_v52 = vand.u32 2147483648, %v12513_v55 }
 0xa04   :  { %v2250_v12 = vmul.f32 %v12510_v9, %v2249_v37  ;;  %v2198_v20 = vadd.f32 %v11277_v44, %v2197_v18  ;;  %v2221_v41 = vor.u32 1.1754944e-38, %v2220_v49  ;;  %vm2219_vm10 = vcmp.eq.f32.partialorder %v2218_v34, 8.507059e+37 }
 0xa05   :  { %v11283_v0 = vpop.eup %11282  ;;  %11290 = vtanh.f32 %v2137_v43  ;;  %vm2277_vm11 = vweird.f32 %v12513_v55  ;;  %v2284_v24 = vor.u32 1.1754944e-38, %v2283_v52  ;;  %vm2282_vm13 = vcmp.eq.f32.partialorder %v2281_v28, 8.507059e+37  ;;  %v11135_v43 = vld [vmem:[%s14727_s14] ss:$0 sm:$0xff]  ;;  %v12604_v28 = vld [vmem:[%s14725_s12 + $0x10] sm:$0xff] }
 0xa06   :  { %v11285_v57 = vpop.eup %11284  ;;  %v2210_v39 = vmul.f32 %v11283_v0, %v12508_v16  ;;  %v2202_v1 = vsel %vm2201_vm14, %v11277_v44, %v2198_v20  ;;  %v2251_v2 = vadd.f32 %v12510_v9, %v2250_v12  ;;  %vm2215_vm8 = vweird.f32 %v11283_v0  ;;  %v11134_v12 = vld [vmem:[%s14727_s14 + $0x4] ss:$0 sm:$0xff] }
 0xa07   :  { %v11287_v33 = vpop.eup %11286  ;;  %v2207_v10 = vsel %vm2204_vm15, %v2206_v38, %v2202_v1  ;;  %v12540_v14 = vpop.f32.mrf.mxu3  ;;  %vm2216_vm9 = vmor %vm2214_vm3, %vm2215_vm8  ;;  %vm2504_vm8 = vcmask 244736   ;;  %vm2514_vm3 = vcmask 242688  }
 0xa08   :  { %v11289_v19 = vpop.eup %11288  ;;  %v2211_v63 = vsub.f32 1.0, %v2210_v39  ;;  %v2273_v3 = vmul.f32 %v11287_v33, %v12513_v55  ;;  %v2304_v42 = vmul.f32 %v11285_v57, %v2207_v10  ;;  %v2255_v13 = vsel %vm12548_vm7, %v12510_v9, %v2251_v2  ;;  %v2362_v38 = vpop.f32.mrf.mxu2 }
 0xa09   :  { %v2271_v8 = vadd.f32 1.0, %v11289_v19  ;;  %vm2278_vm0 = vweird.f32 %v11287_v33  ;;  %v2260_v54 = vsel %vm12536_vm6, %v2259_v22, %v2255_v13  ;;  %vm2313_vm7 = vcmask 125952  }
 0xa0a   :  { %v2274_v25 = vsub.f32 1.0, %v2273_v3  ;;  %v2306_v45 = vadd.f32 %v2304_v42, %v2302_v7  ;;  %v2212_v50 = vmul.f32 %v11283_v0, %v2211_v63  ;;  %vm2279_vm12 = vmor %vm2277_vm11, %vm2278_vm0  ;;  %v2303_v53 = vmul.f32 %v2260_v54, %v12399_v32  ;;  %v12586_v42 = vld [vmem:[%s14725_s12] sm:$0xff] }
 0xa0b   :  { %11292 = vrcp.f32 %v2271_v8  ;;  %v11291_v16 = vpop.eup %11290  ;;  %v2298_v36 = vand.u32 2147483648, %v2271_v8  ;;  %v2296_v46 = vand.u32 2147483647, %v2271_v8  ;;  %vm2292_vm15 = vweird.f32 %v2271_v8 }
 0xa0c   :  { %11294 = vtanh.f32 %v2306_v45  ;;  %v2213_v35 = vadd.f32 %v11283_v0, %v2212_v50  ;;  %v2275_v58 = vmul.f32 %v11287_v33, %v2274_v25  ;;  %v2363_v39 = vadd.f32 %v11135_v43, %v2362_v38  ;;  %v12595_v25 = vld [vmem:[%s14725_s12 + $0x8] sm:$0xff] }
 0xa0d   :  { %v2299_v32 = vor.u32 1.1754944e-38, %v2298_v36  ;;  %vm2297_vm6 = vcmp.eq.f32.partialorder %v2296_v46, 8.507059e+37  ;;  %v2399_v2 = vadd.f32 %v11134_v12, %v12540_v14  ;;  %v9219_v14 = vld [vmem:[%s14726_s13 + $0x40] sm:$0xff]  ;;  %vm2562_vm0 = vcmask 1045504  }
 0xa0e   :  { %v2217_v4 = vsel %vm2216_vm9, %v11283_v0, %v2213_v35  ;;  %v2276_v44 = vadd.f32 %v11287_v33, %v2275_v58  ;;  %2432 = vmatpush.msrb.mxu1 %v9219_v14  ;;  %vm2608_vm9 = vcmask 1041408  }
 0xa0f   :  { %v2222_v21 = vsel %vm2219_vm10, %v2221_v41, %v2217_v4  ;;  %v2401_v48 = vpop.f32.mrf.mxu3  ;;  %9221 = vmatmul.msk.f32.vlgmr.msrb.gmra.mxu1 %vm161_vm1, %v12464_v29  ;;  %v12613_v41 = vld [vmem:[%s14725_s12 + $0x18] sm:$0x3f]  ;;  %vm3570_vm10 = vcmask 62464  }
 0xa10   :  { %v2305_v9 = vmul.f32 %v11291_v16, %v2222_v21  ;;  %v2280_v6 = vsel %vm2279_vm12, %v11287_v33, %v2276_v44  ;;  %v2402_v57 = vadd.f32 %v11134_v12, %v2401_v48  ;;  %v2365_v1 = vpop.f32.mrf.mxu2  ;;  %v2446_v33 = vmul.f32 0.70710677, %v2363_v39 }
 0xa11   :  { %v11293_v17 = vpop.eup %11292  ;;  %v2285_v62 = vsel %vm2282_vm13, %v2284_v24, %v2280_v6  ;;  %v2366_v22 = vadd.f32 %v11135_v43, %v2365_v1  ;;  %v2595_v1 = vld [vmem:[%s14728_s15] sm:$0x3] }
 0xa12   :  { %v11295_v26 = vpop.eup %11294  ;;  %v2288_v15 = vmul.f32 %v11293_v17, %v2271_v8  ;;  %v2307_v61 = vadd.f32 %v2305_v9, %v2303_v53  ;;  %vm2293_vm14 = vweird.f32 %v11293_v17  ;;  %v9249_v53 = vld [vmem:[%s14726_s13 + $0x28] sm:$0xff]  ;;  %9238 = vmatpush.msk.msra.mxu3 %vm2608_vm9, %v2595_v1 }
 0xa13   :  { %v2310_v27 = vmul.f32 %v11295_v26, %v2285_v62  ;;  %vm2294_vm5 = vmor %vm2292_vm15, %vm2293_vm14  ;;  %v2447_v34 = vmul.f32 0.70710677, %v2366_v22 }
 0xa14   :  { %v2289_v60 = vsub.f32 1.0, %v2288_v15  ;;  %11296 = vtanh.f32 %v2307_v61 }
 0xa15   :  { %2312 = vst.msk [vmem:[#allocation2] sm:$0xff] %vm252_vm4, %v2310_v27  ;;  %vm2450_vm4 = vcmask 15360  }
 0xa16   :  { %v2290_v55 = vmul.f32 %v11293_v17, %v2289_v60 }
 0xa17   :  { %v2404_v37 = vpop.f32.mrf.mxu3  ;;  %9222 = vmatmul.msk.f32.gmra.mxu1 %vm161_vm1, %v12473_v47 }
 0xa18   :  { %v2291_v18 = vadd.f32 %v11293_v17, %v2290_v55  ;;  %v2405_v59 = vadd.f32 %v11134_v12, %v2404_v37  ;;  %v2368_v10 = vpop.f32.mrf.mxu2 }
 0xa19   :  { %v2369_v56 = vadd.f32 %v11135_v43, %v2368_v10 }
 0xa1a   :  { %v11297_v30 = vpop.eup %11296  ;;  %v2295_v31 = vsel %vm2294_vm5, %v11293_v17, %v2291_v18 }
 0xa1b   :  { %v2300_v51 = vsel %vm2297_vm6, %v2299_v32, %v2295_v31  ;;  %v2448_v19 = vmul.f32 0.70710677, %v2369_v56  ;;  %v11136_v32 = vld [vmem:[%s14727_s14 + $0x8] ss:$0 sm:$0xff] }
 0xa1c   :  { %v2311_v40 = vmul.f32 %v11297_v30, %v2300_v51 }
 0xa1e   :  { %2314 = vst.msk [vmem:[#allocation2 + $0x8] sm:$0xf] %vm2313_vm7, %v2311_v40 }
 0xa1f   :  { %v2407_v20 = vpop.f32.mrf.mxu3  ;;  %9223 = vmatmul.msk.f32.gmra.mxu1 %vm161_vm1, %v12482_v5 }
 0xa20   :  { %v2408_v0 = vadd.f32 %v11134_v12, %v2407_v20  ;;  %v2371_v63 = vpop.f32.mrf.mxu2 }
 0xa21   :  { %v2372_v3 = vadd.f32 %v11135_v43, %v2371_v63 }
 0xa22   :  { %9225 = vmatpush.xpose.msk.msrb.mxu0 %vm2450_vm4, %v2408_v0 }
 0xa23   :  { %v2449_v7 = vmul.f32 0.70710677, %v2372_v3 }
 0xa26   :  { %9226 = vmatpush.xpose.msk.msrb.mxu0 %vm2450_vm4, %v2405_v59 }
 0xa27   :  { %9224 = vmatmul.msk.f32.gmra.mxu1 %vm161_vm1, %v12491_v23 }
 0xa2a   :  { %9227 = vmatpush.xpose.msk.msrb.mxu0 %vm2450_vm4, %v2402_v57  ;;  %v9243_v57 = vld [vmem:[%s14726_s13 + $0x8] sm:$0xff] }
 0xa2b   :  { %2667 = vmatpush.msra.mxu1 %v9243_v57 }
 0xa2e   :  { %9228 = vmatpush.xpose.msk.msrb.mxu0 %vm2450_vm4, %v2399_v2 }
 0xa2f   :  { %9245 = vmatmul.msk.f32.vlgmr.msra.gmra.mxu1 %vm161_vm1, %v12464_v29 }
 0xa31   :  { %9229 = vmatmul.msk.f32.vlgmr.msrb.gmra.mxu0 %vm2450_vm4, %v2446_v33 }
 0xa32   :  { %2703 = vmatpush.msra.mxu0 %v9249_v53 }
 0xa37   :  { %9246 = vmatmul.msk.f32.gmra.mxu1 %vm161_vm1, %v12473_v47 }
 0xa39   :  { %9230 = vmatmul.msk.f32.gmra.mxu0 %vm2450_vm4, %v2447_v34 }
 0xa3f   :  { %9247 = vmatmul.msk.f32.gmra.mxu1 %vm161_vm1, %v12482_v5 }
 0xa41   :  { %9231 = vmatmul.msk.f32.gmra.mxu0 %vm2450_vm4, %v2448_v19 }
 0xa47   :  { %9248 = vmatmul.msk.f32.gmra.mxu1 %vm161_vm1, %v12491_v23 }
 0xa49   :  { %9232 = vmatmul.msk.f32.gmra.mxu0 %vm2450_vm4, %v2449_v7 }
 0xa51   :  { %9251 = vmatmul.msk.f32.vlgmr.msra.gmra.mxu0 %vm161_vm1, %v12464_v29 }
 0xa59   :  { %9252 = vmatmul.msk.f32.gmra.mxu0 %vm161_vm1, %v12473_v47 }
 0xa61   :  { %9253 = vmatmul.msk.f32.gmra.mxu0 %vm161_vm1, %v12482_v5 }
 0xa69   :  { %9254 = vmatmul.msk.f32.gmra.mxu0 %vm161_vm1, %v12491_v23 }
 0xa8c   :  { %v2434_v24 = vpop.f32.mrf.mxu1 }
 0xa8d   :  { %v2435_v38 = vadd.f32 %v11136_v32, %v2434_v24 }
 0xa94   :  { %v2437_v15 = vpop.f32.mrf.mxu1 }
 0xa95   :  { %v2438_v0 = vadd.f32 %v11136_v32, %v2437_v15 }
 0xa9c   :  { %v2440_v46 = vpop.f32.mrf.mxu1 }
 0xa9d   :  { %v2441_v12 = vadd.f32 %v11136_v32, %v2440_v46 }
 0xaa4   :  { %v2443_v40 = vpop.f32.mrf.mxu1 }
 0xaa5   :  { %v2444_v20 = vadd.f32 %v11136_v32, %v2443_v40 }
 0xaa7   :  { %9233 = vmatpush.msk.msra.mxu2 %vm2562_vm0, %v2444_v20 }
 0xaa9   :  { %2579 = vmatpush.msra.mxu2 %v2441_v12 }
 0xaab   :  { %2580 = vmatpush.msra.mxu2 %v2438_v0 }
 0xaad   :  { %2581 = vmatpush.msra.mxu2 %v2435_v38 }
 0xaae   :  { %v2492_v11 = vpop.f32.mrf.mxu0 }
 0xaaf   :  { %v2493_v8 = vadd.f32 %v2492_v11, %v12586_v42 }
 0xab1   :  { %v2505_v49 = vsel %vm2504_vm8, %v2493_v8, -inf }
 0xab2   :  { %2506 = vmax.xlane.f32.xlu0 %v2505_v49 }
 0xab6   :  { %v2495_v45 = vpop.f32.mrf.mxu0 }
 0xab7   :  { %v2496_v50 = vadd.f32 %v2495_v45, %v12595_v25 }
 0xab9   :  { %v2508_v13 = vsel %vm2504_vm8, %v2496_v50, -inf }
 0xaba   :  { %2509 = vmax.xlane.f32.xlu0 %v2508_v13 }
 0xabe   :  { %v2498_v52 = vpop.f32.mrf.mxu0 }
 0xabf   :  { %v2499_v35 = vadd.f32 %v2498_v52, %v12604_v28 }
 0xac1   :  { %v2511_v58 = vsel %vm2504_vm8, %v2499_v35, -inf }
 0xac2   :  { %2512 = vmax.xlane.f32.xlu1 %v2511_v58 }
 0xac6   :  { %v2501_v54 = vpop.f32.mrf.mxu0 }
 0xac7   :  { %v2502_v4 = vadd.f32 %v2501_v54, %v12613_v41 }
 0xac9   :  { %v2515_v44 = vsel %vm2514_vm3, %v2502_v4, -inf }
 0xaca   :  { %2516 = vmax.xlane.f32.xlu1 %v2515_v44 }
 0xace   :  { %v2705_v2 = vpop.f32.mrf.mxu0 }
 0xad6   :  { %v2708_v34 = vpop.f32.mrf.mxu0 }
 0xade   :  { %v2711_v3 = vpop.f32.mrf.mxu0 }
 0xae6   :  { %v2714_v49 = vpop.f32.mrf.mxu0 }
 0xb25   :  { %v2507_v16 = vpop.xlane.xlu0 %2506 }
 0xb26   :  { %v2518_v21 = vsub.f32 %v2493_v8, %v2507_v16  ;;  %v11137_v8 = vld [vmem:[%s14727_s14 + $0x5] ss:$0 sm:$0xff]  ;;  %v2669_v16 = vpop.f32.mrf.mxu1 }
 0xb27   :  { %v2715_v45 = vadd.f32 %v11137_v8, %v2714_v49  ;;  %v2712_v13 = vadd.f32 %v11137_v8, %v2711_v3  ;;  %v2706_v58 = vadd.f32 %v11137_v8, %v2705_v2 }
 0xb28   :  { %v2522_v48 = vmul.f32 1.442695, %v2518_v21  ;;  %v11138_v21 = vld [vmem:[%s14727_s14 + $0x1] ss:$0 sm:$0xff] }
 0xb29   :  { %9261 = vmatpush.xpose.msk.msrb.mxu3 %vm2450_vm4, %v2715_v45  ;;  %v2670_v24 = vadd.f32 %v11138_v21, %v2669_v16 }
 0xb2a   :  { %11298 = vpow2.f32 %v2522_v48 }
 0xb2d   :  { %v2510_v9 = vpop.xlane.xlu0 %2509  ;;  %9262 = vmatpush.xpose.msk.msrb.mxu3 %vm2450_vm4, %v2712_v13 }
 0xb2e   :  { %v2519_v6 = vsub.f32 %v2496_v50, %v2510_v9  ;;  %v2672_v53 = vpop.f32.mrf.mxu1  ;;  %v2753_v9 = vmul.f32 0.70710677, %v2670_v24 }
 0xb30   :  { %v11299_v17 = vpop.eup %11298  ;;  %v2524_v62 = vmul.f32 1.442695, %v2519_v6  ;;  %v2673_v6 = vadd.f32 %v11138_v21, %v2672_v53 }
 0xb31   :  { %v2530_v26 = vsel %vm2504_vm8, %v11299_v17, 0.0 }
 0xb32   :  { %11300 = vpow2.f32 %v2524_v62  ;;  %2531 = vadd.xlane.f32.xlu2 %v2530_v26  ;;  %v2754_v62 = vmul.f32 0.70710677, %v2673_v6 }
 0xb35   :  { %v2513_v61 = vpop.xlane.xlu1 %2512 }
 0xb36   :  { %v2520_v27 = vsub.f32 %v2499_v35, %v2513_v61  ;;  %v2709_v35 = vadd.f32 %v11137_v8, %v2708_v34 }
 0xb38   :  { %v11301_v60 = vpop.eup %11300  ;;  %v2526_v36 = vmul.f32 1.442695, %v2520_v27  ;;  %9263 = vmatpush.xpose.msk.msrb.mxu3 %vm2450_vm4, %v2709_v35 }
 0xb39   :  { %v2533_v55 = vsel %vm2504_vm8, %v11301_v60, 0.0 }
 0xb3a   :  { %11302 = vpow2.f32 %v2526_v36  ;;  %2534 = vadd.xlane.f32.xlu2 %v2533_v55 }
 0xb3c   :  { %9264 = vmatpush.xpose.msk.msrb.mxu3 %vm2450_vm4, %v2706_v58 }
 0xb3d   :  { %v2517_v37 = vpop.xlane.xlu1 %2516 }
 0xb3e   :  { %v2521_v18 = vsub.f32 %v2502_v4, %v2517_v37 }
 0xb40   :  { %v11303_v30 = vpop.eup %11302  ;;  %v2528_v31 = vmul.f32 1.442695, %v2521_v18  ;;  %v9255_v18 = vld [vmem:[%s14726_s13 + $0x48] sm:$0xff] }
 0xb41   :  { %v2536_v51 = vsel %vm2504_vm8, %v11303_v30, 0.0  ;;  %2739 = vmatpush.msrb.mxu2 %v9255_v18 }
 0xb42   :  { %11304 = vpow2.f32 %v2528_v31  ;;  %2537 = vadd.xlane.f32.xlu0 %v2536_v51 }
 0xb48   :  { %v11305_v59 = vpop.eup %11304 }
 0xb49   :  { %v2539_v43 = vsel %vm2514_vm3, %v11305_v59, 0.0 }
 0xb4a   :  { %2540 = vadd.xlane.f32.xlu1 %v2539_v43 }
 0xba5   :  { %v2532_v39 = vpop.xlane.xlu2 %2531 }
 0xba6   :  { %11306 = vrcp.f32 %v2532_v39 }
 0xbac   :  { %v11307_v33 = vpop.eup %11306 }
 0xbad   :  { %v2546_v22 = vmul.f32 %v11307_v33, %v11299_v17  ;;  %v2535_v10 = vpop.xlane.xlu2 %2534  ;;  %v2675_v17 = vpop.f32.mrf.mxu1  ;;  %v9286_v33 = vld [vmem:[%s14726_s13 + $0x30] sm:$0xff] }
 0xbae   :  { %11308 = vrcp.f32 %v2535_v10  ;;  %v2676_v26 = vadd.f32 %v11138_v21, %v2675_v17  ;;  %v9274_v17 = vld [vmem:[%s14728_s15 + $0x2] sm:$0x3] }
 0xbaf   :  { %9234 = vmatmul.msk.f32.vlgmr.msra.gmra.mxu2 %vm2504_vm8, %v2546_v22  ;;  %9275 = vmatpush.msk.msrb.mxu0 %vm2608_vm9, %v9274_v17 }
 0xbb0   :  { %v2755_v15 = vmul.f32 0.70710677, %v2676_v26 }
 0xbb4   :  { %v11309_v56 = vpop.eup %11308 }
 0xbb5   :  { %v2538_v19 = vpop.xlane.xlu0 %2537  ;;  %v2547_v63 = vmul.f32 %v11309_v56, %v11301_v60  ;;  %v2678_v61 = vpop.f32.mrf.mxu1 }
 0xbb6   :  { %11310 = vrcp.f32 %v2538_v19  ;;  %v2679_v27 = vadd.f32 %v11138_v21, %v2678_v61 }
 0xbb7   :  { %9235 = vmatmul.msk.f32.gmra.mxu2 %vm2504_vm8, %v2547_v63 }
 0xbb8   :  { %v2756_v60 = vmul.f32 0.70710677, %v2679_v27 }
 0xbbc   :  { %v11311_v7 = vpop.eup %11310 }
 0xbbd   :  { %v2541_v14 = vpop.xlane.xlu1 %2540  ;;  %v2548_v11 = vmul.f32 %v11311_v7, %v11303_v30 }
 0xbbe   :  { %11312 = vrcp.f32 %v2541_v14 }
 0xbbf   :  { %9236 = vmatmul.msk.f32.gmra.mxu2 %vm2504_vm8, %v2548_v11 }
 0xbc4   :  { %v11313_v50 = vpop.eup %11312 }
 0xbc5   :  { %v2549_v52 = vmul.f32 %v11313_v50, %v11305_v59 }
 0xbc7   :  { %9237 = vmatmul.msk.f32.gmra.mxu2 %vm2504_vm8, %v2549_v52 }
 0xbcf   :  { %9257 = vmatmul.msk.f32.vlgmr.msrb.gmra.mxu2 %vm161_vm1, %v12464_v29 }
 0xbd7   :  { %9258 = vmatmul.msk.f32.gmra.mxu2 %vm161_vm1, %v12473_v47 }
 0xbdf   :  { %9259 = vmatmul.msk.f32.gmra.mxu2 %vm161_vm1, %v12482_v5 }
 0xbe7   :  { %9260 = vmatmul.msk.f32.gmra.mxu2 %vm161_vm1, %v12491_v23 }
 0xc32   :  { %v2583_v54 = vpop.f32.mrf.mxu2 }
 0xc33   :  { %9239 = vmatmul.msk.f32.vlgmr.msra.gmra.mxu3 %vm2450_vm4, %v2583_v54  ;;  %v11140_v54 = vld [vmem:[%s14727_s14 + $0x9] ss:$0 sm:$0xff] }
 0xc34   :  { %3006 = vmatpush.msra.mxu3 %v9286_v33 }
 0xc3a   :  { %v2586_v4 = vpop.f32.mrf.mxu2 }
 0xc3b   :  { %9240 = vmatmul.msk.f32.gmra.mxu3 %vm2450_vm4, %v2586_v4 }
 0xc42   :  { %v2589_v44 = vpop.f32.mrf.mxu2 }
 0xc43   :  { %9241 = vmatmul.msk.f32.gmra.mxu3 %vm2450_vm4, %v2589_v44 }
 0xc4a   :  { %v2592_v48 = vpop.f32.mrf.mxu2 }
 0xc4b   :  { %9242 = vmatmul.msk.f32.gmra.mxu3 %vm2450_vm4, %v2592_v48 }
 0xc52   :  { %v2741_v34 = vpop.f32.mrf.mxu2 }
 0xc53   :  { %9265 = vmatmul.msk.f32.vlgmr.msrb.gmra.mxu3 %vm2450_vm4, %v2753_v9  ;;  %v2742_v53 = vadd.f32 %v11140_v54, %v2741_v34  ;;  %v9280_v9 = vld [vmem:[%s14726_s13 + $0x10] sm:$0xff] }
 0xc54   :  { %2970 = vmatpush.msra.mxu2 %v9280_v9 }
 0xc55   :  { %9282 = vmatmul.msk.f32.vlgmr.msra.gmra.mxu2 %vm161_vm1, %v12464_v29 }
 0xc5a   :  { %v2744_v14 = vpop.f32.mrf.mxu2 }
 0xc5b   :  { %9266 = vmatmul.msk.f32.gmra.mxu3 %vm2450_vm4, %v2754_v62  ;;  %v2745_v24 = vadd.f32 %v11140_v54, %v2744_v14 }
 0xc5d   :  { %9283 = vmatmul.msk.f32.gmra.mxu2 %vm161_vm1, %v12473_v47 }
 0xc62   :  { %v2747_v13 = vpop.f32.mrf.mxu2 }
 0xc63   :  { %9267 = vmatmul.msk.f32.gmra.mxu3 %vm2450_vm4, %v2755_v15  ;;  %v2748_v16 = vadd.f32 %v11140_v54, %v2747_v13  ;;  %v12761_v13 = vld [vmem:[%s14729_s16] ss:$0 sm:$0xff] }
 0xc65   :  { %9284 = vmatmul.msk.f32.gmra.mxu2 %vm161_vm1, %v12482_v5 }
 0xc6a   :  { %v2750_v4 = vpop.f32.mrf.mxu2 }
 0xc6b   :  { %9268 = vmatmul.msk.f32.gmra.mxu3 %vm2450_vm4, %v2756_v60  ;;  %v2751_v21 = vadd.f32 %v11140_v54, %v2750_v4 }
 0xc6d   :  { %9269 = vmatpush.msk.msrb.mxu1 %vm2562_vm0, %v2751_v21  ;;  %9285 = vmatmul.msk.f32.gmra.mxu2 %vm161_vm1, %v12491_v23 }
 0xc6f   :  { %2882 = vmatpush.msrb.mxu1 %v2748_v16 }
 0xc71   :  { %2883 = vmatpush.msrb.mxu1 %v2745_v24 }
 0xc73   :  { %9288 = vmatmul.msk.f32.vlgmr.msra.gmra.mxu3 %vm161_vm1, %v12464_v29  ;;  %2884 = vmatpush.msrb.mxu1 %v2742_v53 }
 0xc7b   :  { %9289 = vmatmul.msk.f32.gmra.mxu3 %vm161_vm1, %v12473_v47 }
 0xc83   :  { %9290 = vmatmul.msk.f32.gmra.mxu3 %vm161_vm1, %v12482_v5 }
 0xc8b   :  { %9291 = vmatmul.msk.f32.gmra.mxu3 %vm161_vm1, %v12491_v23 }
 0xcb6   :  { %v12675_v36 = vpop.f32.mrf.mxu3 }
 0xcbe   :  { %v12677_v55 = vpop.f32.mrf.mxu3 }
 0xcc6   :  { %v12679_v46 = vpop.f32.mrf.mxu3 }
 0xcc7   :  { %v2643_v4 = vadd.f32 %v12761_v13, %v12679_v46 }
 0xcce   :  { %v12681_v37 = vpop.f32.mrf.mxu3 }
 0xcd6   :  { %v2798_v32 = vpop.f32.mrf.mxu3 }
 0xcd7   :  { %v2799_v30 = vadd.f32 %v2798_v32, %v12586_v42 }
 0xcd9   :  { %v2810_v31 = vsel %vm2504_vm8, %v2799_v30, -inf }
 0xcda   :  { %2811 = vmax.xlane.f32.xlu2 %v2810_v31 }
 0xcde   :  { %v2801_v51 = vpop.f32.mrf.mxu3 }
 0xcdf   :  { %v2802_v40 = vadd.f32 %v2801_v51, %v12595_v25 }
 0xce1   :  { %v2813_v12 = vsel %vm2504_vm8, %v2802_v40, -inf }
 0xce2   :  { %2814 = vmax.xlane.f32.xlu0 %v2813_v12 }
 0xce6   :  { %v2804_v20 = vpop.f32.mrf.mxu3 }
 0xce7   :  { %v2805_v0 = vadd.f32 %v2804_v20, %v12604_v28  ;;  %v11141_v20 = vld [vmem:[%s14727_s14 + $0x6] ss:$0 sm:$0xff] }
 0xce9   :  { %v2816_v38 = vsel %vm2504_vm8, %v2805_v0, -inf }
 0xcea   :  { %2817 = vmax.xlane.f32.xlu1 %v2816_v38 }
 0xcee   :  { %v2807_v59 = vpop.f32.mrf.mxu3 }
 0xcef   :  { %v2808_v43 = vadd.f32 %v2807_v59, %v12613_v41 }
 0xcf1   :  { %v2819_v57 = vsel %vm2514_vm3, %v2808_v43, -inf }
 0xcf2   :  { %2820 = vmax.xlane.f32.xlu2 %v2819_v57 }
 0xcf6   :  { %v3008_v61 = vpop.f32.mrf.mxu3 }
 0xcfe   :  { %v3011_v32 = vpop.f32.mrf.mxu3 }
 0xcff   :  { %v3012_v57 = vadd.f32 %v11141_v20, %v3011_v32 }
 0xd4d   :  { %v2812_v39 = vpop.xlane.xlu2 %2811 }
 0xd4e   :  { %v2822_v1 = vsub.f32 %v2799_v30, %v2812_v39  ;;  %v3009_v39 = vadd.f32 %v11141_v20, %v3008_v61 }
 0xd50   :  { %v2826_v2 = vmul.f32 1.442695, %v2822_v1 }
 0xd52   :  { %11314 = vpow2.f32 %v2826_v2 }
 0xd55   :  { %v2815_v22 = vpop.xlane.xlu0 %2814 }
 0xd56   :  { %v2823_v10 = vsub.f32 %v2802_v40, %v2815_v22  ;;  %v3014_v40 = vpop.f32.mrf.mxu3  ;;  %v2972_v22 = vpop.f32.mrf.mxu2 }
 0xd58   :  { %v11315_v56 = vpop.eup %11314  ;;  %v2828_v19 = vmul.f32 1.442695, %v2823_v10  ;;  %v11142_v10 = vld [vmem:[%s14727_s14 + $0x2] ss:$0 sm:$0xff] }
 0xd59   :  { %v2834_v63 = vsel %vm2504_vm8, %v11315_v56, 0.0 }
 0xd5a   :  { %11316 = vpow2.f32 %v2828_v19  ;;  %2835 = vadd.xlane.f32.xlu0 %v2834_v63 }
 0xd5d   :  { %v2818_v3 = vpop.xlane.xlu1 %2817 }
 0xd5e   :  { %v2824_v7 = vsub.f32 %v2805_v0, %v2818_v3  ;;  %v3017_v38 = vpop.f32.mrf.mxu3  ;;  %v2975_v19 = vpop.f32.mrf.mxu2 }
 0xd5f   :  { %v3018_v59 = vadd.f32 %v11141_v20, %v3017_v38  ;;  %v2976_v3 = vadd.f32 %v11142_v10, %v2975_v19 }
 0xd60   :  { %v11317_v11 = vpop.eup %11316  ;;  %v2830_v8 = vmul.f32 1.442695, %v2824_v7 }
 0xd61   :  { %v2837_v49 = vsel %vm2504_vm8, %v11317_v11, 0.0  ;;  %9298 = vmatpush.xpose.msk.msra.mxu0 %vm2450_vm4, %v3018_v59  ;;  %v3057_v14 = vmul.f32 0.70710677, %v2976_v3 }
 0xd62   :  { %11318 = vpow2.f32 %v2830_v8  ;;  %2838 = vadd.xlane.f32.xlu1 %v2837_v49 }
 0xd65   :  { %v2821_v45 = vpop.xlane.xlu2 %2820 }
 0xd66   :  { %v2825_v50 = vsub.f32 %v2808_v43, %v2821_v45  ;;  %v3015_v43 = vadd.f32 %v11141_v20, %v3014_v40  ;;  %v2978_v7 = vpop.f32.mrf.mxu2  ;;  %v12808_v20 = vld [vmem:[%s14724_s11 + $0x8] sm:$0xff] }
 0xd68   :  { %v11319_v52 = vpop.eup %11318  ;;  %v2832_v35 = vmul.f32 1.442695, %v2825_v50  ;;  %9299 = vmatpush.xpose.msk.msra.mxu0 %vm2450_vm4, %v3015_v43 }
 0xd69   :  { %v2840_v58 = vsel %vm2504_vm8, %v11319_v52, 0.0 }
 0xd6a   :  { %11320 = vpow2.f32 %v2832_v35  ;;  %2841 = vadd.xlane.f32.xlu2 %v2840_v58 }
 0xd6c   :  { %9300 = vmatpush.xpose.msk.msra.mxu0 %vm2450_vm4, %v3012_v57 }
 0xd6e   :  { %v2981_v49 = vpop.f32.mrf.mxu2 }
 0xd6f   :  { %v2982_v45 = vadd.f32 %v11142_v10, %v2981_v49 }
 0xd70   :  { %v11321_v44 = vpop.eup %11320  ;;  %9301 = vmatpush.xpose.msk.msra.mxu0 %vm2450_vm4, %v3009_v39 }
 0xd71   :  { %v2843_v48 = vsel %vm2514_vm3, %v11321_v44, 0.0  ;;  %v3059_v50 = vmul.f32 0.70710677, %v2982_v45  ;;  %v9317_v45 = vld [vmem:[%s14726_s13 + $0x18] sm:$0xff] }
 0xd72   :  { %2844 = vadd.xlane.f32.xlu0 %v2843_v48  ;;  %v9292_v48 = vld [vmem:[%s14726_s13 + $0x50] sm:$0xff] }
 0xd73   :  { %3042 = vmatpush.msra.mxu1 %v9292_v48 }
 0xdcd   :  { %v2836_v6 = vpop.xlane.xlu0 %2835 }
 0xdce   :  { %11322 = vrcp.f32 %v2836_v6 }
 0xdd4   :  { %v11323_v62 = vpop.eup %11322 }
 0xdd5   :  { %v2850_v26 = vmul.f32 %v11323_v62, %v11315_v56  ;;  %v2839_v15 = vpop.xlane.xlu1 %2838  ;;  %v2973_v56 = vadd.f32 %v11142_v10, %v2972_v22  ;;  %v11143_v22 = vld [vmem:[%s14727_s14 + $0xa] ss:$0 sm:$0xff] }
 0xdd6   :  { %11324 = vrcp.f32 %v2839_v15 }
 0xdd7   :  { %9270 = vmatmul.msk.f32.vlgmr.msrb.gmra.mxu1 %vm2504_vm8, %v2850_v26  ;;  %v3056_v63 = vmul.f32 0.70710677, %v2973_v56 }
 0xdd8   :  { %3273 = vmatpush.msrb.mxu1 %v9317_v45 }
 0xddc   :  { %v11325_v27 = vpop.eup %11324 }
 0xddd   :  { %v2842_v60 = vpop.xlane.xlu2 %2841  ;;  %v2851_v18 = vmul.f32 %v11325_v27, %v11317_v11  ;;  %v2979_v11 = vadd.f32 %v11142_v10, %v2978_v7  ;;  %v12827_v7 = vld [vmem:[%s14724_s11 + $0x18] sm:$0x3f] }
 0xdde   :  { %11326 = vrcp.f32 %v2842_v60 }
 0xddf   :  { %9271 = vmatmul.msk.f32.gmra.mxu1 %vm2504_vm8, %v2851_v18  ;;  %v3058_v8 = vmul.f32 0.70710677, %v2979_v11  ;;  %v9323_v18 = vld [vmem:[%s14726_s13 + $0x38] sm:$0xff] }
 0xde4   :  { %v11327_v30 = vpop.eup %11326 }
 0xde5   :  { %v2845_v31 = vpop.xlane.xlu0 %2844  ;;  %v2852_v51 = vmul.f32 %v11327_v30, %v11319_v52  ;;  %v2641_v52 = vadd.f32 %v12761_v13, %v12675_v36 }
 0xde6   :  { %11328 = vrcp.f32 %v2845_v31 }
 0xde7   :  { %9272 = vmatmul.msk.f32.gmra.mxu1 %vm2504_vm8, %v2852_v51 }
 0xdec   :  { %v11329_v12 = vpop.eup %11328 }
 0xded   :  { %v2853_v0 = vmul.f32 %v11329_v12, %v11321_v44 }
 0xdef   :  { %9273 = vmatmul.msk.f32.gmra.mxu1 %vm2504_vm8, %v2853_v0 }
 0xdf7   :  { %9294 = vmatmul.msk.f32.vlgmr.msra.gmra.mxu1 %vm161_vm1, %v12464_v29 }
 0xdff   :  { %9295 = vmatmul.msk.f32.gmra.mxu1 %vm161_vm1, %v12473_v47 }
 0xe07   :  { %9296 = vmatmul.msk.f32.gmra.mxu1 %vm161_vm1, %v12482_v5 }
 0xe0f   :  { %9297 = vmatmul.msk.f32.gmra.mxu1 %vm161_vm1, %v12491_v23  ;;  %v12800_v23 = vld [vmem:[%s14724_s11] sm:$0xff] }
 0xe17   :  { %9319 = vmatmul.msk.f32.vlgmr.msrb.gmra.mxu1 %vm161_vm1, %v12800_v23 }
 0xe1f   :  { %9320 = vmatmul.msk.f32.gmra.mxu1 %vm161_vm1, %v12808_v20 }
 0xe54   :  { %v2886_v1 = vpop.f32.mrf.mxu1 }
 0xe55   :  { %9276 = vmatmul.msk.f32.vlgmr.msrb.gmra.mxu0 %vm2450_vm4, %v2886_v1  ;;  %v12816_v1 = vld [vmem:[%s14724_s11 + $0x10] sm:$0xff] }
 0xe56   :  { %3309 = vmatpush.msrb.mxu0 %v9323_v18  ;;  %9321 = vmatmul.msk.f32.gmra.mxu1 %vm161_vm1, %v12816_v1 }
 0xe5c   :  { %v2889_v2 = vpop.f32.mrf.mxu1 }
 0xe5d   :  { %9277 = vmatmul.msk.f32.gmra.mxu0 %vm2450_vm4, %v2889_v2 }
 0xe5e   :  { %9322 = vmatmul.msk.f32.gmra.mxu1 %vm161_vm1, %v12827_v7 }
 0xe64   :  { %v2892_v33 = vpop.f32.mrf.mxu1 }
 0xe65   :  { %9278 = vmatmul.msk.f32.gmra.mxu0 %vm2450_vm4, %v2892_v33 }
 0xe6c   :  { %v2895_v34 = vpop.f32.mrf.mxu1 }
 0xe6d   :  { %9279 = vmatmul.msk.f32.gmra.mxu0 %vm2450_vm4, %v2895_v34 }
 0xe74   :  { %v3044_v5 = vpop.f32.mrf.mxu1 }
 0xe75   :  { %9302 = vmatmul.msk.f32.vlgmr.msra.gmra.mxu0 %vm2450_vm4, %v3056_v63  ;;  %v3045_v11 = vadd.f32 %v11143_v22, %v3044_v5 }
 0xe7c   :  { %v3047_v12 = vpop.f32.mrf.mxu1 }
 0xe7d   :  { %9303 = vmatmul.msk.f32.gmra.mxu0 %vm2450_vm4, %v3057_v14  ;;  %v3048_v14 = vadd.f32 %v11143_v22, %v3047_v12 }
 0xe84   :  { %v3050_v39 = vpop.f32.mrf.mxu1 }
 0xe85   :  { %9304 = vmatmul.msk.f32.gmra.mxu0 %vm2450_vm4, %v3058_v8  ;;  %v3051_v63 = vadd.f32 %v11143_v22, %v3050_v39 }
 0xe8c   :  { %v3053_v19 = vpop.f32.mrf.mxu1 }
 0xe8d   :  { %9305 = vmatmul.msk.f32.gmra.mxu0 %vm2450_vm4, %v3059_v50  ;;  %v3054_v3 = vadd.f32 %v11143_v22, %v3053_v19 }
 0xe8f   :  { %9306 = vmatpush.msk.msrb.mxu2 %vm2562_vm0, %v3054_v3 }
 0xe91   :  { %3185 = vmatpush.msrb.mxu2 %v3051_v63 }
 0xe93   :  { %3186 = vmatpush.msrb.mxu2 %v3048_v14 }
 0xe95   :  { %9325 = vmatmul.msk.f32.vlgmr.msrb.gmra.mxu0 %vm161_vm1, %v12800_v23  ;;  %3187 = vmatpush.msrb.mxu2 %v3045_v11  ;;  %v9329_v11 = vld [vmem:[%s14726_s13 + $0x58] sm:$0xff] }
 0xe97   :  { %3345 = vmatpush.msra.mxu2 %v9329_v11 }
 0xe9d   :  { %9326 = vmatmul.msk.f32.gmra.mxu0 %vm161_vm1, %v12808_v20 }
 0xea5   :  { %9327 = vmatmul.msk.f32.gmra.mxu0 %vm161_vm1, %v12816_v1 }
 0xead   :  { %9328 = vmatmul.msk.f32.gmra.mxu0 %vm161_vm1, %v12827_v7 }
 0xed2   :  { %v2932_v35 = vpop.f32.mrf.mxu0 }
 0xed3   :  { %v12765_v58 = vadd.f32 %v2932_v35, %v2641_v52  ;;  %v9311_v52 = vld [vmem:[%s14728_s15 + $0x4] sm:$0x3] }
 0xed4   :  { %9312 = vmatpush.msk.msrb.mxu3 %vm2608_vm9, %v9311_v52 }
 0xeda   :  { %v12767_v54 = vpop.f32.mrf.mxu0 }
 0xee2   :  { %v2938_v44 = vpop.f32.mrf.mxu0 }
 0xee3   :  { %v12771_v16 = vadd.f32 %v2938_v44, %v2643_v4 }
 0xeea   :  { %v12773_v21 = vpop.f32.mrf.mxu0 }
 0xef2   :  { %v3101_v36 = vpop.f32.mrf.mxu0 }
 0xef3   :  { %v3102_v24 = vadd.f32 %v3101_v36, %v12586_v42 }
 0xef5   :  { %v3113_v53 = vsel %vm2504_vm8, %v3102_v24, -inf }
 0xef6   :  { %3114 = vmax.xlane.f32.xlu1 %v3113_v53 }
 0xefa   :  { %v3104_v46 = vpop.f32.mrf.mxu0 }
 0xefb   :  { %v3105_v9 = vadd.f32 %v3104_v46, %v12595_v25 }
 0xefd   :  { %v3116_v6 = vsel %vm2504_vm8, %v3105_v9, -inf }
 0xefe   :  { %3117 = vmax.xlane.f32.xlu2 %v3116_v6 }
 0xf02   :  { %v3107_v17 = vpop.f32.mrf.mxu0 }
 0xf03   :  { %v3108_v29 = vadd.f32 %v3107_v17, %v12604_v28 }
 0xf05   :  { %v3119_v62 = vsel %vm2504_vm8, %v3108_v29, -inf }
 0xf06   :  { %3120 = vmax.xlane.f32.xlu0 %v3119_v62  ;;  %v11144_v62 = vld [vmem:[%s14727_s14 + $0x7] ss:$0 sm:$0xff] }
 0xf0a   :  { %v3110_v26 = vpop.f32.mrf.mxu0 }
 0xf0b   :  { %v3111_v47 = vadd.f32 %v3110_v26, %v12613_v41 }
 0xf0d   :  { %v3122_v15 = vsel %vm2514_vm3, %v3111_v47, -inf }
 0xf0e   :  { %3123 = vmax.xlane.f32.xlu1 %v3122_v15 }
 0xf12   :  { %v3311_v35 = vpop.f32.mrf.mxu0 }
 0xf13   :  { %v3312_v5 = vadd.f32 %v11144_v62, %v3311_v35 }
 0xf1a   :  { %v3314_v36 = vpop.f32.mrf.mxu0 }
 0xf69   :  { %v3115_v61 = vpop.xlane.xlu1 %3114 }
 0xf6a   :  { %v3125_v27 = vsub.f32 %v3102_v24, %v3115_v61 }
 0xf6c   :  { %v3129_v60 = vmul.f32 1.442695, %v3125_v27 }
 0xf6e   :  { %11330 = vpow2.f32 %v3129_v60  ;;  %v3315_v60 = vadd.f32 %v11144_v62, %v3314_v36 }
 0xf71   :  { %v3118_v32 = vpop.xlane.xlu2 %3117 }
 0xf72   :  { %v3126_v30 = vsub.f32 %v3105_v9, %v3118_v32  ;;  %v3317_v9 = vpop.f32.mrf.mxu0 }
 0xf73   :  { %v3318_v61 = vadd.f32 %v11144_v62, %v3317_v9 }
 0xf74   :  { %v11331_v31 = vpop.eup %11330  ;;  %v3131_v51 = vmul.f32 1.442695, %v3126_v30 }
 0xf75   :  { %v3137_v40 = vsel %vm2504_vm8, %v11331_v31, 0.0 }
 0xf76   :  { %11332 = vpow2.f32 %v3131_v51  ;;  %3138 = vadd.xlane.f32.xlu2 %v3137_v40  ;;  %v11145_v51 = vld [vmem:[%s14727_s14 + $0x3] ss:$0 sm:$0xff] }
 0xf79   :  { %v3121_v0 = vpop.xlane.xlu0 %3120 }
 0xf7a   :  { %v3127_v38 = vsub.f32 %v3108_v29, %v3121_v0  ;;  %v3320_v26 = vpop.f32.mrf.mxu0 }
 0xf7c   :  { %v11333_v59 = vpop.eup %11332  ;;  %v3133_v43 = vmul.f32 1.442695, %v3127_v38 }
 0xf7d   :  { %v3140_v57 = vsel %vm2504_vm8, %v11333_v59, 0.0 }
 0xf7e   :  { %11334 = vpow2.f32 %v3133_v43  ;;  %3141 = vadd.xlane.f32.xlu0 %v3140_v57 }
 0xf81   :  { %v3124_v2 = vpop.xlane.xlu1 %3123 }
 0xf82   :  { %v3128_v33 = vsub.f32 %v3111_v47, %v3124_v2  ;;  %v3321_v47 = vadd.f32 %v11144_v62, %v3320_v26 }
 0xf84   :  { %v11335_v10 = vpop.eup %11334  ;;  %v3135_v34 = vmul.f32 1.442695, %v3128_v33  ;;  %9335 = vmatpush.xpose.msk.msra.mxu3 %vm2450_vm4, %v3321_v47 }
 0xf85   :  { %v3143_v56 = vsel %vm2504_vm8, %v11335_v10, 0.0 }
 0xf86   :  { %11336 = vpow2.f32 %v3135_v34  ;;  %3144 = vadd.xlane.f32.xlu1 %v3143_v56 }
 0xf88   :  { %9336 = vmatpush.xpose.msk.msra.mxu3 %vm2450_vm4, %v3318_v61 }
 0xf8c   :  { %v11337_v8 = vpop.eup %11336  ;;  %9337 = vmatpush.xpose.msk.msra.mxu3 %vm2450_vm4, %v3315_v60 }
 0xf8d   :  { %v3146_v49 = vsel %vm2514_vm3, %v11337_v8, 0.0 }
 0xf8e   :  { %3147 = vadd.xlane.f32.xlu2 %v3146_v49 }
 0xf90   :  { %9338 = vmatpush.xpose.msk.msra.mxu3 %vm2450_vm4, %v3312_v5 }
 0xfe9   :  { %v3139_v50 = vpop.xlane.xlu2 %3138 }
 0xfea   :  { %11338 = vrcp.f32 %v3139_v50 }
 0xff0   :  { %v11339_v4 = vpop.eup %11338 }
 0xff1   :  { %v3153_v44 = vmul.f32 %v11339_v4, %v11331_v31  ;;  %v3142_v48 = vpop.xlane.xlu0 %3141  ;;  %v3275_v31 = vpop.f32.mrf.mxu1 }
 0xff2   :  { %11340 = vrcp.f32 %v3142_v48  ;;  %v3276_v12 = vadd.f32 %v11145_v51, %v3275_v31 }
 0xff3   :  { %9307 = vmatmul.msk.f32.vlgmr.msrb.gmra.mxu2 %vm2504_vm8, %v3153_v44 }
 0xff4   :  { %v3359_v38 = vmul.f32 0.70710677, %v3276_v12 }
 0xff8   :  { %v11341_v24 = vpop.eup %11340 }
 0xff9   :  { %v3145_v53 = vpop.xlane.xlu1 %3144  ;;  %v3154_v46 = vmul.f32 %v11341_v24, %v11333_v59  ;;  %v3278_v0 = vpop.f32.mrf.mxu1 }
 0xffa   :  { %11342 = vrcp.f32 %v3145_v53  ;;  %v3279_v59 = vadd.f32 %v11145_v51, %v3278_v0 }
 0xffb   :  { %9308 = vmatmul.msk.f32.gmra.mxu2 %vm2504_vm8, %v3154_v46 }
 0xffc   :  { %v3360_v57 = vmul.f32 0.70710677, %v3279_v59 }
0x1000   :  { %v11343_v6 = vpop.eup %11342 }
0x1001   :  { %v3148_v17 = vpop.xlane.xlu2 %3147  ;;  %v3155_v29 = vmul.f32 %v11343_v6, %v11335_v10  ;;  %v3281_v43 = vpop.f32.mrf.mxu1 }
0x1002   :  { %11344 = vrcp.f32 %v3148_v17  ;;  %v3282_v39 = vadd.f32 %v11145_v51, %v3281_v43 }
0x1003   :  { %9309 = vmatmul.msk.f32.gmra.mxu2 %vm2504_vm8, %v3155_v29 }
0x1004   :  { %v3361_v2 = vmul.f32 0.70710677, %v3282_v39 }
0x1008   :  { %v11345_v15 = vpop.eup %11344 }
0x1009   :  { %v3156_v27 = vmul.f32 %v11345_v15, %v11337_v8  ;;  %v3284_v33 = vpop.f32.mrf.mxu1 }
0x100a   :  { %v3285_v22 = vadd.f32 %v11145_v51, %v3284_v33 }
0x100b   :  { %9310 = vmatmul.msk.f32.gmra.mxu2 %vm2504_vm8, %v3156_v27 }
0x100c   :  { %v3362_v10 = vmul.f32 0.70710677, %v3285_v22 }
0x1013   :  { %9331 = vmatmul.msk.f32.vlgmr.msra.gmra.mxu2 %vm161_vm1, %v12800_v23 }
0x101b   :  { %9332 = vmatmul.msk.f32.gmra.mxu2 %vm161_vm1, %v12808_v20 }
0x1023   :  { %9333 = vmatmul.msk.f32.gmra.mxu2 %vm161_vm1, %v12816_v1 }
0x102b   :  { %9334 = vmatmul.msk.f32.gmra.mxu2 %vm161_vm1, %v12827_v7 }
0x1076   :  { %v3189_v18 = vpop.f32.mrf.mxu2 }
0x1077   :  { %9313 = vmatmul.msk.f32.vlgmr.msrb.gmra.mxu3 %vm2450_vm4, %v3189_v18 }
0x107e   :  { %v3192_v32 = vpop.f32.mrf.mxu2 }
0x107f   :  { %9314 = vmatmul.msk.f32.gmra.mxu3 %vm2450_vm4, %v3192_v32 }
0x1086   :  { %v3195_v30 = vpop.f32.mrf.mxu2 }
0x1087   :  { %9315 = vmatmul.msk.f32.gmra.mxu3 %vm2450_vm4, %v3195_v30  ;;  %v11146_v30 = vld [vmem:[%s14727_s14 + $0xb] ss:$0 sm:$0xff] }
0x108e   :  { %v3198_v40 = vpop.f32.mrf.mxu2 }
0x108f   :  { %9316 = vmatmul.msk.f32.gmra.mxu3 %vm2450_vm4, %v3198_v40 }
0x1096   :  { %v3347_v9 = vpop.f32.mrf.mxu2 }
0x1097   :  { %9339 = vmatmul.msk.f32.vlgmr.msra.gmra.mxu3 %vm2450_vm4, %v3359_v38  ;;  %v3348_v59 = vadd.f32 %v11146_v30, %v3347_v9 }
0x109e   :  { %v3350_v26 = vpop.f32.mrf.mxu2 }
0x109f   :  { %9340 = vmatmul.msk.f32.gmra.mxu3 %vm2450_vm4, %v3360_v57  ;;  %v3351_v38 = vadd.f32 %v11146_v30, %v3350_v26  ;;  %v9348_v57 = vld [vmem:[%s14728_s15 + $0x6] sm:$0x3] }
0x10a0   :  { %9349 = vmatpush.msk.msra.mxu0 %vm2608_vm9, %v9348_v57 }
0x10a6   :  { %v3353_v60 = vpop.f32.mrf.mxu2 }
0x10a7   :  { %9341 = vmatmul.msk.f32.gmra.mxu3 %vm2450_vm4, %v3361_v2  ;;  %v3354_v40 = vadd.f32 %v11146_v30, %v3353_v60 }
0x10ae   :  { %v3356_v31 = vpop.f32.mrf.mxu2 }
0x10af   :  { %9342 = vmatmul.msk.f32.gmra.mxu3 %vm2450_vm4, %v3362_v10  ;;  %v3357_v12 = vadd.f32 %v11146_v30, %v3356_v31 }
0x10b1   :  { %9343 = vmatpush.msk.msra.mxu1 %vm2562_vm0, %v3357_v12 }
0x10b3   :  { %3488 = vmatpush.msra.mxu1 %v3354_v40 }
0x10b5   :  { %3489 = vmatpush.msra.mxu1 %v3351_v38 }
0x10b7   :  { %3490 = vmatpush.msra.mxu1 %v3348_v59 }
0x10fa   :  { %v3235_v34 = vpop.f32.mrf.mxu3 }
0x10fb   :  { %v12871_v56 = vadd.f32 %v3235_v34, %v12765_v58 }
0x1102   :  { %v12873_v19 = vpop.f32.mrf.mxu3 }
0x110a   :  { %v3241_v63 = vpop.f32.mrf.mxu3 }
0x110b   :  { %v12876_v3 = vadd.f32 %v3241_v63, %v12771_v16 }
0x1112   :  { %v12878_v14 = vpop.f32.mrf.mxu3 }
0x111a   :  { %v3404_v8 = vpop.f32.mrf.mxu3 }
0x111b   :  { %v3405_v58 = vadd.f32 %v3404_v8, %v12586_v42 }
0x111d   :  { %v3416_v49 = vsel %vm2504_vm8, %v3405_v58, -inf }
0x111e   :  { %3417 = vmax.xlane.f32.xlu0 %v3416_v49 }
0x1122   :  { %v3407_v16 = vpop.f32.mrf.mxu3 }
0x1123   :  { %v3408_v45 = vadd.f32 %v3407_v16, %v12595_v25 }
0x1125   :  { %v3419_v50 = vsel %vm2504_vm8, %v3408_v45, -inf }
0x1126   :  { %3420 = vmax.xlane.f32.xlu1 %v3419_v50 }
0x112a   :  { %v3410_v52 = vpop.f32.mrf.mxu3 }
0x112b   :  { %v3411_v35 = vadd.f32 %v3410_v52, %v12604_v28 }
0x112d   :  { %v3422_v42 = vsel %vm2504_vm8, %v3411_v35, -inf }
0x112e   :  { %3423 = vmax.xlane.f32.xlu2 %v3422_v42 }
0x1132   :  { %v3413_v4 = vpop.f32.mrf.mxu3 }
0x1133   :  { %v3414_v44 = vadd.f32 %v3413_v4, %v12613_v41  ;;  %v2642_v4 = vadd.f32 %v12761_v13, %v12677_v55  ;;  %v2644_v55 = vadd.f32 %v12761_v13, %v12681_v37 }
0x1135   :  { %v3425_v25 = vsel %vm2514_vm3, %v3414_v44, -inf }
0x1136   :  { %3426 = vmax.xlane.f32.xlu0 %v3425_v25  ;;  %v2945_v25 = vadd.f32 %v12767_v54, %v2642_v4 }
0x1191   :  { %v3418_v48 = vpop.xlane.xlu0 %3417 }
0x1192   :  { %v3428_v36 = vsub.f32 %v3405_v58, %v3418_v48 }
0x1194   :  { %v3432_v24 = vmul.f32 1.442695, %v3428_v36  ;;  %v3248_v36 = vadd.f32 %v12873_v19, %v2945_v25 }
0x1196   :  { %11346 = vpow2.f32 %v3432_v24 }
0x1199   :  { %v3421_v53 = vpop.xlane.xlu1 %3420 }
0x119a   :  { %v3429_v46 = vsub.f32 %v3408_v45, %v3421_v53 }
0x119c   :  { %v11347_v28 = vpop.eup %11346  ;;  %v3434_v6 = vmul.f32 1.442695, %v3429_v46 }
0x119d   :  { %v3440_v17 = vsel %vm2504_vm8, %v11347_v28, 0.0 }
0x119e   :  { %11348 = vpow2.f32 %v3434_v6  ;;  %3441 = vadd.xlane.f32.xlu1 %v3440_v17 }
0x11a1   :  { %v3424_v29 = vpop.xlane.xlu2 %3423 }
0x11a2   :  { %v3430_v62 = vsub.f32 %v3411_v35, %v3424_v29 }
0x11a4   :  { %v11349_v41 = vpop.eup %11348  ;;  %v3436_v47 = vmul.f32 1.442695, %v3430_v62 }
0x11a5   :  { %v3443_v15 = vsel %vm2504_vm8, %v11349_v41, 0.0 }
0x11a6   :  { %11350 = vpow2.f32 %v3436_v47  ;;  %3444 = vadd.xlane.f32.xlu2 %v3443_v15 }
0x11a9   :  { %v3427_v61 = vpop.xlane.xlu0 %3426 }
0x11aa   :  { %v3431_v27 = vsub.f32 %v3414_v44, %v3427_v61 }
0x11ac   :  { %v11351_v5 = vpop.eup %11350  ;;  %v3438_v18 = vmul.f32 1.442695, %v3431_v27 }
0x11ad   :  { %v3446_v32 = vsel %vm2504_vm8, %v11351_v5, 0.0 }
0x11ae   :  { %11352 = vpow2.f32 %v3438_v18  ;;  %3447 = vadd.xlane.f32.xlu0 %v3446_v32 }
0x11b4   :  { %v11353_v51 = vpop.eup %11352 }
0x11b5   :  { %v3449_v0 = vsel %vm2514_vm3, %v11353_v51, 0.0 }
0x11b6   :  { %3450 = vadd.xlane.f32.xlu1 %v3449_v0 }
0x1211   :  { %v3442_v43 = vpop.xlane.xlu1 %3441 }
0x1212   :  { %11354 = vrcp.f32 %v3442_v43 }
0x1218   :  { %v11355_v39 = vpop.eup %11354 }
0x1219   :  { %v3456_v2 = vmul.f32 %v11355_v39, %v11347_v28  ;;  %v3445_v33 = vpop.xlane.xlu2 %3444 }
0x121a   :  { %11356 = vrcp.f32 %v3445_v33  ;;  %v3673_v33 = vld [vmem:[%s14730_s17] sm:$0xff] }
0x121b   :  { %9344 = vmatmul.msk.f32.vlgmr.msra.gmra.mxu1 %vm2504_vm8, %v3456_v2 }
0x1220   :  { %v11357_v22 = vpop.eup %11356 }
0x1221   :  { %v3448_v10 = vpop.xlane.xlu0 %3447  ;;  %v3457_v34 = vmul.f32 %v11357_v22, %v11349_v41  ;;  %v3674_v22 = vld [vmem:[%s14730_s17 + $0x8] sm:$0xff] }
0x1222   :  { %11358 = vrcp.f32 %v3448_v10 }
0x1223   :  { %9345 = vmatmul.msk.f32.gmra.mxu1 %vm2504_vm8, %v3457_v34  ;;  %v3725_v34 = vunpack.c.l.b16 %v3673_v33 }
0x1228   :  { %v11359_v63 = vpop.eup %11358 }
0x1229   :  { %v3451_v11 = vpop.xlane.xlu1 %3450  ;;  %v3458_v8 = vmul.f32 %v11359_v63, %v11351_v5  ;;  %v3726_v63 = vunpack.c.h.b16 %v3673_v33 }
0x122a   :  { %11360 = vrcp.f32 %v3451_v11  ;;  %v3727_v11 = vunpack.c.l.b16 %v3674_v22 }
0x122b   :  { %9346 = vmatmul.msk.f32.gmra.mxu1 %vm2504_vm8, %v3458_v8  ;;  %v3728_v8 = vunpack.c.h.b16 %v3674_v22 }
0x1230   :  { %v11361_v58 = vpop.eup %11360 }
0x1231   :  { %v3459_v49 = vmul.f32 %v11361_v58, %v11353_v51  ;;  %v3741_v58 = vpack.c.b16 %v3725_v34, %v3725_v34 }
0x1233   :  { %9347 = vmatmul.msk.f32.gmra.mxu1 %vm2504_vm8, %v3459_v49  ;;  %v3742_v49 = vpack.c.b16 %v3726_v63, %v3726_v63 }
0x1298   :  { %v3492_v16 = vpop.f32.mrf.mxu1 }
0x1299   :  { %9350 = vmatmul.msk.f32.vlgmr.msra.gmra.mxu0 %vm2450_vm4, %v3492_v16  ;;  %v3743_v16 = vpack.c.b16 %v3727_v11, %v3727_v11 }
0x12a0   :  { %v3495_v45 = vpop.f32.mrf.mxu1 }
0x12a1   :  { %9351 = vmatmul.msk.f32.gmra.mxu0 %vm2450_vm4, %v3495_v45  ;;  %v3744_v45 = vpack.c.b16 %v3728_v8, %v3728_v8 }
0x12a3   :  { %v3773_v4 = vsel %vm134_vm2, %v3744_v45, 0 }
0x12a4   :  { %3875 = vmatpush.bf16.msrb.mxu0 %v3773_v4 }
0x12a8   :  { %v3498_v50 = vpop.f32.mrf.mxu1 }
0x12a9   :  { %9352 = vmatmul.msk.f32.gmra.mxu0 %vm2450_vm4, %v3498_v50  ;;  %v3764_v50 = vsel %vm134_vm2, %v3741_v58, 0 }
0x12aa   :  { %3818 = vmatpush.bf16.msrb.mxu2 %v3764_v50 }
0x12b0   :  { %v3501_v52 = vpop.f32.mrf.mxu1 }
0x12b1   :  { %9353 = vmatmul.msk.f32.gmra.mxu0 %vm2450_vm4, %v3501_v52  ;;  %v3767_v52 = vsel %vm134_vm2, %v3742_v49, 0 }
0x12b2   :  { %3837 = vmatpush.bf16.msrb.mxu3 %v3767_v52 }
0x1316   :  { %v3538_v35 = vpop.f32.mrf.mxu0 }
0x1317   :  { %v3550_v42 = vadd.f32 %v3538_v35, %v12871_v56 }
0x1319   :  { %v3554_v44 = vadd.f32 %v12800_v23, %v3550_v42  ;;  %v2947_v23 = vadd.f32 %v12773_v21, %v2644_v55  ;;  %v3770_v42 = vsel %vm134_vm2, %v3743_v16, 0 }
0x131a   :  { %3856 = vmatpush.bf16.msrb.mxu1 %v3770_v42 }
0x131b   :  { %v3561_v48 = vsel %vm161_vm1, %v3554_v44, 0.0  ;;  %v3250_v19 = vadd.f32 %v12878_v14, %v2947_v23 }
0x131c   :  { %3562 = vadd.xlane.f32.xlu2 %v3561_v48 }
0x131e   :  { %v3541_v24 = vpop.f32.mrf.mxu0 }
0x131f   :  { %v3551_v53 = vadd.f32 %v3541_v24, %v3248_v36 }
0x1321   :  { %v3555_v46 = vadd.f32 %v12808_v20, %v3551_v53 }
0x1323   :  { %v3564_v9 = vsel %vm161_vm1, %v3555_v46, 0.0 }
0x1324   :  { %3565 = vadd.xlane.f32.xlu0 %v3564_v9 }
0x1326   :  { %v3544_v56 = vpop.f32.mrf.mxu0 }
0x1327   :  { %v3552_v28 = vadd.f32 %v3544_v56, %v12876_v3  ;;  %v11553_v3 = vmov 8.0  }
0x1328   :  { %11362 = vrcp.f32 %v11553_v3 }
0x1329   :  { %v3556_v54 = vadd.f32 %v12816_v1, %v3552_v28 }
0x132b   :  { %v3567_v6 = vsel %vm161_vm1, %v3556_v54, 0.0 }
0x132c   :  { %3568 = vadd.xlane.f32.xlu1 %v3567_v6 }
0x132e   :  { %v3547_v17 = vpop.f32.mrf.mxu0  ;;  %v11363_v37 = vpop.eup %11362 }
0x132f   :  { %v3553_v20 = vadd.f32 %v3547_v17, %v3250_v19  ;;  %v3575_v13 = vmul.f32 8.0, %v11363_v37  ;;  %vm3579_vm11 = vweird.f32 %v11363_v37 }
0x1331   :  { %v3557_v29 = vadd.f32 %v12827_v7, %v3553_v20  ;;  %v3576_v1 = vsub.f32 1.0, %v3575_v13 }
0x1333   :  { %v3571_v62 = vsel %vm3570_vm10, %v3557_v29, 0.0  ;;  %v3577_v26 = vmul.f32 %v11363_v37, %v3576_v1 }
0x1334   :  { %3572 = vadd.xlane.f32.xlu2 %v3571_v62  ;;  %v3676_v62 = vld [vmem:[%s14730_s17 + $0x18] sm:$0xff] }
0x1335   :  { %v3578_v21 = vadd.f32 %v11363_v37, %v3577_v26  ;;  %v3731_v26 = vunpack.c.l.b16 %v3676_v62 }
0x1337   :  { %v12937_v41 = vsel %vm3579_vm11, %v11363_v37, %v3578_v21  ;;  %v3732_v21 = vunpack.c.h.b16 %v3676_v62  ;;  %v3680_v62 = vld [vmem:[%s14730_s17 + $0x38] sm:$0xff] }
0x138f   :  { %v3563_v47 = vpop.xlane.xlu2 %3562 }
0x1390   :  { %v3581_v14 = vmul.f32 %v12937_v41, %v3563_v47 }
0x1392   :  { %v12940_v15 = vsub.f32 %v3554_v44, %v3581_v14  ;;  %v11147_v14 = vld [vmem:[%s14734_s21] ss:$0 sm:$0xff] }
0x1394   :  { %v3589_v7 = vmul.f32 %v12940_v15, %v12940_v15 }
0x1396   :  { %v3593_v61 = vsel %vm161_vm1, %v3589_v7, 0.0 }
0x1397   :  { %3594 = vadd.xlane.f32.xlu0 %v3593_v61  ;;  %v3566_v27 = vpop.xlane.xlu0 %3565 }
0x1398   :  { %v3582_v60 = vmul.f32 %v12937_v41, %v3566_v27 }
0x139a   :  { %v12946_v5 = vsub.f32 %v3555_v46, %v3582_v60 }
0x139c   :  { %v3590_v18 = vmul.f32 %v12946_v5, %v12946_v5 }
0x139e   :  { %v3596_v32 = vsel %vm161_vm1, %v3590_v18, 0.0 }
0x139f   :  { %v3569_v30 = vpop.xlane.xlu1 %3568  ;;  %3597 = vadd.xlane.f32.xlu1 %v3596_v32 }
0x13a0   :  { %v3583_v31 = vmul.f32 %v12937_v41, %v3569_v30  ;;  %v3747_v30 = vpack.c.b16 %v3731_v26, %v3731_v26 }
0x13a2   :  { %v12952_v51 = vsub.f32 %v3556_v54, %v3583_v31 }
0x13a4   :  { %v3591_v40 = vmul.f32 %v12952_v51, %v12952_v51 }
0x13a6   :  { %v3599_v12 = vsel %vm161_vm1, %v3591_v40, 0.0 }
0x13a7   :  { %3600 = vadd.xlane.f32.xlu2 %v3599_v12  ;;  %v3573_v0 = vpop.xlane.xlu2 %3572 }
0x13a8   :  { %v3584_v38 = vmul.f32 %v12937_v41, %v3573_v0 }
0x13aa   :  { %v12958_v59 = vsub.f32 %v3557_v29, %v3584_v38  ;;  %v3675_v29 = vld [vmem:[%s14730_s17 + $0x10] sm:$0xff]  ;;  %v3782_v38 = vsel %vm134_vm2, %v3747_v30, 0 }
0x13ab   :  { %v3729_v37 = vunpack.c.l.b16 %v3675_v29  ;;  %v3730_v13 = vunpack.c.h.b16 %v3675_v29  ;;  %3932 = vmatpush.bf16.msra.mxu1 %v3782_v38  ;;  %v3679_v29 = vld [vmem:[%s14730_s17 + $0x30] sm:$0xff]  ;;  %v10894_v38 = vld [vmem:[%s14732_s19 + $0xe8] sm:$0xff] }
0x13ac   :  { %v3592_v43 = vmul.f32 %v12958_v59, %v12958_v59  ;;  %v10887_v30 = vld [vmem:[%s14732_s19 + $0xb0] sm:$0xff] }
0x13ad   :  { %v3745_v27 = vpack.c.b16 %v3729_v37, %v3729_v37  ;;  %v3746_v60 = vpack.c.b16 %v3730_v13, %v3730_v13  ;;  %v3738_v37 = vunpack.c.h.b16 %v3679_v29  ;;  %v3739_v13 = vunpack.c.l.b16 %v3680_v62 }
0x13ae   :  { %v3602_v57 = vsel %vm3570_vm10, %v3592_v43, 0.0  ;;  %v11148_v43 = vld [vmem:[%s14734_s21 + $0x1] ss:$0 sm:$0xff] }
0x13af   :  { %3603 = vadd.xlane.f32.xlu0 %v3602_v57  ;;  %v3776_v31 = vsel %vm134_vm2, %v3745_v27, 0  ;;  %v3779_v40 = vsel %vm134_vm2, %v3746_v60, 0 }
0x13b0   :  { %3894 = vmatpush.bf16.msra.mxu2 %v3776_v31  ;;  %3913 = vmatpush.bf16.msra.mxu3 %v3779_v40  ;;  %v10895_v31 = vld [vmem:[%s14732_s19 + $0xf0] sm:$0xff]  ;;  %v10872_v40 = vld [vmem:[%s14732_s19 + $0x38] sm:$0xff] }
0x140a   :  { %v3595_v39 = vpop.xlane.xlu0 %3594 }
0x140b   :  { %v3605_v2 = vmul.f32 %v3595_v39, %v12937_v41 }
0x140d   :  { %v3609_v10 = vadd.f32 1e-05, %v3605_v2 }
0x140f   :  { %11364 = vrsqrt.f32 %v3609_v10  ;;  %vm3619_vm13 = vweird.f32 %v3609_v10 }
0x1412   :  { %v3598_v35 = vpop.xlane.xlu1 %3597 }
0x1413   :  { %v3606_v44 = vmul.f32 %v3598_v35, %v12937_v41 }
0x1415   :  { %v11365_v25 = vpop.eup %11364  ;;  %v3610_v48 = vadd.f32 1e-05, %v3606_v44 }
0x1416   :  { %v3614_v36 = vmul.f32 %v11365_v25, %v3609_v10  ;;  %vm3620_vm12 = vweird.f32 %v11365_v25 }
0x1417   :  { %11366 = vrsqrt.f32 %v3610_v48  ;;  %vm3621_vm14 = vmor %vm3619_vm13, %vm3620_vm12  ;;  %vm3629_vm5 = vweird.f32 %v3610_v48 }
0x1418   :  { %v3615_v24 = vmul.f32 %v11365_v25, %v3614_v36 }
0x141a   :  { %v3616_v53 = vmul.f32 0.5, %v3615_v24  ;;  %v3601_v46 = vpop.xlane.xlu2 %3600 }
0x141b   :  { %v3607_v9 = vmul.f32 %v3601_v46, %v12937_v41 }
0x141c   :  { %v3617_v56 = vsub.f32 1.5, %v3616_v53 }
0x141d   :  { %v11367_v28 = vpop.eup %11366  ;;  %v3611_v55 = vadd.f32 1e-05, %v3607_v9 }
0x141e   :  { %v3618_v54 = vmul.f32 %v11365_v25, %v3617_v56  ;;  %v3624_v23 = vmul.f32 %v11367_v28, %v3610_v48  ;;  %vm3630_vm15 = vweird.f32 %v11367_v28 }
0x141f   :  { %11368 = vrsqrt.f32 %v3611_v55  ;;  %vm3631_vm6 = vmor %vm3629_vm5, %vm3630_vm15  ;;  %vm3639_vm11 = vweird.f32 %v3611_v55 }
0x1420   :  { %v3625_v6 = vmul.f32 %v11367_v28, %v3624_v23  ;;  %v3622_v19 = vsel %vm3621_vm14, %v11365_v25, %v3618_v54 }
0x1421   :  { %v3653_v7 = vmul.f32 %v3622_v19, %v12940_v15  ;;  %v3748_v15 = vpack.c.b16 %v3732_v21, %v3732_v21  ;;  %v3754_v21 = vpack.c.b16 %v3738_v37, %v3738_v37 }
0x1422   :  { %v3626_v17 = vmul.f32 0.5, %v3625_v6  ;;  %v3604_v20 = vpop.xlane.xlu0 %3603 }
0x1423   :  { %v3608_v3 = vmul.f32 %v3604_v20, %v12937_v41  ;;  %v3660_v57 = vmul.f32 %v11147_v14, %v3653_v7  ;;  %v3785_v33 = vsel %vm134_vm2, %v3748_v15, 0  ;;  %v10871_v15 = vld [vmem:[%s14732_s19 + $0x30] sm:$0xff] }
0x1424   :  { %v3627_v1 = vsub.f32 1.5, %v3626_v17  ;;  %3951 = vmatpush.bf16.msra.mxu0 %v3785_v33  ;;  %v10878_v33 = vld [vmem:[%s14732_s19 + $0x68] sm:$0xff] }
0x1425   :  { %v11369_v47 = vpop.eup %11368  ;;  %v3612_v61 = vadd.f32 1e-05, %v3608_v3  ;;  %v12995_v63 = vadd.f32 %v11148_v43, %v3660_v57  ;;  %v3737_v3 = vunpack.c.l.b16 %v3679_v29  ;;  %v10885_v57 = vld [vmem:[%s14732_s19 + $0xa0] sm:$0xff]  ;;  %v10910_v29 = vld [vmem:[%s14732_s19 + $0x168] sm:$0xff] }
0x1426   :  { %v3628_v18 = vmul.f32 %v11367_v28, %v3627_v1  ;;  %v3634_v32 = vmul.f32 %v11369_v47, %v3611_v55  ;;  %vm3640_vm7 = vweird.f32 %v11369_v47  ;;  %v3740_v1 = vunpack.c.h.b16 %v3680_v62  ;;  %v13238_v62 = vld [vmem:[%s14731_s18] sm:$0xff] }
0x1427   :  { %11370 = vrsqrt.f32 %v3612_v61  ;;  %vm3641_vm12 = vmor %vm3639_vm11, %vm3640_vm7  ;;  %vm3649_vm14 = vweird.f32 %v3612_v61  ;;  %v3753_v26 = vpack.c.b16 %v3737_v3, %v3737_v3 }
0x1428   :  { %v3632_v12 = vsel %vm3631_vm6, %v11367_v28, %v3628_v18  ;;  %v3635_v0 = vmul.f32 %v11369_v47, %v3634_v32  ;;  %v10888_v18 = vld [vmem:[%s14732_s19 + $0xb8] sm:$0xff] }
0x1429   :  { %v3654_v39 = vmul.f32 %v3632_v12, %v12946_v5  ;;  %v3800_v7 = vsel %vm134_vm2, %v3753_v26, 0  ;;  %v10896_v32 = vld [vmem:[%s14732_s19 + $0xf8] sm:$0xff]  ;;  %v13247_v26 = vperm.slane %v13238_v62, 2 }
0x142a   :  { %v3636_v2 = vmul.f32 0.5, %v3635_v0  ;;  %v10880_v12 = vld [vmem:[%s14732_s19 + $0x78] sm:$0xff]  ;;  %v10886_v0 = vld [vmem:[%s14732_s19 + $0xa8] sm:$0xff] }
0x142b   :  { %v3661_v22 = vmul.f32 %v11147_v14, %v3654_v39  ;;  %v10893_v39 = vld [vmem:[%s14732_s19 + $0xe0] sm:$0xff] }
0x142c   :  { %v3637_v10 = vsub.f32 1.5, %v3636_v2  ;;  %v10870_v2 = vld [vmem:[%s14732_s19 + $0x28] sm:$0xff] }
0x142d   :  { %v11371_v34 = vpop.eup %11370  ;;  %v12997_v11 = vadd.f32 %v11148_v43, %v3661_v22  ;;  %v10884_v22 = vld [vmem:[%s14732_s19 + $0x98] sm:$0xff] }
0x142e   :  { %v3638_v8 = vmul.f32 %v11369_v47, %v3637_v10  ;;  %v3644_v58 = vmul.f32 %v11371_v34, %v3612_v61  ;;  %vm3650_vm13 = vweird.f32 %v11371_v34  ;;  %v3803_v61 = vsel %vm134_vm2, %v3754_v21, 0  ;;  %v10892_v10 = vld [vmem:[%s14732_s19 + $0xd8] sm:$0xff] }
0x142f   :  { %v13001_v49 = vpack.c.bf16 %v12997_v11, %v12995_v63  ;;  %vm3651_vm15 = vmor %vm3649_vm14, %vm3650_vm13  ;;  %v13250_v21 = vperm.slane %v13238_v62, 3 }
0x1430   :  { %v3645_v5 = vmul.f32 %v11371_v34, %v3644_v58  ;;  %v3642_v16 = vsel %vm3641_vm12, %v11369_v47, %v3638_v8  ;;  %v3755_v47 = vpack.c.b16 %v3739_v13, %v3739_v13  ;;  %v10877_v8 = vld [vmem:[%s14732_s19 + $0x60] sm:$0xff]  ;;  %v10883_v58 = vld [vmem:[%s14732_s19 + $0x90] sm:$0xff]  ;;  %v10916_v13 = vld [vmem:[%s14732_s19 + $0x198] sm:$0xff] }
0x1431   :  { %9355 = vmatmul.msk.bf16.vlgmr.msrb.gmra.mxu2 %vm161_vm1, %v13001_v49  ;;  %9357 = vmatmul.msk.bf16.vlgmr.msrb.gmra.mxu3 %vm161_vm1, %v13001_v49  ;;  %v3655_v52 = vmul.f32 %v3642_v16, %v12952_v51  ;;  %v3677_v51 = vld [vmem:[%s14730_s17 + $0x20] sm:$0xff]  ;;  %v10876_v16 = vld [vmem:[%s14732_s19 + $0x58] sm:$0xff] }
0x1432   :  { %v3646_v45 = vmul.f32 0.5, %v3645_v5  ;;  %9359 = vmatmul.msk.bf16.vlgmr.msrb.gmra.mxu1 %vm161_vm1, %v13001_v49  ;;  %9361 = vmatmul.msk.bf16.vlgmr.msrb.gmra.mxu0 %vm161_vm1, %v13001_v49  ;;  %v3733_v53 = vunpack.c.l.b16 %v3677_v51  ;;  %v3734_v46 = vunpack.c.h.b16 %v3677_v51  ;;  %v3806_v27 = vsel %vm134_vm2, %v3755_v47, 0  ;;  %v10891_v5 = vld [vmem:[%s14732_s19 + $0xd0] sm:$0xff]  ;;  %v10920_v51 = vld [vmem:[%s14732_s19 + $0x1b8] sm:$0xff]  ;;  %v10901_v47 = vld [vmem:[%s14732_s19 + $0x120] sm:$0xff] }
0x1433   :  { %v3662_v4 = vmul.f32 %v11147_v14, %v3655_v52  ;;  %v10867_v52 = vld [vmem:[%s14732_s19 + $0x10] sm:$0xff] }
0x1434   :  { %v3647_v50 = vsub.f32 1.5, %v3646_v45  ;;  %v3749_v28 = vpack.c.b16 %v3733_v53, %v3733_v53  ;;  %v3750_v55 = vpack.c.b16 %v3734_v46, %v3734_v46  ;;  %v10882_v45 = vld [vmem:[%s14732_s19 + $0x88] sm:$0xff]  ;;  %v10865_v53 = vld [vmem:[%s14732_s19] sm:$0xff] }
0x1435   :  { %v13013_v48 = vadd.f32 %v11148_v43, %v3662_v4  ;;  %v10889_v4 = vld [vmem:[%s14732_s19 + $0xc0] sm:$0xff] }
0x1436   :  { %v3648_v35 = vmul.f32 %v11371_v34, %v3647_v50  ;;  %v3788_v6 = vsel %vm134_vm2, %v3749_v28, 0  ;;  %v3791_v19 = vsel %vm134_vm2, %v3750_v55, 0  ;;  %v10890_v50 = vld [vmem:[%s14732_s19 + $0xc8] sm:$0xff]  ;;  %v10873_v46 = vld [vmem:[%s14732_s19 + $0x40] sm:$0xff]  ;;  %v10912_v28 = vld [vmem:[%s14732_s19 + $0x178] sm:$0xff] }
0x1437   :  { %3970 = vmatpush.bf16.msrb.mxu2 %v3788_v6  ;;  %3989 = vmatpush.bf16.msrb.mxu3 %v3791_v19  ;;  %v10918_v55 = vld [vmem:[%s14732_s19 + $0x1a8] sm:$0xff]  ;;  %v10911_v6 = vld [vmem:[%s14732_s19 + $0x170] sm:$0xff]  ;;  %v10917_v19 = vld [vmem:[%s14732_s19 + $0x1a0] sm:$0xff] }
0x1438   :  { %v3652_v42 = vsel %vm3651_vm15, %v11371_v34, %v3648_v35  ;;  %v10869_v34 = vld [vmem:[%s14732_s19 + $0x20] sm:$0xff]  ;;  %v10875_v35 = vld [vmem:[%s14732_s19 + $0x50] sm:$0xff] }
0x1439   :  { %v3656_v44 = vmul.f32 %v3652_v42, %v12958_v59  ;;  %v3678_v59 = vld [vmem:[%s14730_s17 + $0x28] sm:$0xff]  ;;  %v10881_v42 = vld [vmem:[%s14732_s19 + $0x80] sm:$0xff] }
0x143a   :  { %v3735_v9 = vunpack.c.l.b16 %v3678_v59  ;;  %v3736_v56 = vunpack.c.h.b16 %v3678_v59  ;;  %v10928_v59 = vld [vmem:[%s14732_s19 + $0x1f8] sm:$0xff] }
0x143b   :  { %v3663_v25 = vmul.f32 %v11147_v14, %v3656_v44  ;;  %v3756_v14 = vpack.c.b16 %v3740_v1, %v3740_v1  ;;  %v10866_v44 = vld [vmem:[%s14732_s19 + $0x8] sm:$0xff]  ;;  %v10924_v1 = vld [vmem:[%s14732_s19 + $0x1d8] sm:$0xff] }
0x143c   :  { %v3751_v54 = vpack.c.b16 %v3735_v9, %v3735_v9  ;;  %v3752_v23 = vpack.c.b16 %v3736_v56, %v3736_v56  ;;  %v10919_v9 = vld [vmem:[%s14732_s19 + $0x1b0] sm:$0xff] }
0x143d   :  { %v13015_v36 = vadd.f32 %v11148_v43, %v3663_v25  ;;  %v3809_v60 = vsel %vm134_vm2, %v3756_v14, 0  ;;  %v10879_v43 = vld [vmem:[%s14732_s19 + $0x70] sm:$0xff]  ;;  %v10874_v25 = vld [vmem:[%s14732_s19 + $0x48] sm:$0xff]  ;;  %v10909_v14 = vld [vmem:[%s14732_s19 + $0x160] sm:$0xff] }
0x143e   :  { %v3794_v17 = vsel %vm134_vm2, %v3751_v54, 0  ;;  %v3797_v20 = vsel %vm134_vm2, %v3752_v23, 0  ;;  %v10927_v56 = vld [vmem:[%s14732_s19 + $0x1f0] sm:$0xff]  ;;  %v10926_v54 = vld [vmem:[%s14732_s19 + $0x1e8] sm:$0xff] }
0x143f   :  { %v13019_v24 = vpack.c.bf16 %v13015_v36, %v13013_v48  ;;  %4008 = vmatpush.bf16.msrb.mxu1 %v3794_v17  ;;  %4027 = vmatpush.bf16.msrb.mxu0 %v3797_v20  ;;  %v10903_v23 = vld [vmem:[%s14732_s19 + $0x130] sm:$0xff]  ;;  %v10925_v17 = vld [vmem:[%s14732_s19 + $0x1e0] sm:$0xff]  ;;  %v10902_v20 = vld [vmem:[%s14732_s19 + $0x128] sm:$0xff] }
0x1441   :  { %9356 = vmatmul.msk.bf16.gmra.mxu2 %vm161_vm1, %v13019_v24  ;;  %9358 = vmatmul.msk.bf16.gmra.mxu3 %vm161_vm1, %v13019_v24 }
0x1442   :  { %9360 = vmatmul.msk.bf16.gmra.mxu1 %vm161_vm1, %v13019_v24  ;;  %9362 = vmatmul.msk.bf16.gmra.mxu0 %vm161_vm1, %v13019_v24 }
0x1451   :  { %9363 = vmatmul.msk.bf16.vlgmr.msra.gmra.mxu2 %vm161_vm1, %v13001_v49  ;;  %9365 = vmatmul.msk.bf16.vlgmr.msra.gmra.mxu3 %vm161_vm1, %v13001_v49 }
0x1452   :  { %9367 = vmatmul.msk.bf16.vlgmr.msra.gmra.mxu1 %vm161_vm1, %v13001_v49  ;;  %9369 = vmatmul.msk.bf16.vlgmr.msra.gmra.mxu0 %vm161_vm1, %v13001_v49 }
0x1453   :  { %4046 = vmatpush.bf16.msra.mxu2 %v3800_v7  ;;  %4065 = vmatpush.bf16.msra.mxu3 %v3803_v61  ;;  %v10915_v7 = vld [vmem:[%s14732_s19 + $0x190] sm:$0xff] }
0x1454   :  { %4084 = vmatpush.bf16.msra.mxu1 %v3806_v27  ;;  %4103 = vmatpush.bf16.msra.mxu0 %v3809_v60  ;;  %v10923_v61 = vld [vmem:[%s14732_s19 + $0x1d0] sm:$0xff] }
0x1461   :  { %9364 = vmatmul.msk.bf16.gmra.mxu2 %vm161_vm1, %v13019_v24  ;;  %9366 = vmatmul.msk.bf16.gmra.mxu3 %vm161_vm1, %v13019_v24 }
0x1462   :  { %9368 = vmatmul.msk.bf16.gmra.mxu1 %vm161_vm1, %v13019_v24  ;;  %9370 = vmatmul.msk.bf16.gmra.mxu0 %vm161_vm1, %v13019_v24 }
0x1471   :  { %9371 = vmatmul.msk.bf16.vlgmr.msrb.gmra.mxu2 %vm161_vm1, %v13001_v49  ;;  %9373 = vmatmul.msk.bf16.vlgmr.msrb.gmra.mxu3 %vm161_vm1, %v13001_v49 }
0x1472   :  { %9375 = vmatmul.msk.bf16.vlgmr.msrb.gmra.mxu1 %vm161_vm1, %v13001_v49  ;;  %9377 = vmatmul.msk.bf16.vlgmr.msrb.gmra.mxu0 %vm161_vm1, %v13001_v49 }
0x1473   :  { %5277 = vmatpush.bf16.msrb.mxu1 %v10888_v18  ;;  %5296 = vmatpush.bf16.msrb.mxu0 %v10896_v32 }
0x1474   :  { %5239 = vmatpush.bf16.msrb.mxu2 %v10872_v40  ;;  %5258 = vmatpush.bf16.msrb.mxu3 %v10880_v12  ;;  %v13273_v40 = vperm.slane %v13238_v62, 0  ;;  %v13276_v12 = vperm.slane %v13238_v62, 1 }
0x1477   :  { %5278 = vmatpush.bf16.msrb.mxu1 %v10887_v30  ;;  %5297 = vmatpush.bf16.msrb.mxu0 %v10895_v31  ;;  %v10900_v30 = vld [vmem:[%s14732_s19 + $0x118] sm:$0xff] }
0x1478   :  { %5240 = vmatpush.bf16.msrb.mxu2 %v10871_v15  ;;  %5259 = vmatpush.bf16.msrb.mxu3 %v10879_v43  ;;  %v10908_v31 = vld [vmem:[%s14732_s19 + $0x158] sm:$0xff] }
0x147b   :  { %5279 = vmatpush.bf16.msrb.mxu1 %v10886_v0  ;;  %5298 = vmatpush.bf16.msrb.mxu0 %v10894_v38 }
0x147c   :  { %5241 = vmatpush.bf16.msrb.mxu2 %v10870_v2  ;;  %5260 = vmatpush.bf16.msrb.mxu3 %v10878_v33 }
0x147f   :  { %5280 = vmatpush.bf16.msrb.mxu1 %v10885_v57  ;;  %5299 = vmatpush.bf16.msrb.mxu0 %v10893_v39  ;;  %v10914_v57 = vld [vmem:[%s14732_s19 + $0x188] sm:$0xff] }
0x1480   :  { %5242 = vmatpush.bf16.msrb.mxu2 %v10869_v34  ;;  %5261 = vmatpush.bf16.msrb.mxu3 %v10877_v8  ;;  %v10922_v39 = vld [vmem:[%s14732_s19 + $0x1c8] sm:$0xff]  ;;  %v10899_v34 = vld [vmem:[%s14732_s19 + $0x110] sm:$0xff] }
0x1481   :  { %9372 = vmatmul.msk.bf16.gmra.mxu2 %vm161_vm1, %v13019_v24  ;;  %9374 = vmatmul.msk.bf16.gmra.mxu3 %vm161_vm1, %v13019_v24  ;;  %v10907_v8 = vld [vmem:[%s14732_s19 + $0x150] sm:$0xff] }
0x1482   :  { %9376 = vmatmul.msk.bf16.gmra.mxu1 %vm161_vm1, %v13019_v24  ;;  %9378 = vmatmul.msk.bf16.gmra.mxu0 %vm161_vm1, %v13019_v24 }
0x1483   :  { %5281 = vmatpush.bf16.msrb.mxu1 %v10884_v22  ;;  %5300 = vmatpush.bf16.msrb.mxu0 %v10892_v10 }
0x1484   :  { %5262 = vmatpush.bf16.msrb.mxu3 %v10876_v16 }
0x1487   :  { %5282 = vmatpush.bf16.msrb.mxu1 %v10883_v58  ;;  %5301 = vmatpush.bf16.msrb.mxu0 %v10891_v5 }
0x1488   :  { %5263 = vmatpush.bf16.msrb.mxu3 %v10875_v35  ;;  %v10921_v35 = vld [vmem:[%s14732_s19 + $0x1c0] sm:$0xff] }
0x148b   :  { %5283 = vmatpush.bf16.msrb.mxu1 %v10882_v45  ;;  %5302 = vmatpush.bf16.msrb.mxu0 %v10890_v50 }
0x148c   :  { %5264 = vmatpush.bf16.msrb.mxu3 %v10874_v25  ;;  %v10906_v25 = vld [vmem:[%s14732_s19 + $0x148] sm:$0xff] }
0x148f   :  { %5284 = vmatpush.bf16.msrb.mxu1 %v10881_v42  ;;  %5303 = vmatpush.bf16.msrb.mxu0 %v10889_v4 }
0x1490   :  { %5265 = vmatpush.bf16.msrb.mxu3 %v10873_v46 }
0x1491   :  { %9379 = vmatmul.msk.bf16.vlgmr.msra.gmra.mxu2 %vm161_vm1, %v13001_v49  ;;  %9381 = vmatmul.msk.bf16.vlgmr.msra.gmra.mxu3 %vm161_vm1, %v13001_v49 }
0x1492   :  { %9383 = vmatmul.msk.bf16.vlgmr.msra.gmra.mxu1 %vm161_vm1, %v13001_v49  ;;  %9385 = vmatmul.msk.bf16.vlgmr.msra.gmra.mxu0 %vm161_vm1, %v13001_v49  ;;  %v10868_v49 = vld [vmem:[%s14732_s19 + $0x18] sm:$0xff] }
0x1493   :  { %5243 = vmatpush.bf16.msrb.mxu2 %v10868_v49  ;;  %5353 = vmatpush.bf16.msra.mxu1 %v10920_v51 }
0x1494   :  { %5372 = vmatpush.bf16.msra.mxu0 %v10928_v59  ;;  %5334 = vmatpush.bf16.msra.mxu3 %v10912_v28  ;;  %v10960_v28 = vld [vmem:[%s14732_s19 + $0x2f8] sm:$0xff] }
0x1497   :  { %5244 = vmatpush.bf16.msrb.mxu2 %v10867_v52  ;;  %5354 = vmatpush.bf16.msra.mxu1 %v10919_v9  ;;  %v10913_v52 = vld [vmem:[%s14732_s19 + $0x180] sm:$0xff] }
0x1498   :  { %5373 = vmatpush.bf16.msra.mxu0 %v10927_v56  ;;  %5335 = vmatpush.bf16.msra.mxu3 %v10911_v6  ;;  %v10905_v6 = vld [vmem:[%s14732_s19 + $0x140] sm:$0xff] }
0x149b   :  { %5245 = vmatpush.bf16.msrb.mxu2 %v10866_v44  ;;  %5355 = vmatpush.bf16.msra.mxu1 %v10918_v55  ;;  %v10898_v44 = vld [vmem:[%s14732_s19 + $0x108] sm:$0xff] }
0x149c   :  { %5374 = vmatpush.bf16.msra.mxu0 %v10926_v54  ;;  %5336 = vmatpush.bf16.msra.mxu3 %v10910_v29 }
0x149f   :  { %5246 = vmatpush.bf16.msrb.mxu2 %v10865_v53  ;;  %5356 = vmatpush.bf16.msra.mxu1 %v10917_v19  ;;  %v10951_v19 = vld [vmem:[%s14732_s19 + $0x2b0] sm:$0xff] }
0x14a0   :  { %5375 = vmatpush.bf16.msra.mxu0 %v10925_v17  ;;  %5337 = vmatpush.bf16.msra.mxu3 %v10909_v14  ;;  %v10959_v17 = vld [vmem:[%s14732_s19 + $0x2f0] sm:$0xff] }
0x14a1   :  { %9380 = vmatmul.msk.bf16.gmra.mxu2 %vm161_vm1, %v13019_v24  ;;  %9382 = vmatmul.msk.bf16.gmra.mxu3 %vm161_vm1, %v13019_v24 }
0x14a2   :  { %9384 = vmatmul.msk.bf16.gmra.mxu1 %vm161_vm1, %v13019_v24  ;;  %9386 = vmatmul.msk.bf16.gmra.mxu0 %vm161_vm1, %v13019_v24  ;;  %v10904_v24 = vld [vmem:[%s14732_s19 + $0x138] sm:$0xff] }
0x14a3   :  { %5315 = vmatpush.bf16.msra.mxu2 %v10904_v24  ;;  %5357 = vmatpush.bf16.msra.mxu1 %v10916_v13  ;;  %v10952_v24 = vld [vmem:[%s14732_s19 + $0x2b8] sm:$0xff] }
0x14a4   :  { %5376 = vmatpush.bf16.msra.mxu0 %v10924_v1  ;;  %5338 = vmatpush.bf16.msra.mxu3 %v10908_v31  ;;  %v10936_v13 = vld [vmem:[%s14732_s19 + $0x238] sm:$0xff] }
0x14a5   :  { %v10944_v1 = vld [vmem:[%s14732_s19 + $0x278] sm:$0xff] }
0x14a7   :  { %5316 = vmatpush.bf16.msra.mxu2 %v10903_v23  ;;  %5358 = vmatpush.bf16.msra.mxu1 %v10915_v7  ;;  %v10897_v23 = vld [vmem:[%s14732_s19 + $0x100] sm:$0xff] }
0x14a8   :  { %5377 = vmatpush.bf16.msra.mxu0 %v10923_v61  ;;  %5339 = vmatpush.bf16.msra.mxu3 %v10907_v8  ;;  %v10942_v8 = vld [vmem:[%s14732_s19 + $0x268] sm:$0xff] }
0x14ab   :  { %5317 = vmatpush.bf16.msra.mxu2 %v10902_v20  ;;  %5359 = vmatpush.bf16.msra.mxu1 %v10914_v57 }
0x14ac   :  { %5378 = vmatpush.bf16.msra.mxu0 %v10922_v39  ;;  %5340 = vmatpush.bf16.msra.mxu3 %v10906_v25  ;;  %v10941_v25 = vld [vmem:[%s14732_s19 + $0x260] sm:$0xff] }
0x14af   :  { %v3858_v3 = vpop.f32.mrf.mxu1  ;;  %v3877_v37 = vpop.f32.mrf.mxu0  ;;  %5318 = vmatpush.bf16.msra.mxu2 %v10901_v47  ;;  %5360 = vmatpush.bf16.msra.mxu1 %v10913_v52 }
0x14b0   :  { %v3859_v18 = vadd.f32 %v3858_v3, %v13247_v26  ;;  %v3878_v32 = vadd.f32 %v3877_v37, %v13250_v21  ;;  %5379 = vmatpush.bf16.msra.mxu0 %v10921_v35  ;;  %5341 = vmatpush.bf16.msra.mxu3 %v10905_v6 }
0x14b2   :  { %v4117_v2 = vmax.f32 %v3859_v18, 0.0  ;;  %v4118_v33 = vmax.f32 %v3878_v32, 0.0 }
0x14b3   :  { %5319 = vmatpush.bf16.msra.mxu2 %v10900_v30 }
0x14b4   :  { %v3820_v27 = vpop.f32.mrf.mxu2  ;;  %v3839_v60 = vpop.f32.mrf.mxu3 }
0x14b5   :  { %v3821_v58 = vadd.f32 %v3820_v27, %v13273_v40  ;;  %v3840_v5 = vadd.f32 %v3839_v60, %v13276_v12  ;;  %v10950_v27 = vld [vmem:[%s14732_s19 + $0x2a8] sm:$0xff] }
0x14b6   :  { %v10958_v60 = vld [vmem:[%s14732_s19 + $0x2e8] sm:$0xff] }
0x14b7   :  { %v3860_v0 = vpop.f32.mrf.mxu1  ;;  %v3879_v38 = vpop.f32.mrf.mxu0  ;;  %5320 = vmatpush.bf16.msra.mxu2 %v10899_v34  ;;  %v4115_v51 = vmax.f32 %v3821_v58, 0.0  ;;  %v4116_v59 = vmax.f32 %v3840_v5, 0.0  ;;  %v10934_v34 = vld [vmem:[%s14732_s19 + $0x228] sm:$0xff] }
0x14b8   :  { %v3861_v15 = vadd.f32 %v3860_v0, %v13247_v26  ;;  %v3880_v43 = vadd.f32 %v3879_v38, %v13250_v21 }
0x14ba   :  { %v4133_v22 = vmax.f32 %v3861_v15, 0.0  ;;  %v4134_v10 = vmax.f32 %v3880_v43, 0.0  ;;  %v10949_v15 = vld [vmem:[%s14732_s19 + $0x2a0] sm:$0xff] }
0x14bb   :  { %5321 = vmatpush.bf16.msra.mxu2 %v10898_v44  ;;  %v10957_v43 = vld [vmem:[%s14732_s19 + $0x2e0] sm:$0xff] }
0x14bc   :  { %v4181_v49 = vpack.c.bf16 %v4133_v22, %v4117_v2  ;;  %v4182_v16 = vpack.c.bf16 %v4134_v10, %v4118_v33  ;;  %v3822_v45 = vpop.f32.mrf.mxu2  ;;  %v3841_v50 = vpop.f32.mrf.mxu3  ;;  %v10933_v44 = vld [vmem:[%s14732_s19 + $0x220] sm:$0xff] }
0x14bd   :  { %v3823_v42 = vadd.f32 %v3822_v45, %v13273_v40  ;;  %v3842_v4 = vadd.f32 %v3841_v50, %v13276_v12 }
0x14be   :  { %5285 = vmatmul.bf16.vlgmr.msrb.gmra.mxu1 %v4181_v49  ;;  %5304 = vmatmul.bf16.vlgmr.msrb.gmra.mxu0 %v4182_v16 }
0x14bf   :  { %v4131_v53 = vmax.f32 %v3823_v42, 0.0  ;;  %v4132_v46 = vmax.f32 %v3842_v4, 0.0  ;;  %v3863_v9 = vpop.f32.mrf.mxu1  ;;  %v3882_v56 = vpop.f32.mrf.mxu0  ;;  %5429 = vmatpush.bf16.msrb.mxu1 %v10952_v24  ;;  %5448 = vmatpush.bf16.msrb.mxu0 %v10960_v28  ;;  %v13371_v42 = vperm.slane %v13238_v62, 6  ;;  %v13374_v4 = vperm.slane %v13238_v62, 7  ;;  %v10932_v24 = vld [vmem:[%s14732_s19 + $0x218] sm:$0xff] }
0x14c0   :  { %5322 = vmatpush.bf16.msra.mxu2 %v10897_v23  ;;  %v3864_v3 = vadd.f32 %v3863_v9, %v13247_v26  ;;  %v3883_v37 = vadd.f32 %v3882_v56, %v13250_v21  ;;  %v10940_v28 = vld [vmem:[%s14732_s19 + $0x258] sm:$0xff] }
0x14c1   :  { %v4179_v55 = vpack.c.bf16 %v4131_v53, %v4115_v51  ;;  %v4180_v54 = vpack.c.bf16 %v4132_v46, %v4116_v59  ;;  %v10947_v53 = vld [vmem:[%s14732_s19 + $0x290] sm:$0xff] }
0x14c2   :  { %v4149_v18 = vmax.f32 %v3864_v3, 0.0  ;;  %v4150_v32 = vmax.f32 %v3883_v37, 0.0  ;;  %v10955_v46 = vld [vmem:[%s14732_s19 + $0x2d0] sm:$0xff] }
0x14c3   :  { %5247 = vmatmul.bf16.vlgmr.msrb.gmra.mxu2 %v4179_v55  ;;  %5266 = vmatmul.bf16.vlgmr.msrb.gmra.mxu3 %v4180_v54  ;;  %v13397_v55 = vperm.slane %v13238_v62, 4  ;;  %v13400_v54 = vperm.slane %v13238_v62, 5 }
0x14c4   :  { %v3825_v20 = vpop.f32.mrf.mxu2  ;;  %v3844_v29 = vpop.f32.mrf.mxu3  ;;  %5430 = vmatpush.bf16.msrb.mxu1 %v10951_v19  ;;  %5449 = vmatpush.bf16.msrb.mxu0 %v10959_v17 }
0x14c5   :  { %5391 = vmatpush.bf16.msrb.mxu2 %v10936_v13  ;;  %5410 = vmatpush.bf16.msrb.mxu3 %v10944_v1  ;;  %v3826_v0 = vadd.f32 %v3825_v20, %v13273_v40  ;;  %v3845_v38 = vadd.f32 %v3844_v29, %v13276_v12  ;;  %v10946_v20 = vld [vmem:[%s14732_s19 + $0x288] sm:$0xff]  ;;  %v10931_v1 = vld [vmem:[%s14732_s19 + $0x210] sm:$0xff] }
0x14c6   :  { %v10954_v29 = vld [vmem:[%s14732_s19 + $0x2c8] sm:$0xff] }
0x14c7   :  { %v3865_v47 = vpop.f32.mrf.mxu1  ;;  %v3884_v14 = vpop.f32.mrf.mxu0  ;;  %v4147_v58 = vmax.f32 %v3826_v0, 0.0  ;;  %v4148_v5 = vmax.f32 %v3845_v38, 0.0  ;;  %v10938_v0 = vld [vmem:[%s14732_s19 + $0x248] sm:$0xff] }
0x14c8   :  { %v3866_v7 = vadd.f32 %v3865_v47, %v13247_v26  ;;  %v3885_v61 = vadd.f32 %v3884_v14, %v13250_v21  ;;  %5431 = vmatpush.bf16.msrb.mxu1 %v10950_v27  ;;  %5450 = vmatpush.bf16.msrb.mxu0 %v10958_v60  ;;  %v10935_v26 = vld [vmem:[%s14732_s19 + $0x230] sm:$0xff] }
0x14c9   :  { %v10943_v21 = vld [vmem:[%s14732_s19 + $0x270] sm:$0xff]  ;;  %5392 = vmatpush.bf16.msrb.mxu2 %v10935_v26 }
0x14ca   :  { %v4165_v30 = vmax.f32 %v3866_v7, 0.0  ;;  %v4166_v31 = vmax.f32 %v3885_v61, 0.0  ;;  %5411 = vmatpush.bf16.msrb.mxu3 %v10943_v21  ;;  %v10939_v47 = vld [vmem:[%s14732_s19 + $0x250] sm:$0xff]  ;;  %v10930_v21 = vld [vmem:[%s14732_s19 + $0x208] sm:$0xff] }
0x14cc   :  { %v3827_v57 = vpop.f32.mrf.mxu2  ;;  %v3846_v39 = vpop.f32.mrf.mxu3  ;;  %v4197_v2 = vpack.c.bf16 %v4165_v30, %v4149_v18  ;;  %v4198_v33 = vpack.c.bf16 %v4166_v31, %v4150_v32  ;;  %5432 = vmatpush.bf16.msrb.mxu1 %v10949_v15  ;;  %5451 = vmatpush.bf16.msrb.mxu0 %v10957_v43  ;;  %v10945_v32 = vld [vmem:[%s14732_s19 + $0x280] sm:$0xff] }
0x14cd   :  { %v3828_v22 = vadd.f32 %v3827_v57, %v13273_v40  ;;  %v3847_v10 = vadd.f32 %v3846_v39, %v13276_v12  ;;  %5393 = vmatpush.bf16.msrb.mxu2 %v10934_v34  ;;  %v10948_v40 = vld [vmem:[%s14732_s19 + $0x298] sm:$0xff]  ;;  %v10953_v30 = vld [vmem:[%s14732_s19 + $0x2c0] sm:$0xff] }
0x14ce   :  { %5290 = vmatmul.bf16.gmra.mxu1 %v4197_v2  ;;  %5309 = vmatmul.bf16.gmra.mxu0 %v4198_v33  ;;  %v10956_v12 = vld [vmem:[%s14732_s19 + $0x2d8] sm:$0xff] }
0x14cf   :  { %v4163_v49 = vmax.f32 %v3828_v22, 0.0  ;;  %v4164_v16 = vmax.f32 %v3847_v10, 0.0  ;;  %v3934_v45 = vpop.f32.mrf.mxu1  ;;  %v3953_v50 = vpop.f32.mrf.mxu0  ;;  %5412 = vmatpush.bf16.msrb.mxu3 %v10942_v8  ;;  %v10984_v33 = vld [vmem:[%s14732_s19 + $0x3b8] sm:$0xff]  ;;  %v10929_v8 = vld [vmem:[%s14732_s19 + $0x200] sm:$0xff] }
0x14d0   :  { %5433 = vmatpush.bf16.msrb.mxu1 %v10948_v40  ;;  %5452 = vmatpush.bf16.msrb.mxu0 %v10956_v12  ;;  %v3935_v9 = vadd.f32 %v3934_v45, %v13371_v42  ;;  %v3954_v56 = vadd.f32 %v3953_v50, %v13374_v4  ;;  %v10992_v22 = vld [vmem:[%s14732_s19 + $0x3f8] sm:$0xff] }
0x14d1   :  { %v4195_v52 = vpack.c.bf16 %v4163_v49, %v4147_v58  ;;  %v4196_v35 = vpack.c.bf16 %v4164_v16, %v4148_v5  ;;  %5394 = vmatpush.bf16.msrb.mxu2 %v10933_v44  ;;  %v10937_v58 = vld [vmem:[%s14732_s19 + $0x240] sm:$0xff]  ;;  %v10983_v5 = vld [vmem:[%s14732_s19 + $0x3b0] sm:$0xff]  ;;  %v10968_v12 = vld [vmem:[%s14732_s19 + $0x338] sm:$0xff] }
0x14d2   :  { %v4121_v62 = vmax.f32 %v3935_v9, 0.0  ;;  %v4122_v3 = vmax.f32 %v3954_v56, 0.0  ;;  %v10991_v49 = vld [vmem:[%s14732_s19 + $0x3f0] sm:$0xff] }
0x14d3   :  { %5252 = vmatmul.bf16.gmra.mxu2 %v4195_v52  ;;  %5271 = vmatmul.bf16.gmra.mxu3 %v4196_v35  ;;  %v10976_v52 = vld [vmem:[%s14732_s19 + $0x378] sm:$0xff] }
0x14d4   :  { %v3896_v51 = vpop.f32.mrf.mxu2  ;;  %v3915_v59 = vpop.f32.mrf.mxu3  ;;  %5413 = vmatpush.bf16.msrb.mxu3 %v10941_v25  ;;  %5434 = vmatpush.bf16.msrb.mxu1 %v10947_v53  ;;  %v10990_v53 = vld [vmem:[%s14732_s19 + $0x3e8] sm:$0xff] }
0x14d5   :  { %5453 = vmatpush.bf16.msrb.mxu0 %v10955_v46  ;;  %5395 = vmatpush.bf16.msrb.mxu2 %v10932_v24  ;;  %v3897_v14 = vadd.f32 %v3896_v51, %v13397_v55  ;;  %v3916_v7 = vadd.f32 %v3915_v59, %v13400_v54  ;;  %v10982_v59 = vld [vmem:[%s14732_s19 + $0x3a8] sm:$0xff] }
0x14d7   :  { %v3936_v23 = vpop.f32.mrf.mxu1  ;;  %v3955_v6 = vpop.f32.mrf.mxu0  ;;  %v4119_v38 = vmax.f32 %v3897_v14, 0.0  ;;  %v4120_v15 = vmax.f32 %v3916_v7, 0.0 }
0x14d8   :  { %v3937_v19 = vadd.f32 %v3936_v23, %v13371_v42  ;;  %v3956_v17 = vadd.f32 %v3955_v6, %v13374_v4  ;;  %5414 = vmatpush.bf16.msrb.mxu3 %v10940_v28  ;;  %5435 = vmatpush.bf16.msrb.mxu1 %v10946_v20  ;;  %v10981_v6 = vld [vmem:[%s14732_s19 + $0x3a0] sm:$0xff] }
0x14d9   :  { %5454 = vmatpush.bf16.msrb.mxu0 %v10954_v29  ;;  %5396 = vmatpush.bf16.msrb.mxu2 %v10931_v1  ;;  %v10974_v1 = vld [vmem:[%s14732_s19 + $0x368] sm:$0xff] }
0x14da   :  { %v4137_v37 = vmax.f32 %v3937_v19, 0.0  ;;  %v4138_v13 = vmax.f32 %v3956_v17, 0.0  ;;  %v10989_v19 = vld [vmem:[%s14732_s19 + $0x3e0] sm:$0xff] }
0x14dc   :  { %v4185_v61 = vpack.c.bf16 %v4137_v37, %v4121_v62  ;;  %v4186_v27 = vpack.c.bf16 %v4138_v13, %v4122_v3  ;;  %v3898_v60 = vpop.f32.mrf.mxu2  ;;  %v3917_v18 = vpop.f32.mrf.mxu3  ;;  %5415 = vmatpush.bf16.msrb.mxu3 %v10939_v47  ;;  %5436 = vmatpush.bf16.msrb.mxu1 %v10945_v32  ;;  %v10966_v13 = vld [vmem:[%s14732_s19 + $0x328] sm:$0xff] }
0x14dd   :  { %v3899_v31 = vadd.f32 %v3898_v60, %v13397_v55  ;;  %v3918_v26 = vadd.f32 %v3917_v18, %v13400_v54  ;;  %5455 = vmatpush.bf16.msrb.mxu0 %v10953_v30  ;;  %5397 = vmatpush.bf16.msrb.mxu2 %v10930_v21  ;;  %v10980_v60 = vld [vmem:[%s14732_s19 + $0x398] sm:$0xff]  ;;  %v10965_v21 = vld [vmem:[%s14732_s19 + $0x320] sm:$0xff] }
0x14de   :  { %5361 = vmatmul.bf16.vlgmr.msra.gmra.mxu1 %v4185_v61  ;;  %5380 = vmatmul.bf16.vlgmr.msra.gmra.mxu0 %v4186_v27  ;;  %v10988_v18 = vld [vmem:[%s14732_s19 + $0x3d8] sm:$0xff] }
0x14df   :  { %v4135_v43 = vmax.f32 %v3899_v31, 0.0  ;;  %v4136_v57 = vmax.f32 %v3918_v26, 0.0  ;;  %v3939_v39 = vpop.f32.mrf.mxu1  ;;  %v3958_v2 = vpop.f32.mrf.mxu0 }
0x14e0   :  { %5416 = vmatpush.bf16.msrb.mxu3 %v10938_v0  ;;  %5505 = vmatpush.bf16.msra.mxu1 %v10984_v33  ;;  %v3940_v50 = vadd.f32 %v3939_v39, %v13371_v42  ;;  %v3959_v40 = vadd.f32 %v3958_v2, %v13374_v4  ;;  %v10973_v0 = vld [vmem:[%s14732_s19 + $0x360] sm:$0xff]  ;;  %v10964_v33 = vld [vmem:[%s14732_s19 + $0x318] sm:$0xff] }
0x14e1   :  { %v4183_v10 = vpack.c.bf16 %v4135_v43, %v4119_v38  ;;  %v4184_v34 = vpack.c.bf16 %v4136_v57, %v4120_v15  ;;  %5524 = vmatpush.bf16.msra.mxu0 %v10992_v22  ;;  %5398 = vmatpush.bf16.msrb.mxu2 %v10929_v8  ;;  %v10979_v43 = vld [vmem:[%s14732_s19 + $0x390] sm:$0xff]  ;;  %v10972_v22 = vld [vmem:[%s14732_s19 + $0x358] sm:$0xff] }
0x14e2   :  { %v4153_v46 = vmax.f32 %v3940_v50, 0.0  ;;  %v4154_v9 = vmax.f32 %v3959_v40, 0.0  ;;  %v10987_v57 = vld [vmem:[%s14732_s19 + $0x3d0] sm:$0xff] }
0x14e3   :  { %5323 = vmatmul.bf16.vlgmr.msra.gmra.mxu2 %v4183_v10  ;;  %5342 = vmatmul.bf16.vlgmr.msra.gmra.mxu3 %v4184_v34 }
0x14e4   :  { %v3901_v16 = vpop.f32.mrf.mxu2  ;;  %v3920_v45 = vpop.f32.mrf.mxu3  ;;  %5417 = vmatpush.bf16.msrb.mxu3 %v10937_v58  ;;  %5506 = vmatpush.bf16.msra.mxu1 %v10983_v5 }
0x14e5   :  { %5525 = vmatpush.bf16.msra.mxu0 %v10991_v49  ;;  %5467 = vmatpush.bf16.msra.mxu2 %v10968_v12  ;;  %v3902_v28 = vadd.f32 %v3901_v16, %v13397_v55  ;;  %v3921_v23 = vadd.f32 %v3920_v45, %v13400_v54  ;;  %v10978_v16 = vld [vmem:[%s14732_s19 + $0x388] sm:$0xff] }
0x14e6   :  { %v10986_v45 = vld [vmem:[%s14732_s19 + $0x3c8] sm:$0xff] }
0x14e7   :  { %v3941_v35 = vpop.f32.mrf.mxu1  ;;  %v3960_v44 = vpop.f32.mrf.mxu0  ;;  %v4151_v47 = vmax.f32 %v3902_v28, 0.0  ;;  %v4152_v14 = vmax.f32 %v3921_v23, 0.0  ;;  %v10962_v28 = vld [vmem:[%s14732_s19 + $0x308] sm:$0xff] }
0x14e8   :  { %v3942_v25 = vadd.f32 %v3941_v35, %v13371_v42  ;;  %v3961_v51 = vadd.f32 %v3960_v44, %v13374_v4  ;;  %5486 = vmatpush.bf16.msra.mxu3 %v10976_v52  ;;  %5507 = vmatpush.bf16.msra.mxu1 %v10982_v59  ;;  %v10967_v42 = vld [vmem:[%s14732_s19 + $0x330] sm:$0xff]  ;;  %v10970_v23 = vld [vmem:[%s14732_s19 + $0x348] sm:$0xff] }
0x14e9   :  { %5526 = vmatpush.bf16.msra.mxu0 %v10990_v53  ;;  %v10975_v4 = vld [vmem:[%s14732_s19 + $0x370] sm:$0xff]  ;;  %5468 = vmatpush.bf16.msra.mxu2 %v10967_v42 }
0x14ea   :  { %v4169_v56 = vmax.f32 %v3942_v25, 0.0  ;;  %v4170_v24 = vmax.f32 %v3961_v51, 0.0  ;;  %v10963_v35 = vld [vmem:[%s14732_s19 + $0x310] sm:$0xff] }
0x14eb   :  { %v10971_v44 = vld [vmem:[%s14732_s19 + $0x350] sm:$0xff] }
0x14ec   :  { %v3903_v17 = vpop.f32.mrf.mxu2  ;;  %v3922_v20 = vpop.f32.mrf.mxu3  ;;  %v4201_v29 = vpack.c.bf16 %v4169_v56, %v4153_v46  ;;  %v4202_v62 = vpack.c.bf16 %v4170_v24, %v4154_v9  ;;  %5487 = vmatpush.bf16.msra.mxu3 %v10975_v4  ;;  %5508 = vmatpush.bf16.msra.mxu1 %v10981_v6  ;;  %v10977_v56 = vld [vmem:[%s14732_s19 + $0x380] sm:$0xff] }
0x14ed   :  { %v3904_v3 = vadd.f32 %v3903_v17, %v13397_v55  ;;  %v3923_v37 = vadd.f32 %v3922_v20, %v13400_v54  ;;  %v13491_v55 = vld [vmem:[%s14731_s18 + $0x8] sm:$0xff]  ;;  %5527 = vmatpush.bf16.msra.mxu0 %v10989_v19  ;;  %5469 = vmatpush.bf16.msra.mxu2 %v10966_v13  ;;  %v10985_v24 = vld [vmem:[%s14732_s19 + $0x3c0] sm:$0xff] }
0x14ee   :  { %5366 = vmatmul.bf16.gmra.mxu1 %v4201_v29  ;;  %5385 = vmatmul.bf16.gmra.mxu0 %v4202_v62  ;;  %v13500_v31 = vperm.slane %v13491_v55, 2  ;;  %v13503_v26 = vperm.slane %v13491_v55, 3  ;;  %v13526_v10 = vperm.slane %v13491_v55, 0  ;;  %v13529_v34 = vperm.slane %v13491_v55, 1  ;;  %v10961_v13 = vld [vmem:[%s14732_s19 + $0x300] sm:$0xff] }
0x14ef   :  { %v4167_v7 = vmax.f32 %v3904_v3, 0.0  ;;  %v4168_v61 = vmax.f32 %v3923_v37, 0.0  ;;  %v4010_v54 = vpop.f32.mrf.mxu1  ;;  %v4029_v27 = vpop.f32.mrf.mxu0 }
0x14f0   :  { %5488 = vmatpush.bf16.msra.mxu3 %v10974_v1  ;;  %5509 = vmatpush.bf16.msra.mxu1 %v10980_v60  ;;  %v4011_v39 = vadd.f32 %v4010_v54, %v13500_v31  ;;  %v4030_v2 = vadd.f32 %v4029_v27, %v13503_v26  ;;  %v10969_v1 = vld [vmem:[%s14732_s19 + $0x340] sm:$0xff] }
0x14f1   :  { %v4199_v32 = vpack.c.bf16 %v4167_v7, %v4151_v47  ;;  %v4200_v30 = vpack.c.bf16 %v4168_v61, %v4152_v14  ;;  %5528 = vmatpush.bf16.msra.mxu0 %v10988_v18  ;;  %5470 = vmatpush.bf16.msra.mxu2 %v10965_v21 }
0x14f2   :  { %v4125_v50 = vmax.f32 %v4011_v39, 0.0  ;;  %v4126_v40 = vmax.f32 %v4030_v2, 0.0 }
0x14f3   :  { %5328 = vmatmul.bf16.gmra.mxu2 %v4199_v32  ;;  %5347 = vmatmul.bf16.gmra.mxu3 %v4200_v30 }
0x14f4   :  { %v3972_v38 = vpop.f32.mrf.mxu2  ;;  %v3991_v15 = vpop.f32.mrf.mxu3  ;;  %5489 = vmatpush.bf16.msra.mxu3 %v10973_v0  ;;  %5510 = vmatpush.bf16.msra.mxu1 %v10979_v43 }
0x14f5   :  { %5529 = vmatpush.bf16.msra.mxu0 %v10987_v57  ;;  %5471 = vmatpush.bf16.msra.mxu2 %v10964_v33  ;;  %v3973_v25 = vadd.f32 %v3972_v38, %v13526_v10  ;;  %v3992_v51 = vadd.f32 %v3991_v15, %v13529_v34 }
0x14f7   :  { %v4012_v8 = vpop.f32.mrf.mxu1  ;;  %v4031_v58 = vpop.f32.mrf.mxu0  ;;  %v4123_v6 = vmax.f32 %v3973_v25, 0.0  ;;  %v4124_v19 = vmax.f32 %v3992_v51, 0.0 }
0x14f8   :  { %v4013_v5 = vadd.f32 %v4012_v8, %v13500_v31  ;;  %v4032_v49 = vadd.f32 %v4031_v58, %v13503_v26  ;;  %5490 = vmatpush.bf16.msra.mxu3 %v10972_v22  ;;  %5511 = vmatpush.bf16.msra.mxu1 %v10978_v16 }
0x14f9   :  { %5530 = vmatpush.bf16.msra.mxu0 %v10986_v45  ;;  %5472 = vmatpush.bf16.msra.mxu2 %v10963_v35  ;;  %v3697_v35 = vperm.slane %v13491_v55, 4 }
0x14fa   :  { %v4141_v12 = vmax.f32 %v4013_v5, 0.0  ;;  %v4142_v52 = vmax.f32 %v4032_v49, 0.0 }
0x14fc   :  { %v4189_v59 = vpack.c.bf16 %v4141_v12, %v4125_v50  ;;  %v4190_v53 = vpack.c.bf16 %v4142_v52, %v4126_v40  ;;  %v3974_v46 = vpop.f32.mrf.mxu2  ;;  %v3993_v9 = vpop.f32.mrf.mxu3  ;;  %5491 = vmatpush.bf16.msra.mxu3 %v10971_v44  ;;  %5512 = vmatpush.bf16.msra.mxu1 %v10977_v56  ;;  %v3699_v50 = vperm.slane %v13491_v55, 6  ;;  %v3700_v40 = vperm.slane %v13491_v55, 7 }
0x14fd   :  { %v3975_v42 = vadd.f32 %v3974_v46, %v13526_v10  ;;  %v3994_v4 = vadd.f32 %v3993_v9, %v13529_v34  ;;  %5531 = vmatpush.bf16.msra.mxu0 %v10985_v24  ;;  %5473 = vmatpush.bf16.msra.mxu2 %v10962_v28  ;;  %v3698_v44 = vperm.slane %v13491_v55, 5 }
0x14fe   :  { %5437 = vmatmul.bf16.vlgmr.msrb.gmra.mxu1 %v4189_v59  ;;  %5456 = vmatmul.bf16.vlgmr.msrb.gmra.mxu0 %v4190_v53 }
0x14ff   :  { %v4139_v17 = vmax.f32 %v3975_v42, 0.0  ;;  %v4140_v20 = vmax.f32 %v3994_v4, 0.0  ;;  %v4015_v29 = vpop.f32.mrf.mxu1  ;;  %v4034_v62 = vpop.f32.mrf.mxu0 }
0x1500   :  { %5492 = vmatpush.bf16.msra.mxu3 %v10970_v23  ;;  %v4016_v7 = vadd.f32 %v4015_v29, %v13500_v31  ;;  %v4035_v61 = vadd.f32 %v4034_v62, %v13503_v26 }
0x1501   :  { %v4187_v3 = vpack.c.bf16 %v4139_v17, %v4123_v6  ;;  %v4188_v37 = vpack.c.bf16 %v4140_v20, %v4124_v19  ;;  %5474 = vmatpush.bf16.msra.mxu2 %v10961_v13 }
0x1502   :  { %v4157_v32 = vmax.f32 %v4016_v7, 0.0  ;;  %v4158_v30 = vmax.f32 %v4035_v61, 0.0 }
0x1503   :  { %5399 = vmatmul.bf16.vlgmr.msrb.gmra.mxu2 %v4187_v3  ;;  %5418 = vmatmul.bf16.vlgmr.msrb.gmra.mxu3 %v4188_v37 }
0x1504   :  { %v3977_v47 = vpop.f32.mrf.mxu2  ;;  %v3996_v14 = vpop.f32.mrf.mxu3  ;;  %5493 = vmatpush.bf16.msra.mxu3 %v10969_v1 }
0x1505   :  { %v3978_v38 = vadd.f32 %v3977_v47, %v13526_v10  ;;  %v3997_v15 = vadd.f32 %v3996_v14, %v13529_v34 }
0x1507   :  { %v4017_v54 = vpop.f32.mrf.mxu1  ;;  %v4036_v27 = vpop.f32.mrf.mxu0 }
0x1508   :  { %v4018_v60 = vadd.f32 %v4017_v54, %v13500_v31  ;;  %v4037_v18 = vadd.f32 %v4036_v27, %v13503_v26  ;;  %v4155_v31 = vmax.f32 %v3978_v38, 0.0  ;;  %v4156_v26 = vmax.f32 %v3997_v15, 0.0 }
0x150a   :  { %v4173_v21 = vmax.f32 %v4018_v60, 0.0  ;;  %v4174_v0 = vmax.f32 %v4037_v18, 0.0 }
0x150c   :  { %v3979_v43 = vpop.f32.mrf.mxu2  ;;  %v3998_v57 = vpop.f32.mrf.mxu3  ;;  %v4205_v39 = vpack.c.bf16 %v4173_v21, %v4157_v32  ;;  %v4206_v2 = vpack.c.bf16 %v4174_v0, %v4158_v30 }
0x150d   :  { %v3980_v33 = vadd.f32 %v3979_v43, %v13526_v10  ;;  %v3999_v22 = vadd.f32 %v3998_v57, %v13529_v34 }
0x150e   :  { %5442 = vmatmul.bf16.gmra.mxu1 %v4205_v39  ;;  %5461 = vmatmul.bf16.gmra.mxu0 %v4206_v2 }
0x150f   :  { %v4171_v8 = vmax.f32 %v3980_v33, 0.0  ;;  %v4172_v58 = vmax.f32 %v3999_v22, 0.0  ;;  %v4086_v5 = vpop.f32.mrf.mxu1  ;;  %v4105_v49 = vpop.f32.mrf.mxu0 }
0x1510   :  { %v4087_v52 = vadd.f32 %v4086_v5, %v3699_v50  ;;  %v4106_v34 = vadd.f32 %v4105_v49, %v3700_v40 }
0x1511   :  { %v4203_v16 = vpack.c.bf16 %v4171_v8, %v4155_v31  ;;  %v4204_v45 = vpack.c.bf16 %v4172_v58, %v4156_v26 }
0x1512   :  { %v4129_v46 = vmax.f32 %v4087_v52, 0.0  ;;  %v4130_v9 = vmax.f32 %v4106_v34, 0.0 }
0x1513   :  { %5404 = vmatmul.bf16.gmra.mxu2 %v4203_v16  ;;  %5423 = vmatmul.bf16.gmra.mxu3 %v4204_v45 }
0x1514   :  { %v4048_v12 = vpop.f32.mrf.mxu2  ;;  %v4067_v10 = vpop.f32.mrf.mxu3 }
0x1515   :  { %v4049_v42 = vadd.f32 %v4048_v12, %v3697_v35  ;;  %v4068_v4 = vadd.f32 %v4067_v10, %v3698_v44 }
0x1517   :  { %v4088_v25 = vpop.f32.mrf.mxu1  ;;  %v4107_v51 = vpop.f32.mrf.mxu0  ;;  %v4127_v29 = vmax.f32 %v4049_v42, 0.0  ;;  %v4128_v55 = vmax.f32 %v4068_v4, 0.0 }
0x1518   :  { %v4089_v59 = vadd.f32 %v4088_v25, %v3699_v50  ;;  %v4108_v53 = vadd.f32 %v4107_v51, %v3700_v40 }
0x151a   :  { %v4145_v56 = vmax.f32 %v4089_v59, 0.0  ;;  %v4146_v24 = vmax.f32 %v4108_v53, 0.0 }
0x151c   :  { %v4193_v28 = vpack.c.bf16 %v4145_v56, %v4129_v46  ;;  %v4194_v23 = vpack.c.bf16 %v4146_v24, %v4130_v9  ;;  %v4050_v6 = vpop.f32.mrf.mxu2  ;;  %v4069_v19 = vpop.f32.mrf.mxu3 }
0x151d   :  { %v4051_v17 = vadd.f32 %v4050_v6, %v3697_v35  ;;  %v4070_v20 = vadd.f32 %v4069_v19, %v3698_v44 }
0x151e   :  { %5513 = vmatmul.bf16.vlgmr.msra.gmra.mxu1 %v4193_v28  ;;  %5532 = vmatmul.bf16.vlgmr.msra.gmra.mxu0 %v4194_v23 }
0x151f   :  { %v4143_v62 = vmax.f32 %v4051_v17, 0.0  ;;  %v4144_v3 = vmax.f32 %v4070_v20, 0.0  ;;  %v4091_v37 = vpop.f32.mrf.mxu1  ;;  %v4110_v13 = vpop.f32.mrf.mxu0 }
0x1520   :  { %v4092_v61 = vadd.f32 %v4091_v37, %v3699_v50  ;;  %v4111_v54 = vadd.f32 %v4110_v13, %v3700_v40  ;;  %v11149_v13 = vld [vmem:[%s14733_s20] ss:$0 sm:$0xff] }
0x1521   :  { %v4191_v1 = vpack.c.bf16 %v4143_v62, %v4127_v29  ;;  %v4192_v47 = vpack.c.bf16 %v4144_v3, %v4128_v55 }
0x1522   :  { %v4161_v30 = vmax.f32 %v4092_v61, 0.0  ;;  %v4162_v21 = vmax.f32 %v4111_v54, 0.0 }
0x1523   :  { %5475 = vmatmul.bf16.vlgmr.msra.gmra.mxu2 %v4191_v1  ;;  %5494 = vmatmul.bf16.vlgmr.msra.gmra.mxu3 %v4192_v47 }
0x1524   :  { %v4053_v14 = vpop.f32.mrf.mxu2  ;;  %v4072_v7 = vpop.f32.mrf.mxu3 }
0x1525   :  { %v4054_v15 = vadd.f32 %v4053_v14, %v3697_v35  ;;  %v4073_v43 = vadd.f32 %v4072_v7, %v3698_v44 }
0x1527   :  { %v4093_v27 = vpop.f32.mrf.mxu1  ;;  %v4112_v60 = vpop.f32.mrf.mxu0  ;;  %v4159_v26 = vmax.f32 %v4054_v15, 0.0  ;;  %v4160_v8 = vmax.f32 %v4073_v43, 0.0 }
0x1528   :  { %v4094_v18 = vadd.f32 %v4093_v27, %v3699_v50  ;;  %v4113_v32 = vadd.f32 %v4112_v60, %v3700_v40 }
0x152a   :  { %v4177_v0 = vmax.f32 %v4094_v18, 0.0  ;;  %v4178_v38 = vmax.f32 %v4113_v32, 0.0 }
0x152c   :  { %v4055_v57 = vpop.f32.mrf.mxu2  ;;  %v4074_v39 = vpop.f32.mrf.mxu3  ;;  %v4209_v2 = vpack.c.bf16 %v4177_v0, %v4161_v30  ;;  %v4210_v33 = vpack.c.bf16 %v4178_v38, %v4162_v21 }
0x152d   :  { %v4056_v22 = vadd.f32 %v4055_v57, %v3697_v35  ;;  %v4075_v31 = vadd.f32 %v4074_v39, %v3698_v44 }
0x152e   :  { %5518 = vmatmul.bf16.gmra.mxu1 %v4209_v2  ;;  %5537 = vmatmul.bf16.gmra.mxu0 %v4210_v33 }
0x152f   :  { %v4175_v58 = vmax.f32 %v4056_v22, 0.0  ;;  %v4176_v5 = vmax.f32 %v4075_v31, 0.0 }
0x1531   :  { %v4207_v49 = vpack.c.bf16 %v4175_v58, %v4159_v26  ;;  %v4208_v16 = vpack.c.bf16 %v4176_v5, %v4160_v8 }
0x1533   :  { %5480 = vmatmul.bf16.gmra.mxu2 %v4207_v49  ;;  %5499 = vmatmul.bf16.gmra.mxu3 %v4208_v16 }
0x153b   :  { %v5286_v45 = vpop.f32.mrf.mxu1  ;;  %v5305_v50 = vpop.f32.mrf.mxu0 }
0x1543   :  { %v5288_v40 = vpop.f32.mrf.mxu1  ;;  %v5307_v12 = vpop.f32.mrf.mxu0 }
0x1546   :  { %v5248_v10 = vpop.f32.mrf.mxu2  ;;  %v5267_v52 = vpop.f32.mrf.mxu3 }
0x1547   :  { %v5249_v47 = vadd.f32 %v11149_v13, %v5248_v10 }
0x1549   :  { %v5268_v54 = vadd.f32 %v5267_v52, %v5249_v47 }
0x154b   :  { %v5291_v34 = vpop.f32.mrf.mxu1  ;;  %v5310_v25 = vpop.f32.mrf.mxu0  ;;  %v5287_v27 = vadd.f32 %v5286_v45, %v5268_v54 }
0x154d   :  { %v5306_v38 = vadd.f32 %v5305_v50, %v5287_v27 }
0x154e   :  { %v5250_v35 = vpop.f32.mrf.mxu2  ;;  %v5269_v44 = vpop.f32.mrf.mxu3 }
0x154f   :  { %v5251_v60 = vadd.f32 %v11149_v13, %v5250_v35 }
0x1551   :  { %v5270_v0 = vadd.f32 %v5269_v44, %v5251_v60 }
0x1553   :  { %v5293_v51 = vpop.f32.mrf.mxu1  ;;  %v13579_v59 = vpop.f32.mrf.mxu0  ;;  %v5289_v43 = vadd.f32 %v5288_v40, %v5270_v0 }
0x1555   :  { %v5308_v26 = vadd.f32 %v5307_v12, %v5289_v43 }
0x1556   :  { %v5253_v53 = vpop.f32.mrf.mxu2  ;;  %v5272_v46 = vpop.f32.mrf.mxu3 }
0x1557   :  { %v5254_v57 = vadd.f32 %v11149_v13, %v5253_v53 }
0x1559   :  { %v5273_v31 = vadd.f32 %v5272_v46, %v5254_v57 }
0x155b   :  { %v5362_v9 = vpop.f32.mrf.mxu1  ;;  %v5381_v56 = vpop.f32.mrf.mxu0  ;;  %v5292_v49 = vadd.f32 %v5291_v34, %v5273_v31 }
0x155d   :  { %v5311_v50 = vadd.f32 %v5310_v25, %v5292_v49 }
0x155e   :  { %v5255_v24 = vpop.f32.mrf.mxu2  ;;  %v5274_v42 = vpop.f32.mrf.mxu3 }
0x155f   :  { %v5256_v16 = vadd.f32 %v11149_v13, %v5255_v24 }
0x1561   :  { %v5275_v44 = vadd.f32 %v5274_v42, %v5256_v16 }
0x1563   :  { %v5364_v4 = vpop.f32.mrf.mxu1  ;;  %v5383_v28 = vpop.f32.mrf.mxu0 }
0x1566   :  { %v5324_v23 = vpop.f32.mrf.mxu2  ;;  %v5343_v6 = vpop.f32.mrf.mxu3 }
0x1567   :  { %v5325_v15 = vadd.f32 %v5324_v23, %v5306_v38 }
0x1569   :  { %v5344_v33 = vadd.f32 %v5343_v6, %v5325_v15  ;;  %v5294_v6 = vadd.f32 %v5293_v51, %v5275_v44 }
0x156b   :  { %v5367_v19 = vpop.f32.mrf.mxu1  ;;  %v13581_v17 = vpop.f32.mrf.mxu0  ;;  %v5363_v58 = vadd.f32 %v5362_v9, %v5344_v33  ;;  %v5313_v34 = vadd.f32 %v13579_v59, %v5294_v6 }
0x156d   :  { %v5382_v35 = vadd.f32 %v5381_v56, %v5363_v58 }
0x156e   :  { %v5326_v20 = vpop.f32.mrf.mxu2  ;;  %v5345_v29 = vpop.f32.mrf.mxu3 }
0x156f   :  { %v5327_v5 = vadd.f32 %v5326_v20, %v5308_v26 }
0x1571   :  { %v5346_v52 = vadd.f32 %v5345_v29, %v5327_v5 }
0x1573   :  { %v13583_v55 = vpop.f32.mrf.mxu1  ;;  %v13585_v62 = vpop.f32.mrf.mxu0  ;;  %v5365_v53 = vadd.f32 %v5364_v4, %v5346_v52 }
0x1575   :  { %v5384_v9 = vadd.f32 %v5383_v28, %v5365_v53 }
0x1576   :  { %v5329_v3 = vpop.f32.mrf.mxu2  ;;  %v5348_v37 = vpop.f32.mrf.mxu3 }
0x1577   :  { %v5330_v47 = vadd.f32 %v5329_v3, %v5311_v50 }
0x1579   :  { %v5349_v60 = vadd.f32 %v5348_v37, %v5330_v47 }
0x157b   :  { %v5438_v1 = vpop.f32.mrf.mxu1  ;;  %v5457_v14 = vpop.f32.mrf.mxu0  ;;  %v5368_v13 = vadd.f32 %v5367_v19, %v5349_v60 }
0x157d   :  { %v5387_v51 = vadd.f32 %v13581_v17, %v5368_v13 }
0x157e   :  { %v5331_v7 = vpop.f32.mrf.mxu2  ;;  %v5350_v61 = vpop.f32.mrf.mxu3 }
0x157f   :  { %v5332_v29 = vadd.f32 %v5331_v7, %v5313_v34 }
0x1581   :  { %v5351_v3 = vadd.f32 %v5350_v61, %v5332_v29 }
0x1583   :  { %v5440_v18 = vpop.f32.mrf.mxu1  ;;  %v5459_v21 = vpop.f32.mrf.mxu0  ;;  %v5370_v28 = vadd.f32 %v13583_v55, %v5351_v3 }
0x1586   :  { %v5400_v32 = vpop.f32.mrf.mxu2  ;;  %v5419_v30 = vpop.f32.mrf.mxu3 }
0x1587   :  { %v5401_v23 = vadd.f32 %v5400_v32, %v5382_v35 }
0x1589   :  { %v5420_v27 = vadd.f32 %v5419_v30, %v5401_v23 }
0x158b   :  { %v5443_v22 = vpop.f32.mrf.mxu1  ;;  %v5462_v8 = vpop.f32.mrf.mxu0  ;;  %v5439_v24 = vadd.f32 %v5438_v1, %v5420_v27 }
0x158d   :  { %v5458_v32 = vadd.f32 %v5457_v14, %v5439_v24  ;;  %v5389_v14 = vadd.f32 %v13585_v62, %v5370_v28 }
0x158e   :  { %v5402_v39 = vpop.f32.mrf.mxu2  ;;  %v5421_v2 = vpop.f32.mrf.mxu3 }
0x158f   :  { %v5403_v20 = vadd.f32 %v5402_v39, %v5384_v9 }
0x1591   :  { %v5422_v42 = vadd.f32 %v5421_v2, %v5403_v20 }
0x1593   :  { %v5445_v40 = vpop.f32.mrf.mxu1  ;;  %v5464_v54 = vpop.f32.mrf.mxu0  ;;  %v5441_v38 = vadd.f32 %v5440_v18, %v5422_v42 }
0x1595   :  { %v5460_v19 = vadd.f32 %v5459_v21, %v5441_v38 }
0x1596   :  { %v5405_v45 = vpop.f32.mrf.mxu2  ;;  %v5424_v10 = vpop.f32.mrf.mxu3 }
0x1597   :  { %v5406_v15 = vadd.f32 %v5405_v45, %v5387_v51 }
0x1599   :  { %v5425_v1 = vadd.f32 %v5424_v10, %v5406_v15 }
0x159b   :  { %v5514_v56 = vpop.f32.mrf.mxu1  ;;  %v5533_v25 = vpop.f32.mrf.mxu0  ;;  %v5444_v17 = vadd.f32 %v5443_v22, %v5425_v1  ;;  %v9902_v1 = vld [vmem:[%s14726_s13 + $0x60] sm:$0xff] }
0x159c   :  { %5693 = vmatpush.msrb.mxu2 %v9902_v1  ;;  %v11152_v1 = vld [vmem:[%s14727_s14 + $0x14] ss:$0 sm:$0xff] }
0x159d   :  { %v5463_v5 = vadd.f32 %v5462_v8, %v5444_v17 }
0x159e   :  { %v5407_v46 = vpop.f32.mrf.mxu2  ;;  %v5426_v12 = vpop.f32.mrf.mxu3 }
0x159f   :  { %v5408_v31 = vadd.f32 %v5407_v46, %v5389_v14 }
0x15a1   :  { %v5427_v58 = vadd.f32 %v5426_v12, %v5408_v31 }
0x15a3   :  { %v5516_v43 = vpop.f32.mrf.mxu1  ;;  %v5535_v33 = vpop.f32.mrf.mxu0  ;;  %v5446_v52 = vadd.f32 %v5445_v40, %v5427_v58 }
0x15a5   :  { %v5465_v50 = vadd.f32 %v5464_v54, %v5446_v52  ;;  %v11151_v52 = vld [vmem:[%s14734_s21 + $0x3] ss:$0 sm:$0xff] }
0x15a6   :  { %v5476_v0 = vpop.f32.mrf.mxu2  ;;  %v5495_v4 = vpop.f32.mrf.mxu3 }
0x15a7   :  { %v5477_v30 = vadd.f32 %v5476_v0, %v5458_v32 }
0x15a9   :  { %v5496_v37 = vadd.f32 %v5495_v4, %v5477_v30 }
0x15ab   :  { %v5515_v59 = vadd.f32 %v5514_v56, %v5496_v37  ;;  %v5519_v62 = vpop.f32.mrf.mxu1  ;;  %v5538_v22 = vpop.f32.mrf.mxu0 }
0x15ad   :  { %v5534_v7 = vadd.f32 %v5533_v25, %v5515_v59  ;;  %v9908_v59 = vld [vmem:[%s14726_s13 + $0x80] sm:$0xff] }
0x15ae   :  { %v5478_v57 = vpop.f32.mrf.mxu2  ;;  %v5497_v39 = vpop.f32.mrf.mxu3  ;;  %5729 = vmatpush.msrb.mxu3 %v9908_v59 }
0x15af   :  { %v5479_v2 = vadd.f32 %v5478_v57, %v5460_v19  ;;  %v5543_v61 = vadd.f32 %v5534_v7, %v12995_v63 }
0x15b1   :  { %v5498_v18 = vadd.f32 %v5497_v39, %v5479_v2  ;;  %v5551_v26 = vsel %vm161_vm1, %v5543_v61, 0.0 }
0x15b2   :  { %5552 = vadd.xlane.f32.xlu1 %v5551_v26 }
0x15b3   :  { %v5517_v55 = vadd.f32 %v5516_v43, %v5498_v18  ;;  %v5521_v12 = vpop.f32.mrf.mxu1  ;;  %v5540_v40 = vpop.f32.mrf.mxu0  ;;  %v9914_v43 = vld [vmem:[%s14726_s13 + $0xa0] sm:$0xff] }
0x15b4   :  { %5765 = vmatpush.msrb.mxu1 %v9914_v43 }
0x15b5   :  { %v5536_v49 = vadd.f32 %v5535_v33, %v5517_v55 }
0x15b6   :  { %v5481_v21 = vpop.f32.mrf.mxu2  ;;  %v5500_v16 = vpop.f32.mrf.mxu3 }
0x15b7   :  { %v5482_v45 = vadd.f32 %v5481_v21, %v5463_v5  ;;  %v5544_v10 = vadd.f32 %v5536_v49, %v12997_v11 }
0x15b9   :  { %v5501_v35 = vadd.f32 %v5500_v16, %v5482_v45  ;;  %v5554_v63 = vsel %vm161_vm1, %v5544_v10, 0.0  ;;  %v11150_v16 = vld [vmem:[%s14734_s21 + $0x2] ss:$0 sm:$0xff] }
0x15ba   :  { %5555 = vadd.xlane.f32.xlu2 %v5554_v63 }
0x15bb   :  { %v5520_v44 = vadd.f32 %v5519_v62, %v5501_v35  ;;  %v9939_v62 = vld [vmem:[%s14726_s13 + $0x68] sm:$0xff] }
0x15bc   :  { %5996 = vmatpush.msra.mxu1 %v9939_v62 }
0x15bd   :  { %v5539_v23 = vadd.f32 %v5538_v22, %v5520_v44 }
0x15be   :  { %v5483_v53 = vpop.f32.mrf.mxu2  ;;  %v5502_v6 = vpop.f32.mrf.mxu3 }
0x15bf   :  { %v5484_v47 = vadd.f32 %v5483_v53, %v5465_v50  ;;  %v5545_v8 = vadd.f32 %v5539_v23, %v13013_v48 }
0x15c1   :  { %v5503_v27 = vadd.f32 %v5502_v6, %v5484_v47  ;;  %v5557_v46 = vsel %vm161_vm1, %v5545_v8, 0.0 }
0x15c2   :  { %5558 = vadd.xlane.f32.xlu0 %v5557_v46 }
0x15c3   :  { %v5522_v11 = vadd.f32 %v5521_v12, %v5503_v27 }
0x15c5   :  { %v5541_v60 = vadd.f32 %v5540_v40, %v5522_v11 }
0x15c7   :  { %v5546_v9 = vadd.f32 %v5541_v60, %v13015_v36 }
0x15c9   :  { %v5560_v34 = vsel %vm3570_vm10, %v5546_v9, 0.0 }
0x15ca   :  { %5561 = vadd.xlane.f32.xlu1 %v5560_v34 }
0x1625   :  { %v5553_v54 = vpop.xlane.xlu1 %5552 }
0x1626   :  { %v5563_v24 = vmul.f32 %v5553_v54, %v12937_v41 }
0x1628   :  { %v5567_v20 = vsub.f32 %v5543_v61, %v5563_v24 }
0x162a   :  { %v5571_v13 = vmul.f32 %v5567_v20, %v5567_v20 }
0x162c   :  { %v5575_v48 = vsel %vm161_vm1, %v5571_v13, 0.0 }
0x162d   :  { %v5556_v29 = vpop.xlane.xlu2 %5555  ;;  %5576 = vadd.xlane.f32.xlu2 %v5575_v48 }
0x162e   :  { %v5564_v56 = vmul.f32 %v5556_v29, %v12937_v41 }
0x1630   :  { %v13605_v42 = vsub.f32 %v5544_v10, %v5564_v56 }
0x1632   :  { %v5572_v25 = vmul.f32 %v13605_v42, %v13605_v42 }
0x1634   :  { %v5578_v36 = vsel %vm161_vm1, %v5572_v25, 0.0 }
0x1635   :  { %5579 = vadd.xlane.f32.xlu0 %v5578_v36  ;;  %v5559_v32 = vpop.xlane.xlu0 %5558 }
0x1636   :  { %v5565_v0 = vmul.f32 %v5559_v32, %v12937_v41 }
0x1638   :  { %v13611_v4 = vsub.f32 %v5545_v8, %v5565_v0 }
0x163a   :  { %v5573_v3 = vmul.f32 %v13611_v4, %v13611_v4 }
0x163c   :  { %v5581_v51 = vsel %vm161_vm1, %v5573_v3, 0.0 }
0x163d   :  { %v5562_v30 = vpop.xlane.xlu1 %5561  ;;  %5582 = vadd.xlane.f32.xlu1 %v5581_v51 }
0x163e   :  { %v5566_v38 = vmul.f32 %v5562_v30, %v12937_v41 }
0x1640   :  { %v13617_v15 = vsub.f32 %v5546_v9, %v5566_v38 }
0x1642   :  { %v5574_v37 = vmul.f32 %v13617_v15, %v13617_v15 }
0x1644   :  { %v5584_v28 = vsel %vm3570_vm10, %v5574_v37, 0.0 }
0x1645   :  { %5585 = vadd.xlane.f32.xlu2 %v5584_v28 }
0x16a0   :  { %v5577_v19 = vpop.xlane.xlu2 %5576 }
0x16a1   :  { %v5587_v7 = vmul.f32 %v5577_v19, %v12937_v41 }
0x16a3   :  { %v5591_v57 = vadd.f32 1e-05, %v5587_v7 }
0x16a5   :  { %11372 = vrsqrt.f32 %v5591_v57  ;;  %vm5601_vm6 = vweird.f32 %v5591_v57 }
0x16a8   :  { %v5580_v39 = vpop.xlane.xlu0 %5579 }
0x16a9   :  { %v5588_v14 = vmul.f32 %v5580_v39, %v12937_v41 }
0x16ab   :  { %v11373_v2 = vpop.eup %11372  ;;  %v5592_v61 = vadd.f32 1e-05, %v5588_v14 }
0x16ac   :  { %v5596_v33 = vmul.f32 %v11373_v2, %v5591_v57  ;;  %vm5602_vm5 = vweird.f32 %v11373_v2  ;;  %v11154_v57 = vld [vmem:[%s14727_s14 + $0x10] ss:$0 sm:$0xff] }
0x16ad   :  { %11374 = vrsqrt.f32 %v5592_v61  ;;  %vm5603_vm7 = vmor %vm5601_vm6, %vm5602_vm5  ;;  %vm5611_vm12 = vweird.f32 %v5592_v61 }
0x16ae   :  { %v5597_v17 = vmul.f32 %v11373_v2, %v5596_v33 }
0x16b0   :  { %v5598_v31 = vmul.f32 0.5, %v5597_v17  ;;  %v5583_v18 = vpop.xlane.xlu1 %5582 }
0x16b1   :  { %v5589_v26 = vmul.f32 %v5583_v18, %v12937_v41 }
0x16b2   :  { %v5599_v55 = vsub.f32 1.5, %v5598_v31  ;;  %v11153_v31 = vld [vmem:[%s14727_s14 + $0xc] ss:$0 sm:$0xff] }
0x16b3   :  { %v11375_v58 = vpop.eup %11374  ;;  %v5593_v5 = vadd.f32 1e-05, %v5589_v26 }
0x16b4   :  { %v5600_v49 = vmul.f32 %v11373_v2, %v5599_v55  ;;  %v5606_v21 = vmul.f32 %v11375_v58, %v5592_v61  ;;  %vm5612_vm11 = vweird.f32 %v11375_v58 }
0x16b5   :  { %11376 = vrsqrt.f32 %v5593_v5  ;;  %vm5613_vm13 = vmor %vm5611_vm12, %vm5612_vm11  ;;  %vm5621_vm15 = vweird.f32 %v5593_v5 }
0x16b6   :  { %v5604_v45 = vsel %vm5603_vm7, %v11373_v2, %v5600_v49  ;;  %v5607_v10 = vmul.f32 %v11375_v58, %v5606_v21 }
0x16b7   :  { %v5635_v35 = vmul.f32 %v5604_v45, %v5567_v20 }
0x16b8   :  { %v5608_v63 = vmul.f32 0.5, %v5607_v10  ;;  %v5586_v22 = vpop.xlane.xlu2 %5585 }
0x16b9   :  { %v5642_v44 = vmul.f32 %v11150_v16, %v5635_v35  ;;  %v5590_v50 = vmul.f32 %v5586_v22, %v12937_v41 }
0x16ba   :  { %v5609_v23 = vsub.f32 1.5, %v5608_v63 }
0x16bb   :  { %v11377_v53 = vpop.eup %11376  ;;  %v13644_v47 = vadd.f32 %v11151_v52, %v5642_v44  ;;  %v5594_v8 = vadd.f32 1e-05, %v5590_v50  ;;  %v13719_v44 = vld [vmem:[%s14725_s12] sm:$0xff] }
0x16bc   :  { %v5610_v6 = vmul.f32 %v11375_v58, %v5609_v23  ;;  %v5616_v27 = vmul.f32 %v11377_v53, %v5593_v5  ;;  %vm5622_vm14 = vweird.f32 %v11377_v53  ;;  %v9945_v5 = vld [vmem:[%s14726_s13 + $0x88] sm:$0xff] }
0x16bd   :  { %11378 = vrsqrt.f32 %v5594_v8  ;;  %9904 = vmatmul.msk.f32.vlgmr.msrb.gmra.mxu2 %vm161_vm1, %v13644_v47  ;;  %9910 = vmatmul.msk.f32.vlgmr.msrb.gmra.mxu3 %vm161_vm1, %v13644_v47  ;;  %vm5623_vm5 = vmor %vm5621_vm15, %vm5622_vm14  ;;  %vm5631_vm7 = vweird.f32 %v5594_v8 }
0x16be   :  { %v5614_v46 = vsel %vm5613_vm13, %v11375_v58, %v5610_v6  ;;  %v5617_v12 = vmul.f32 %v11377_v53, %v5616_v27  ;;  %9916 = vmatmul.msk.f32.vlgmr.msrb.gmra.mxu1 %vm161_vm1, %v13644_v47 }
0x16bf   :  { %v5636_v11 = vmul.f32 %v5614_v46, %v13605_v42 }
0x16c0   :  { %v5618_v40 = vmul.f32 0.5, %v5617_v12  ;;  %v13733_v12 = vld [vmem:[%s14725_s12 + $0x10] sm:$0xff] }
0x16c1   :  { %v5643_v60 = vmul.f32 %v11150_v16, %v5636_v11 }
0x16c2   :  { %v5619_v9 = vsub.f32 1.5, %v5618_v40 }
0x16c3   :  { %v11379_v34 = vpop.eup %11378  ;;  %v13653_v54 = vadd.f32 %v11151_v52, %v5643_v60 }
0x16c4   :  { %v5620_v24 = vmul.f32 %v11377_v53, %v5619_v9  ;;  %v5626_v20 = vmul.f32 %v11379_v34, %v5594_v8  ;;  %vm5632_vm6 = vweird.f32 %v11379_v34  ;;  %v13726_v8 = vld [vmem:[%s14725_s12 + $0x8] sm:$0xff]  ;;  %v13740_v9 = vld [vmem:[%s14725_s12 + $0x18] sm:$0x3f]  ;;  %s11554_s12 = smov [#allocation2]  }
0x16c5   :  { %9905 = vmatmul.msk.f32.gmra.mxu2 %vm161_vm1, %v13653_v54  ;;  %9911 = vmatmul.msk.f32.gmra.mxu3 %vm161_vm1, %v13653_v54  ;;  %vm5633_vm11 = vmor %vm5631_vm7, %vm5632_vm6  ;;  %s9005_s8 = sshll.u32 %s11554_s12, 4  ;;  %s9006_s8 = int_to_ptr.vmem [resolvable:$true] %s9005_s8 }
0x16c6   :  { %v5624_v13 = vsel %vm5623_vm5, %v11377_v53, %v5620_v24  ;;  %v5627_v48 = vmul.f32 %v11379_v34, %v5626_v20  ;;  %9917 = vmatmul.msk.f32.gmra.mxu1 %vm161_vm1, %v13653_v54  ;;  %v9933_v24 = vld [vmem:[%s14728_s15 + $0x8] sm:$0x3] }
0x16c7   :  { %v5637_v29 = vmul.f32 %v5624_v13, %v13611_v4  ;;  %9934 = vmatpush.msk.msra.mxu3 %vm2608_vm9, %v9933_v24  ;;  %9013 = dma.vmem_to_hbm [thread:$0]  %s9006_s8, 256, %s9008_s7, [#allocation3], %s11555_s4, %s11555_s4, %s11556_s0  }
0x16c8   :  { %v5628_v56 = vmul.f32 0.5, %v5627_v48 }
0x16c9   :  { %v5644_v42 = vmul.f32 %v11150_v16, %v5637_v29 }
0x16ca   :  { %v5629_v25 = vsub.f32 1.5, %v5628_v56  ;;  %v11156_v56 = vld [vmem:[%s14727_s14 + $0x11] ss:$0 sm:$0xff] }
0x16cb   :  { %v13662_v36 = vadd.f32 %v11151_v52, %v5644_v42 }
0x16cc   :  { %v5630_v32 = vmul.f32 %v11379_v34, %v5629_v25 }
0x16cd   :  { %9906 = vmatmul.msk.f32.gmra.mxu2 %vm161_vm1, %v13662_v36  ;;  %9912 = vmatmul.msk.f32.gmra.mxu3 %vm161_vm1, %v13662_v36 }
0x16ce   :  { %v5634_v0 = vsel %vm5633_vm11, %v11379_v34, %v5630_v32  ;;  %9918 = vmatmul.msk.f32.gmra.mxu1 %vm161_vm1, %v13662_v36 }
0x16cf   :  { %v5638_v4 = vmul.f32 %v5634_v0, %v13617_v15 }
0x16d1   :  { %v5645_v3 = vmul.f32 %v11150_v16, %v5638_v4 }
0x16d3   :  { %v13671_v51 = vadd.f32 %v11151_v52, %v5645_v3 }
0x16d5   :  { %9907 = vmatmul.msk.f32.gmra.mxu2 %vm161_vm1, %v13671_v51  ;;  %9913 = vmatmul.msk.f32.gmra.mxu3 %vm161_vm1, %v13671_v51 }
0x16d6   :  { %9919 = vmatmul.msk.f32.gmra.mxu1 %vm161_vm1, %v13671_v51 }
0x16de   :  { %9941 = vmatmul.msk.f32.vlgmr.msra.gmra.mxu1 %vm161_vm1, %v13644_v47 }
0x16e6   :  { %9942 = vmatmul.msk.f32.gmra.mxu1 %vm161_vm1, %v13653_v54 }
0x16ee   :  { %9943 = vmatmul.msk.f32.gmra.mxu1 %vm161_vm1, %v13662_v36 }
0x16f6   :  { %9944 = vmatmul.msk.f32.gmra.mxu1 %vm161_vm1, %v13671_v51 }
0x173b   :  { %v5767_v30 = vpop.f32.mrf.mxu1 }
0x173c   :  { %v5768_v61 = vadd.f32 %v11152_v1, %v5767_v30 }
0x1740   :  { %v5731_v38 = vpop.f32.mrf.mxu3  ;;  %v5695_v33 = vpop.f32.mrf.mxu2 }
0x1741   :  { %v5696_v26 = vadd.f32 %v11153_v31, %v5695_v33  ;;  %v5732_v55 = vadd.f32 %v11154_v57, %v5731_v38 }
0x1743   :  { %v5770_v15 = vpop.f32.mrf.mxu1  ;;  %v5779_v49 = vmul.f32 0.70710677, %v5696_v26 }
0x1744   :  { %v5771_v39 = vadd.f32 %v11152_v1, %v5770_v15 }
0x1748   :  { %v5734_v37 = vpop.f32.mrf.mxu3  ;;  %v5698_v58 = vpop.f32.mrf.mxu2 }
0x1749   :  { %v5735_v18 = vadd.f32 %v11154_v57, %v5734_v37  ;;  %v5699_v21 = vadd.f32 %v11153_v31, %v5698_v58 }
0x174b   :  { %v5773_v28 = vpop.f32.mrf.mxu1  ;;  %v5780_v45 = vmul.f32 0.70710677, %v5699_v21 }
0x174c   :  { %v5774_v7 = vadd.f32 %v11152_v1, %v5773_v28 }
0x1750   :  { %v5737_v59 = vpop.f32.mrf.mxu3  ;;  %v5701_v16 = vpop.f32.mrf.mxu2 }
0x1751   :  { %v5738_v17 = vadd.f32 %v11154_v57, %v5737_v59  ;;  %v5702_v10 = vadd.f32 %v11153_v31, %v5701_v16 }
0x1753   :  { %v5776_v43 = vpop.f32.mrf.mxu1  ;;  %v5781_v62 = vmul.f32 0.70710677, %v5702_v10 }
0x1754   :  { %v5777_v19 = vadd.f32 %v11152_v1, %v5776_v43 }
0x1756   :  { %9928 = vmatpush.msk.msra.mxu2 %vm2562_vm0, %v5777_v19 }
0x1758   :  { %5908 = vmatpush.msra.mxu2 %v5774_v7  ;;  %v5740_v14 = vpop.f32.mrf.mxu3  ;;  %v5704_v52 = vpop.f32.mrf.mxu2 }
0x1759   :  { %v5741_v2 = vadd.f32 %v11154_v57, %v5740_v14  ;;  %v5705_v35 = vadd.f32 %v11153_v31, %v5704_v52 }
0x175a   :  { %5909 = vmatpush.msra.mxu2 %v5771_v39 }
0x175b   :  { %9920 = vmatpush.xpose.msk.msrb.mxu0 %vm2450_vm4, %v5741_v2  ;;  %v5782_v63 = vmul.f32 0.70710677, %v5705_v35 }
0x175c   :  { %5910 = vmatpush.msra.mxu2 %v5768_v61 }
0x175f   :  { %9921 = vmatpush.xpose.msk.msrb.mxu0 %vm2450_vm4, %v5738_v17 }
0x1763   :  { %9922 = vmatpush.xpose.msk.msrb.mxu0 %vm2450_vm4, %v5735_v18 }
0x1767   :  { %9923 = vmatpush.xpose.msk.msrb.mxu0 %vm2450_vm4, %v5732_v55  ;;  %v9951_v55 = vld [vmem:[%s14726_s13 + $0xa8] sm:$0xff] }
0x1768   :  { %6068 = vmatpush.msrb.mxu2 %v9951_v55  ;;  %v9970_v55 = vld [vmem:[%s14728_s15 + $0xa] sm:$0x3] }
0x176a   :  { %9924 = vmatmul.msk.f32.vlgmr.msrb.gmra.mxu0 %vm2450_vm4, %v5779_v49 }
0x176b   :  { %6032 = vmatpush.msra.mxu0 %v9945_v5 }
0x176d   :  { %9971 = vmatpush.msk.msrb.mxu0 %vm2608_vm9, %v9970_v55 }
0x1772   :  { %9925 = vmatmul.msk.f32.gmra.mxu0 %vm2450_vm4, %v5780_v45 }
0x177a   :  { %9926 = vmatmul.msk.f32.gmra.mxu0 %vm2450_vm4, %v5781_v62 }
0x1782   :  { %9927 = vmatmul.msk.f32.gmra.mxu0 %vm2450_vm4, %v5782_v63 }
0x178a   :  { %9947 = vmatmul.msk.f32.vlgmr.msra.gmra.mxu0 %vm161_vm1, %v13644_v47 }
0x1792   :  { %9948 = vmatmul.msk.f32.gmra.mxu0 %vm161_vm1, %v13653_v54 }
0x179a   :  { %9949 = vmatmul.msk.f32.gmra.mxu0 %vm161_vm1, %v13662_v36 }
0x17a2   :  { %9950 = vmatmul.msk.f32.gmra.mxu0 %vm161_vm1, %v13671_v51 }
0x17e7   :  { %v5824_v22 = vpop.f32.mrf.mxu0 }
0x17e8   :  { %v5825_v50 = vadd.f32 %v13719_v44, %v5824_v22  ;;  %v9976_v22 = vld [vmem:[%s14726_s13 + $0x70] sm:$0xff] }
0x17ea   :  { %v5836_v23 = vsel %vm2504_vm8, %v5825_v50, -inf }
0x17eb   :  { %5837 = vmax.xlane.f32.xlu0 %v5836_v23 }
0x17ef   :  { %v5827_v53 = vpop.f32.mrf.mxu0 }
0x17f0   :  { %v5828_v6 = vadd.f32 %v13726_v8, %v5827_v53 }
0x17f2   :  { %v5839_v27 = vsel %vm2504_vm8, %v5828_v6, -inf }
0x17f3   :  { %5840 = vmax.xlane.f32.xlu1 %v5839_v27  ;;  %v11155_v27 = vld [vmem:[%s14727_s14 + $0xd] ss:$0 sm:$0xff] }
0x17f7   :  { %v5830_v46 = vpop.f32.mrf.mxu0 }
0x17f8   :  { %v5831_v11 = vadd.f32 %v13733_v12, %v5830_v46 }
0x17fa   :  { %v5842_v40 = vsel %vm2504_vm8, %v5831_v11, -inf }
0x17fb   :  { %5843 = vmax.xlane.f32.xlu2 %v5842_v40 }
0x17ff   :  { %v5833_v60 = vpop.f32.mrf.mxu0 }
0x1800   :  { %v5834_v34 = vadd.f32 %v13740_v9, %v5833_v60 }
0x1802   :  { %v5845_v20 = vsel %vm2514_vm3, %v5834_v34, -inf }
0x1803   :  { %5846 = vmax.xlane.f32.xlu0 %v5845_v20  ;;  %v9982_v20 = vld [vmem:[%s14726_s13 + $0x90] sm:$0xff] }
0x1807   :  { %v6034_v13 = vpop.f32.mrf.mxu0 }
0x1808   :  { %v6035_v4 = vadd.f32 %v11156_v56, %v6034_v13 }
0x180f   :  { %v6037_v48 = vpop.f32.mrf.mxu0 }
0x1810   :  { %v6038_v0 = vadd.f32 %v11156_v56, %v6037_v48 }
0x1817   :  { %v6040_v29 = vpop.f32.mrf.mxu0 }
0x1818   :  { %v6041_v32 = vadd.f32 %v11156_v56, %v6040_v29 }
0x181f   :  { %v6043_v42 = vpop.f32.mrf.mxu0 }
0x1820   :  { %v6044_v25 = vadd.f32 %v11156_v56, %v6043_v42 }
0x1822   :  { %9957 = vmatpush.xpose.msk.msrb.mxu3 %vm2450_vm4, %v6044_v25 }
0x1826   :  { %9958 = vmatpush.xpose.msk.msrb.mxu3 %vm2450_vm4, %v6041_v32 }
0x182a   :  { %9959 = vmatpush.xpose.msk.msrb.mxu3 %vm2450_vm4, %v6038_v0 }
0x182e   :  { %9960 = vmatpush.xpose.msk.msrb.mxu3 %vm2450_vm4, %v6035_v4 }
0x185e   :  { %v5838_v3 = vpop.xlane.xlu0 %5837 }
0x185f   :  { %v5848_v30 = vsub.f32 %v5825_v50, %v5838_v3  ;;  %v11157_v3 = vld [vmem:[%s14727_s14 + $0x15] ss:$0 sm:$0xff] }
0x1861   :  { %v5852_v38 = vmul.f32 1.442695, %v5848_v30 }
0x1863   :  { %11380 = vpow2.f32 %v5852_v38 }
0x1866   :  { %v5841_v15 = vpop.xlane.xlu1 %5840 }
0x1867   :  { %v5849_v37 = vsub.f32 %v5828_v6, %v5841_v15  ;;  %v5998_v6 = vpop.f32.mrf.mxu1 }
0x1869   :  { %v11381_v28 = vpop.eup %11380  ;;  %v5854_v59 = vmul.f32 1.442695, %v5849_v37 }
0x186a   :  { %v5860_v1 = vsel %vm2504_vm8, %v11381_v28, 0.0 }
0x186b   :  { %11382 = vpow2.f32 %v5854_v59  ;;  %5861 = vadd.xlane.f32.xlu1 %v5860_v1 }
0x186e   :  { %v5844_v43 = vpop.xlane.xlu2 %5843 }
0x186f   :  { %v5850_v19 = vsub.f32 %v5831_v11, %v5844_v43  ;;  %v5999_v11 = vadd.f32 %v11155_v27, %v5998_v6  ;;  %v6001_v40 = vpop.f32.mrf.mxu1 }
0x1870   :  { %v6002_v24 = vadd.f32 %v11155_v27, %v6001_v40 }
0x1871   :  { %v11383_v7 = vpop.eup %11382  ;;  %v5856_v57 = vmul.f32 1.442695, %v5850_v19  ;;  %v6082_v60 = vmul.f32 0.70710677, %v5999_v11 }
0x1872   :  { %v5863_v39 = vsel %vm2504_vm8, %v11383_v7, 0.0  ;;  %v6083_v48 = vmul.f32 0.70710677, %v6002_v24 }
0x1873   :  { %11384 = vpow2.f32 %v5856_v57  ;;  %5864 = vadd.xlane.f32.xlu2 %v5863_v39 }
0x1876   :  { %v5847_v14 = vpop.xlane.xlu0 %5846 }
0x1877   :  { %v5851_v2 = vsub.f32 %v5834_v34, %v5847_v14  ;;  %v6004_v13 = vpop.f32.mrf.mxu1 }
0x1878   :  { %v6005_v56 = vadd.f32 %v11155_v27, %v6004_v13 }
0x1879   :  { %v11385_v61 = vpop.eup %11384  ;;  %v5858_v33 = vmul.f32 1.442695, %v5851_v2 }
0x187a   :  { %v5866_v17 = vsel %vm2504_vm8, %v11385_v61, 0.0  ;;  %v6084_v42 = vmul.f32 0.70710677, %v6005_v56 }
0x187b   :  { %11386 = vpow2.f32 %v5858_v33  ;;  %5867 = vadd.xlane.f32.xlu0 %v5866_v17 }
0x187f   :  { %v6007_v25 = vpop.f32.mrf.mxu1 }
0x1880   :  { %v6008_v0 = vadd.f32 %v11155_v27, %v6007_v25 }
0x1881   :  { %v11387_v31 = vpop.eup %11386 }
0x1882   :  { %v5869_v18 = vsel %vm2514_vm3, %v11387_v31, 0.0  ;;  %v6085_v4 = vmul.f32 0.70710677, %v6008_v0  ;;  %v9988_v0 = vld [vmem:[%s14726_s13 + $0xb0] sm:$0xff] }
0x1883   :  { %5870 = vadd.xlane.f32.xlu1 %v5869_v18 }
0x18de   :  { %v5862_v26 = vpop.xlane.xlu1 %5861 }
0x18df   :  { %11388 = vrcp.f32 %v5862_v26 }
0x18e5   :  { %v11389_v58 = vpop.eup %11388 }
0x18e6   :  { %v5876_v5 = vmul.f32 %v11389_v58, %v11381_v28  ;;  %v5865_v49 = vpop.xlane.xlu2 %5864 }
0x18e7   :  { %11390 = vrcp.f32 %v5865_v49 }
0x18e8   :  { %9929 = vmatmul.msk.f32.vlgmr.msra.gmra.mxu2 %vm2504_vm8, %v5876_v5 }
0x18e9   :  { %6299 = vmatpush.msra.mxu2 %v9976_v22 }
0x18ed   :  { %v11391_v21 = vpop.eup %11390 }
0x18ee   :  { %v5868_v16 = vpop.xlane.xlu0 %5867  ;;  %v5877_v45 = vmul.f32 %v11391_v21, %v11383_v7 }
0x18ef   :  { %11392 = vrcp.f32 %v5868_v16  ;;  %v11160_v16 = vld [vmem:[%s14727_s14 + $0x12] ss:$0 sm:$0xff] }
0x18f0   :  { %9930 = vmatmul.msk.f32.gmra.mxu2 %vm2504_vm8, %v5877_v45 }
0x18f5   :  { %v11393_v10 = vpop.eup %11392 }
0x18f6   :  { %v5871_v62 = vpop.xlane.xlu1 %5870  ;;  %v5878_v52 = vmul.f32 %v11393_v10, %v11385_v61 }
0x18f7   :  { %11394 = vrcp.f32 %v5871_v62 }
0x18f8   :  { %9931 = vmatmul.msk.f32.gmra.mxu2 %vm2504_vm8, %v5878_v52 }
0x18fd   :  { %v11395_v35 = vpop.eup %11394 }
0x18fe   :  { %v5879_v63 = vmul.f32 %v11395_v35, %v11387_v31 }
0x1900   :  { %9932 = vmatmul.msk.f32.gmra.mxu2 %vm2504_vm8, %v5879_v63 }
0x1908   :  { %9953 = vmatmul.msk.f32.vlgmr.msrb.gmra.mxu2 %vm161_vm1, %v13644_v47 }
0x1910   :  { %9954 = vmatmul.msk.f32.gmra.mxu2 %vm161_vm1, %v13653_v54 }
0x1918   :  { %9955 = vmatmul.msk.f32.gmra.mxu2 %vm161_vm1, %v13662_v36 }
0x1920   :  { %9956 = vmatmul.msk.f32.gmra.mxu2 %vm161_vm1, %v13671_v51 }
0x1928   :  { %9978 = vmatmul.msk.f32.vlgmr.msra.gmra.mxu2 %vm161_vm1, %v13644_v47 }
0x1930   :  { %9979 = vmatmul.msk.f32.gmra.mxu2 %vm161_vm1, %v13653_v54 }
0x1938   :  { %9980 = vmatmul.msk.f32.gmra.mxu2 %vm161_vm1, %v13662_v36 }
0x1940   :  { %9981 = vmatmul.msk.f32.gmra.mxu2 %vm161_vm1, %v13671_v51 }
0x196b   :  { %v5912_v50 = vpop.f32.mrf.mxu2 }
0x196c   :  { %9935 = vmatmul.msk.f32.vlgmr.msra.gmra.mxu3 %vm2450_vm4, %v5912_v50 }
0x196d   :  { %6335 = vmatpush.msra.mxu3 %v9982_v20 }
0x1973   :  { %v5915_v23 = vpop.f32.mrf.mxu2 }
0x1974   :  { %9936 = vmatmul.msk.f32.gmra.mxu3 %vm2450_vm4, %v5915_v23 }
0x197b   :  { %v5918_v53 = vpop.f32.mrf.mxu2 }
0x197c   :  { %9937 = vmatmul.msk.f32.gmra.mxu3 %vm2450_vm4, %v5918_v53 }
0x1983   :  { %v5921_v46 = vpop.f32.mrf.mxu2 }
0x1984   :  { %9938 = vmatmul.msk.f32.gmra.mxu3 %vm2450_vm4, %v5921_v46 }
0x198b   :  { %v6070_v34 = vpop.f32.mrf.mxu2 }
0x198c   :  { %9961 = vmatmul.msk.f32.vlgmr.msrb.gmra.mxu3 %vm2450_vm4, %v6082_v60  ;;  %v6071_v28 = vadd.f32 %v11157_v3, %v6070_v34 }
0x1993   :  { %v6073_v29 = vpop.f32.mrf.mxu2 }
0x1994   :  { %9962 = vmatmul.msk.f32.gmra.mxu3 %vm2450_vm4, %v6083_v48  ;;  %v6074_v37 = vadd.f32 %v11157_v3, %v6073_v29 }
0x199b   :  { %v6076_v32 = vpop.f32.mrf.mxu2 }
0x199c   :  { %9963 = vmatmul.msk.f32.gmra.mxu3 %vm2450_vm4, %v6084_v42  ;;  %v6077_v15 = vadd.f32 %v11157_v3, %v6076_v32 }
0x19a3   :  { %v6079_v30 = vpop.f32.mrf.mxu2 }
0x19a4   :  { %v6080_v38 = vadd.f32 %v11157_v3, %v6079_v30  ;;  %9964 = vmatmul.msk.f32.gmra.mxu3 %vm2450_vm4, %v6085_v4 }
0x19a6   :  { %9965 = vmatpush.msk.msrb.mxu1 %vm2562_vm0, %v6080_v38 }
0x19a8   :  { %6211 = vmatpush.msrb.mxu1 %v6077_v15 }
0x19aa   :  { %6212 = vmatpush.msrb.mxu1 %v6074_v37 }
0x19ac   :  { %6213 = vmatpush.msrb.mxu1 %v6071_v28  ;;  %9984 = vmatmul.msk.f32.vlgmr.msra.gmra.mxu3 %vm161_vm1, %v13644_v47 }
0x19ae   :  { %6371 = vmatpush.msra.mxu1 %v9988_v0 }
0x19b4   :  { %9985 = vmatmul.msk.f32.gmra.mxu3 %vm161_vm1, %v13653_v54 }
0x19bc   :  { %9986 = vmatmul.msk.f32.gmra.mxu3 %vm161_vm1, %v13662_v36 }
0x19c4   :  { %9987 = vmatmul.msk.f32.gmra.mxu3 %vm161_vm1, %v13671_v51 }
0x19ef   :  { %v13811_v59 = vpop.f32.mrf.mxu3 }
0x19f7   :  { %v13813_v1 = vpop.f32.mrf.mxu3 }
0x19ff   :  { %v13815_v43 = vpop.f32.mrf.mxu3 }
0x1a07   :  { %v13817_v19 = vpop.f32.mrf.mxu3 }
0x1a0f   :  { %v6127_v7 = vpop.f32.mrf.mxu3 }
0x1a10   :  { %v6128_v57 = vadd.f32 %v13719_v44, %v6127_v7 }
0x1a12   :  { %v6139_v39 = vsel %vm2504_vm8, %v6128_v57, -inf }
0x1a13   :  { %6140 = vmax.xlane.f32.xlu2 %v6139_v39 }
0x1a17   :  { %v6130_v14 = vpop.f32.mrf.mxu3 }
0x1a18   :  { %v6131_v2 = vadd.f32 %v13726_v8, %v6130_v14 }
0x1a1a   :  { %v6142_v61 = vsel %vm2504_vm8, %v6131_v2, -inf }
0x1a1b   :  { %6143 = vmax.xlane.f32.xlu0 %v6142_v61 }
0x1a1f   :  { %v6133_v33 = vpop.f32.mrf.mxu3 }
0x1a20   :  { %v6134_v17 = vadd.f32 %v13733_v12, %v6133_v33 }
0x1a22   :  { %v6145_v31 = vsel %vm2504_vm8, %v6134_v17, -inf }
0x1a23   :  { %6146 = vmax.xlane.f32.xlu1 %v6145_v31  ;;  %v6301_v31 = vpop.f32.mrf.mxu2 }
0x1a27   :  { %v6136_v18 = vpop.f32.mrf.mxu3 }
0x1a28   :  { %v6137_v26 = vadd.f32 %v13740_v9, %v6136_v18  ;;  %v11158_v18 = vld [vmem:[%s14727_s14 + $0xe] ss:$0 sm:$0xff] }
0x1a29   :  { %v6302_v55 = vadd.f32 %v11158_v18, %v6301_v31 }
0x1a2a   :  { %v6148_v58 = vsel %vm2514_vm3, %v6137_v26, -inf }
0x1a2b   :  { %6149 = vmax.xlane.f32.xlu2 %v6148_v58  ;;  %v6304_v58 = vpop.f32.mrf.mxu2 }
0x1a2f   :  { %v6337_v5 = vpop.f32.mrf.mxu3 }
0x1a30   :  { %v6338_v35 = vadd.f32 %v11160_v16, %v6337_v5  ;;  %v6385_v5 = vmul.f32 0.70710677, %v6302_v55 }
0x1a37   :  { %v6340_v49 = vpop.f32.mrf.mxu3 }
0x1a38   :  { %v6341_v52 = vadd.f32 %v11160_v16, %v6340_v49 }
0x1a3f   :  { %v6343_v21 = vpop.f32.mrf.mxu3 }
0x1a40   :  { %v6344_v62 = vadd.f32 %v11160_v16, %v6343_v21  ;;  %v6305_v21 = vadd.f32 %v11158_v18, %v6304_v58 }
0x1a47   :  { %v6346_v45 = vpop.f32.mrf.mxu3 }
0x1a48   :  { %v6347_v10 = vadd.f32 %v11160_v16, %v6346_v45  ;;  %v10019_v16 = vld [vmem:[%s14726_s13 + $0x98] sm:$0xff]  ;;  %v6307_v45 = vpop.f32.mrf.mxu2 }
0x1a4a   :  { %9994 = vmatpush.xpose.msk.msra.mxu0 %vm2450_vm4, %v6347_v10  ;;  %v6386_v10 = vmul.f32 0.70710677, %v6305_v21 }
0x1a4e   :  { %9995 = vmatpush.xpose.msk.msra.mxu0 %vm2450_vm4, %v6344_v62 }
0x1a52   :  { %9996 = vmatpush.xpose.msk.msra.mxu0 %vm2450_vm4, %v6341_v52  ;;  %v6308_v52 = vadd.f32 %v11158_v18, %v6307_v45 }
0x1a56   :  { %9997 = vmatpush.xpose.msk.msra.mxu0 %vm2450_vm4, %v6338_v35  ;;  %v6387_v35 = vmul.f32 0.70710677, %v6308_v52 }
0x1a86   :  { %v6141_v63 = vpop.xlane.xlu2 %6140 }
0x1a87   :  { %v6151_v22 = vsub.f32 %v6128_v57, %v6141_v63  ;;  %v6310_v63 = vpop.f32.mrf.mxu2 }
0x1a89   :  { %v6155_v50 = vmul.f32 1.442695, %v6151_v22 }
0x1a8b   :  { %11396 = vpow2.f32 %v6155_v50  ;;  %v6311_v50 = vadd.f32 %v11158_v18, %v6310_v63 }
0x1a8e   :  { %v6144_v23 = vpop.xlane.xlu0 %6143 }
0x1a8f   :  { %v6152_v53 = vsub.f32 %v6131_v2, %v6144_v23  ;;  %v10013_v2 = vld [vmem:[%s14726_s13 + $0x78] sm:$0xff]  ;;  %v6388_v23 = vmul.f32 0.70710677, %v6311_v50 }
0x1a91   :  { %v11397_v6 = vpop.eup %11396  ;;  %v6157_v27 = vmul.f32 1.442695, %v6152_v53  ;;  %v11161_v53 = vld [vmem:[%s14727_s14 + $0x16] ss:$0 sm:$0xff] }
0x1a92   :  { %v6163_v46 = vsel %vm2504_vm8, %v11397_v6, 0.0 }
0x1a93   :  { %11398 = vpow2.f32 %v6157_v27  ;;  %6164 = vadd.xlane.f32.xlu0 %v6163_v46 }
0x1a96   :  { %v6147_v11 = vpop.xlane.xlu1 %6146 }
0x1a97   :  { %v6153_v40 = vsub.f32 %v6134_v17, %v6147_v11 }
0x1a99   :  { %v11399_v60 = vpop.eup %11398  ;;  %v6159_v34 = vmul.f32 1.442695, %v6153_v40 }
0x1a9a   :  { %v6166_v24 = vsel %vm2504_vm8, %v11399_v60, 0.0 }
0x1a9b   :  { %11400 = vpow2.f32 %v6159_v34  ;;  %6167 = vadd.xlane.f32.xlu1 %v6166_v24 }
0x1a9e   :  { %v6150_v20 = vpop.xlane.xlu2 %6149 }
0x1a9f   :  { %v6154_v13 = vsub.f32 %v6137_v26, %v6150_v20 }
0x1aa1   :  { %v11401_v48 = vpop.eup %11400  ;;  %v6161_v29 = vmul.f32 1.442695, %v6154_v13 }
0x1aa2   :  { %v6169_v56 = vsel %vm2504_vm8, %v11401_v48, 0.0 }
0x1aa3   :  { %11402 = vpow2.f32 %v6161_v29  ;;  %6170 = vadd.xlane.f32.xlu2 %v6169_v56 }
0x1aa9   :  { %v11403_v42 = vpop.eup %11402 }
0x1aaa   :  { %v6172_v25 = vsel %vm2514_vm3, %v11403_v42, 0.0 }
0x1aab   :  { %6173 = vadd.xlane.f32.xlu0 %v6172_v25 }
0x1b06   :  { %v6165_v32 = vpop.xlane.xlu0 %6164 }
0x1b07   :  { %11404 = vrcp.f32 %v6165_v32 }
0x1b0d   :  { %v11405_v4 = vpop.eup %11404 }
0x1b0e   :  { %v6179_v3 = vmul.f32 %v11405_v4, %v11397_v6  ;;  %v6168_v30 = vpop.xlane.xlu1 %6167 }
0x1b0f   :  { %11406 = vrcp.f32 %v6168_v30 }
0x1b10   :  { %9966 = vmatmul.msk.f32.vlgmr.msrb.gmra.mxu1 %vm2504_vm8, %v6179_v3 }
0x1b11   :  { %6602 = vmatpush.msrb.mxu1 %v10013_v2  ;;  %v11163_v2 = vld [vmem:[%s14727_s14 + $0x13] ss:$0 sm:$0xff] }
0x1b15   :  { %v11407_v38 = vpop.eup %11406 }
0x1b16   :  { %v6171_v15 = vpop.xlane.xlu2 %6170  ;;  %v6180_v37 = vmul.f32 %v11407_v38, %v11399_v60  ;;  %v13897_v60 = vld [vmem:[%s14729_s16 + $0x1] ss:$0 sm:$0xff] }
0x1b17   :  { %11408 = vrcp.f32 %v6171_v15  ;;  %v5970_v34 = vadd.f32 %v13897_v60, %v13811_v59 }
0x1b18   :  { %9967 = vmatmul.msk.f32.gmra.mxu1 %vm2504_vm8, %v6180_v37 }
0x1b1d   :  { %v11409_v28 = vpop.eup %11408 }
0x1b1e   :  { %v6174_v7 = vpop.xlane.xlu0 %6173  ;;  %v6181_v57 = vmul.f32 %v11409_v28, %v11401_v48  ;;  %v5972_v48 = vadd.f32 %v13897_v60, %v13815_v43  ;;  %v10007_v28 = vld [vmem:[%s14728_s15 + $0xc] sm:$0x3] }
0x1b1f   :  { %11410 = vrcp.f32 %v6174_v7  ;;  %10008 = vmatpush.msk.msrb.mxu3 %vm2608_vm9, %v10007_v28  ;;  %v11162_v28 = vld [vmem:[%s14727_s14 + $0xf] ss:$0 sm:$0xff] }
0x1b20   :  { %9968 = vmatmul.msk.f32.gmra.mxu1 %vm2504_vm8, %v6181_v57 }
0x1b25   :  { %v11411_v39 = vpop.eup %11410 }
0x1b26   :  { %v6182_v14 = vmul.f32 %v11411_v39, %v11403_v42 }
0x1b28   :  { %9969 = vmatmul.msk.f32.gmra.mxu1 %vm2504_vm8, %v6182_v14 }
0x1b30   :  { %9990 = vmatmul.msk.f32.vlgmr.msra.gmra.mxu1 %vm161_vm1, %v13644_v47 }
0x1b38   :  { %9991 = vmatmul.msk.f32.gmra.mxu1 %vm161_vm1, %v13653_v54 }
0x1b40   :  { %9992 = vmatmul.msk.f32.gmra.mxu1 %vm161_vm1, %v13662_v36 }
0x1b48   :  { %9993 = vmatmul.msk.f32.gmra.mxu1 %vm161_vm1, %v13671_v51 }
0x1b50   :  { %10015 = vmatmul.msk.f32.vlgmr.msrb.gmra.mxu1 %vm161_vm1, %v13644_v47 }
0x1b58   :  { %10016 = vmatmul.msk.f32.gmra.mxu1 %vm161_vm1, %v13653_v54 }
0x1b60   :  { %10017 = vmatmul.msk.f32.gmra.mxu1 %vm161_vm1, %v13662_v36 }
0x1b68   :  { %10018 = vmatmul.msk.f32.gmra.mxu1 %vm161_vm1, %v13671_v51 }
0x1b8d   :  { %v6215_v61 = vpop.f32.mrf.mxu1 }
0x1b8e   :  { %9972 = vmatmul.msk.f32.vlgmr.msrb.gmra.mxu0 %vm2450_vm4, %v6215_v61 }
0x1b8f   :  { %6638 = vmatpush.msrb.mxu0 %v10019_v16 }
0x1b95   :  { %v6218_v33 = vpop.f32.mrf.mxu1 }
0x1b96   :  { %9973 = vmatmul.msk.f32.gmra.mxu0 %vm2450_vm4, %v6218_v33 }
0x1b9d   :  { %v6221_v17 = vpop.f32.mrf.mxu1 }
0x1b9e   :  { %9974 = vmatmul.msk.f32.gmra.mxu0 %vm2450_vm4, %v6221_v17 }
0x1ba5   :  { %v6224_v26 = vpop.f32.mrf.mxu1 }
0x1ba6   :  { %9975 = vmatmul.msk.f32.gmra.mxu0 %vm2450_vm4, %v6224_v26 }
0x1bad   :  { %v6373_v49 = vpop.f32.mrf.mxu1 }
0x1bae   :  { %9998 = vmatmul.msk.f32.vlgmr.msra.gmra.mxu0 %vm2450_vm4, %v6385_v5  ;;  %v6374_v40 = vadd.f32 %v11161_v53, %v6373_v49 }
0x1bb5   :  { %v6376_v62 = vpop.f32.mrf.mxu1 }
0x1bb6   :  { %9999 = vmatmul.msk.f32.gmra.mxu0 %vm2450_vm4, %v6386_v10  ;;  %v6377_v11 = vadd.f32 %v11161_v53, %v6376_v62 }
0x1bbd   :  { %v6379_v22 = vpop.f32.mrf.mxu1 }
0x1bbe   :  { %10000 = vmatmul.msk.f32.gmra.mxu0 %vm2450_vm4, %v6387_v35  ;;  %v6380_v46 = vadd.f32 %v11161_v53, %v6379_v22 }
0x1bc5   :  { %v6382_v6 = vpop.f32.mrf.mxu1 }
0x1bc6   :  { %v6383_v27 = vadd.f32 %v11161_v53, %v6382_v6  ;;  %10001 = vmatmul.msk.f32.gmra.mxu0 %vm2450_vm4, %v6388_v23 }
0x1bc8   :  { %10002 = vmatpush.msk.msrb.mxu2 %vm2562_vm0, %v6383_v27 }
0x1bca   :  { %6514 = vmatpush.msrb.mxu2 %v6380_v46 }
0x1bcc   :  { %6515 = vmatpush.msrb.mxu2 %v6377_v11 }
0x1bce   :  { %6516 = vmatpush.msrb.mxu2 %v6374_v40  ;;  %10021 = vmatmul.msk.f32.vlgmr.msrb.gmra.mxu0 %vm161_vm1, %v13644_v47  ;;  %v10025_v40 = vld [vmem:[%s14726_s13 + $0xb8] sm:$0xff] }
0x1bd0   :  { %6674 = vmatpush.msra.mxu2 %v10025_v40 }
0x1bd6   :  { %10022 = vmatmul.msk.f32.gmra.mxu0 %vm161_vm1, %v13653_v54 }
0x1bde   :  { %10023 = vmatmul.msk.f32.gmra.mxu0 %vm161_vm1, %v13662_v36 }
0x1be6   :  { %10024 = vmatmul.msk.f32.gmra.mxu0 %vm161_vm1, %v13671_v51 }
0x1c0b   :  { %v6261_v24 = vpop.f32.mrf.mxu0 }
0x1c0c   :  { %v13901_v20 = vadd.f32 %v6261_v24, %v5970_v34 }
0x1c13   :  { %v13903_v13 = vpop.f32.mrf.mxu0 }
0x1c1b   :  { %v6267_v29 = vpop.f32.mrf.mxu0 }
0x1c1c   :  { %v13907_v56 = vadd.f32 %v6267_v29, %v5972_v48 }
0x1c23   :  { %v13909_v42 = vpop.f32.mrf.mxu0 }
0x1c2b   :  { %v6430_v25 = vpop.f32.mrf.mxu0 }
0x1c2c   :  { %v6431_v32 = vadd.f32 %v13719_v44, %v6430_v25 }
0x1c2e   :  { %v6442_v0 = vsel %vm2504_vm8, %v6431_v32, -inf }
0x1c2f   :  { %6443 = vmax.xlane.f32.xlu1 %v6442_v0 }
0x1c33   :  { %v6433_v59 = vpop.f32.mrf.mxu0 }
0x1c34   :  { %v6434_v4 = vadd.f32 %v13726_v8, %v6433_v59 }
0x1c36   :  { %v6445_v3 = vsel %vm2504_vm8, %v6434_v4, -inf }
0x1c37   :  { %6446 = vmax.xlane.f32.xlu2 %v6445_v3 }
0x1c3b   :  { %v6436_v30 = vpop.f32.mrf.mxu0 }
0x1c3c   :  { %v6437_v43 = vadd.f32 %v13733_v12, %v6436_v30 }
0x1c3e   :  { %v6448_v38 = vsel %vm2504_vm8, %v6437_v43, -inf }
0x1c3f   :  { %6449 = vmax.xlane.f32.xlu0 %v6448_v38 }
0x1c43   :  { %v6439_v15 = vpop.f32.mrf.mxu0 }
0x1c44   :  { %v6440_v37 = vadd.f32 %v13740_v9, %v6439_v15 }
0x1c46   :  { %v6451_v7 = vsel %vm2514_vm3, %v6440_v37, -inf }
0x1c47   :  { %6452 = vmax.xlane.f32.xlu1 %v6451_v7 }
0x1c4b   :  { %v6640_v57 = vpop.f32.mrf.mxu0 }
0x1c4c   :  { %v6641_v18 = vadd.f32 %v11163_v2, %v6640_v57 }
0x1c53   :  { %v6643_v39 = vpop.f32.mrf.mxu0 }
0x1c54   :  { %v6644_v31 = vadd.f32 %v11163_v2, %v6643_v39 }
0x1c5b   :  { %v6646_v14 = vpop.f32.mrf.mxu0 }
0x1c5c   :  { %v6647_v17 = vadd.f32 %v11163_v2, %v6646_v14 }
0x1c63   :  { %v6649_v61 = vpop.f32.mrf.mxu0 }
0x1c64   :  { %v6650_v33 = vadd.f32 %v11163_v2, %v6649_v61 }
0x1c66   :  { %10031 = vmatpush.xpose.msk.msra.mxu3 %vm2450_vm4, %v6650_v33 }
0x1c6a   :  { %10032 = vmatpush.xpose.msk.msra.mxu3 %vm2450_vm4, %v6647_v17 }
0x1c6e   :  { %10033 = vmatpush.xpose.msk.msra.mxu3 %vm2450_vm4, %v6644_v31 }
0x1c72   :  { %10034 = vmatpush.xpose.msk.msra.mxu3 %vm2450_vm4, %v6641_v18 }
0x1ca2   :  { %v6444_v26 = vpop.xlane.xlu1 %6443 }
0x1ca3   :  { %v6454_v55 = vsub.f32 %v6431_v32, %v6444_v26 }
0x1ca5   :  { %v6458_v58 = vmul.f32 1.442695, %v6454_v55 }
0x1ca7   :  { %11412 = vpow2.f32 %v6458_v58 }
0x1caa   :  { %v6447_v5 = vpop.xlane.xlu2 %6446 }
0x1cab   :  { %v6455_v49 = vsub.f32 %v6434_v4, %v6447_v5 }
0x1cad   :  { %v11413_v21 = vpop.eup %11412  ;;  %v6460_v16 = vmul.f32 1.442695, %v6455_v49 }
0x1cae   :  { %v6466_v45 = vsel %vm2504_vm8, %v11413_v21, 0.0 }
0x1caf   :  { %11414 = vpow2.f32 %v6460_v16  ;;  %6467 = vadd.xlane.f32.xlu2 %v6466_v45 }
0x1cb2   :  { %v6450_v10 = vpop.xlane.xlu0 %6449 }
0x1cb3   :  { %v6456_v62 = vsub.f32 %v6437_v43, %v6450_v10 }
0x1cb5   :  { %v11415_v52 = vpop.eup %11414  ;;  %v6462_v35 = vmul.f32 1.442695, %v6456_v62 }
0x1cb6   :  { %v6469_v63 = vsel %vm2504_vm8, %v11415_v52, 0.0 }
0x1cb7   :  { %11416 = vpow2.f32 %v6462_v35  ;;  %6470 = vadd.xlane.f32.xlu0 %v6469_v63 }
0x1cba   :  { %v6453_v22 = vpop.xlane.xlu1 %6452 }
0x1cbb   :  { %v6457_v50 = vsub.f32 %v6440_v37, %v6453_v22  ;;  %v6604_v37 = vpop.f32.mrf.mxu1 }
0x1cbc   :  { %v6605_v57 = vadd.f32 %v11162_v28, %v6604_v37 }
0x1cbd   :  { %v11417_v23 = vpop.eup %11416  ;;  %v6464_v53 = vmul.f32 1.442695, %v6457_v50 }
0x1cbe   :  { %v6472_v6 = vsel %vm2504_vm8, %v11417_v23, 0.0  ;;  %v6688_v14 = vmul.f32 0.70710677, %v6605_v57 }
0x1cbf   :  { %11418 = vpow2.f32 %v6464_v53  ;;  %6473 = vadd.xlane.f32.xlu1 %v6472_v6 }
0x1cc3   :  { %v6607_v39 = vpop.f32.mrf.mxu1 }
0x1cc4   :  { %v6608_v61 = vadd.f32 %v11162_v28, %v6607_v39 }
0x1cc5   :  { %v11419_v27 = vpop.eup %11418 }
0x1cc6   :  { %v6475_v46 = vsel %vm2514_vm3, %v11419_v27, 0.0  ;;  %v6689_v17 = vmul.f32 0.70710677, %v6608_v61 }
0x1cc7   :  { %6476 = vadd.xlane.f32.xlu2 %v6475_v46 }
0x1ccb   :  { %v6610_v33 = vpop.f32.mrf.mxu1 }
0x1ccc   :  { %v6611_v18 = vadd.f32 %v11162_v28, %v6610_v33  ;;  %v10044_v33 = vld [vmem:[%s14728_s15 + $0xe] sm:$0x3] }
0x1ccd   :  { %10045 = vmatpush.msk.msra.mxu0 %vm2608_vm9, %v10044_v33 }
0x1cce   :  { %v6690_v26 = vmul.f32 0.70710677, %v6611_v18 }
0x1cd3   :  { %v6613_v55 = vpop.f32.mrf.mxu1 }
0x1cd4   :  { %v6614_v5 = vadd.f32 %v11162_v28, %v6613_v55 }
0x1cd6   :  { %v6691_v49 = vmul.f32 0.70710677, %v6614_v5 }
0x1d22   :  { %v6468_v11 = vpop.xlane.xlu2 %6467 }
0x1d23   :  { %11420 = vrcp.f32 %v6468_v11 }
0x1d29   :  { %v11421_v34 = vpop.eup %11420 }
0x1d2a   :  { %v6482_v24 = vmul.f32 %v11421_v34, %v11413_v21  ;;  %v6471_v48 = vpop.xlane.xlu0 %6470  ;;  %v11164_v21 = vld [vmem:[%s14727_s14 + $0x17] ss:$0 sm:$0xff] }
0x1d2b   :  { %11422 = vrcp.f32 %v6471_v48 }
0x1d2c   :  { %10003 = vmatmul.msk.f32.vlgmr.msrb.gmra.mxu2 %vm2504_vm8, %v6482_v24 }
0x1d31   :  { %v11423_v29 = vpop.eup %11422 }
0x1d32   :  { %v6474_v25 = vpop.xlane.xlu1 %6473  ;;  %v6483_v32 = vmul.f32 %v11423_v29, %v11415_v52 }
0x1d33   :  { %11424 = vrcp.f32 %v6474_v25 }
0x1d34   :  { %10004 = vmatmul.msk.f32.gmra.mxu2 %vm2504_vm8, %v6483_v32 }
0x1d39   :  { %v11425_v0 = vpop.eup %11424 }
0x1d3a   :  { %v6477_v59 = vpop.xlane.xlu2 %6476  ;;  %v6484_v4 = vmul.f32 %v11425_v0, %v11417_v23 }
0x1d3b   :  { %11426 = vrcp.f32 %v6477_v59 }
0x1d3c   :  { %10005 = vmatmul.msk.f32.gmra.mxu2 %vm2504_vm8, %v6484_v4 }
0x1d41   :  { %v11427_v3 = vpop.eup %11426 }
0x1d42   :  { %v6485_v30 = vmul.f32 %v11427_v3, %v11419_v27 }
0x1d44   :  { %10006 = vmatmul.msk.f32.gmra.mxu2 %vm2504_vm8, %v6485_v30 }
0x1d4c   :  { %10027 = vmatmul.msk.f32.vlgmr.msra.gmra.mxu2 %vm161_vm1, %v13644_v47 }
0x1d54   :  { %10028 = vmatmul.msk.f32.gmra.mxu2 %vm161_vm1, %v13653_v54 }
0x1d5c   :  { %10029 = vmatmul.msk.f32.gmra.mxu2 %vm161_vm1, %v13662_v36 }
0x1d64   :  { %10030 = vmatmul.msk.f32.gmra.mxu2 %vm161_vm1, %v13671_v51 }
0x1daf   :  { %v6518_v43 = vpop.f32.mrf.mxu2 }
0x1db0   :  { %10009 = vmatmul.msk.f32.vlgmr.msrb.gmra.mxu3 %vm2450_vm4, %v6518_v43 }
0x1db7   :  { %v6521_v38 = vpop.f32.mrf.mxu2 }
0x1db8   :  { %10010 = vmatmul.msk.f32.gmra.mxu3 %vm2450_vm4, %v6521_v38 }
0x1dbf   :  { %v6524_v15 = vpop.f32.mrf.mxu2 }
0x1dc0   :  { %10011 = vmatmul.msk.f32.gmra.mxu3 %vm2450_vm4, %v6524_v15 }
0x1dc7   :  { %v6527_v7 = vpop.f32.mrf.mxu2 }
0x1dc8   :  { %10012 = vmatmul.msk.f32.gmra.mxu3 %vm2450_vm4, %v6527_v7 }
0x1dcf   :  { %v6676_v2 = vpop.f32.mrf.mxu2 }
0x1dd0   :  { %10035 = vmatmul.msk.f32.vlgmr.msra.gmra.mxu3 %vm2450_vm4, %v6688_v14  ;;  %v6677_v52 = vadd.f32 %v11164_v21, %v6676_v2 }
0x1dd7   :  { %v6679_v31 = vpop.f32.mrf.mxu2 }
0x1dd8   :  { %10036 = vmatmul.msk.f32.gmra.mxu3 %vm2450_vm4, %v6689_v17  ;;  %v6680_v62 = vadd.f32 %v11164_v21, %v6679_v31 }
0x1ddf   :  { %v6682_v58 = vpop.f32.mrf.mxu2 }
0x1de0   :  { %10037 = vmatmul.msk.f32.gmra.mxu3 %vm2450_vm4, %v6690_v26  ;;  %v6683_v10 = vadd.f32 %v11164_v21, %v6682_v58 }
0x1de7   :  { %v6685_v16 = vpop.f32.mrf.mxu2 }
0x1de8   :  { %v6686_v45 = vadd.f32 %v11164_v21, %v6685_v16  ;;  %10038 = vmatmul.msk.f32.gmra.mxu3 %vm2450_vm4, %v6691_v49 }
0x1dea   :  { %10039 = vmatpush.msk.msra.mxu1 %vm2562_vm0, %v6686_v45 }
0x1dec   :  { %6817 = vmatpush.msra.mxu1 %v6683_v10 }
0x1dee   :  { %6818 = vmatpush.msra.mxu1 %v6680_v62 }
0x1df0   :  { %6819 = vmatpush.msra.mxu1 %v6677_v52 }
0x1e33   :  { %v6564_v35 = vpop.f32.mrf.mxu3 }
0x1e34   :  { %v13965_v63 = vadd.f32 %v6564_v35, %v13901_v20 }
0x1e3b   :  { %v13967_v22 = vpop.f32.mrf.mxu3 }
0x1e43   :  { %v6570_v50 = vpop.f32.mrf.mxu3 }
0x1e44   :  { %v13970_v23 = vadd.f32 %v6570_v50, %v13907_v56 }
0x1e4b   :  { %v13972_v53 = vpop.f32.mrf.mxu3 }
0x1e53   :  { %v6733_v6 = vpop.f32.mrf.mxu3 }
0x1e54   :  { %v6734_v27 = vadd.f32 %v13719_v44, %v6733_v6 }
0x1e56   :  { %v6745_v46 = vsel %vm2504_vm8, %v6734_v27, -inf }
0x1e57   :  { %6746 = vmax.xlane.f32.xlu0 %v6745_v46 }
0x1e5b   :  { %v6736_v11 = vpop.f32.mrf.mxu3 }
0x1e5c   :  { %v6737_v40 = vadd.f32 %v13726_v8, %v6736_v11 }
0x1e5e   :  { %v6748_v20 = vsel %vm2504_vm8, %v6737_v40, -inf }
0x1e5f   :  { %6749 = vmax.xlane.f32.xlu1 %v6748_v20 }
0x1e63   :  { %v6739_v34 = vpop.f32.mrf.mxu3 }
0x1e64   :  { %v6740_v24 = vadd.f32 %v13733_v12, %v6739_v34 }
0x1e66   :  { %v6751_v56 = vsel %vm2504_vm8, %v6740_v24, -inf }
0x1e67   :  { %6752 = vmax.xlane.f32.xlu2 %v6751_v56 }
0x1e6b   :  { %v6742_v48 = vpop.f32.mrf.mxu3 }
0x1e6c   :  { %v6743_v29 = vadd.f32 %v13740_v9, %v6742_v48 }
0x1e6e   :  { %v6754_v44 = vsel %vm2514_vm3, %v6743_v29, -inf }
0x1e6f   :  { %6755 = vmax.xlane.f32.xlu0 %v6754_v44 }
0x1eca   :  { %v6747_v25 = vpop.xlane.xlu0 %6746 }
0x1ecb   :  { %v6757_v32 = vsub.f32 %v6734_v27, %v6747_v25  ;;  %v5971_v27 = vadd.f32 %v13897_v60, %v13813_v1 }
0x1ecd   :  { %v6761_v0 = vmul.f32 1.442695, %v6757_v32  ;;  %v6274_v11 = vadd.f32 %v13903_v13, %v5971_v27 }
0x1ecf   :  { %11428 = vpow2.f32 %v6761_v0  ;;  %v6577_v20 = vadd.f32 %v13967_v22, %v6274_v11 }
0x1ed2   :  { %v6750_v8 = vpop.xlane.xlu1 %6749 }
0x1ed3   :  { %v6758_v59 = vsub.f32 %v6737_v40, %v6750_v8 }
0x1ed5   :  { %v11429_v4 = vpop.eup %11428  ;;  %v6763_v3 = vmul.f32 1.442695, %v6758_v59 }
0x1ed6   :  { %v6769_v30 = vsel %vm2504_vm8, %v11429_v4, 0.0 }
0x1ed7   :  { %11430 = vpow2.f32 %v6763_v3  ;;  %6770 = vadd.xlane.f32.xlu1 %v6769_v30 }
0x1eda   :  { %v6753_v12 = vpop.xlane.xlu2 %6752 }
0x1edb   :  { %v6759_v43 = vsub.f32 %v6740_v24, %v6753_v12 }
0x1edd   :  { %v11431_v38 = vpop.eup %11430  ;;  %v6765_v15 = vmul.f32 1.442695, %v6759_v43 }
0x1ede   :  { %v6772_v9 = vsel %vm2504_vm8, %v11431_v38, 0.0 }
0x1edf   :  { %11432 = vpow2.f32 %v6765_v15  ;;  %6773 = vadd.xlane.f32.xlu2 %v6772_v9 }
0x1ee2   :  { %v6756_v37 = vpop.xlane.xlu0 %6755 }
0x1ee3   :  { %v6760_v28 = vsub.f32 %v6743_v29, %v6756_v37 }
0x1ee5   :  { %v11433_v7 = vpop.eup %11432  ;;  %v6767_v57 = vmul.f32 1.442695, %v6760_v28 }
0x1ee6   :  { %v6775_v39 = vsel %vm2504_vm8, %v11433_v7, 0.0 }
0x1ee7   :  { %11434 = vpow2.f32 %v6767_v57  ;;  %6776 = vadd.xlane.f32.xlu0 %v6775_v39 }
0x1eed   :  { %v11435_v14 = vpop.eup %11434 }
0x1eee   :  { %v6778_v2 = vsel %vm2514_vm3, %v11435_v14, 0.0 }
0x1eef   :  { %6779 = vadd.xlane.f32.xlu1 %v6778_v2  ;;  %v10053_v2 = vld [vmem:[%s14730_s17 + $0x48] sm:$0xff] }
0x1f4a   :  { %v6771_v61 = vpop.xlane.xlu1 %6770 }
0x1f4b   :  { %11436 = vrcp.f32 %v6771_v61 }
0x1f51   :  { %v11437_v17 = vpop.eup %11436 }
0x1f52   :  { %v6785_v31 = vmul.f32 %v11437_v17, %v11429_v4  ;;  %v6774_v18 = vpop.xlane.xlu2 %6773 }
0x1f53   :  { %11438 = vrcp.f32 %v6774_v18  ;;  %v7052_v18 = vunpack.c.h.b16 %v10053_v2 }
0x1f54   :  { %10040 = vmatmul.msk.f32.vlgmr.msra.gmra.mxu1 %vm2504_vm8, %v6785_v31  ;;  %v7051_v31 = vunpack.c.l.b16 %v10053_v2 }
0x1f59   :  { %v11439_v26 = vpop.eup %11438 }
0x1f5a   :  { %v6777_v55 = vpop.xlane.xlu0 %6776  ;;  %v6786_v58 = vmul.f32 %v11439_v26, %v11431_v38 }
0x1f5b   :  { %11440 = vrcp.f32 %v6777_v55 }
0x1f5c   :  { %10041 = vmatmul.msk.f32.gmra.mxu1 %vm2504_vm8, %v6786_v58  ;;  %v7067_v58 = vpack.c.b16 %v7051_v31, %v7051_v31 }
0x1f61   :  { %v11441_v5 = vpop.eup %11440 }
0x1f62   :  { %v6780_v49 = vpop.xlane.xlu1 %6779  ;;  %v6787_v21 = vmul.f32 %v11441_v5, %v11433_v7  ;;  %v7068_v5 = vpack.c.b16 %v7052_v18, %v7052_v18 }
0x1f63   :  { %11442 = vrcp.f32 %v6780_v49 }
0x1f64   :  { %10042 = vmatmul.msk.f32.gmra.mxu1 %vm2504_vm8, %v6787_v21 }
0x1f69   :  { %v11443_v16 = vpop.eup %11442 }
0x1f6a   :  { %v6788_v45 = vmul.f32 %v11443_v16, %v11435_v14  ;;  %v10052_v14 = vld [vmem:[%s14730_s17 + $0x40] sm:$0xff] }
0x1f6b   :  { %v7049_v33 = vunpack.c.l.b16 %v10052_v14  ;;  %v7050_v17 = vunpack.c.h.b16 %v10052_v14 }
0x1f6c   :  { %10043 = vmatmul.msk.f32.gmra.mxu1 %vm2504_vm8, %v6788_v45  ;;  %v7094_v45 = vsel %vm134_vm2, %v7067_v58, 0 }
0x1f6d   :  { %v7065_v26 = vpack.c.b16 %v7049_v33, %v7049_v33  ;;  %v7066_v55 = vpack.c.b16 %v7050_v17, %v7050_v17  ;;  %7180 = vmatpush.bf16.msrb.mxu1 %v7094_v45 }
0x1f6f   :  { %v7088_v49 = vsel %vm134_vm2, %v7065_v26, 0  ;;  %v7091_v21 = vsel %vm134_vm2, %v7066_v55, 0 }
0x1f70   :  { %7142 = vmatpush.bf16.msrb.mxu2 %v7088_v49  ;;  %7161 = vmatpush.bf16.msrb.mxu3 %v7091_v21 }
0x1fd1   :  { %v6821_v10 = vpop.f32.mrf.mxu1 }
0x1fd2   :  { %10046 = vmatmul.msk.f32.vlgmr.msra.gmra.mxu0 %vm2450_vm4, %v6821_v10  ;;  %v7097_v10 = vsel %vm134_vm2, %v7068_v5, 0 }
0x1fd3   :  { %7199 = vmatpush.bf16.msrb.mxu0 %v7097_v10 }
0x1fd9   :  { %v6824_v62 = vpop.f32.mrf.mxu1 }
0x1fda   :  { %10047 = vmatmul.msk.f32.gmra.mxu0 %vm2450_vm4, %v6824_v62 }
0x1fe1   :  { %v6827_v52 = vpop.f32.mrf.mxu1 }
0x1fe2   :  { %10048 = vmatmul.msk.f32.gmra.mxu0 %vm2450_vm4, %v6827_v52 }
0x1fe9   :  { %v6830_v35 = vpop.f32.mrf.mxu1 }
0x1fea   :  { %10049 = vmatmul.msk.f32.gmra.mxu0 %vm2450_vm4, %v6830_v35 }
0x204f   :  { %v6867_v50 = vpop.f32.mrf.mxu0 }
0x2050   :  { %v6879_v6 = vadd.f32 %v6867_v50, %v13965_v63 }
0x2052   :  { %v6883_v46 = vadd.f32 %v6879_v6, %v13644_v47  ;;  %v5973_v47 = vadd.f32 %v13897_v60, %v13817_v19 }
0x2054   :  { %v6891_v40 = vsel %vm161_vm1, %v6883_v46, 0.0  ;;  %v6276_v13 = vadd.f32 %v13909_v42, %v5973_v47 }
0x2055   :  { %6892 = vadd.xlane.f32.xlu2 %v6891_v40 }
0x2056   :  { %v6579_v22 = vadd.f32 %v13972_v53, %v6276_v13  ;;  %v10055_v13 = vld [vmem:[%s14730_s17 + $0x58] sm:$0xff] }
0x2057   :  { %v6870_v34 = vpop.f32.mrf.mxu0 }
0x2058   :  { %v6880_v24 = vadd.f32 %v6870_v34, %v6577_v20 }
0x205a   :  { %v6884_v56 = vadd.f32 %v6880_v24, %v13653_v54 }
0x205c   :  { %v6894_v48 = vsel %vm161_vm1, %v6884_v56, 0.0 }
0x205d   :  { %6895 = vadd.xlane.f32.xlu0 %v6894_v48 }
0x205f   :  { %v6873_v63 = vpop.f32.mrf.mxu0 }
0x2060   :  { %v6881_v29 = vadd.f32 %v6873_v63, %v13970_v23 }
0x2062   :  { %v6885_v1 = vadd.f32 %v6881_v29, %v13662_v36 }
0x2064   :  { %v6897_v44 = vsel %vm161_vm1, %v6885_v1, 0.0 }
0x2065   :  { %6898 = vadd.xlane.f32.xlu1 %v6897_v44 }
0x2067   :  { %v6876_v25 = vpop.f32.mrf.mxu0 }
0x2068   :  { %v6882_v54 = vadd.f32 %v6876_v25, %v6579_v22 }
0x206a   :  { %v6886_v32 = vadd.f32 %v6882_v54, %v13671_v51 }
0x206c   :  { %v6900_v0 = vsel %vm3570_vm10, %v6886_v32, 0.0 }
0x206d   :  { %6901 = vadd.xlane.f32.xlu2 %v6900_v0  ;;  %v7056_v0 = vunpack.c.h.b16 %v10055_v13 }
0x20c8   :  { %v6893_v23 = vpop.xlane.xlu2 %6892 }
0x20c9   :  { %v6903_v8 = vmul.f32 %v6893_v23, %v12937_v41 }
0x20cb   :  { %v14017_v19 = vsub.f32 %v6883_v46, %v6903_v8  ;;  %v11165_v8 = vld [vmem:[%s14734_s21 + $0x4] ss:$0 sm:$0xff] }
0x20cd   :  { %v6911_v36 = vmul.f32 %v14017_v19, %v14017_v19 }
0x20cf   :  { %v6915_v60 = vsel %vm161_vm1, %v6911_v36, 0.0 }
0x20d0   :  { %6916 = vadd.xlane.f32.xlu0 %v6915_v60  ;;  %v6896_v42 = vpop.xlane.xlu0 %6895 }
0x20d1   :  { %v6904_v53 = vmul.f32 %v6896_v42, %v12937_v41 }
0x20d3   :  { %v14023_v59 = vsub.f32 %v6884_v56, %v6904_v53 }
0x20d5   :  { %v6912_v51 = vmul.f32 %v14023_v59, %v14023_v59 }
0x20d7   :  { %v6918_v4 = vsel %vm161_vm1, %v6912_v51, 0.0 }
0x20d8   :  { %v6899_v3 = vpop.xlane.xlu1 %6898  ;;  %6919 = vadd.xlane.f32.xlu1 %v6918_v4 }
0x20d9   :  { %v6905_v30 = vmul.f32 %v6899_v3, %v12937_v41 }
0x20db   :  { %v14029_v12 = vsub.f32 %v6885_v1, %v6905_v30  ;;  %v10054_v1 = vld [vmem:[%s14730_s17 + $0x50] sm:$0xff] }
0x20dc   :  { %v7053_v22 = vunpack.c.l.b16 %v10054_v1  ;;  %v7054_v25 = vunpack.c.h.b16 %v10054_v1  ;;  %v10058_v1 = vld [vmem:[%s14730_s17 + $0x70] sm:$0xff] }
0x20dd   :  { %v6913_v43 = vmul.f32 %v14029_v12, %v14029_v12 }
0x20de   :  { %v7069_v42 = vpack.c.b16 %v7053_v22, %v7053_v22  ;;  %v7070_v53 = vpack.c.b16 %v7054_v25, %v7054_v25  ;;  %v7062_v22 = vunpack.c.h.b16 %v10058_v1 }
0x20df   :  { %v6921_v38 = vsel %vm161_vm1, %v6913_v43, 0.0 }
0x20e0   :  { %6922 = vadd.xlane.f32.xlu2 %v6921_v38  ;;  %v6902_v15 = vpop.xlane.xlu2 %6901  ;;  %v7100_v30 = vsel %vm134_vm2, %v7069_v42, 0  ;;  %v7103_v43 = vsel %vm134_vm2, %v7070_v53, 0 }
0x20e1   :  { %v6906_v9 = vmul.f32 %v6902_v15, %v12937_v41  ;;  %7218 = vmatpush.bf16.msra.mxu2 %v7100_v30  ;;  %7237 = vmatpush.bf16.msra.mxu3 %v7103_v43  ;;  %v11023_v30 = vld [vmem:[%s14732_s19 + $0x4f0] sm:$0xff]  ;;  %v11000_v43 = vld [vmem:[%s14732_s19 + $0x438] sm:$0xff] }
0x20e3   :  { %v14035_v37 = vsub.f32 %v6886_v32, %v6906_v9  ;;  %v7055_v32 = vunpack.c.l.b16 %v10055_v13  ;;  %v10059_v13 = vld [vmem:[%s14730_s17 + $0x78] sm:$0xff] }
0x20e4   :  { %v7063_v25 = vunpack.c.l.b16 %v10059_v13 }
0x20e5   :  { %v6914_v28 = vmul.f32 %v14035_v37, %v14035_v37  ;;  %v7071_v3 = vpack.c.b16 %v7055_v32, %v7055_v32 }
0x20e7   :  { %v6924_v7 = vsel %vm3570_vm10, %v6914_v28, 0.0  ;;  %v7106_v9 = vsel %vm134_vm2, %v7071_v3, 0  ;;  %v11166_v28 = vld [vmem:[%s14734_s21 + $0x5] ss:$0 sm:$0xff]  ;;  %v11015_v3 = vld [vmem:[%s14732_s19 + $0x4b0] sm:$0xff] }
0x20e8   :  { %6925 = vadd.xlane.f32.xlu0 %v6924_v7  ;;  %7256 = vmatpush.bf16.msra.mxu1 %v7106_v9  ;;  %v11022_v9 = vld [vmem:[%s14732_s19 + $0x4e8] sm:$0xff] }
0x2143   :  { %v6917_v57 = vpop.xlane.xlu0 %6916 }
0x2144   :  { %v6927_v39 = vmul.f32 %v6917_v57, %v12937_v41 }
0x2146   :  { %v6931_v61 = vadd.f32 1e-05, %v6927_v39 }
0x2148   :  { %11444 = vrsqrt.f32 %v6931_v61  ;;  %vm6941_vm8 = vweird.f32 %v6931_v61 }
0x214b   :  { %v6920_v16 = vpop.xlane.xlu1 %6919 }
0x214c   :  { %v6928_v62 = vmul.f32 %v6920_v16, %v12937_v41 }
0x214e   :  { %v11445_v52 = vpop.eup %11444  ;;  %v6932_v35 = vadd.f32 1e-05, %v6928_v62 }
0x214f   :  { %v6936_v50 = vmul.f32 %v11445_v52, %v6931_v61  ;;  %vm6942_vm4 = vweird.f32 %v11445_v52 }
0x2150   :  { %11446 = vrsqrt.f32 %v6932_v35  ;;  %vm6943_vm3 = vmor %vm6941_vm8, %vm6942_vm4  ;;  %vm6951_vm12 = vweird.f32 %v6932_v35 }
0x2151   :  { %v6937_v6 = vmul.f32 %v11445_v52, %v6936_v50 }
0x2153   :  { %v6938_v27 = vmul.f32 0.5, %v6937_v6  ;;  %v6923_v46 = vpop.xlane.xlu2 %6922 }
0x2154   :  { %v6929_v11 = vmul.f32 %v6923_v46, %v12937_v41 }
0x2155   :  { %v6939_v40 = vsub.f32 1.5, %v6938_v27 }
0x2156   :  { %v11447_v20 = vpop.eup %11446  ;;  %v6933_v34 = vadd.f32 1e-05, %v6929_v11 }
0x2157   :  { %v6940_v24 = vmul.f32 %v11445_v52, %v6939_v40  ;;  %v6946_v56 = vmul.f32 %v11447_v20, %v6932_v35  ;;  %vm6952_vm0 = vweird.f32 %v11447_v20 }
0x2158   :  { %11448 = vrsqrt.f32 %v6933_v34  ;;  %vm6953_vm13 = vmor %vm6951_vm12, %vm6952_vm0  ;;  %vm6961_vm15 = vweird.f32 %v6933_v34 }
0x2159   :  { %v6947_v48 = vmul.f32 %v11447_v20, %v6946_v56  ;;  %v6944_v63 = vsel %vm6943_vm3, %v11445_v52, %v6940_v24 }
0x215a   :  { %v6975_v36 = vmul.f32 %v6944_v63, %v14017_v19  ;;  %v7072_v19 = vpack.c.b16 %v7056_v0, %v7056_v0  ;;  %v7078_v0 = vpack.c.b16 %v7062_v22, %v7062_v22 }
0x215b   :  { %v6948_v29 = vmul.f32 0.5, %v6947_v48  ;;  %v6926_v47 = vpop.xlane.xlu0 %6925 }
0x215c   :  { %v6930_v44 = vmul.f32 %v6926_v47, %v12937_v41  ;;  %v6982_v7 = vmul.f32 %v11165_v8, %v6975_v36  ;;  %v7109_v14 = vsel %vm134_vm2, %v7072_v19, 0  ;;  %v10999_v19 = vld [vmem:[%s14732_s19 + $0x430] sm:$0xff] }
0x215d   :  { %v6949_v54 = vsub.f32 1.5, %v6948_v29  ;;  %7275 = vmatpush.bf16.msra.mxu0 %v7109_v14  ;;  %v11006_v14 = vld [vmem:[%s14732_s19 + $0x468] sm:$0xff] }
0x215e   :  { %v11449_v23 = vpop.eup %11448  ;;  %v6934_v60 = vadd.f32 1e-05, %v6930_v44  ;;  %v14072_v17 = vadd.f32 %v11166_v28, %v6982_v7  ;;  %v7061_v44 = vunpack.c.l.b16 %v10058_v1  ;;  %v11013_v7 = vld [vmem:[%s14732_s19 + $0x4a0] sm:$0xff]  ;;  %v11038_v1 = vld [vmem:[%s14732_s19 + $0x568] sm:$0xff] }
0x215f   :  { %v6950_v51 = vmul.f32 %v11447_v20, %v6949_v54  ;;  %v6956_v4 = vmul.f32 %v11449_v23, %v6933_v34  ;;  %vm6962_vm14 = vweird.f32 %v11449_v23  ;;  %v7064_v54 = vunpack.c.h.b16 %v10059_v13  ;;  %v14315_v13 = vld [vmem:[%s14731_s18 + $0x10] sm:$0xff] }
0x2160   :  { %11450 = vrsqrt.f32 %v6934_v60  ;;  %vm6963_vm5 = vmor %vm6961_vm15, %vm6962_vm14  ;;  %vm6971_vm7 = vweird.f32 %v6934_v60  ;;  %v7077_v32 = vpack.c.b16 %v7061_v44, %v7061_v44 }
0x2161   :  { %v6954_v38 = vsel %vm6953_vm13, %v11447_v20, %v6950_v51  ;;  %v6957_v15 = vmul.f32 %v11449_v23, %v6956_v4  ;;  %v11016_v51 = vld [vmem:[%s14732_s19 + $0x4b8] sm:$0xff] }
0x2162   :  { %v6976_v57 = vmul.f32 %v6954_v38, %v14023_v59  ;;  %v7124_v36 = vsel %vm134_vm2, %v7077_v32, 0  ;;  %v11024_v4 = vld [vmem:[%s14732_s19 + $0x4f8] sm:$0xff]  ;;  %v14324_v32 = vperm.slane %v14315_v13, 2 }
0x2163   :  { %v6958_v39 = vmul.f32 0.5, %v6957_v15  ;;  %v11008_v38 = vld [vmem:[%s14732_s19 + $0x478] sm:$0xff]  ;;  %v11014_v15 = vld [vmem:[%s14732_s19 + $0x4a8] sm:$0xff] }
0x2164   :  { %v6983_v2 = vmul.f32 %v11165_v8, %v6976_v57  ;;  %v11021_v57 = vld [vmem:[%s14732_s19 + $0x4e0] sm:$0xff] }
0x2165   :  { %v6959_v61 = vsub.f32 1.5, %v6958_v39  ;;  %v10998_v39 = vld [vmem:[%s14732_s19 + $0x428] sm:$0xff] }
0x2166   :  { %v11451_v33 = vpop.eup %11450  ;;  %v14074_v31 = vadd.f32 %v11166_v28, %v6983_v2  ;;  %v11012_v2 = vld [vmem:[%s14732_s19 + $0x498] sm:$0xff] }
0x2167   :  { %v6960_v18 = vmul.f32 %v11449_v23, %v6959_v61  ;;  %v6966_v26 = vmul.f32 %v11451_v33, %v6934_v60  ;;  %vm6972_vm6 = vweird.f32 %v11451_v33  ;;  %v7127_v60 = vsel %vm134_vm2, %v7078_v0, 0  ;;  %v11020_v61 = vld [vmem:[%s14732_s19 + $0x4d8] sm:$0xff] }
0x2168   :  { %v14078_v55 = vpack.c.bf16 %v14074_v31, %v14072_v17  ;;  %vm6973_vm11 = vmor %vm6971_vm7, %vm6972_vm6  ;;  %v14327_v0 = vperm.slane %v14315_v13, 3  ;;  %vm8993_vm7 = vcmask 1040384  }
0x2169   :  { %v6967_v59 = vmul.f32 %v11451_v33, %v6966_v26  ;;  %v6964_v58 = vsel %vm6963_vm5, %v11449_v23, %v6960_v18  ;;  %v7079_v23 = vpack.c.b16 %v7063_v25, %v7063_v25  ;;  %v11005_v18 = vld [vmem:[%s14732_s19 + $0x460] sm:$0xff]  ;;  %v11011_v26 = vld [vmem:[%s14732_s19 + $0x490] sm:$0xff]  ;;  %v11044_v25 = vld [vmem:[%s14732_s19 + $0x598] sm:$0xff] }
0x216a   :  { %10062 = vmatmul.msk.bf16.vlgmr.msrb.gmra.mxu2 %vm161_vm1, %v14078_v55  ;;  %10064 = vmatmul.msk.bf16.vlgmr.msrb.gmra.mxu3 %vm161_vm1, %v14078_v55  ;;  %v6977_v21 = vmul.f32 %v6964_v58, %v14029_v12  ;;  %v10056_v12 = vld [vmem:[%s14730_s17 + $0x60] sm:$0xff]  ;;  %v11004_v58 = vld [vmem:[%s14732_s19 + $0x458] sm:$0xff] }
0x216b   :  { %v6968_v5 = vmul.f32 0.5, %v6967_v59  ;;  %10066 = vmatmul.msk.bf16.vlgmr.msrb.gmra.mxu1 %vm161_vm1, %v14078_v55  ;;  %10068 = vmatmul.msk.bf16.vlgmr.msrb.gmra.mxu0 %vm161_vm1, %v14078_v55  ;;  %v7057_v27 = vunpack.c.l.b16 %v10056_v12  ;;  %v7058_v46 = vunpack.c.h.b16 %v10056_v12  ;;  %v7130_v42 = vsel %vm134_vm2, %v7079_v23, 0  ;;  %v11019_v59 = vld [vmem:[%s14732_s19 + $0x4d0] sm:$0xff]  ;;  %v11048_v12 = vld [vmem:[%s14732_s19 + $0x5b8] sm:$0xff]  ;;  %v11029_v23 = vld [vmem:[%s14732_s19 + $0x520] sm:$0xff] }
0x216c   :  { %v6984_v10 = vmul.f32 %v11165_v8, %v6977_v21  ;;  %v10995_v21 = vld [vmem:[%s14732_s19 + $0x410] sm:$0xff] }
0x216d   :  { %v6969_v49 = vsub.f32 1.5, %v6968_v5  ;;  %v7073_v20 = vpack.c.b16 %v7057_v27, %v7057_v27  ;;  %v7074_v34 = vpack.c.b16 %v7058_v46, %v7058_v46  ;;  %v11010_v5 = vld [vmem:[%s14732_s19 + $0x488] sm:$0xff]  ;;  %v10993_v27 = vld [vmem:[%s14732_s19 + $0x400] sm:$0xff] }
0x216e   :  { %v14090_v35 = vadd.f32 %v11166_v28, %v6984_v10  ;;  %v11017_v10 = vld [vmem:[%s14732_s19 + $0x4c0] sm:$0xff] }
0x216f   :  { %v6970_v16 = vmul.f32 %v11451_v33, %v6969_v49  ;;  %v7112_v48 = vsel %vm134_vm2, %v7073_v20, 0  ;;  %v7115_v63 = vsel %vm134_vm2, %v7074_v34, 0  ;;  %v11018_v49 = vld [vmem:[%s14732_s19 + $0x4c8] sm:$0xff]  ;;  %v11001_v46 = vld [vmem:[%s14732_s19 + $0x440] sm:$0xff]  ;;  %v11040_v20 = vld [vmem:[%s14732_s19 + $0x578] sm:$0xff] }
0x2170   :  { %7294 = vmatpush.bf16.msrb.mxu2 %v7112_v48  ;;  %7313 = vmatpush.bf16.msrb.mxu3 %v7115_v63  ;;  %v11046_v34 = vld [vmem:[%s14732_s19 + $0x5a8] sm:$0xff]  ;;  %v11039_v48 = vld [vmem:[%s14732_s19 + $0x570] sm:$0xff]  ;;  %v11045_v63 = vld [vmem:[%s14732_s19 + $0x5a0] sm:$0xff] }
0x2171   :  { %v6974_v45 = vsel %vm6973_vm11, %v11451_v33, %v6970_v16  ;;  %v10997_v33 = vld [vmem:[%s14732_s19 + $0x420] sm:$0xff]  ;;  %v11003_v16 = vld [vmem:[%s14732_s19 + $0x450] sm:$0xff]  ;;  %vm8996_vm11 = vcmask 1042432  }
0x2172   :  { %v6978_v62 = vmul.f32 %v6974_v45, %v14035_v37  ;;  %v10057_v37 = vld [vmem:[%s14730_s17 + $0x68] sm:$0xff]  ;;  %v11009_v45 = vld [vmem:[%s14732_s19 + $0x480] sm:$0xff] }
0x2173   :  { %v7059_v11 = vunpack.c.l.b16 %v10057_v37  ;;  %v7060_v40 = vunpack.c.h.b16 %v10057_v37  ;;  %v11056_v37 = vld [vmem:[%s14732_s19 + $0x5f8] sm:$0xff] }
0x2174   :  { %v6985_v52 = vmul.f32 %v11165_v8, %v6978_v62  ;;  %v7080_v8 = vpack.c.b16 %v7064_v54, %v7064_v54  ;;  %v10994_v62 = vld [vmem:[%s14732_s19 + $0x408] sm:$0xff]  ;;  %v11052_v54 = vld [vmem:[%s14732_s19 + $0x5d8] sm:$0xff] }
0x2175   :  { %v7075_v24 = vpack.c.b16 %v7059_v11, %v7059_v11  ;;  %v7076_v56 = vpack.c.b16 %v7060_v40, %v7060_v40  ;;  %v11047_v11 = vld [vmem:[%s14732_s19 + $0x5b0] sm:$0xff] }
0x2176   :  { %v14092_v50 = vadd.f32 %v11166_v28, %v6985_v52  ;;  %v7133_v53 = vsel %vm134_vm2, %v7080_v8, 0  ;;  %v11007_v28 = vld [vmem:[%s14732_s19 + $0x470] sm:$0xff]  ;;  %v11002_v52 = vld [vmem:[%s14732_s19 + $0x448] sm:$0xff]  ;;  %v11037_v8 = vld [vmem:[%s14732_s19 + $0x560] sm:$0xff] }
0x2177   :  { %v7118_v29 = vsel %vm134_vm2, %v7075_v24, 0  ;;  %v7121_v47 = vsel %vm134_vm2, %v7076_v56, 0  ;;  %v11055_v40 = vld [vmem:[%s14732_s19 + $0x5f0] sm:$0xff]  ;;  %v11054_v24 = vld [vmem:[%s14732_s19 + $0x5e8] sm:$0xff] }
0x2178   :  { %v14096_v6 = vpack.c.bf16 %v14092_v50, %v14090_v35  ;;  %7332 = vmatpush.bf16.msrb.mxu1 %v7118_v29  ;;  %7351 = vmatpush.bf16.msrb.mxu0 %v7121_v47  ;;  %v11031_v56 = vld [vmem:[%s14732_s19 + $0x530] sm:$0xff]  ;;  %v11053_v29 = vld [vmem:[%s14732_s19 + $0x5e0] sm:$0xff]  ;;  %v11030_v47 = vld [vmem:[%s14732_s19 + $0x528] sm:$0xff] }
0x217a   :  { %10063 = vmatmul.msk.bf16.gmra.mxu2 %vm161_vm1, %v14096_v6  ;;  %10065 = vmatmul.msk.bf16.gmra.mxu3 %vm161_vm1, %v14096_v6 }
0x217b   :  { %10067 = vmatmul.msk.bf16.gmra.mxu1 %vm161_vm1, %v14096_v6  ;;  %10069 = vmatmul.msk.bf16.gmra.mxu0 %vm161_vm1, %v14096_v6 }
0x218a   :  { %10070 = vmatmul.msk.bf16.vlgmr.msra.gmra.mxu2 %vm161_vm1, %v14078_v55  ;;  %10072 = vmatmul.msk.bf16.vlgmr.msra.gmra.mxu3 %vm161_vm1, %v14078_v55 }
0x218b   :  { %10074 = vmatmul.msk.bf16.vlgmr.msra.gmra.mxu1 %vm161_vm1, %v14078_v55  ;;  %10076 = vmatmul.msk.bf16.vlgmr.msra.gmra.mxu0 %vm161_vm1, %v14078_v55 }
0x218c   :  { %7370 = vmatpush.bf16.msra.mxu2 %v7124_v36  ;;  %7389 = vmatpush.bf16.msra.mxu3 %v7127_v60  ;;  %v11043_v36 = vld [vmem:[%s14732_s19 + $0x590] sm:$0xff] }
0x218d   :  { %7408 = vmatpush.bf16.msra.mxu1 %v7130_v42  ;;  %7427 = vmatpush.bf16.msra.mxu0 %v7133_v53  ;;  %v11051_v60 = vld [vmem:[%s14732_s19 + $0x5d0] sm:$0xff] }
0x219a   :  { %10071 = vmatmul.msk.bf16.gmra.mxu2 %vm161_vm1, %v14096_v6  ;;  %10073 = vmatmul.msk.bf16.gmra.mxu3 %vm161_vm1, %v14096_v6 }
0x219b   :  { %10075 = vmatmul.msk.bf16.gmra.mxu1 %vm161_vm1, %v14096_v6  ;;  %10077 = vmatmul.msk.bf16.gmra.mxu0 %vm161_vm1, %v14096_v6 }
0x21aa   :  { %10078 = vmatmul.msk.bf16.vlgmr.msrb.gmra.mxu2 %vm161_vm1, %v14078_v55  ;;  %10080 = vmatmul.msk.bf16.vlgmr.msrb.gmra.mxu3 %vm161_vm1, %v14078_v55 }
0x21ab   :  { %10082 = vmatmul.msk.bf16.vlgmr.msrb.gmra.mxu1 %vm161_vm1, %v14078_v55  ;;  %10084 = vmatmul.msk.bf16.vlgmr.msrb.gmra.mxu0 %vm161_vm1, %v14078_v55 }
0x21ac   :  { %8603 = vmatpush.bf16.msrb.mxu1 %v11016_v51  ;;  %8622 = vmatpush.bf16.msrb.mxu0 %v11024_v4 }
0x21ad   :  { %8565 = vmatpush.bf16.msrb.mxu2 %v11000_v43  ;;  %8584 = vmatpush.bf16.msrb.mxu3 %v11008_v38  ;;  %v14350_v43 = vperm.slane %v14315_v13, 0  ;;  %v14353_v38 = vperm.slane %v14315_v13, 1 }
0x21b0   :  { %8604 = vmatpush.bf16.msrb.mxu1 %v11015_v3  ;;  %8623 = vmatpush.bf16.msrb.mxu0 %v11023_v30  ;;  %v11028_v3 = vld [vmem:[%s14732_s19 + $0x518] sm:$0xff] }
0x21b1   :  { %8566 = vmatpush.bf16.msrb.mxu2 %v10999_v19  ;;  %8585 = vmatpush.bf16.msrb.mxu3 %v11007_v28  ;;  %v11036_v30 = vld [vmem:[%s14732_s19 + $0x558] sm:$0xff] }
0x21b4   :  { %8605 = vmatpush.bf16.msrb.mxu1 %v11014_v15  ;;  %8624 = vmatpush.bf16.msrb.mxu0 %v11022_v9 }
0x21b5   :  { %8567 = vmatpush.bf16.msrb.mxu2 %v10998_v39  ;;  %8586 = vmatpush.bf16.msrb.mxu3 %v11006_v14 }
0x21b8   :  { %8606 = vmatpush.bf16.msrb.mxu1 %v11013_v7  ;;  %8625 = vmatpush.bf16.msrb.mxu0 %v11021_v57  ;;  %v11042_v7 = vld [vmem:[%s14732_s19 + $0x588] sm:$0xff] }
0x21b9   :  { %8568 = vmatpush.bf16.msrb.mxu2 %v10997_v33  ;;  %8587 = vmatpush.bf16.msrb.mxu3 %v11005_v18  ;;  %v11050_v57 = vld [vmem:[%s14732_s19 + $0x5c8] sm:$0xff]  ;;  %v11027_v33 = vld [vmem:[%s14732_s19 + $0x510] sm:$0xff] }
0x21ba   :  { %10079 = vmatmul.msk.bf16.gmra.mxu2 %vm161_vm1, %v14096_v6  ;;  %10081 = vmatmul.msk.bf16.gmra.mxu3 %vm161_vm1, %v14096_v6  ;;  %v11035_v18 = vld [vmem:[%s14732_s19 + $0x550] sm:$0xff] }
0x21bb   :  { %10083 = vmatmul.msk.bf16.gmra.mxu1 %vm161_vm1, %v14096_v6  ;;  %10085 = vmatmul.msk.bf16.gmra.mxu0 %vm161_vm1, %v14096_v6 }
0x21bc   :  { %8607 = vmatpush.bf16.msrb.mxu1 %v11012_v2  ;;  %8626 = vmatpush.bf16.msrb.mxu0 %v11020_v61 }
0x21bd   :  { %8588 = vmatpush.bf16.msrb.mxu3 %v11004_v58 }
0x21c0   :  { %8608 = vmatpush.bf16.msrb.mxu1 %v11011_v26  ;;  %8627 = vmatpush.bf16.msrb.mxu0 %v11019_v59 }
0x21c1   :  { %8589 = vmatpush.bf16.msrb.mxu3 %v11003_v16  ;;  %v11049_v16 = vld [vmem:[%s14732_s19 + $0x5c0] sm:$0xff] }
0x21c4   :  { %8609 = vmatpush.bf16.msrb.mxu1 %v11010_v5  ;;  %8628 = vmatpush.bf16.msrb.mxu0 %v11018_v49 }
0x21c5   :  { %8590 = vmatpush.bf16.msrb.mxu3 %v11002_v52  ;;  %v11034_v52 = vld [vmem:[%s14732_s19 + $0x548] sm:$0xff] }
0x21c8   :  { %8610 = vmatpush.bf16.msrb.mxu1 %v11009_v45  ;;  %8629 = vmatpush.bf16.msrb.mxu0 %v11017_v10 }
0x21c9   :  { %8591 = vmatpush.bf16.msrb.mxu3 %v11001_v46 }
0x21ca   :  { %10086 = vmatmul.msk.bf16.vlgmr.msra.gmra.mxu2 %vm161_vm1, %v14078_v55  ;;  %10088 = vmatmul.msk.bf16.vlgmr.msra.gmra.mxu3 %vm161_vm1, %v14078_v55 }
0x21cb   :  { %10090 = vmatmul.msk.bf16.vlgmr.msra.gmra.mxu1 %vm161_vm1, %v14078_v55  ;;  %10092 = vmatmul.msk.bf16.vlgmr.msra.gmra.mxu0 %vm161_vm1, %v14078_v55  ;;  %v10996_v55 = vld [vmem:[%s14732_s19 + $0x418] sm:$0xff] }
0x21cc   :  { %8569 = vmatpush.bf16.msrb.mxu2 %v10996_v55  ;;  %8679 = vmatpush.bf16.msra.mxu1 %v11048_v12 }
0x21cd   :  { %8698 = vmatpush.bf16.msra.mxu0 %v11056_v37  ;;  %8660 = vmatpush.bf16.msra.mxu3 %v11040_v20  ;;  %v11088_v20 = vld [vmem:[%s14732_s19 + $0x6f8] sm:$0xff] }
0x21d0   :  { %8570 = vmatpush.bf16.msrb.mxu2 %v10995_v21  ;;  %8680 = vmatpush.bf16.msra.mxu1 %v11047_v11  ;;  %v11041_v21 = vld [vmem:[%s14732_s19 + $0x580] sm:$0xff] }
0x21d1   :  { %8699 = vmatpush.bf16.msra.mxu0 %v11055_v40  ;;  %8661 = vmatpush.bf16.msra.mxu3 %v11039_v48  ;;  %v11033_v48 = vld [vmem:[%s14732_s19 + $0x540] sm:$0xff] }
0x21d4   :  { %8571 = vmatpush.bf16.msrb.mxu2 %v10994_v62  ;;  %8681 = vmatpush.bf16.msra.mxu1 %v11046_v34  ;;  %v11026_v62 = vld [vmem:[%s14732_s19 + $0x508] sm:$0xff] }
0x21d5   :  { %8700 = vmatpush.bf16.msra.mxu0 %v11054_v24  ;;  %8662 = vmatpush.bf16.msra.mxu3 %v11038_v1 }
0x21d8   :  { %8572 = vmatpush.bf16.msrb.mxu2 %v10993_v27  ;;  %8682 = vmatpush.bf16.msra.mxu1 %v11045_v63  ;;  %v11079_v63 = vld [vmem:[%s14732_s19 + $0x6b0] sm:$0xff] }
0x21d9   :  { %8701 = vmatpush.bf16.msra.mxu0 %v11053_v29  ;;  %8663 = vmatpush.bf16.msra.mxu3 %v11037_v8  ;;  %v11087_v29 = vld [vmem:[%s14732_s19 + $0x6f0] sm:$0xff] }
0x21da   :  { %10087 = vmatmul.msk.bf16.gmra.mxu2 %vm161_vm1, %v14096_v6  ;;  %10089 = vmatmul.msk.bf16.gmra.mxu3 %vm161_vm1, %v14096_v6 }
0x21db   :  { %10091 = vmatmul.msk.bf16.gmra.mxu1 %vm161_vm1, %v14096_v6  ;;  %10093 = vmatmul.msk.bf16.gmra.mxu0 %vm161_vm1, %v14096_v6  ;;  %v11032_v6 = vld [vmem:[%s14732_s19 + $0x538] sm:$0xff] }
0x21dc   :  { %8641 = vmatpush.bf16.msra.mxu2 %v11032_v6  ;;  %8683 = vmatpush.bf16.msra.mxu1 %v11044_v25  ;;  %v11080_v6 = vld [vmem:[%s14732_s19 + $0x6b8] sm:$0xff] }
0x21dd   :  { %8702 = vmatpush.bf16.msra.mxu0 %v11052_v54  ;;  %8664 = vmatpush.bf16.msra.mxu3 %v11036_v30  ;;  %v11064_v25 = vld [vmem:[%s14732_s19 + $0x638] sm:$0xff] }
0x21de   :  { %v11072_v54 = vld [vmem:[%s14732_s19 + $0x678] sm:$0xff] }
0x21e0   :  { %8642 = vmatpush.bf16.msra.mxu2 %v11031_v56  ;;  %8684 = vmatpush.bf16.msra.mxu1 %v11043_v36  ;;  %v11025_v56 = vld [vmem:[%s14732_s19 + $0x500] sm:$0xff] }
0x21e1   :  { %8703 = vmatpush.bf16.msra.mxu0 %v11051_v60  ;;  %8665 = vmatpush.bf16.msra.mxu3 %v11035_v18  ;;  %v11070_v18 = vld [vmem:[%s14732_s19 + $0x668] sm:$0xff] }
0x21e4   :  { %8643 = vmatpush.bf16.msra.mxu2 %v11030_v47  ;;  %8685 = vmatpush.bf16.msra.mxu1 %v11042_v7 }
0x21e5   :  { %8704 = vmatpush.bf16.msra.mxu0 %v11050_v57  ;;  %8666 = vmatpush.bf16.msra.mxu3 %v11034_v52  ;;  %v11069_v52 = vld [vmem:[%s14732_s19 + $0x660] sm:$0xff] }
0x21e8   :  { %v7182_v44 = vpop.f32.mrf.mxu1  ;;  %v7201_v22 = vpop.f32.mrf.mxu0  ;;  %8644 = vmatpush.bf16.msra.mxu2 %v11029_v23  ;;  %8686 = vmatpush.bf16.msra.mxu1 %v11041_v21 }
0x21e9   :  { %v7183_v51 = vadd.f32 %v7182_v44, %v14324_v32  ;;  %v7202_v4 = vadd.f32 %v7201_v22, %v14327_v0  ;;  %8705 = vmatpush.bf16.msra.mxu0 %v11049_v16  ;;  %8667 = vmatpush.bf16.msra.mxu3 %v11033_v48 }
0x21eb   :  { %v7441_v39 = vmax.f32 %v7183_v51, 0.0  ;;  %v7442_v14 = vmax.f32 %v7202_v4, 0.0 }
0x21ec   :  { %8645 = vmatpush.bf16.msra.mxu2 %v11028_v3 }
0x21ed   :  { %v7144_v42 = vpop.f32.mrf.mxu2  ;;  %v7163_v53 = vpop.f32.mrf.mxu3 }
0x21ee   :  { %v7145_v26 = vadd.f32 %v7144_v42, %v14350_v43  ;;  %v7164_v59 = vadd.f32 %v7163_v53, %v14353_v38  ;;  %v11078_v42 = vld [vmem:[%s14732_s19 + $0x6a8] sm:$0xff] }
0x21ef   :  { %v11086_v53 = vld [vmem:[%s14732_s19 + $0x6e8] sm:$0xff] }
0x21f0   :  { %v7184_v15 = vpop.f32.mrf.mxu1  ;;  %v7203_v9 = vpop.f32.mrf.mxu0  ;;  %8646 = vmatpush.bf16.msra.mxu2 %v11027_v33  ;;  %v7439_v12 = vmax.f32 %v7145_v26, 0.0  ;;  %v7440_v37 = vmax.f32 %v7164_v59, 0.0  ;;  %v11062_v33 = vld [vmem:[%s14732_s19 + $0x628] sm:$0xff] }
0x21f1   :  { %v7185_v19 = vadd.f32 %v7184_v15, %v14324_v32  ;;  %v7204_v28 = vadd.f32 %v7203_v9, %v14327_v0 }
0x21f3   :  { %v7457_v2 = vmax.f32 %v7185_v19, 0.0  ;;  %v7458_v61 = vmax.f32 %v7204_v28, 0.0  ;;  %v11077_v19 = vld [vmem:[%s14732_s19 + $0x6a0] sm:$0xff] }
0x21f4   :  { %8647 = vmatpush.bf16.msra.mxu2 %v11026_v62  ;;  %v11085_v28 = vld [vmem:[%s14732_s19 + $0x6e0] sm:$0xff] }
0x21f5   :  { %v7505_v55 = vpack.c.bf16 %v7457_v2, %v7441_v39  ;;  %v7506_v58 = vpack.c.bf16 %v7458_v61, %v7442_v14  ;;  %v7146_v5 = vpop.f32.mrf.mxu2  ;;  %v7165_v49 = vpop.f32.mrf.mxu3  ;;  %v11061_v62 = vld [vmem:[%s14732_s19 + $0x620] sm:$0xff] }
0x21f6   :  { %v7147_v45 = vadd.f32 %v7146_v5, %v14350_v43  ;;  %v7166_v10 = vadd.f32 %v7165_v49, %v14353_v38 }
0x21f7   :  { %8611 = vmatmul.bf16.vlgmr.msrb.gmra.mxu1 %v7505_v55  ;;  %8630 = vmatmul.bf16.vlgmr.msrb.gmra.mxu0 %v7506_v58 }
0x21f8   :  { %v7455_v27 = vmax.f32 %v7147_v45, 0.0  ;;  %v7456_v46 = vmax.f32 %v7166_v10, 0.0  ;;  %v7187_v11 = vpop.f32.mrf.mxu1  ;;  %v7206_v40 = vpop.f32.mrf.mxu0  ;;  %8755 = vmatpush.bf16.msrb.mxu1 %v11080_v6  ;;  %8774 = vmatpush.bf16.msrb.mxu0 %v11088_v20  ;;  %v14448_v45 = vperm.slane %v14315_v13, 6  ;;  %v14451_v10 = vperm.slane %v14315_v13, 7  ;;  %v11060_v6 = vld [vmem:[%s14732_s19 + $0x618] sm:$0xff] }
0x21f9   :  { %8648 = vmatpush.bf16.msra.mxu2 %v11025_v56  ;;  %v7188_v44 = vadd.f32 %v7187_v11, %v14324_v32  ;;  %v7207_v22 = vadd.f32 %v7206_v40, %v14327_v0  ;;  %v11068_v20 = vld [vmem:[%s14732_s19 + $0x658] sm:$0xff] }
0x21fa   :  { %v7503_v34 = vpack.c.bf16 %v7455_v27, %v7439_v12  ;;  %v7504_v24 = vpack.c.bf16 %v7456_v46, %v7440_v37  ;;  %v11075_v27 = vld [vmem:[%s14732_s19 + $0x690] sm:$0xff] }
0x21fb   :  { %v7473_v51 = vmax.f32 %v7188_v44, 0.0  ;;  %v7474_v4 = vmax.f32 %v7207_v22, 0.0  ;;  %v11083_v46 = vld [vmem:[%s14732_s19 + $0x6d0] sm:$0xff] }
0x21fc   :  { %8573 = vmatmul.bf16.vlgmr.msrb.gmra.mxu2 %v7503_v34  ;;  %8592 = vmatmul.bf16.vlgmr.msrb.gmra.mxu3 %v7504_v24  ;;  %v14474_v34 = vperm.slane %v14315_v13, 4  ;;  %v14477_v24 = vperm.slane %v14315_v13, 5 }
0x21fd   :  { %v7149_v47 = vpop.f32.mrf.mxu2  ;;  %v7168_v1 = vpop.f32.mrf.mxu3  ;;  %8756 = vmatpush.bf16.msrb.mxu1 %v11079_v63  ;;  %8775 = vmatpush.bf16.msrb.mxu0 %v11087_v29 }
0x21fe   :  { %8717 = vmatpush.bf16.msrb.mxu2 %v11064_v25  ;;  %8736 = vmatpush.bf16.msrb.mxu3 %v11072_v54  ;;  %v7150_v15 = vadd.f32 %v7149_v47, %v14350_v43  ;;  %v7169_v9 = vadd.f32 %v7168_v1, %v14353_v38  ;;  %v11074_v47 = vld [vmem:[%s14732_s19 + $0x688] sm:$0xff]  ;;  %v11059_v54 = vld [vmem:[%s14732_s19 + $0x610] sm:$0xff] }
0x21ff   :  { %v11082_v1 = vld [vmem:[%s14732_s19 + $0x6c8] sm:$0xff] }
0x2200   :  { %v7189_v23 = vpop.f32.mrf.mxu1  ;;  %v7208_v8 = vpop.f32.mrf.mxu0  ;;  %v7471_v26 = vmax.f32 %v7150_v15, 0.0  ;;  %v7472_v59 = vmax.f32 %v7169_v9, 0.0  ;;  %v11066_v15 = vld [vmem:[%s14732_s19 + $0x648] sm:$0xff] }
0x2201   :  { %v7190_v36 = vadd.f32 %v7189_v23, %v14324_v32  ;;  %v7209_v60 = vadd.f32 %v7208_v8, %v14327_v0  ;;  %8757 = vmatpush.bf16.msrb.mxu1 %v11078_v42  ;;  %8776 = vmatpush.bf16.msrb.mxu0 %v11086_v53  ;;  %v11063_v32 = vld [vmem:[%s14732_s19 + $0x630] sm:$0xff] }
0x2202   :  { %v11071_v0 = vld [vmem:[%s14732_s19 + $0x670] sm:$0xff]  ;;  %8718 = vmatpush.bf16.msrb.mxu2 %v11063_v32 }
0x2203   :  { %v7489_v3 = vmax.f32 %v7190_v36, 0.0  ;;  %v7490_v30 = vmax.f32 %v7209_v60, 0.0  ;;  %8737 = vmatpush.bf16.msrb.mxu3 %v11071_v0  ;;  %v11067_v23 = vld [vmem:[%s14732_s19 + $0x650] sm:$0xff]  ;;  %v11058_v0 = vld [vmem:[%s14732_s19 + $0x608] sm:$0xff] }
0x2205   :  { %v7151_v7 = vpop.f32.mrf.mxu2  ;;  %v7170_v57 = vpop.f32.mrf.mxu3  ;;  %v7521_v39 = vpack.c.bf16 %v7489_v3, %v7473_v51  ;;  %v7522_v14 = vpack.c.bf16 %v7490_v30, %v7474_v4  ;;  %8758 = vmatpush.bf16.msrb.mxu1 %v11077_v19  ;;  %8777 = vmatpush.bf16.msrb.mxu0 %v11085_v28  ;;  %v11073_v4 = vld [vmem:[%s14732_s19 + $0x680] sm:$0xff] }
0x2206   :  { %v7152_v2 = vadd.f32 %v7151_v7, %v14350_v43  ;;  %v7171_v61 = vadd.f32 %v7170_v57, %v14353_v38  ;;  %8719 = vmatpush.bf16.msrb.mxu2 %v11062_v33  ;;  %v11076_v43 = vld [vmem:[%s14732_s19 + $0x698] sm:$0xff]  ;;  %v11081_v3 = vld [vmem:[%s14732_s19 + $0x6c0] sm:$0xff] }
0x2207   :  { %8616 = vmatmul.bf16.gmra.mxu1 %v7521_v39  ;;  %8635 = vmatmul.bf16.gmra.mxu0 %v7522_v14  ;;  %v11084_v38 = vld [vmem:[%s14732_s19 + $0x6d8] sm:$0xff] }
0x2208   :  { %v7487_v55 = vmax.f32 %v7152_v2, 0.0  ;;  %v7488_v58 = vmax.f32 %v7171_v61, 0.0  ;;  %v7258_v5 = vpop.f32.mrf.mxu1  ;;  %v7277_v49 = vpop.f32.mrf.mxu0  ;;  %8738 = vmatpush.bf16.msrb.mxu3 %v11070_v18  ;;  %v11112_v14 = vld [vmem:[%s14732_s19 + $0x7b8] sm:$0xff]  ;;  %v11057_v18 = vld [vmem:[%s14732_s19 + $0x600] sm:$0xff] }
0x2209   :  { %8759 = vmatpush.bf16.msrb.mxu1 %v11076_v43  ;;  %8778 = vmatpush.bf16.msrb.mxu0 %v11084_v38  ;;  %v7259_v11 = vadd.f32 %v7258_v5, %v14448_v45  ;;  %v7278_v40 = vadd.f32 %v7277_v49, %v14451_v10  ;;  %v11120_v2 = vld [vmem:[%s14732_s19 + $0x7f8] sm:$0xff] }
0x220a   :  { %v7519_v21 = vpack.c.bf16 %v7487_v55, %v7471_v26  ;;  %v7520_v16 = vpack.c.bf16 %v7488_v58, %v7472_v59  ;;  %8720 = vmatpush.bf16.msrb.mxu2 %v11061_v62  ;;  %v11065_v26 = vld [vmem:[%s14732_s19 + $0x640] sm:$0xff]  ;;  %v11111_v59 = vld [vmem:[%s14732_s19 + $0x7b0] sm:$0xff]  ;;  %v11096_v38 = vld [vmem:[%s14732_s19 + $0x738] sm:$0xff] }
0x220b   :  { %v7445_v13 = vmax.f32 %v7259_v11, 0.0  ;;  %v7446_v44 = vmax.f32 %v7278_v40, 0.0  ;;  %v11119_v55 = vld [vmem:[%s14732_s19 + $0x7f0] sm:$0xff] }
0x220c   :  { %8578 = vmatmul.bf16.gmra.mxu2 %v7519_v21  ;;  %8597 = vmatmul.bf16.gmra.mxu3 %v7520_v16  ;;  %v11104_v21 = vld [vmem:[%s14732_s19 + $0x778] sm:$0xff] }
0x220d   :  { %v7220_v12 = vpop.f32.mrf.mxu2  ;;  %v7239_v37 = vpop.f32.mrf.mxu3  ;;  %8739 = vmatpush.bf16.msrb.mxu3 %v11069_v52  ;;  %8760 = vmatpush.bf16.msrb.mxu1 %v11075_v27  ;;  %v11118_v27 = vld [vmem:[%s14732_s19 + $0x7e8] sm:$0xff] }
0x220e   :  { %8779 = vmatpush.bf16.msrb.mxu0 %v11083_v46  ;;  %8721 = vmatpush.bf16.msrb.mxu2 %v11060_v6  ;;  %v7221_v8 = vadd.f32 %v7220_v12, %v14474_v34  ;;  %v7240_v36 = vadd.f32 %v7239_v37, %v14477_v24  ;;  %v11110_v37 = vld [vmem:[%s14732_s19 + $0x7a8] sm:$0xff] }
0x2210   :  { %v7260_v56 = vpop.f32.mrf.mxu1  ;;  %v7279_v48 = vpop.f32.mrf.mxu0  ;;  %v7443_v9 = vmax.f32 %v7221_v8, 0.0  ;;  %v7444_v19 = vmax.f32 %v7240_v36, 0.0 }
0x2211   :  { %v7261_v63 = vadd.f32 %v7260_v56, %v14448_v45  ;;  %v7280_v29 = vadd.f32 %v7279_v48, %v14451_v10  ;;  %8740 = vmatpush.bf16.msrb.mxu3 %v11068_v20  ;;  %8761 = vmatpush.bf16.msrb.mxu1 %v11074_v47 }
0x2212   :  { %8780 = vmatpush.bf16.msrb.mxu0 %v11082_v1  ;;  %8722 = vmatpush.bf16.msrb.mxu2 %v11059_v54  ;;  %v11109_v1 = vld [vmem:[%s14732_s19 + $0x7a0] sm:$0xff]  ;;  %v11102_v54 = vld [vmem:[%s14732_s19 + $0x768] sm:$0xff] }
0x2213   :  { %v7461_v22 = vmax.f32 %v7261_v63, 0.0  ;;  %v7462_v25 = vmax.f32 %v7280_v29, 0.0 }
0x2215   :  { %v7509_v60 = vpack.c.bf16 %v7461_v22, %v7445_v13  ;;  %v7510_v42 = vpack.c.bf16 %v7462_v25, %v7446_v44  ;;  %v7222_v53 = vpop.f32.mrf.mxu2  ;;  %v7241_v51 = vpop.f32.mrf.mxu3  ;;  %8741 = vmatpush.bf16.msrb.mxu3 %v11067_v23  ;;  %8762 = vmatpush.bf16.msrb.mxu1 %v11073_v4  ;;  %v11117_v13 = vld [vmem:[%s14732_s19 + $0x7e0] sm:$0xff]  ;;  %v11094_v25 = vld [vmem:[%s14732_s19 + $0x728] sm:$0xff] }
0x2216   :  { %v7223_v30 = vadd.f32 %v7222_v53, %v14474_v34  ;;  %v7242_v32 = vadd.f32 %v7241_v51, %v14477_v24  ;;  %8781 = vmatpush.bf16.msrb.mxu0 %v11081_v3  ;;  %8723 = vmatpush.bf16.msrb.mxu2 %v11058_v0  ;;  %v11108_v53 = vld [vmem:[%s14732_s19 + $0x798] sm:$0xff]  ;;  %v11093_v0 = vld [vmem:[%s14732_s19 + $0x720] sm:$0xff] }
0x2217   :  { %8687 = vmatmul.bf16.vlgmr.msra.gmra.mxu1 %v7509_v60  ;;  %8706 = vmatmul.bf16.vlgmr.msra.gmra.mxu0 %v7510_v42  ;;  %v11116_v51 = vld [vmem:[%s14732_s19 + $0x7d8] sm:$0xff] }
0x2218   :  { %v7459_v28 = vmax.f32 %v7223_v30, 0.0  ;;  %v7460_v7 = vmax.f32 %v7242_v32, 0.0  ;;  %v7263_v57 = vpop.f32.mrf.mxu1  ;;  %v7282_v39 = vpop.f32.mrf.mxu0 }
0x2219   :  { %8742 = vmatpush.bf16.msrb.mxu3 %v11066_v15  ;;  %8831 = vmatpush.bf16.msra.mxu1 %v11112_v14  ;;  %v7264_v49 = vadd.f32 %v7263_v57, %v14448_v45  ;;  %v7283_v43 = vadd.f32 %v7282_v39, %v14451_v10  ;;  %v11101_v15 = vld [vmem:[%s14732_s19 + $0x760] sm:$0xff]  ;;  %v11092_v14 = vld [vmem:[%s14732_s19 + $0x718] sm:$0xff] }
0x221a   :  { %v7507_v61 = vpack.c.bf16 %v7459_v28, %v7443_v9  ;;  %v7508_v33 = vpack.c.bf16 %v7460_v7, %v7444_v19  ;;  %8850 = vmatpush.bf16.msra.mxu0 %v11120_v2  ;;  %8724 = vmatpush.bf16.msrb.mxu2 %v11057_v18  ;;  %v11107_v28 = vld [vmem:[%s14732_s19 + $0x790] sm:$0xff]  ;;  %v11100_v2 = vld [vmem:[%s14732_s19 + $0x758] sm:$0xff] }
0x221b   :  { %v7477_v46 = vmax.f32 %v7264_v49, 0.0  ;;  %v7478_v11 = vmax.f32 %v7283_v43, 0.0  ;;  %v11115_v7 = vld [vmem:[%s14732_s19 + $0x7d0] sm:$0xff] }
0x221c   :  { %8649 = vmatmul.bf16.vlgmr.msra.gmra.mxu2 %v7507_v61  ;;  %8668 = vmatmul.bf16.vlgmr.msra.gmra.mxu3 %v7508_v33 }
0x221d   :  { %v7225_v58 = vpop.f32.mrf.mxu2  ;;  %v7244_v5 = vpop.f32.mrf.mxu3  ;;  %8743 = vmatpush.bf16.msrb.mxu3 %v11065_v26  ;;  %8832 = vmatpush.bf16.msra.mxu1 %v11111_v59 }
0x221e   :  { %8851 = vmatpush.bf16.msra.mxu0 %v11119_v55  ;;  %8793 = vmatpush.bf16.msra.mxu2 %v11096_v38  ;;  %v7226_v20 = vadd.f32 %v7225_v58, %v14474_v34  ;;  %v7245_v56 = vadd.f32 %v7244_v5, %v14477_v24  ;;  %v11106_v58 = vld [vmem:[%s14732_s19 + $0x788] sm:$0xff] }
0x221f   :  { %v11114_v5 = vld [vmem:[%s14732_s19 + $0x7c8] sm:$0xff] }
0x2220   :  { %v7265_v16 = vpop.f32.mrf.mxu1  ;;  %v7284_v62 = vpop.f32.mrf.mxu0  ;;  %v7475_v23 = vmax.f32 %v7226_v20, 0.0  ;;  %v7476_v8 = vmax.f32 %v7245_v56, 0.0  ;;  %v11090_v20 = vld [vmem:[%s14732_s19 + $0x708] sm:$0xff] }
0x2221   :  { %v7266_v52 = vadd.f32 %v7265_v16, %v14448_v45  ;;  %v7285_v12 = vadd.f32 %v7284_v62, %v14451_v10  ;;  %8812 = vmatpush.bf16.msra.mxu3 %v11104_v21  ;;  %8833 = vmatpush.bf16.msra.mxu1 %v11110_v37  ;;  %v11095_v45 = vld [vmem:[%s14732_s19 + $0x730] sm:$0xff]  ;;  %v11098_v56 = vld [vmem:[%s14732_s19 + $0x748] sm:$0xff] }
0x2222   :  { %8852 = vmatpush.bf16.msra.mxu0 %v11118_v27  ;;  %v11103_v10 = vld [vmem:[%s14732_s19 + $0x770] sm:$0xff]  ;;  %8794 = vmatpush.bf16.msra.mxu2 %v11095_v45 }
0x2223   :  { %v7493_v40 = vmax.f32 %v7266_v52, 0.0  ;;  %v7494_v6 = vmax.f32 %v7285_v12, 0.0  ;;  %v11091_v16 = vld [vmem:[%s14732_s19 + $0x710] sm:$0xff] }
0x2224   :  { %v11099_v62 = vld [vmem:[%s14732_s19 + $0x750] sm:$0xff] }
0x2225   :  { %v7227_v48 = vpop.f32.mrf.mxu2  ;;  %v7246_v63 = vpop.f32.mrf.mxu3  ;;  %v7525_v29 = vpack.c.bf16 %v7493_v40, %v7477_v46  ;;  %v7526_v47 = vpack.c.bf16 %v7494_v6, %v7478_v11  ;;  %8813 = vmatpush.bf16.msra.mxu3 %v11103_v10  ;;  %8834 = vmatpush.bf16.msra.mxu1 %v11109_v1  ;;  %v11105_v40 = vld [vmem:[%s14732_s19 + $0x780] sm:$0xff] }
0x2226   :  { %v7228_v44 = vadd.f32 %v7227_v48, %v14474_v34  ;;  %v7247_v22 = vadd.f32 %v7246_v63, %v14477_v24  ;;  %v14568_v34 = vld [vmem:[%s14731_s18 + $0x18] sm:$0xff]  ;;  %8853 = vmatpush.bf16.msra.mxu0 %v11117_v13  ;;  %8795 = vmatpush.bf16.msra.mxu2 %v11094_v25  ;;  %v11113_v6 = vld [vmem:[%s14732_s19 + $0x7c0] sm:$0xff] }
0x2227   :  { %8692 = vmatmul.bf16.gmra.mxu1 %v7525_v29  ;;  %8711 = vmatmul.bf16.gmra.mxu0 %v7526_v47  ;;  %v14577_v30 = vperm.slane %v14568_v34, 2  ;;  %v14580_v32 = vperm.slane %v14568_v34, 3  ;;  %v14603_v61 = vperm.slane %v14568_v34, 0  ;;  %v14606_v33 = vperm.slane %v14568_v34, 1  ;;  %v11089_v25 = vld [vmem:[%s14732_s19 + $0x700] sm:$0xff] }
0x2228   :  { %v7491_v36 = vmax.f32 %v7228_v44, 0.0  ;;  %v7492_v60 = vmax.f32 %v7247_v22, 0.0  ;;  %v7334_v24 = vpop.f32.mrf.mxu1  ;;  %v7353_v42 = vpop.f32.mrf.mxu0 }
0x2229   :  { %8814 = vmatpush.bf16.msra.mxu3 %v11102_v54  ;;  %8835 = vmatpush.bf16.msra.mxu1 %v11108_v53  ;;  %v7335_v57 = vadd.f32 %v7334_v24, %v14577_v30  ;;  %v7354_v39 = vadd.f32 %v7353_v42, %v14580_v32  ;;  %v11097_v54 = vld [vmem:[%s14732_s19 + $0x740] sm:$0xff] }
0x222a   :  { %v7523_v4 = vpack.c.bf16 %v7491_v36, %v7475_v23  ;;  %v7524_v3 = vpack.c.bf16 %v7492_v60, %v7476_v8  ;;  %8854 = vmatpush.bf16.msra.mxu0 %v11116_v51  ;;  %8796 = vmatpush.bf16.msra.mxu2 %v11093_v0 }
0x222b   :  { %v7449_v49 = vmax.f32 %v7335_v57, 0.0  ;;  %v7450_v43 = vmax.f32 %v7354_v39, 0.0 }
0x222c   :  { %8654 = vmatmul.bf16.gmra.mxu2 %v7523_v4  ;;  %8673 = vmatmul.bf16.gmra.mxu3 %v7524_v3 }
0x222d   :  { %v7296_v9 = vpop.f32.mrf.mxu2  ;;  %v7315_v19 = vpop.f32.mrf.mxu3  ;;  %8815 = vmatpush.bf16.msra.mxu3 %v11101_v15  ;;  %8836 = vmatpush.bf16.msra.mxu1 %v11107_v28 }
0x222e   :  { %8855 = vmatpush.bf16.msra.mxu0 %v11115_v7  ;;  %8797 = vmatpush.bf16.msra.mxu2 %v11092_v14  ;;  %v7297_v52 = vadd.f32 %v7296_v9, %v14603_v61  ;;  %v7316_v12 = vadd.f32 %v7315_v19, %v14606_v33 }
0x2230   :  { %v7336_v18 = vpop.f32.mrf.mxu1  ;;  %v7355_v26 = vpop.f32.mrf.mxu0  ;;  %v7447_v48 = vmax.f32 %v7297_v52, 0.0  ;;  %v7448_v63 = vmax.f32 %v7316_v12, 0.0 }
0x2231   :  { %v7337_v59 = vadd.f32 %v7336_v18, %v14577_v30  ;;  %v7356_v55 = vadd.f32 %v7355_v26, %v14580_v32  ;;  %8816 = vmatpush.bf16.msra.mxu3 %v11100_v2  ;;  %8837 = vmatpush.bf16.msra.mxu1 %v11106_v58 }
0x2232   :  { %8856 = vmatpush.bf16.msra.mxu0 %v11114_v5  ;;  %8798 = vmatpush.bf16.msra.mxu2 %v11091_v16  ;;  %v7021_v16 = vperm.slane %v14568_v34, 4 }
0x2233   :  { %v7465_v38 = vmax.f32 %v7337_v59, 0.0  ;;  %v7466_v21 = vmax.f32 %v7356_v55, 0.0 }
0x2235   :  { %v7513_v37 = vpack.c.bf16 %v7465_v38, %v7449_v49  ;;  %v7514_v27 = vpack.c.bf16 %v7466_v21, %v7450_v43  ;;  %v7298_v46 = vpop.f32.mrf.mxu2  ;;  %v7317_v11 = vpop.f32.mrf.mxu3  ;;  %8817 = vmatpush.bf16.msra.mxu3 %v11099_v62  ;;  %8838 = vmatpush.bf16.msra.mxu1 %v11105_v40  ;;  %v7023_v49 = vperm.slane %v14568_v34, 6  ;;  %v7024_v43 = vperm.slane %v14568_v34, 7 }
0x2236   :  { %v7299_v45 = vadd.f32 %v7298_v46, %v14603_v61  ;;  %v7318_v10 = vadd.f32 %v7317_v11, %v14606_v33  ;;  %8857 = vmatpush.bf16.msra.mxu0 %v11113_v6  ;;  %8799 = vmatpush.bf16.msra.mxu2 %v11090_v20  ;;  %v7022_v62 = vperm.slane %v14568_v34, 5 }
0x2237   :  { %8763 = vmatmul.bf16.vlgmr.msrb.gmra.mxu1 %v7513_v37  ;;  %8782 = vmatmul.bf16.vlgmr.msrb.gmra.mxu0 %v7514_v27 }
0x2238   :  { %v7463_v29 = vmax.f32 %v7299_v45, 0.0  ;;  %v7464_v47 = vmax.f32 %v7318_v10, 0.0  ;;  %v7339_v1 = vpop.f32.mrf.mxu1  ;;  %v7358_v13 = vpop.f32.mrf.mxu0 }
0x2239   :  { %8818 = vmatpush.bf16.msra.mxu3 %v11098_v56  ;;  %v7340_v36 = vadd.f32 %v7339_v1, %v14577_v30  ;;  %v7359_v60 = vadd.f32 %v7358_v13, %v14580_v32 }
0x223a   :  { %v7511_v44 = vpack.c.bf16 %v7463_v29, %v7447_v48  ;;  %v7512_v22 = vpack.c.bf16 %v7464_v47, %v7448_v63  ;;  %8800 = vmatpush.bf16.msra.mxu2 %v11089_v25 }
0x223b   :  { %v7481_v4 = vmax.f32 %v7340_v36, 0.0  ;;  %v7482_v3 = vmax.f32 %v7359_v60, 0.0 }
0x223c   :  { %8725 = vmatmul.bf16.vlgmr.msrb.gmra.mxu2 %v7511_v44  ;;  %8744 = vmatmul.bf16.vlgmr.msrb.gmra.mxu3 %v7512_v22 }
0x223d   :  { %v7301_v23 = vpop.f32.mrf.mxu2  ;;  %v7320_v8 = vpop.f32.mrf.mxu3  ;;  %8819 = vmatpush.bf16.msra.mxu3 %v11097_v54 }
0x223e   :  { %v7302_v9 = vadd.f32 %v7301_v23, %v14603_v61  ;;  %v7321_v19 = vadd.f32 %v7320_v8, %v14606_v33 }
0x2240   :  { %v7341_v24 = vpop.f32.mrf.mxu1  ;;  %v7360_v42 = vpop.f32.mrf.mxu0 }
0x2241   :  { %v7342_v53 = vadd.f32 %v7341_v24, %v14577_v30  ;;  %v7361_v51 = vadd.f32 %v7360_v42, %v14580_v32  ;;  %v7479_v30 = vmax.f32 %v7302_v9, 0.0  ;;  %v7480_v32 = vmax.f32 %v7321_v19, 0.0 }
0x2243   :  { %v7497_v0 = vmax.f32 %v7342_v53, 0.0  ;;  %v7498_v15 = vmax.f32 %v7361_v51, 0.0 }
0x2245   :  { %v7529_v28 = vpack.c.bf16 %v7497_v0, %v7481_v4  ;;  %v7530_v7 = vpack.c.bf16 %v7498_v15, %v7482_v3  ;;  %v7303_v57 = vpop.f32.mrf.mxu2  ;;  %v7322_v39 = vpop.f32.mrf.mxu3 }
0x2246   :  { %v7304_v14 = vadd.f32 %v7303_v57, %v14603_v61  ;;  %v7323_v2 = vadd.f32 %v7322_v39, %v14606_v33 }
0x2247   :  { %8768 = vmatmul.bf16.gmra.mxu1 %v7529_v28  ;;  %8787 = vmatmul.bf16.gmra.mxu0 %v7530_v7 }
0x2248   :  { %v7495_v18 = vmax.f32 %v7304_v14, 0.0  ;;  %v7496_v26 = vmax.f32 %v7323_v2, 0.0  ;;  %v7410_v59 = vpop.f32.mrf.mxu1  ;;  %v7429_v55 = vpop.f32.mrf.mxu0 }
0x2249   :  { %v7411_v21 = vadd.f32 %v7410_v59, %v7023_v49  ;;  %v7430_v33 = vadd.f32 %v7429_v55, %v7024_v43 }
0x224a   :  { %v7527_v58 = vpack.c.bf16 %v7495_v18, %v7479_v30  ;;  %v7528_v5 = vpack.c.bf16 %v7496_v26, %v7480_v32 }
0x224b   :  { %v7453_v46 = vmax.f32 %v7411_v21, 0.0  ;;  %v7454_v11 = vmax.f32 %v7430_v33, 0.0 }
0x224c   :  { %8730 = vmatmul.bf16.gmra.mxu2 %v7527_v58  ;;  %8749 = vmatmul.bf16.gmra.mxu3 %v7528_v5 }
0x224d   :  { %v7372_v38 = vpop.f32.mrf.mxu2  ;;  %v7391_v61 = vpop.f32.mrf.mxu3 }
0x224e   :  { %v7373_v45 = vadd.f32 %v7372_v38, %v7021_v16  ;;  %v7392_v10 = vadd.f32 %v7391_v61, %v7022_v62  ;;  %v11167_v61 = vld [vmem:[%s14733_s20 + $0x1] ss:$0 sm:$0xff] }
0x2250   :  { %v7412_v52 = vpop.f32.mrf.mxu1  ;;  %v7431_v12 = vpop.f32.mrf.mxu0  ;;  %v7451_v1 = vmax.f32 %v7373_v45, 0.0  ;;  %v7452_v34 = vmax.f32 %v7392_v10, 0.0 }
0x2251   :  { %v7413_v37 = vadd.f32 %v7412_v52, %v7023_v49  ;;  %v7432_v27 = vadd.f32 %v7431_v12, %v7024_v43 }
0x2253   :  { %v7469_v40 = vmax.f32 %v7413_v37, 0.0  ;;  %v7470_v6 = vmax.f32 %v7432_v27, 0.0 }
0x2255   :  { %v7517_v20 = vpack.c.bf16 %v7469_v40, %v7453_v46  ;;  %v7518_v56 = vpack.c.bf16 %v7470_v6, %v7454_v11  ;;  %v7374_v48 = vpop.f32.mrf.mxu2  ;;  %v7393_v63 = vpop.f32.mrf.mxu3 }
0x2256   :  { %v7375_v29 = vadd.f32 %v7374_v48, %v7021_v16  ;;  %v7394_v47 = vadd.f32 %v7393_v63, %v7022_v62 }
0x2257   :  { %8839 = vmatmul.bf16.vlgmr.msra.gmra.mxu1 %v7517_v20  ;;  %8858 = vmatmul.bf16.vlgmr.msra.gmra.mxu0 %v7518_v56 }
0x2258   :  { %v7467_v13 = vmax.f32 %v7375_v29, 0.0  ;;  %v7468_v44 = vmax.f32 %v7394_v47, 0.0  ;;  %v7415_v22 = vpop.f32.mrf.mxu1  ;;  %v7434_v25 = vpop.f32.mrf.mxu0 }
0x2259   :  { %v7416_v60 = vadd.f32 %v7415_v22, %v7023_v49  ;;  %v7435_v24 = vadd.f32 %v7434_v25, %v7024_v43 }
0x225a   :  { %v7515_v54 = vpack.c.bf16 %v7467_v13, %v7451_v1  ;;  %v7516_v23 = vpack.c.bf16 %v7468_v44, %v7452_v34 }
0x225b   :  { %v7485_v3 = vmax.f32 %v7416_v60, 0.0  ;;  %v7486_v0 = vmax.f32 %v7435_v24, 0.0 }
0x225c   :  { %8801 = vmatmul.bf16.vlgmr.msra.gmra.mxu2 %v7515_v54  ;;  %8820 = vmatmul.bf16.vlgmr.msra.gmra.mxu3 %v7516_v23 }
0x225d   :  { %v7377_v8 = vpop.f32.mrf.mxu2  ;;  %v7396_v36 = vpop.f32.mrf.mxu3 }
0x225e   :  { %v7378_v19 = vadd.f32 %v7377_v8, %v7021_v16  ;;  %v7397_v28 = vadd.f32 %v7396_v36, %v7022_v62 }
0x2260   :  { %v7417_v42 = vpop.f32.mrf.mxu1  ;;  %v7436_v53 = vpop.f32.mrf.mxu0  ;;  %v7483_v32 = vmax.f32 %v7378_v19, 0.0  ;;  %v7484_v18 = vmax.f32 %v7397_v28, 0.0 }
0x2261   :  { %v7418_v51 = vadd.f32 %v7417_v42, %v7023_v49  ;;  %v7437_v4 = vadd.f32 %v7436_v53, %v7024_v43 }
0x2263   :  { %v7501_v15 = vmax.f32 %v7418_v51, 0.0  ;;  %v7502_v9 = vmax.f32 %v7437_v4, 0.0 }
0x2265   :  { %v7533_v7 = vpack.c.bf16 %v7501_v15, %v7485_v3  ;;  %v7534_v57 = vpack.c.bf16 %v7502_v9, %v7486_v0  ;;  %v7379_v39 = vpop.f32.mrf.mxu2  ;;  %v7398_v14 = vpop.f32.mrf.mxu3 }
0x2266   :  { %v7380_v2 = vadd.f32 %v7379_v39, %v7021_v16  ;;  %v7399_v30 = vadd.f32 %v7398_v14, %v7022_v62 }
0x2267   :  { %8844 = vmatmul.bf16.gmra.mxu1 %v7533_v7  ;;  %8863 = vmatmul.bf16.gmra.mxu0 %v7534_v57 }
0x2268   :  { %v7499_v26 = vmax.f32 %v7380_v2, 0.0  ;;  %v7500_v59 = vmax.f32 %v7399_v30, 0.0 }
0x226a   :  { %v7531_v55 = vpack.c.bf16 %v7499_v26, %v7483_v32  ;;  %v7532_v58 = vpack.c.bf16 %v7500_v59, %v7484_v18 }
0x226c   :  { %8806 = vmatmul.bf16.gmra.mxu2 %v7531_v55  ;;  %8825 = vmatmul.bf16.gmra.mxu3 %v7532_v58 }
0x2274   :  { %v8612_v5 = vpop.f32.mrf.mxu1  ;;  %v8631_v49 = vpop.f32.mrf.mxu0 }
0x227c   :  { %v8614_v43 = vpop.f32.mrf.mxu1  ;;  %v8633_v38 = vpop.f32.mrf.mxu0 }
0x227f   :  { %v8574_v21 = vpop.f32.mrf.mxu2  ;;  %v8593_v33 = vpop.f32.mrf.mxu3 }
0x2280   :  { %v8575_v16 = vadd.f32 %v11167_v61, %v8574_v21 }
0x2282   :  { %v8594_v62 = vadd.f32 %v8593_v33, %v8575_v16 }
0x2284   :  { %v8613_v52 = vadd.f32 %v8612_v5, %v8594_v62  ;;  %v8617_v12 = vpop.f32.mrf.mxu1  ;;  %v8636_v37 = vpop.f32.mrf.mxu0 }
0x2286   :  { %v8632_v27 = vadd.f32 %v8631_v49, %v8613_v52 }
0x2287   :  { %v8576_v46 = vpop.f32.mrf.mxu2  ;;  %v8595_v11 = vpop.f32.mrf.mxu3 }
0x2288   :  { %v8577_v40 = vadd.f32 %v11167_v61, %v8576_v46 }
0x228a   :  { %v8596_v6 = vadd.f32 %v8595_v11, %v8577_v40 }
0x228c   :  { %v8615_v45 = vadd.f32 %v8614_v43, %v8596_v6  ;;  %v8619_v10 = vpop.f32.mrf.mxu1  ;;  %v8638_v20 = vpop.f32.mrf.mxu0 }
0x228e   :  { %v8634_v56 = vadd.f32 %v8633_v38, %v8615_v45 }
0x228f   :  { %v8579_v48 = vpop.f32.mrf.mxu2  ;;  %v8598_v63 = vpop.f32.mrf.mxu3 }
0x2290   :  { %v8580_v29 = vadd.f32 %v11167_v61, %v8579_v48 }
0x2292   :  { %v8599_v47 = vadd.f32 %v8598_v63, %v8580_v29 }
0x2294   :  { %v8618_v1 = vadd.f32 %v8617_v12, %v8599_v47  ;;  %v8688_v34 = vpop.f32.mrf.mxu1  ;;  %v8707_v13 = vpop.f32.mrf.mxu0 }
0x2296   :  { %v8637_v44 = vadd.f32 %v8636_v37, %v8618_v1 }
0x2297   :  { %v8581_v22 = vpop.f32.mrf.mxu2  ;;  %v8600_v25 = vpop.f32.mrf.mxu3 }
0x2298   :  { %v8582_v54 = vadd.f32 %v11167_v61, %v8581_v22 }
0x229a   :  { %v8601_v23 = vadd.f32 %v8600_v25, %v8582_v54 }
0x229c   :  { %v8620_v8 = vadd.f32 %v8619_v10, %v8601_v23  ;;  %v8690_v36 = vpop.f32.mrf.mxu1  ;;  %v8709_v60 = vpop.f32.mrf.mxu0 }
0x229e   :  { %v8639_v24 = vadd.f32 %v8638_v20, %v8620_v8 }
0x229f   :  { %v8650_v42 = vpop.f32.mrf.mxu2  ;;  %v8669_v53 = vpop.f32.mrf.mxu3 }
0x22a0   :  { %v8651_v26 = vadd.f32 %v8650_v42, %v8632_v27 }
0x22a2   :  { %v8670_v58 = vadd.f32 %v8669_v53, %v8651_v26 }
0x22a4   :  { %v8693_v51 = vpop.f32.mrf.mxu1  ;;  %v8712_v4 = vpop.f32.mrf.mxu0  ;;  %v8689_v43 = vadd.f32 %v8688_v34, %v8670_v58 }
0x22a6   :  { %v8708_v16 = vadd.f32 %v8707_v13, %v8689_v43 }
0x22a7   :  { %v8652_v3 = vpop.f32.mrf.mxu2  ;;  %v8671_v0 = vpop.f32.mrf.mxu3 }
0x22a8   :  { %v8653_v38 = vadd.f32 %v8652_v3, %v8634_v56 }
0x22aa   :  { %v8672_v33 = vadd.f32 %v8671_v0, %v8653_v38 }
0x22ac   :  { %v8695_v15 = vpop.f32.mrf.mxu1  ;;  %v8714_v9 = vpop.f32.mrf.mxu0  ;;  %v8691_v12 = vadd.f32 %v8690_v36, %v8672_v33 }
0x22ae   :  { %v8710_v45 = vadd.f32 %v8709_v60, %v8691_v12 }
0x22af   :  { %v8655_v19 = vpop.f32.mrf.mxu2  ;;  %v8674_v28 = vpop.f32.mrf.mxu3 }
0x22b0   :  { %v8656_v37 = vadd.f32 %v8655_v19, %v8637_v44 }
0x22b2   :  { %v8675_v27 = vadd.f32 %v8674_v28, %v8656_v37 }
0x22b4   :  { %v8764_v7 = vpop.f32.mrf.mxu1  ;;  %v8783_v57 = vpop.f32.mrf.mxu0  ;;  %v8694_v48 = vadd.f32 %v8693_v51, %v8675_v27 }
0x22b6   :  { %v8713_v25 = vadd.f32 %v8712_v4, %v8694_v48 }
0x22b7   :  { %v8657_v39 = vpop.f32.mrf.mxu2  ;;  %v8676_v14 = vpop.f32.mrf.mxu3 }
0x22b8   :  { %v8658_v63 = vadd.f32 %v8657_v39, %v8639_v24 }
0x22ba   :  { %v8677_v22 = vadd.f32 %v8676_v14, %v8658_v63 }
0x22bc   :  { %v8766_v2 = vpop.f32.mrf.mxu1  ;;  %v8785_v18 = vpop.f32.mrf.mxu0  ;;  %v8696_v36 = vadd.f32 %v8695_v15, %v8677_v22 }
0x22be   :  { %v8715_v19 = vadd.f32 %v8714_v9, %v8696_v36 }
0x22bf   :  { %v8726_v30 = vpop.f32.mrf.mxu2  ;;  %v8745_v32 = vpop.f32.mrf.mxu3 }
0x22c0   :  { %v8727_v62 = vadd.f32 %v8726_v30, %v8708_v16 }
0x22c2   :  { %v8746_v11 = vadd.f32 %v8745_v32, %v8727_v62 }
0x22c4   :  { %v8769_v5 = vpop.f32.mrf.mxu1  ;;  %v8788_v49 = vpop.f32.mrf.mxu0  ;;  %v8765_v10 = vadd.f32 %v8764_v7, %v8746_v11 }
0x22c6   :  { %v8784_v1 = vadd.f32 %v8783_v57, %v8765_v10 }
0x22c7   :  { %v8728_v59 = vpop.f32.mrf.mxu2  ;;  %v8747_v55 = vpop.f32.mrf.mxu3 }
0x22c8   :  { %v8729_v20 = vadd.f32 %v8728_v59, %v8710_v45 }
0x22ca   :  { %v8748_v56 = vadd.f32 %v8747_v55, %v8729_v20 }
0x22cc   :  { %v8771_v52 = vpop.f32.mrf.mxu1  ;;  %v8790_v46 = vpop.f32.mrf.mxu0  ;;  %v8767_v44 = vadd.f32 %v8766_v2, %v8748_v56 }
0x22ce   :  { %v8786_v3 = vadd.f32 %v8785_v18, %v8767_v44 }
0x22cf   :  { %v8731_v61 = vpop.f32.mrf.mxu2  ;;  %v8750_v21 = vpop.f32.mrf.mxu3 }
0x22d0   :  { %v8732_v23 = vadd.f32 %v8731_v61, %v8713_v25 }
0x22d2   :  { %v8751_v53 = vadd.f32 %v8750_v21, %v8732_v23 }
0x22d4   :  { %v8840_v29 = vpop.f32.mrf.mxu1  ;;  %v8859_v47 = vpop.f32.mrf.mxu0  ;;  %v8770_v39 = vadd.f32 %v8769_v5, %v8751_v53 }
0x22d6   :  { %v8789_v32 = vadd.f32 %v8788_v49, %v8770_v39 }
0x22d7   :  { %v8733_v40 = vpop.f32.mrf.mxu2  ;;  %v8752_v6 = vpop.f32.mrf.mxu3 }
0x22d8   :  { %v8734_v14 = vadd.f32 %v8733_v40, %v8715_v19 }
0x22da   :  { %v8753_v15 = vadd.f32 %v8752_v6, %v8734_v14 }
0x22dc   :  { %v8842_v60 = vpop.f32.mrf.mxu1  ;;  %v8861_v57 = vpop.f32.mrf.mxu0  ;;  %v8772_v43 = vadd.f32 %v8771_v52, %v8753_v15 }
0x22de   :  { %v8791_v21 = vadd.f32 %v8790_v46, %v8772_v43 }
0x22df   :  { %v8802_v34 = vpop.f32.mrf.mxu2  ;;  %v8821_v13 = vpop.f32.mrf.mxu3 }
0x22e0   :  { %v8803_v54 = vadd.f32 %v8802_v34, %v8784_v1 }
0x22e2   :  { %v8822_v8 = vadd.f32 %v8821_v13, %v8803_v54 }
0x22e4   :  { %v8841_v42 = vadd.f32 %v8840_v29, %v8822_v8  ;;  %v8845_v9 = vpop.f32.mrf.mxu1  ;;  %v8864_v5 = vpop.f32.mrf.mxu0 }
0x22e6   :  { %v8860_v0 = vadd.f32 %v8859_v47, %v8841_v42 }
0x22e7   :  { %v8804_v51 = vpop.f32.mrf.mxu2  ;;  %v8823_v24 = vpop.f32.mrf.mxu3 }
0x22e8   :  { %v8805_v28 = vadd.f32 %v8804_v51, %v8786_v3  ;;  %v8869_v7 = vadd.f32 %v8860_v0, %v14072_v17 }
0x22ea   :  { %v8824_v4 = vadd.f32 %v8823_v24, %v8805_v28  ;;  %v8877_v2 = vsel %vm161_vm1, %v8869_v7, 0.0 }
0x22eb   :  { %8878 = vadd.xlane.f32.xlu1 %v8877_v2 }
0x22ec   :  { %v8843_v30 = vadd.f32 %v8842_v60, %v8824_v4  ;;  %v8847_v40 = vpop.f32.mrf.mxu1  ;;  %v8866_v52 = vpop.f32.mrf.mxu0 }
0x22ee   :  { %v8862_v26 = vadd.f32 %v8861_v57, %v8843_v30 }
0x22ef   :  { %v8807_v59 = vpop.f32.mrf.mxu2  ;;  %v8826_v18 = vpop.f32.mrf.mxu3 }
0x22f0   :  { %v8808_v55 = vadd.f32 %v8807_v59, %v8789_v32  ;;  %v8870_v58 = vadd.f32 %v8862_v26, %v14074_v31 }
0x22f2   :  { %v8827_v38 = vadd.f32 %v8826_v18, %v8808_v55  ;;  %v8880_v17 = vsel %vm161_vm1, %v8870_v58, 0.0 }
0x22f3   :  { %8881 = vadd.xlane.f32.xlu2 %v8880_v17 }
0x22f4   :  { %v8846_v61 = vadd.f32 %v8845_v9, %v8827_v38 }
0x22f6   :  { %v8865_v33 = vadd.f32 %v8864_v5, %v8846_v61 }
0x22f7   :  { %v8809_v16 = vpop.f32.mrf.mxu2  ;;  %v8828_v12 = vpop.f32.mrf.mxu3 }
0x22f8   :  { %v8810_v62 = vadd.f32 %v8809_v16, %v8791_v21  ;;  %v8871_v49 = vadd.f32 %v8865_v33, %v14090_v35 }
0x22fa   :  { %v8829_v37 = vadd.f32 %v8828_v12, %v8810_v62  ;;  %v8883_v11 = vsel %vm161_vm1, %v8871_v49, 0.0  ;;  %v11168_v62 = vld [vmem:[%s14734_s21 + $0x6] ss:$0 sm:$0xff] }
0x22fb   :  { %8884 = vadd.xlane.f32.xlu0 %v8883_v11 }
0x22fc   :  { %v8848_v31 = vadd.f32 %v8847_v40, %v8829_v37 }
0x22fe   :  { %v8867_v6 = vadd.f32 %v8866_v52, %v8848_v31 }
0x2300   :  { %v8872_v27 = vadd.f32 %v8867_v6, %v14092_v50  ;;  %v11169_v6 = vld [vmem:[%s14734_s21 + $0x7] ss:$0 sm:$0xff]  ;;  %s11557_s21 = smov [#allocation4]  }
0x2301   :  { %s9019_s3 = sshll.u32 %s11557_s21, 4  ;;  %s9020_s3 = int_to_ptr.vmem [resolvable:$true] %s9019_s3 }
0x2302   :  { %v8886_v45 = vsel %vm3570_vm10, %v8872_v27, 0.0 }
0x2303   :  { %8887 = vadd.xlane.f32.xlu1 %v8886_v45 }
0x235e   :  { %v8879_v46 = vpop.xlane.xlu1 %8878 }
0x235f   :  { %v8889_v10 = vmul.f32 %v8879_v46, %v12937_v41 }
0x2361   :  { %v14668_v20 = vsub.f32 %v8869_v7, %v8889_v10 }
0x2363   :  { %v8897_v35 = vmul.f32 %v14668_v20, %v14668_v20 }
0x2365   :  { %v8901_v48 = vsel %vm161_vm1, %v8897_v35, 0.0 }
0x2366   :  { %v8882_v63 = vpop.xlane.xlu2 %8881  ;;  %8902 = vadd.xlane.f32.xlu2 %v8901_v48 }
0x2367   :  { %v8890_v29 = vmul.f32 %v8882_v63, %v12937_v41 }
0x2369   :  { %v14674_v56 = vsub.f32 %v8870_v58, %v8890_v29 }
0x236b   :  { %v8898_v50 = vmul.f32 %v14674_v56, %v14674_v56 }
0x236d   :  { %v8904_v47 = vsel %vm161_vm1, %v8898_v50, 0.0 }
0x236e   :  { %8905 = vadd.xlane.f32.xlu0 %v8904_v47  ;;  %v8885_v1 = vpop.xlane.xlu0 %8884 }
0x236f   :  { %v8891_v34 = vmul.f32 %v8885_v1, %v12937_v41 }
0x2371   :  { %v14680_v13 = vsub.f32 %v8871_v49, %v8891_v34 }
0x2373   :  { %v8899_v22 = vmul.f32 %v14680_v13, %v14680_v13 }
0x2375   :  { %v8907_v25 = vsel %vm161_vm1, %v8899_v22, 0.0 }
0x2376   :  { %v8888_v54 = vpop.xlane.xlu1 %8887  ;;  %8908 = vadd.xlane.f32.xlu1 %v8907_v25 }
0x2377   :  { %v8892_v44 = vmul.f32 %v8888_v54, %v12937_v41 }
0x2379   :  { %v14686_v23 = vsub.f32 %v8872_v27, %v8892_v44 }
0x237b   :  { %v8900_v8 = vmul.f32 %v14686_v23, %v14686_v23 }
0x237d   :  { %v8910_v36 = vsel %vm3570_vm10, %v8900_v8, 0.0 }
0x237e   :  { %8911 = vadd.xlane.f32.xlu2 %v8910_v36 }
0x23d9   :  { %v8903_v42 = vpop.xlane.xlu2 %8902 }
0x23da   :  { %v8913_v53 = vmul.f32 %v8903_v42, %v12937_v41 }
0x23dc   :  { %v8917_v60 = vadd.f32 1e-05, %v8913_v53 }
0x23de   :  { %11452 = vrsqrt.f32 %v8917_v60  ;;  %vm8927_vm3 = vweird.f32 %v8917_v60 }
0x23e1   :  { %v8906_v3 = vpop.xlane.xlu0 %8905 }
0x23e2   :  { %v8914_v0 = vmul.f32 %v8906_v3, %v12937_v41 }
0x23e4   :  { %v11453_v51 = vpop.eup %11452  ;;  %v8918_v24 = vadd.f32 1e-05, %v8914_v0 }
0x23e5   :  { %v8922_v19 = vmul.f32 %v11453_v51, %v8917_v60  ;;  %vm8928_vm10 = vweird.f32 %v11453_v51 }
0x23e6   :  { %11454 = vrsqrt.f32 %v8918_v24  ;;  %vm8937_vm4 = vweird.f32 %v8918_v24  ;;  %vm8929_vm0 = vmor %vm8927_vm3, %vm8928_vm10 }
0x23e7   :  { %v8923_v7 = vmul.f32 %v11453_v51, %v8922_v19 }
0x23e9   :  { %v8909_v28 = vpop.xlane.xlu1 %8908  ;;  %v8924_v2 = vmul.f32 0.5, %v8923_v7 }
0x23ea   :  { %v8915_v57 = vmul.f32 %v8909_v28, %v12937_v41 }
0x23eb   :  { %v8925_v26 = vsub.f32 1.5, %v8924_v2 }
0x23ec   :  { %v11455_v39 = vpop.eup %11454  ;;  %v8919_v14 = vadd.f32 1e-05, %v8915_v57 }
0x23ed   :  { %v8932_v4 = vmul.f32 %v11455_v39, %v8918_v24  ;;  %vm8938_vm1 = vweird.f32 %v11455_v39  ;;  %v8926_v38 = vmul.f32 %v11453_v51, %v8925_v26 }
0x23ee   :  { %11456 = vrsqrt.f32 %v8919_v14  ;;  %vm8939_vm8 = vmor %vm8937_vm4, %vm8938_vm1  ;;  %vm8947_vm13 = vweird.f32 %v8919_v14  ;;  %vm8999_vm1 = vcmask 61440  }
0x23ef   :  { %v8933_v30 = vmul.f32 %v11455_v39, %v8932_v4  ;;  %v8930_v21 = vsel %vm8929_vm0, %v11453_v51, %v8926_v38 }
0x23f0   :  { %v8961_v49 = vmul.f32 %v8930_v21, %v14668_v20 }
0x23f1   :  { %v8934_v15 = vmul.f32 0.5, %v8933_v30  ;;  %v8912_v32 = vpop.xlane.xlu2 %8911 }
0x23f2   :  { %v8916_v59 = vmul.f32 %v8912_v32, %v12937_v41  ;;  %v8968_v27 = vmul.f32 %v11168_v62, %v8961_v49 }
0x23f3   :  { %v8935_v18 = vsub.f32 1.5, %v8934_v15 }
0x23f4   :  { %v11457_v55 = vpop.eup %11456  ;;  %v8920_v58 = vadd.f32 1e-05, %v8916_v59  ;;  %v8975_v48 = vadd.f32 %v11169_v6, %v8968_v27 }
0x23f5   :  { %v8936_v9 = vmul.f32 %v11455_v39, %v8935_v18  ;;  %v8942_v43 = vmul.f32 %v11457_v55, %v8919_v14  ;;  %vm8948_vm12 = vweird.f32 %v11457_v55 }
0x23f6   :  { %11458 = vrsqrt.f32 %v8920_v58  ;;  %vm8949_vm14 = vmor %vm8947_vm13, %vm8948_vm12  ;;  %vm8957_vm5 = vweird.f32 %v8920_v58  ;;  %v8980_v1 = vrot.slane %v8975_v48, 5 }
0x23f7   :  { %v8943_v17 = vmul.f32 %v11457_v55, %v8942_v43  ;;  %v8940_v5 = vsel %vm8939_vm8, %v11455_v39, %v8936_v9 }
0x23f8   :  { %v8962_v33 = vmul.f32 %v8940_v5, %v14674_v56 }
0x23f9   :  { %v8944_v61 = vmul.f32 0.5, %v8943_v17 }
0x23fa   :  { %v8969_v11 = vmul.f32 %v11168_v62, %v8962_v33 }
0x23fb   :  { %v8945_v41 = vsub.f32 1.5, %v8944_v61 }
0x23fc   :  { %v11459_v16 = vpop.eup %11458  ;;  %v8976_v10 = vadd.f32 %v11169_v6, %v8969_v11 }
0x23fd   :  { %v8946_v12 = vmul.f32 %v11457_v55, %v8945_v41  ;;  %v8952_v37 = vmul.f32 %v11459_v16, %v8920_v58  ;;  %vm8958_vm15 = vweird.f32 %v11459_v16 }
0x23fe   :  { %vm8959_vm6 = vmor %vm8957_vm5, %vm8958_vm15  ;;  %v8983_v29 = vrot.slane %v8976_v10, 2 }
0x23ff   :  { %v8950_v40 = vsel %vm8949_vm14, %v11457_v55, %v8946_v12  ;;  %v8953_v31 = vmul.f32 %v11459_v16, %v8952_v37 }
0x2400   :  { %v8963_v52 = vmul.f32 %v8950_v40, %v14680_v13  ;;  %v8994_v22 = vsel %vm8993_vm7, %v8980_v1, %v8983_v29 }
0x2401   :  { %v8954_v45 = vmul.f32 0.5, %v8953_v31 }
0x2402   :  { %v8970_v46 = vmul.f32 %v11168_v62, %v8963_v52 }
0x2403   :  { %v8955_v35 = vsub.f32 1.5, %v8954_v45 }
0x2404   :  { %v8977_v20 = vadd.f32 %v11169_v6, %v8970_v46 }
0x2405   :  { %v8956_v63 = vmul.f32 %v11459_v16, %v8955_v35 }
0x2406   :  { %v8986_v47 = vrot.slane %v8977_v20, 7  ;;  %v8988_v13 = vrot.slane %v8977_v20, 4 }
0x2407   :  { %v8960_v56 = vsel %vm8959_vm6, %v11459_v16, %v8956_v63 }
0x2408   :  { %v8964_v50 = vmul.f32 %v8960_v56, %v14686_v23  ;;  %v8995_v54 = vsel %vm2608_vm9, %v8994_v22, %v8986_v47 }
0x2409   :  { %v8997_v8 = vsel %vm8996_vm11, %v8995_v54, %v8988_v13 }
0x240a   :  { %v8971_v34 = vmul.f32 %v11168_v62, %v8964_v50 }
0x240c   :  { %v8978_v25 = vadd.f32 %v11169_v6, %v8971_v34 }
0x240e   :  { %v8991_v44 = vrot.slane %v8978_v25, 1 }
0x2410   :  { %v8998_v23 = vsel %vm134_vm2, %v8997_v8, %v8991_v44 }
0x2411   :  { %9000 = vst.msk [vmem:[#allocation4] sm:$0x1f] %vm8999_vm1, %v8998_v23 }
0x2412   :  { %9024 = dma.vmem_to_hbm [thread:$0]  %s9020_s3, 128, %s9022_s28, [#allocation5]  }
0x2413   :  { %11548 = dma.done.wait [#allocation3], 256  }
0x2414   :  { %11549 = vsyncadd [#allocation3], 4294967040 }
0x2415   :  { %11550 = dma.done.wait [#allocation5], 128  }
0x2416   :  { %11551 = vsyncadd [#allocation5], 4294967168 }
0x2417   :  { %9033 = vsyncpa [#allocation3], 1 }
0x2418   :  { %9034 = vsyncpa [#allocation5], 1 }

</bundles_post_ra>
